<compile_context>
chip_gen: v6e
topology: v6e:2x2x1
jax: 0.10.0
libtpu: 0.0.40
codegen_flags: <defaults>
</compile_context>

<pallas_src>
import functools

import jax
import jax.numpy as jnp
from jax import lax
from jax.experimental import pallas as pl
from jax.experimental.pallas import tpu as pltpu

_LANE = 128              # channel lane-padding multiple
_TARGET_TILE_ROWS = 512  # target matmul M rows per tile (review: 512 fits v7x VMEM,
                         # fills the 256-tall MXU M dim on v6e/v7x)
_EPS = 1e-5              # BatchNorm2d default
_NEG = 0.1               # LeakyReLU slope


# ----------------------------------------------------------------------------- utils
def _round_up(x, m):
    return (x + m - 1) // m * m


def _row_tile(ho, wo):
    """Largest output-row tile that divides Ho and targets ~_TARGET_TILE_ROWS rows."""
    th = max(1, min(ho, _TARGET_TILE_ROWS // max(wo, 1)))
    while ho % th:
        th -= 1
    if (th * wo) % 8 and th != ho:   # keep block sublane dim legal
        th = ho
    return th


def _cparams(dim_sem=None, vmem_bytes=0):
    kwargs = {}
    if dim_sem is not None:
        kwargs["dimension_semantics"] = dim_sem
    # Only raise the scoped-VMEM limit when a layer actually needs more than the
    # conservative default; cap below the smallest-generation (v7x) physical VMEM.
    if vmem_bytes > 24 * 1024 * 1024:
        kwargs["vmem_limit_bytes"] = int(min(2 * vmem_bytes, 60 * 1024 * 1024))
    return pltpu.CompilerParams(**kwargs)


# ------------------------------------------------ direct (im2col-free) conv, pass 1
def _make_pass1_kernel(taps, kw, th, wo, ci, co, use_bn):
    merge_ok = (wo % 8 == 0) or th == 1

    def kernel(*refs):
        if use_bn:
            x_ref, w_ref, y_ref, st_ref, acc_ref = refs
        else:
            x_ref, w_ref, b_ref, y_ref, acc_ref = refs
        r = pl.program_id(1)
        row0 = r * th
        acc_ref[...] = jnp.zeros_like(acc_ref)
        for t in range(taps):                       # static loop over kh*kw taps
            ki, kj = divmod(t, kw)
            if merge_ok:
                win = x_ref[0, pl.ds(row0 + ki, th), kj:kj + wo, :]   # (th, wo, ci)
                # Merge (th, wo) -> rows via an f32-layout reshape (sublane merge is
                # aligned for wo % 8 == 0), then back to bf16 for the MXU operands.
                lhs = win.astype(jnp.float32).reshape(th * wo, ci)
                acc_ref[...] += jnp.dot(lhs.astype(jnp.bfloat16), w_ref[t],
                                        preferred_element_type=jnp.float32)
            else:                                   # rare fallback: per-row matmuls
                for hh in range(th):
                    row = x_ref[0, row0 + ki + hh, kj:kj + wo, :]     # (wo, ci)
                    acc_ref[hh * wo:(hh + 1) * wo, :] += jnp.dot(
                        row, w_ref[t], preferred_element_type=jnp.float32)
        y = acc_ref[...]
        if use_bn:
            # Per-tile partial stats -> disjoint output blocks, so the grid stays
            # fully "parallel" (both v7x TensorCores run the matmul pass).
            st_ref[0, 0, 0:1, :] = jnp.sum(y, axis=0, keepdims=True)
            st_ref[0, 0, 1:2, :] = jnp.sum(y * y, axis=0, keepdims=True)
        else:
            y = y + b_ref[...]                      # prediction head bias
        y_ref[0, :, :] = y.astype(y_ref.dtype)

    return kernel


def _direct_pass1(x, wtaps, ksize, padding, *, use_bn, bias=None,
                  y_dtype=jnp.bfloat16):
    """Direct conv: grid (N, row-tiles); each step runs kh*kw shifted MXU matmuls
    from the VMEM-resident padded image, writing a lane-dense y tile (+BN stats)."""
    n, h, w, ci = x.shape
    kh, kw = ksize
    taps = kh * kw
    co = wtaps.shape[-1]
    ho = h + 2 * padding - kh + 1
    wo = w + 2 * padding - kw + 1
    if padding:
        # Border-only spatial pad (~1x activation), NOT the 9x im2col expansion.
        x = jnp.pad(x, ((0, 0), (padding, padding), (padding, padding), (0, 0)))
    hp, wp = h + 2 * padding, w + 2 * padding
    th = _row_tile(ho, wo)
    rt = ho // th

    kernel = _make_pass1_kernel(taps, kw, th, wo, ci, co, use_bn)

    y_spec = pl.BlockSpec((1, th * wo, co), lambda i, r: (i, r, 0))
    # TODO(synk): for large images, switch the x spec to halo row-blocks instead of
    # the whole padded image per batch element.
    in_specs = [pl.BlockSpec((1, hp, wp, ci), lambda i, r: (i, 0, 0, 0)),
                pl.BlockSpec((taps, ci, co), lambda i, r: (0, 0, 0))]
    args = [x, wtaps]
    if use_bn:
        out_shape = (jax.ShapeDtypeStruct((n, ho * wo, co), y_dtype),
                     jax.ShapeDtypeStruct((n, rt, 2, co), jnp.float32))
        out_specs = (y_spec,
                     pl.BlockSpec((1, 1, 2, co), lambda i, r: (i, r, 0, 0)))
    else:
        in_specs.append(pl.BlockSpec((1, co), lambda i, r: (0, 0)))
        args.append(bias)
        out_shape = jax.ShapeDtypeStruct((n, ho * wo, co), y_dtype)
        out_specs = y_spec

    ybytes = 2 if y_dtype == jnp.bfloat16 else 4
    vmem = (2 * hp * wp * ci * 2 + taps * ci * co * 2
            + 2 * th * wo * co * ybytes + th * wo * co * 4)

    outs = pl.pallas_call(
        kernel,
        out_shape=out_shape,
        grid=(n, rt),
        in_specs=in_specs,
        out_specs=out_specs,
        scratch_shapes=[pltpu.VMEM((th * wo, co), jnp.float32)],
        compiler_params=_cparams(("parallel", "parallel"), vmem),
    )(*args)

    if use_bn:
        y, stats = outs
        return y, stats, (ho, wo, th)
    return outs, None, (ho, wo, th)


# ------------------------------------------------------------ BN stats -> scale/shift
def _bn_scale_shift(stats, gamma, beta, count):
    s = jnp.sum(stats, axis=(0, 1))                  # (2, C) — tiny, stays in XLA
    inv = 1.0 / float(count)
    mean = s[0:1] * inv
    var = jnp.maximum(s[1:2] * inv - mean * mean, 0.0)
    # TODO(synk): E[y^2]-mean^2 can cancel in f32 for very large N*H*W with large
    # channel means; switch to shifted/compensated accumulation for big inputs.
    scale = gamma * lax.rsqrt(var + _EPS)
    shift = beta - mean * scale
    return scale, shift


# --------------------------------------------------- pass 2: normalize + act + residual
def _make_pass2_kernel(use_act, use_res):
    def kernel(*refs):
        if use_res:
            y_ref, sc_ref, sh_ref, r_ref, o_ref = refs
        else:
            y_ref, sc_ref, sh_ref, o_ref = refs
        o = y_ref[...].astype(jnp.float32) * sc_ref[...] + sh_ref[...]
        if use_act:
            o = jnp.where(o > 0, o, _NEG * o)        # LeakyReLU(0.1)
        if use_res:
            o = o + r_ref[...].astype(jnp.float32)   # residual add in f32
        o_ref[...] = o.astype(o_ref.dtype)           # bf16 activation out
    return kernel


def _apply_pass2(y, scale, shift, residual, *, use_act, tile_rows):
    n, hw, co = y.shape
    rt = hw // tile_rows
    blk = pl.BlockSpec((1, tile_rows, co), lambda i, r: (i, r, 0))
    vec = pl.BlockSpec((1, co), lambda i, r: (0, 0))
    in_specs = [blk, vec, vec]
    args = [y, scale, shift]
    if residual is not None:
        in_specs.append(blk)
        args.append(residual)
    vmem = (6 + (2 if residual is not None else 0)) * tile_rows * co * 2
    return pl.pallas_call(
        _make_pass2_kernel(use_act, residual is not None),
        out_shape=jax.ShapeDtypeStruct((n, hw, co), jnp.bfloat16),
        grid=(n, rt),
        in_specs=in_specs,
        out_specs=blk,
        compiler_params=_cparams(("parallel", "parallel"), vmem),
    )(*args)


# -------------------------------------------- strided-conv fallback (im2col in XLA)
def _im2col(x, cin, kh, kw, stride, padding):
    n, h, w, _ = x.shape
    xr = x[..., :cin]                   # pack real channels (no per-tap 128-pad)
    xp = jnp.pad(xr, ((0, 0), (padding, padding), (padding, padding), (0, 0)))
    ho = (h + 2 * padding - kh) // stride + 1
    wo = (w + 2 * padding - kw) // stride + 1
    cols = [xp[:, i:i + stride * ho:stride, j:j + stride * wo:stride, :]
            for i in range(kh) for j in range(kw)]
    patches = jnp.concatenate(cols, axis=-1).reshape(n * ho * wo, kh * kw * cin)
    return patches, ho, wo


def _make_fused_bn_kernel(m_true):
    inv = 1.0 / float(m_true)

    def kernel(p_ref, w_ref, g_ref, b_ref, o_ref):
        y = jnp.dot(p_ref[...], w_ref[...], preferred_element_type=jnp.float32)
        ssum = jnp.sum(y, axis=0, keepdims=True)
        ssq = jnp.sum(y * y, axis=0, keepdims=True)
        mean = ssum * inv
        var = jnp.maximum(ssq * inv - mean * mean, 0.0)
        scale = g_ref[...] * lax.rsqrt(var + _EPS)
        shift = b_ref[...] - mean * scale
        y = y * scale + shift
        y = jnp.where(y > 0, y, _NEG * y)
        o_ref[...] = y.astype(o_ref.dtype)

    return kernel


def _strided_conv_block(x, p, *, stride, padding):
    # TODO(synk): strided convs still gather patches in XLA (only the single
    # downsampling layer here); move the strided gather in-kernel for production.
    kh, kw = p["ksize"]
    cin = p["cin"]
    kp, co = p["wmat"].shape
    n = x.shape[0]
    patches, ho, wo = _im2col(x, cin, kh, kw, stride, padding)
    m = n * ho * wo
    kr = kh * kw * cin
    if kr < kp:
        patches = jnp.pad(patches, ((0, 0), (0, kp - kr)))
    mp = _round_up(m, 8)
    if mp > m:
        patches = jnp.pad(patches, ((0, mp - m), (0, 0)))
    out = pl.pallas_call(
        _make_fused_bn_kernel(m),
        out_shape=jax.ShapeDtypeStruct((mp, co), jnp.bfloat16),
        in_specs=[pl.BlockSpec(memory_space=pltpu.MemorySpace.VMEM)] * 4,
        out_specs=pl.BlockSpec(memory_space=pltpu.MemorySpace.VMEM),
    )(patches, p["wmat"], p["gamma"], p["beta"])
    if mp > m:
        out = out[:m]
    return out.reshape(n, ho, wo, co)


# ------------------------------------------------------------------------ layer blocks
def _direct_conv_block(x, p, *, padding, residual=None):
    n = x.shape[0]
    co = p["wtaps"].shape[-1]
    y, stats, (ho, wo, th) = _direct_pass1(x, p["wtaps"], p["ksize"], padding,
                                           use_bn=True)
    scale, shift = _bn_scale_shift(stats, p["gamma"], p["beta"], n * ho * wo)
    res = residual.reshape(n, ho * wo, co) if residual is not None else None
    # TODO(synk): fuse this normalize/act/residual pass into the consumer's pass-1
    # tile load to save one full activation read+write per interior ConvBlock.
    o = _apply_pass2(y, scale, shift, res, use_act=True, tile_rows=th * wo)
    return o.reshape(n, ho, wo, co)


def conv_block(x, p, *, stride, padding, residual=None):
    """ConvBlock = Conv2d(no bias) + BatchNorm2d(batch stats) + LeakyReLU(0.1)."""
    if p["mode"] == "direct":
        return _direct_conv_block(x, p, padding=padding, residual=residual)
    assert residual is None
    return _strided_conv_block(x, p, stride=stride, padding=padding)


def residual_block(x, pairs, *, use_residual):
    """num_repeat x [ConvBlock(c, c/2, 1x1) -> ConvBlock(c/2, c, 3x3)] (+ skip)."""
    for p1, p2 in pairs:
        h = conv_block(x, p1, stride=1, padding=0)
        x = conv_block(h, p2, stride=1, padding=1,
                       residual=x if use_residual else None)
    return x


def scale_prediction(x, p, num_classes):
    """ConvBlock(c, 2c, 3x3) -> Conv2d(2c, 3*(nc+5), 1x1, bias) -> (N,3,H,W,nc+5)."""
    h = conv_block(x, p["conv"], stride=1, padding=1)
    n = h.shape[0]
    y, _, (ho, wo, _) = _direct_pass1(h, p["pred_w"], (1, 1), 0,
                                      use_bn=False, bias=p["pred_b"],
                                      y_dtype=jnp.float32)
    cout = 3 * (num_classes + 5)
    y = y[:, :, :cout]                     # drop lane padding (final output only)
    y = y.reshape(n, ho, wo, 3, num_classes + 5)
    return jnp.transpose(y, (0, 3, 1, 2, 4))          # (N, 3, H, W, nc+5)


# ------------------------------------------------------------------------ param init
def _prep_conv(w, gamma, beta, stride):
    """Pad + prepack conv weights; layout depends on direct vs strided path."""
    kh, kw, cin, cout = w.shape
    cpo = _round_up(cout, _LANE)
    g = jnp.zeros((1, cpo), jnp.float32).at[0, :cout].set(gamma)
    b = jnp.zeros((1, cpo), jnp.float32).at[0, :cout].set(beta)
    if stride == 1:        # direct path: per-tap (Ci_pad, Co_pad) matrices
        cpi = _round_up(cin, _LANE)
        wt = (jnp.zeros((kh * kw, cpi, cpo), jnp.float32)
              .at[:, :cin, :cout].set(w.reshape(kh * kw, cin, cout)))
        return {"mode": "direct", "wtaps": wt.astype(jnp.bfloat16),
                "gamma": g, "beta": b, "ksize": (kh, kw), "cin": cin}
    kp = _round_up(kh * kw * cin, _LANE)   # im2col path: packed-K matmul matrix
    wm = (jnp.zeros((kp, cpo), jnp.float32)
          .at[:kh * kw * cin, :cout].set(w.reshape(kh * kw * cin, cout)))
    return {"mode": "im2col", "wmat": wm.astype(jnp.bfloat16),
            "gamma": g, "beta": b, "ksize": (kh, kw), "cin": cin}


def _init_conv_params(key, cin, cout, kernel, stride):
    key, k1 = jax.random.split(key)
    w = jax.random.normal(k1, (kernel, kernel, cin, cout), jnp.float32) * 0.05
    return key, _prep_conv(w, jnp.ones((cout,), jnp.float32),   # BatchNorm2d defaults
                           jnp.zeros((cout,), jnp.float32), stride)


def _init_residual_params(key, channels, num_repeat):
    pairs = []
    for _ in range(num_repeat):
        key, p1 = _init_conv_params(key, channels, channels // 2, 1, 1)
        key, p2 = _init_conv_params(key, channels // 2, channels, 3, 1)
        pairs.append((p1, p2))
    return key, pairs


def _init_scale_pred_params(key, cin, num_classes):
    key, conv = _init_conv_params(key, cin, 2 * cin, 3, 1)
    cout = 3 * (num_classes + 5)
    cpi, cpo = _round_up(2 * cin, _LANE), _round_up(cout, _LANE)
    key, k1, k2 = jax.random.split(key, 3)
    pred_w = jax.random.normal(k1, (2 * cin, cout), jnp.float32) * 0.05
    pred_b = jax.random.normal(k2, (cout,), jnp.float32) * 0.05
    wt = (jnp.zeros((1, cpi, cpo), jnp.float32)
          .at[0, :2 * cin, :cout].set(pred_w)).astype(jnp.bfloat16)
    bias = jnp.zeros((1, cpo), jnp.float32).at[0, :cout].set(pred_b)
    return key, {"conv": conv, "pred_w": wt, "pred_b": bias}


# ------------------------------------------------------ MultiLayerCreator (layer_creator)
def build_layers(config, in_channel, num_classes, key):
    layers = []
    for conf in config:
        if isinstance(conf, list):
            out_c, kernel, sp = conf
            key, p = _init_conv_params(key, in_channel, out_c, kernel, sp)
            layers.append(("conv", {"params": p, "stride": sp,
                                    "padding": 1 if kernel == 3 else 0}))
            in_channel = out_c
        elif isinstance(conf, tuple):
            types, t = conf
            if types == "B":
                key, pairs = _init_residual_params(key, in_channel, t)
                layers.append(("res", {"pairs": pairs, "use_residual": True,
                                       "num_repeat": t}))
            elif types == "M":
                for _ in range(t):
                    key, pairs = _init_residual_params(key, in_channel, t)
                    layers.append(("res", {"pairs": pairs, "use_residual": True,
                                           "num_repeat": t}))
            elif types == "S":
                key, pairs = _init_residual_params(key, in_channel, 1)
                layers.append(("res", {"pairs": pairs, "use_residual": False,
                                       "num_repeat": 1}))
                key, pc = _init_conv_params(key, in_channel, in_channel // 2, 1, 1)
                layers.append(("conv", {"params": pc, "stride": 1, "padding": 0}))
                key, ps = _init_scale_pred_params(key, in_channel // 2, num_classes)
                layers.append(("scale", {"params": ps}))
                in_channel //= 2
        elif isinstance(conf, str):
            if conf == "S":
                key, pairs = _init_residual_params(key, in_channel, 1)
                layers.append(("res", {"pairs": pairs, "use_residual": False,
                                       "num_repeat": 1}))
                key, pc = _init_conv_params(key, in_channel, in_channel // 2, 1, 1)
                layers.append(("conv", {"params": pc, "stride": 1, "padding": 0}))
                key, ps = _init_scale_pred_params(key, in_channel // 2, num_classes)
                layers.append(("scale", {"params": ps}))
                in_channel //= 2
            elif conf == "U":
                layers.append(("upsample", {}))   # nn.Upsample(scale_factor=1) == identity
                in_channel *= 9                   # mirrors the reference bookkeeping
            # TODO(synk): 'O'/'P' branches use NeuronBlock/PredictionNeurons which are
            # undefined in the source module (non-integer channel count); not built here.
    return layers


# --------------------------------------------------------------- MultiLayerCreator.forward
def multilayer_forward(x_nchw, layers, num_classes):
    x = jnp.transpose(x_nchw, (0, 2, 3, 1))               # NCHW -> NHWC
    c = x.shape[-1]
    x = jnp.pad(x, ((0, 0), (0, 0), (0, 0),               # lane-pad channels ONCE
                    (0, _round_up(c, _LANE) - c))).astype(jnp.bfloat16)
    output = []
    route_connections = []
    for kind, info in layers:
        if kind == "scale":
            output.append(scale_prediction(x, info["params"], num_classes))
            continue
        if kind == "conv":
            x = conv_block(x, info["params"], stride=info["stride"],
                           padding=info["padding"])
        elif kind == "res":
            x = residual_block(x, info["pairs"], use_residual=info["use_residual"])
        elif kind == "upsample":
            x = x                                          # scale_factor=1 -> identity
        if kind == "res" and info["num_repeat"] == 2:
            route_connections.append(x)
        elif kind == "upsample":
            # TODO(synk): concat of lane-padded activations interleaves pad channels;
            # nothing consumes x after 'U' in this config (matching the reference).
            x = jnp.concatenate((x, route_connections[-1]), axis=-1)  # torch dim=1
            route_connections.pop()
    return output


# ----------------------------------------------------------------------------- main
# config exercising every forward branch used with this module:
#   stride-1 ConvBlock (direct in-kernel conv, grid over (N, row-tiles)),
#   strided ConvBlock (packed-K im2col fallback, fused BN kernel),
#   ResidualBlock(num_repeat=2) route push, 'S' (non-residual block + 1x1 ConvBlock
#   + ScalePrediction head), 'U' (identity upsample + channel concat).
CONFIG = [
    [8, 3, 1],     # 3  -> 8,  16x16   (direct conv, two-pass BN, grid (2, 1))
    [16, 3, 2],    # 8  -> 16,  8x8    (strided fallback, single fused kernel)
    ("B", 2),      # residual x2, route connection appended
    "S",           # -> ScalePrediction output; x becomes 8ch @ 8x8
    "U",           # identity upsample + concat with route
]

if __name__ == "__main__":
    num_classes = 2
    N, C, H, W = 2, 3, 16, 16

    key = jax.random.PRNGKey(0)
    xkey, wkey = jax.random.split(key)
    x = jax.random.normal(xkey, (N, C, H, W), jnp.float32)   # NCHW like PyTorch

    layers = build_layers(CONFIG, in_channel=C, num_classes=num_classes, key=wkey)

    fwd = jax.jit(functools.partial(multilayer_forward, layers=layers,
                                    num_classes=num_classes))
    outputs = fwd(x)
    for o in outputs:
        jax.block_until_ready(o)

    assert len(outputs) == 1
    assert outputs[0].shape == (N, 3, H // 2, W // 2, num_classes + 5)
    assert bool(jnp.all(jnp.isfinite(outputs[0])))
    print("KERNEL_OK")
</pallas_src>

<mosaic_0001>
module attributes {stable_mosaic.version = 11 : i64} {
  func.func @kernel(%arg0: i32, %arg1: i32, %arg2: memref<1x18x18x128xbf16, #tpu.memory_space<vmem>>, %arg3: memref<9x128x128xbf16, #tpu.memory_space<vmem>>, %arg4: memref<1x256x128xbf16, #tpu.memory_space<vmem>>, %arg5: memref<1x1x2x128xf32, #tpu.memory_space<vmem>>, %arg6: memref<256x128xf32, #tpu.memory_space<vmem>>) attributes {dimension_semantics = [#tpu.dimension_semantics<parallel>, #tpu.dimension_semantics<parallel>], iteration_bounds = array<i64: 2, 1>, scalar_prefetch = 0 : i64, scratch_operands = 1 : i64, tpu.core_type = #tpu.core_type<tc>, window_params = [{transform_indices = @transform_0, window_bounds = array<i64: 1, 18, 18, 128>}, {pipeline_mode = #tpu.pipeline_mode<synchronous>, transform_indices = @transform_1, window_bounds = array<i64: 9, 128, 128>}, {transform_indices = @transform_2, window_bounds = array<i64: 1, 256, 128>}, {transform_indices = @transform_3, window_bounds = array<i64: 1, 1, 2, 128>}]} {
    %c16_i32 = arith.constant 16 : i32
    %0 = arith.muli %arg1, %c16_i32 : i32
    %cst = arith.constant 0.000000e+00 : f32
    %1 = vector.broadcast %cst : f32 to vector<256x128xf32>
    %c0 = arith.constant 0 : index
    %c0_0 = arith.constant 0 : index
    %2 = vector.load %arg6[%c0, %c0_0] : memref<256x128xf32, #tpu.memory_space<vmem>>, vector<256x128xf32>
    tpu.vector_store %arg6[%c0, %c0_0], %1 {strides = array<i32>} : memref<256x128xf32, #tpu.memory_space<vmem>>, vector<256x128xf32>,
    %c0_i32 = arith.constant 0 : i32
    %3 = arith.addi %0, %c0_i32 : i32
    %c0_1 = arith.constant 0 : index
    %4 = arith.index_cast %3 : i32 to index
    %c0_2 = arith.constant 0 : index
    %c0_3 = arith.constant 0 : index
    %5 = vector.load %arg2[%c0_1, %4, %c0_2, %c0_3] : memref<1x18x18x128xbf16, #tpu.memory_space<vmem>>, vector<1x16x16x128xbf16>
    %6 = vector.shape_cast %5 : vector<1x16x16x128xbf16> to vector<16x16x128xbf16>
    %7 = arith.extf %6 : vector<16x16x128xbf16> to vector<16x16x128xf32>
    %8 = vector.shape_cast %7 : vector<16x16x128xf32> to vector<256x128xf32>
    %c0_4 = arith.constant 0 : index
    %c0_5 = arith.constant 0 : index
    %9 = vector.load %arg6[%c0_4, %c0_5] : memref<256x128xf32, #tpu.memory_space<vmem>>, vector<256x128xf32>
    %10 = arith.truncf %8 : vector<256x128xf32> to vector<256x128xbf16>
    %c0_6 = arith.constant 0 : index
    %c0_7 = arith.constant 0 : index
    %c0_8 = arith.constant 0 : index
    %11 = vector.load %arg3[%c0_6, %c0_7, %c0_8] : memref<9x128x128xbf16, #tpu.memory_space<vmem>>, vector<1x128x128xbf16>
    %12 = vector.shape_cast %11 : vector<1x128x128xbf16> to vector<128x128xbf16>
    %cst_9 = arith.constant dense<0.000000e+00> : vector<256x128xf32>
    %13 = tpu.matmul %10, %12, %cst_9 {dimension_numbers = #tpu.dot_dimension_numbers<[1], [0], [0], [1], [0, 0, 1, 1], [], []>} : vector<256x128xbf16>, vector<128x128xbf16>, vector<256x128xf32> -> vector<256x128xf32>
    %14 = arith.addf %9, %13 : vector<256x128xf32>
    %c0_10 = arith.constant 0 : index
    %c0_11 = arith.constant 0 : index
    %15 = vector.load %arg6[%c0_10, %c0_11] : memref<256x128xf32, #tpu.memory_space<vmem>>, vector<256x128xf32>
    tpu.vector_store %arg6[%c0_10, %c0_11], %14 {strides = array<i32>} : memref<256x128xf32, #tpu.memory_space<vmem>>, vector<256x128xf32>,
    %c0_i32_12 = arith.constant 0 : i32
    %16 = arith.addi %0, %c0_i32_12 : i32
    %c0_13 = arith.constant 0 : index
    %17 = arith.index_cast %16 : i32 to index
    %c1 = arith.constant 1 : index
    %c0_14 = arith.constant 0 : index
    %18 = vector.load %arg2[%c0_13, %17, %c1, %c0_14] : memref<1x18x18x128xbf16, #tpu.memory_space<vmem>>, vector<1x16x16x128xbf16>
    %19 = vector.shape_cast %18 : vector<1x16x16x128xbf16> to vector<16x16x128xbf16>
    %20 = arith.extf %19 : vector<16x16x128xbf16> to vector<16x16x128xf32>
    %21 = vector.shape_cast %20 : vector<16x16x128xf32> to vector<256x128xf32>
    %c0_15 = arith.constant 0 : index
    %c0_16 = arith.constant 0 : index
    %22 = vector.load %arg6[%c0_15, %c0_16] : memref<256x128xf32, #tpu.memory_space<vmem>>, vector<256x128xf32>
    %23 = arith.truncf %21 : vector<256x128xf32> to vector<256x128xbf16>
    %c1_17 = arith.constant 1 : index
    %c0_18 = arith.constant 0 : index
    %c0_19 = arith.constant 0 : index
    %24 = vector.load %arg3[%c1_17, %c0_18, %c0_19] : memref<9x128x128xbf16, #tpu.memory_space<vmem>>, vector<1x128x128xbf16>
    %25 = vector.shape_cast %24 : vector<1x128x128xbf16> to vector<128x128xbf16>
    %cst_20 = arith.constant dense<0.000000e+00> : vector<256x128xf32>
    %26 = tpu.matmul %23, %25, %cst_20 {dimension_numbers = #tpu.dot_dimension_numbers<[1], [0], [0], [1], [0, 0, 1, 1], [], []>} : vector<256x128xbf16>, vector<128x128xbf16>, vector<256x128xf32> -> vector<256x128xf32>
    %27 = arith.addf %22, %26 : vector<256x128xf32>
    %c0_21 = arith.constant 0 : index
    %c0_22 = arith.constant 0 : index
    %28 = vector.load %arg6[%c0_21, %c0_22] : memref<256x128xf32, #tpu.memory_space<vmem>>, vector<256x128xf32>
    tpu.vector_store %arg6[%c0_21, %c0_22], %27 {strides = array<i32>} : memref<256x128xf32, #tpu.memory_space<vmem>>, vector<256x128xf32>,
    %c0_i32_23 = arith.constant 0 : i32
    %29 = arith.addi %0, %c0_i32_23 : i32
    %c0_24 = arith.constant 0 : index
    %30 = arith.index_cast %29 : i32 to index
    %c2 = arith.constant 2 : index
    %c0_25 = arith.constant 0 : index
    %31 = vector.load %arg2[%c0_24, %30, %c2, %c0_25] : memref<1x18x18x128xbf16, #tpu.memory_space<vmem>>, vector<1x16x16x128xbf16>
    %32 = vector.shape_cast %31 : vector<1x16x16x128xbf16> to vector<16x16x128xbf16>
    %33 = arith.extf %32 : vector<16x16x128xbf16> to vector<16x16x128xf32>
    %34 = vector.shape_cast %33 : vector<16x16x128xf32> to vector<256x128xf32>
    %c0_26 = arith.constant 0 : index
    %c0_27 = arith.constant 0 : index
    %35 = vector.load %arg6[%c0_26, %c0_27] : memref<256x128xf32, #tpu.memory_space<vmem>>, vector<256x128xf32>
    %36 = arith.truncf %34 : vector<256x128xf32> to vector<256x128xbf16>
    %c2_28 = arith.constant 2 : index
    %c0_29 = arith.constant 0 : index
    %c0_30 = arith.constant 0 : index
    %37 = vector.load %arg3[%c2_28, %c0_29, %c0_30] : memref<9x128x128xbf16, #tpu.memory_space<vmem>>, vector<1x128x128xbf16>
    %38 = vector.shape_cast %37 : vector<1x128x128xbf16> to vector<128x128xbf16>
    %cst_31 = arith.constant dense<0.000000e+00> : vector<256x128xf32>
    %39 = tpu.matmul %36, %38, %cst_31 {dimension_numbers = #tpu.dot_dimension_numbers<[1], [0], [0], [1], [0, 0, 1, 1], [], []>} : vector<256x128xbf16>, vector<128x128xbf16>, vector<256x128xf32> -> vector<256x128xf32>
    %40 = arith.addf %35, %39 : vector<256x128xf32>
    %c0_32 = arith.constant 0 : index
    %c0_33 = arith.constant 0 : index
    %41 = vector.load %arg6[%c0_32, %c0_33] : memref<256x128xf32, #tpu.memory_space<vmem>>, vector<256x128xf32>
    tpu.vector_store %arg6[%c0_32, %c0_33], %40 {strides = array<i32>} : memref<256x128xf32, #tpu.memory_space<vmem>>, vector<256x128xf32>,
    %c1_i32 = arith.constant 1 : i32
    %42 = arith.addi %0, %c1_i32 : i32
    %c0_34 = arith.constant 0 : index
    %43 = arith.index_cast %42 : i32 to index
    %c0_35 = arith.constant 0 : index
    %c0_36 = arith.constant 0 : index
    %44 = vector.load %arg2[%c0_34, %43, %c0_35, %c0_36] : memref<1x18x18x128xbf16, #tpu.memory_space<vmem>>, vector<1x16x16x128xbf16>
    %45 = vector.shape_cast %44 : vector<1x16x16x128xbf16> to vector<16x16x128xbf16>
    %46 = arith.extf %45 : vector<16x16x128xbf16> to vector<16x16x128xf32>
    %47 = vector.shape_cast %46 : vector<16x16x128xf32> to vector<256x128xf32>
    %c0_37 = arith.constant 0 : index
    %c0_38 = arith.constant 0 : index
    %48 = vector.load %arg6[%c0_37, %c0_38] : memref<256x128xf32, #tpu.memory_space<vmem>>, vector<256x128xf32>
    %49 = arith.truncf %47 : vector<256x128xf32> to vector<256x128xbf16>
    %c3 = arith.constant 3 : index
    %c0_39 = arith.constant 0 : index
    %c0_40 = arith.constant 0 : index
    %50 = vector.load %arg3[%c3, %c0_39, %c0_40] : memref<9x128x128xbf16, #tpu.memory_space<vmem>>, vector<1x128x128xbf16>
    %51 = vector.shape_cast %50 : vector<1x128x128xbf16> to vector<128x128xbf16>
    %cst_41 = arith.constant dense<0.000000e+00> : vector<256x128xf32>
    %52 = tpu.matmul %49, %51, %cst_41 {dimension_numbers = #tpu.dot_dimension_numbers<[1], [0], [0], [1], [0, 0, 1, 1], [], []>} : vector<256x128xbf16>, vector<128x128xbf16>, vector<256x128xf32> -> vector<256x128xf32>
    %53 = arith.addf %48, %52 : vector<256x128xf32>
    %c0_42 = arith.constant 0 : index
    %c0_43 = arith.constant 0 : index
    %54 = vector.load %arg6[%c0_42, %c0_43] : memref<256x128xf32, #tpu.memory_space<vmem>>, vector<256x128xf32>
    tpu.vector_store %arg6[%c0_42, %c0_43], %53 {strides = array<i32>} : memref<256x128xf32, #tpu.memory_space<vmem>>, vector<256x128xf32>,
    %c1_i32_44 = arith.constant 1 : i32
    %55 = arith.addi %0, %c1_i32_44 : i32
    %c0_45 = arith.constant 0 : index
    %56 = arith.index_cast %55 : i32 to index
    %c1_46 = arith.constant 1 : index
    %c0_47 = arith.constant 0 : index
    %57 = vector.load %arg2[%c0_45, %56, %c1_46, %c0_47] : memref<1x18x18x128xbf16, #tpu.memory_space<vmem>>, vector<1x16x16x128xbf16>
    %58 = vector.shape_cast %57 : vector<1x16x16x128xbf16> to vector<16x16x128xbf16>
    %59 = arith.extf %58 : vector<16x16x128xbf16> to vector<16x16x128xf32>
    %60 = vector.shape_cast %59 : vector<16x16x128xf32> to vector<256x128xf32>
    %c0_48 = arith.constant 0 : index
    %c0_49 = arith.constant 0 : index
    %61 = vector.load %arg6[%c0_48, %c0_49] : memref<256x128xf32, #tpu.memory_space<vmem>>, vector<256x128xf32>
    %62 = arith.truncf %60 : vector<256x128xf32> to vector<256x128xbf16>
    %c4 = arith.constant 4 : index
    %c0_50 = arith.constant 0 : index
    %c0_51 = arith.constant 0 : index
    %63 = vector.load %arg3[%c4, %c0_50, %c0_51] : memref<9x128x128xbf16, #tpu.memory_space<vmem>>, vector<1x128x128xbf16>
    %64 = vector.shape_cast %63 : vector<1x128x128xbf16> to vector<128x128xbf16>
    %cst_52 = arith.constant dense<0.000000e+00> : vector<256x128xf32>
    %65 = tpu.matmul %62, %64, %cst_52 {dimension_numbers = #tpu.dot_dimension_numbers<[1], [0], [0], [1], [0, 0, 1, 1], [], []>} : vector<256x128xbf16>, vector<128x128xbf16>, vector<256x128xf32> -> vector<256x128xf32>
    %66 = arith.addf %61, %65 : vector<256x128xf32>
    %c0_53 = arith.constant 0 : index
    %c0_54 = arith.constant 0 : index
    %67 = vector.load %arg6[%c0_53, %c0_54] : memref<256x128xf32, #tpu.memory_space<vmem>>, vector<256x128xf32>
    tpu.vector_store %arg6[%c0_53, %c0_54], %66 {strides = array<i32>} : memref<256x128xf32, #tpu.memory_space<vmem>>, vector<256x128xf32>,
    %c1_i32_55 = arith.constant 1 : i32
    %68 = arith.addi %0, %c1_i32_55 : i32
    %c0_56 = arith.constant 0 : index
    %69 = arith.index_cast %68 : i32 to index
    %c2_57 = arith.constant 2 : index
    %c0_58 = arith.constant 0 : index
    %70 = vector.load %arg2[%c0_56, %69, %c2_57, %c0_58] : memref<1x18x18x128xbf16, #tpu.memory_space<vmem>>, vector<1x16x16x128xbf16>
    %71 = vector.shape_cast %70 : vector<1x16x16x128xbf16> to vector<16x16x128xbf16>
    %72 = arith.extf %71 : vector<16x16x128xbf16> to vector<16x16x128xf32>
    %73 = vector.shape_cast %72 : vector<16x16x128xf32> to vector<256x128xf32>
    %c0_59 = arith.constant 0 : index
    %c0_60 = arith.constant 0 : index
    %74 = vector.load %arg6[%c0_59, %c0_60] : memref<256x128xf32, #tpu.memory_space<vmem>>, vector<256x128xf32>
    %75 = arith.truncf %73 : vector<256x128xf32> to vector<256x128xbf16>
    %c5 = arith.constant 5 : index
    %c0_61 = arith.constant 0 : index
    %c0_62 = arith.constant 0 : index
    %76 = vector.load %arg3[%c5, %c0_61, %c0_62] : memref<9x128x128xbf16, #tpu.memory_space<vmem>>, vector<1x128x128xbf16>
    %77 = vector.shape_cast %76 : vector<1x128x128xbf16> to vector<128x128xbf16>
    %cst_63 = arith.constant dense<0.000000e+00> : vector<256x128xf32>
    %78 = tpu.matmul %75, %77, %cst_63 {dimension_numbers = #tpu.dot_dimension_numbers<[1], [0], [0], [1], [0, 0, 1, 1], [], []>} : vector<256x128xbf16>, vector<128x128xbf16>, vector<256x128xf32> -> vector<256x128xf32>
    %79 = arith.addf %74, %78 : vector<256x128xf32>
    %c0_64 = arith.constant 0 : index
    %c0_65 = arith.constant 0 : index
    %80 = vector.load %arg6[%c0_64, %c0_65] : memref<256x128xf32, #tpu.memory_space<vmem>>, vector<256x128xf32>
    tpu.vector_store %arg6[%c0_64, %c0_65], %79 {strides = array<i32>} : memref<256x128xf32, #tpu.memory_space<vmem>>, vector<256x128xf32>,
    %c2_i32 = arith.constant 2 : i32
    %81 = arith.addi %0, %c2_i32 : i32
    %c0_66 = arith.constant 0 : index
    %82 = arith.index_cast %81 : i32 to index
    %c0_67 = arith.constant 0 : index
    %c0_68 = arith.constant 0 : index
    %83 = vector.load %arg2[%c0_66, %82, %c0_67, %c0_68] : memref<1x18x18x128xbf16, #tpu.memory_space<vmem>>, vector<1x16x16x128xbf16>
    %84 = vector.shape_cast %83 : vector<1x16x16x128xbf16> to vector<16x16x128xbf16>
    %85 = arith.extf %84 : vector<16x16x128xbf16> to vector<16x16x128xf32>
    %86 = vector.shape_cast %85 : vector<16x16x128xf32> to vector<256x128xf32>
    %c0_69 = arith.constant 0 : index
    %c0_70 = arith.constant 0 : index
    %87 = vector.load %arg6[%c0_69, %c0_70] : memref<256x128xf32, #tpu.memory_space<vmem>>, vector<256x128xf32>
    %88 = arith.truncf %86 : vector<256x128xf32> to vector<256x128xbf16>
    %c6 = arith.constant 6 : index
    %c0_71 = arith.constant 0 : index
    %c0_72 = arith.constant 0 : index
    %89 = vector.load %arg3[%c6, %c0_71, %c0_72] : memref<9x128x128xbf16, #tpu.memory_space<vmem>>, vector<1x128x128xbf16>
    %90 = vector.shape_cast %89 : vector<1x128x128xbf16> to vector<128x128xbf16>
    %cst_73 = arith.constant dense<0.000000e+00> : vector<256x128xf32>
    %91 = tpu.matmul %88, %90, %cst_73 {dimension_numbers = #tpu.dot_dimension_numbers<[1], [0], [0], [1], [0, 0, 1, 1], [], []>} : vector<256x128xbf16>, vector<128x128xbf16>, vector<256x128xf32> -> vector<256x128xf32>
    %92 = arith.addf %87, %91 : vector<256x128xf32>
    %c0_74 = arith.constant 0 : index
    %c0_75 = arith.constant 0 : index
    %93 = vector.load %arg6[%c0_74, %c0_75] : memref<256x128xf32, #tpu.memory_space<vmem>>, vector<256x128xf32>
    tpu.vector_store %arg6[%c0_74, %c0_75], %92 {strides = array<i32>} : memref<256x128xf32, #tpu.memory_space<vmem>>, vector<256x128xf32>,
    %c2_i32_76 = arith.constant 2 : i32
    %94 = arith.addi %0, %c2_i32_76 : i32
    %c0_77 = arith.constant 0 : index
    %95 = arith.index_cast %94 : i32 to index
    %c1_78 = arith.constant 1 : index
    %c0_79 = arith.constant 0 : index
    %96 = vector.load %arg2[%c0_77, %95, %c1_78, %c0_79] : memref<1x18x18x128xbf16, #tpu.memory_space<vmem>>, vector<1x16x16x128xbf16>
    %97 = vector.shape_cast %96 : vector<1x16x16x128xbf16> to vector<16x16x128xbf16>
    %98 = arith.extf %97 : vector<16x16x128xbf16> to vector<16x16x128xf32>
    %99 = vector.shape_cast %98 : vector<16x16x128xf32> to vector<256x128xf32>
    %c0_80 = arith.constant 0 : index
    %c0_81 = arith.constant 0 : index
    %100 = vector.load %arg6[%c0_80, %c0_81] : memref<256x128xf32, #tpu.memory_space<vmem>>, vector<256x128xf32>
    %101 = arith.truncf %99 : vector<256x128xf32> to vector<256x128xbf16>
    %c7 = arith.constant 7 : index
    %c0_82 = arith.constant 0 : index
    %c0_83 = arith.constant 0 : index
    %102 = vector.load %arg3[%c7, %c0_82, %c0_83] : memref<9x128x128xbf16, #tpu.memory_space<vmem>>, vector<1x128x128xbf16>
    %103 = vector.shape_cast %102 : vector<1x128x128xbf16> to vector<128x128xbf16>
    %cst_84 = arith.constant dense<0.000000e+00> : vector<256x128xf32>
    %104 = tpu.matmul %101, %103, %cst_84 {dimension_numbers = #tpu.dot_dimension_numbers<[1], [0], [0], [1], [0, 0, 1, 1], [], []>} : vector<256x128xbf16>, vector<128x128xbf16>, vector<256x128xf32> -> vector<256x128xf32>
    %105 = arith.addf %100, %104 : vector<256x128xf32>
    %c0_85 = arith.constant 0 : index
    %c0_86 = arith.constant 0 : index
    %106 = vector.load %arg6[%c0_85, %c0_86] : memref<256x128xf32, #tpu.memory_space<vmem>>, vector<256x128xf32>
    tpu.vector_store %arg6[%c0_85, %c0_86], %105 {strides = array<i32>} : memref<256x128xf32, #tpu.memory_space<vmem>>, vector<256x128xf32>,
    %c2_i32_87 = arith.constant 2 : i32
    %107 = arith.addi %0, %c2_i32_87 : i32
    %c0_88 = arith.constant 0 : index
    %108 = arith.index_cast %107 : i32 to index
    %c2_89 = arith.constant 2 : index
    %c0_90 = arith.constant 0 : index
    %109 = vector.load %arg2[%c0_88, %108, %c2_89, %c0_90] : memref<1x18x18x128xbf16, #tpu.memory_space<vmem>>, vector<1x16x16x128xbf16>
    %110 = vector.shape_cast %109 : vector<1x16x16x128xbf16> to vector<16x16x128xbf16>
    %111 = arith.extf %110 : vector<16x16x128xbf16> to vector<16x16x128xf32>
    %112 = vector.shape_cast %111 : vector<16x16x128xf32> to vector<256x128xf32>
    %c0_91 = arith.constant 0 : index
    %c0_92 = arith.constant 0 : index
    %113 = vector.load %arg6[%c0_91, %c0_92] : memref<256x128xf32, #tpu.memory_space<vmem>>, vector<256x128xf32>
    %114 = arith.truncf %112 : vector<256x128xf32> to vector<256x128xbf16>
    %c8 = arith.constant 8 : index
    %c0_93 = arith.constant 0 : index
    %c0_94 = arith.constant 0 : index
    %115 = vector.load %arg3[%c8, %c0_93, %c0_94] : memref<9x128x128xbf16, #tpu.memory_space<vmem>>, vector<1x128x128xbf16>
    %116 = vector.shape_cast %115 : vector<1x128x128xbf16> to vector<128x128xbf16>
    %cst_95 = arith.constant dense<0.000000e+00> : vector<256x128xf32>
    %117 = tpu.matmul %114, %116, %cst_95 {dimension_numbers = #tpu.dot_dimension_numbers<[1], [0], [0], [1], [0, 0, 1, 1], [], []>} : vector<256x128xbf16>, vector<128x128xbf16>, vector<256x128xf32> -> vector<256x128xf32>
    %118 = arith.addf %113, %117 : vector<256x128xf32>
    %c0_96 = arith.constant 0 : index
    %c0_97 = arith.constant 0 : index
    %119 = vector.load %arg6[%c0_96, %c0_97] : memref<256x128xf32, #tpu.memory_space<vmem>>, vector<256x128xf32>
    tpu.vector_store %arg6[%c0_96, %c0_97], %118 {strides = array<i32>} : memref<256x128xf32, #tpu.memory_space<vmem>>, vector<256x128xf32>,
    %c0_98 = arith.constant 0 : index
    %c0_99 = arith.constant 0 : index
    %120 = vector.load %arg6[%c0_98, %c0_99] : memref<256x128xf32, #tpu.memory_space<vmem>>, vector<256x128xf32>
    %cst_100 = arith.constant dense<0.000000e+00> : vector<128xf32>
    %121 = vector.multi_reduction <add>, %120, %cst_100 [0] : vector<256x128xf32> to vector<128xf32>
    %122 = vector.shape_cast %121 : vector<128xf32> to vector<1x128xf32>
    %c0_101 = arith.constant 0 : index
    %c0_102 = arith.constant 0 : index
    %c0_103 = arith.constant 0 : index
    %c0_104 = arith.constant 0 : index
    %123 = vector.load %arg5[%c0_101, %c0_102, %c0_103, %c0_104] : memref<1x1x2x128xf32, #tpu.memory_space<vmem>>, vector<1x1x1x128xf32>
    %124 = vector.shape_cast %123 : vector<1x1x1x128xf32> to vector<1x128xf32>
    %125 = vector.shape_cast %122 : vector<1x128xf32> to vector<1x1x1x128xf32>
    tpu.vector_store %arg5[%c0_101, %c0_102, %c0_103, %c0_104], %125 {strides = array<i32>} : memref<1x1x2x128xf32, #tpu.memory_space<vmem>>, vector<1x1x1x128xf32>,
    %126 = arith.mulf %120, %120 : vector<256x128xf32>
    %cst_105 = arith.constant dense<0.000000e+00> : vector<128xf32>
    %127 = vector.multi_reduction <add>, %126, %cst_105 [0] : vector<256x128xf32> to vector<128xf32>
    %128 = vector.shape_cast %127 : vector<128xf32> to vector<1x128xf32>
    %c0_106 = arith.constant 0 : index
    %c0_107 = arith.constant 0 : index
    %c1_108 = arith.constant 1 : index
    %c0_109 = arith.constant 0 : index
    %129 = vector.load %arg5[%c0_106, %c0_107, %c1_108, %c0_109] : memref<1x1x2x128xf32, #tpu.memory_space<vmem>>, vector<1x1x1x128xf32>
    %130 = vector.shape_cast %129 : vector<1x1x1x128xf32> to vector<1x128xf32>
    %131 = vector.shape_cast %128 : vector<1x128xf32> to vector<1x1x1x128xf32>
    tpu.vector_store %arg5[%c0_106, %c0_107, %c1_108, %c0_109], %131 {strides = array<i32>} : memref<1x1x2x128xf32, #tpu.memory_space<vmem>>, vector<1x1x1x128xf32>,
    %132 = arith.truncf %120 : vector<256x128xf32> to vector<256x128xbf16>
    %c0_110 = arith.constant 0 : index
    %c0_111 = arith.constant 0 : index
    %c0_112 = arith.constant 0 : index
    %133 = vector.load %arg4[%c0_110, %c0_111, %c0_112] : memref<1x256x128xbf16, #tpu.memory_space<vmem>>, vector<1x256x128xbf16>
    %134 = vector.shape_cast %133 : vector<1x256x128xbf16> to vector<256x128xbf16>
    %135 = vector.shape_cast %132 : vector<256x128xbf16> to vector<1x256x128xbf16>
    tpu.vector_store %arg4[%c0_110, %c0_111, %c0_112], %135 {strides = array<i32>} : memref<1x256x128xbf16, #tpu.memory_space<vmem>>, vector<1x256x128xbf16>,
    return
  }
  func.func @transform_0(%arg0: i32, %arg1: i32) -> (i32, i32, i32, i32) {
    %c0_i32 = arith.constant 0 : i32
    %c0_i32_0 = arith.constant 0 : i32
    %c0_i32_1 = arith.constant 0 : i32
    %c0_i32_2 = arith.constant 0 : i32
    return %arg0, %c0_i32, %c0_i32_0, %c0_i32_1 : i32, i32, i32, i32
  }
  func.func @transform_1(%arg0: i32, %arg1: i32) -> (i32, i32, i32) {
    %c0_i32 = arith.constant 0 : i32
    %c0_i32_0 = arith.constant 0 : i32
    %c0_i32_1 = arith.constant 0 : i32
    %c0_i32_2 = arith.constant 0 : i32
    return %c0_i32, %c0_i32_0, %c0_i32_1 : i32, i32, i32
  }
  func.func @transform_2(%arg0: i32, %arg1: i32) -> (i32, i32, i32) {
    %c0_i32 = arith.constant 0 : i32
    %c0_i32_0 = arith.constant 0 : i32
    return %arg0, %arg1, %c0_i32 : i32, i32, i32
  }
  func.func @transform_3(%arg0: i32, %arg1: i32) -> (i32, i32, i32, i32) {
    %c0_i32 = arith.constant 0 : i32
    %c0_i32_0 = arith.constant 0 : i32
    %c0_i32_1 = arith.constant 0 : i32
    return %arg0, %arg1, %c0_i32, %c0_i32_0 : i32, i32, i32, i32
  }
}

module attributes {stable_mosaic.version = 11 : i64} {
  func.func @kernel(%arg0: i32, %arg1: i32, %arg2: memref<1x256x128xbf16, #tpu.memory_space<vmem>>, %arg3: memref<1x128xf32, #tpu.memory_space<vmem>>, %arg4: memref<1x128xf32, #tpu.memory_space<vmem>>, %arg5: memref<1x256x128xbf16, #tpu.memory_space<vmem>>) attributes {dimension_semantics = [#tpu.dimension_semantics<parallel>, #tpu.dimension_semantics<parallel>], iteration_bounds = array<i64: 2, 1>, scalar_prefetch = 0 : i64, scratch_operands = 0 : i64, tpu.core_type = #tpu.core_type<tc>, window_params = [{transform_indices = @transform_0, window_bounds = array<i64: 1, 256, 128>}, {pipeline_mode = #tpu.pipeline_mode<synchronous>, transform_indices = @transform_1, window_bounds = array<i64: 1, 128>}, {pipeline_mode = #tpu.pipeline_mode<synchronous>, transform_indices = @transform_2, window_bounds = array<i64: 1, 128>}, {transform_indices = @transform_3, window_bounds = array<i64: 1, 256, 128>}]} {
    %c0 = arith.constant 0 : index
    %c0_0 = arith.constant 0 : index
    %c0_1 = arith.constant 0 : index
    %0 = vector.load %arg2[%c0, %c0_0, %c0_1] : memref<1x256x128xbf16, #tpu.memory_space<vmem>>, vector<1x256x128xbf16>
    %1 = arith.extf %0 : vector<1x256x128xbf16> to vector<1x256x128xf32>
    %c0_2 = arith.constant 0 : index
    %c0_3 = arith.constant 0 : index
    %2 = vector.load %arg3[%c0_2, %c0_3] : memref<1x128xf32, #tpu.memory_space<vmem>>, vector<1x128xf32>
    %3 = vector.shape_cast %2 : vector<1x128xf32> to vector<1x1x128xf32>
    %4 = vector.broadcast %3 : vector<1x1x128xf32> to vector<1x256x128xf32>
    %5 = arith.mulf %1, %4 : vector<1x256x128xf32>
    %c0_4 = arith.constant 0 : index
    %c0_5 = arith.constant 0 : index
    %6 = vector.load %arg4[%c0_4, %c0_5] : memref<1x128xf32, #tpu.memory_space<vmem>>, vector<1x128xf32>
    %7 = vector.shape_cast %6 : vector<1x128xf32> to vector<1x1x128xf32>
    %8 = vector.broadcast %7 : vector<1x1x128xf32> to vector<1x256x128xf32>
    %9 = arith.addf %5, %8 : vector<1x256x128xf32>
    %cst = arith.constant 0.000000e+00 : f32
    %10 = vector.broadcast %cst : f32 to vector<1x256x128xf32>
    %11 = arith.cmpf ogt, %9, %10 : vector<1x256x128xf32>
    %cst_6 = arith.constant 1.000000e-01 : f32
    %12 = vector.broadcast %cst_6 : f32 to vector<1x256x128xf32>
    %13 = arith.mulf %12, %9 : vector<1x256x128xf32>
    %14 = arith.select %11, %9, %13 : vector<1x256x128xi1>, vector<1x256x128xf32>
    %15 = arith.truncf %14 : vector<1x256x128xf32> to vector<1x256x128xbf16>
    %c0_7 = arith.constant 0 : index
    %c0_8 = arith.constant 0 : index
    %c0_9 = arith.constant 0 : index
    %16 = vector.load %arg5[%c0_7, %c0_8, %c0_9] : memref<1x256x128xbf16, #tpu.memory_space<vmem>>, vector<1x256x128xbf16>
    tpu.vector_store %arg5[%c0_7, %c0_8, %c0_9], %15 {strides = array<i32>} : memref<1x256x128xbf16, #tpu.memory_space<vmem>>, vector<1x256x128xbf16>,
    return
  }
  func.func @transform_0(%arg0: i32, %arg1: i32) -> (i32, i32, i32) {
    %c0_i32 = arith.constant 0 : i32
    %c0_i32_0 = arith.constant 0 : i32
    return %arg0, %arg1, %c0_i32 : i32, i32, i32
  }
  func.func @transform_1(%arg0: i32, %arg1: i32) -> (i32, i32) {
    %c0_i32 = arith.constant 0 : i32
    %c0_i32_0 = arith.constant 0 : i32
    %c0_i32_1 = arith.constant 0 : i32
    return %c0_i32, %c0_i32_0 : i32, i32
  }
  func.func @transform_2(%arg0: i32, %arg1: i32) -> (i32, i32) {
    %c0_i32 = arith.constant 0 : i32
    %c0_i32_0 = arith.constant 0 : i32
    %c0_i32_1 = arith.constant 0 : i32
    return %c0_i32, %c0_i32_0 : i32, i32
  }
  func.func @transform_3(%arg0: i32, %arg1: i32) -> (i32, i32, i32) {
    %c0_i32 = arith.constant 0 : i32
    %c0_i32_0 = arith.constant 0 : i32
    return %arg0, %arg1, %c0_i32 : i32, i32, i32
  }
}

module attributes {stable_mosaic.version = 11 : i64} {
  func.func @kernel(%arg0: i32, %arg1: i32, %arg2: memref<1x8x8x128xbf16, #tpu.memory_space<vmem>>, %arg3: memref<1x128x128xbf16, #tpu.memory_space<vmem>>, %arg4: memref<1x64x128xbf16, #tpu.memory_space<vmem>>, %arg5: memref<1x1x2x128xf32, #tpu.memory_space<vmem>>, %arg6: memref<64x128xf32, #tpu.memory_space<vmem>>) attributes {dimension_semantics = [#tpu.dimension_semantics<parallel>, #tpu.dimension_semantics<parallel>], iteration_bounds = array<i64: 2, 1>, scalar_prefetch = 0 : i64, scratch_operands = 1 : i64, tpu.core_type = #tpu.core_type<tc>, window_params = [{transform_indices = @transform_0, window_bounds = array<i64: 1, 8, 8, 128>}, {pipeline_mode = #tpu.pipeline_mode<synchronous>, transform_indices = @transform_1, window_bounds = array<i64: 1, 128, 128>}, {transform_indices = @transform_2, window_bounds = array<i64: 1, 64, 128>}, {transform_indices = @transform_3, window_bounds = array<i64: 1, 1, 2, 128>}]} {
    %c8_i32 = arith.constant 8 : i32
    %0 = arith.muli %arg1, %c8_i32 : i32
    %cst = arith.constant 0.000000e+00 : f32
    %1 = vector.broadcast %cst : f32 to vector<64x128xf32>
    %c0 = arith.constant 0 : index
    %c0_0 = arith.constant 0 : index
    %2 = vector.load %arg6[%c0, %c0_0] : memref<64x128xf32, #tpu.memory_space<vmem>>, vector<64x128xf32>
    tpu.vector_store %arg6[%c0, %c0_0], %1 {strides = array<i32>} : memref<64x128xf32, #tpu.memory_space<vmem>>, vector<64x128xf32>,
    %c0_i32 = arith.constant 0 : i32
    %3 = arith.addi %0, %c0_i32 : i32
    %c0_1 = arith.constant 0 : index
    %4 = arith.index_cast %3 : i32 to index
    %c0_2 = arith.constant 0 : index
    %c0_3 = arith.constant 0 : index
    %5 = vector.load %arg2[%c0_1, %4, %c0_2, %c0_3] : memref<1x8x8x128xbf16, #tpu.memory_space<vmem>>, vector<1x8x8x128xbf16>
    %6 = vector.shape_cast %5 : vector<1x8x8x128xbf16> to vector<8x8x128xbf16>
    %7 = arith.extf %6 : vector<8x8x128xbf16> to vector<8x8x128xf32>
    %8 = vector.shape_cast %7 : vector<8x8x128xf32> to vector<64x128xf32>
    %c0_4 = arith.constant 0 : index
    %c0_5 = arith.constant 0 : index
    %9 = vector.load %arg6[%c0_4, %c0_5] : memref<64x128xf32, #tpu.memory_space<vmem>>, vector<64x128xf32>
    %10 = arith.truncf %8 : vector<64x128xf32> to vector<64x128xbf16>
    %c0_6 = arith.constant 0 : index
    %c0_7 = arith.constant 0 : index
    %c0_8 = arith.constant 0 : index
    %11 = vector.load %arg3[%c0_6, %c0_7, %c0_8] : memref<1x128x128xbf16, #tpu.memory_space<vmem>>, vector<1x128x128xbf16>
    %12 = vector.shape_cast %11 : vector<1x128x128xbf16> to vector<128x128xbf16>
    %cst_9 = arith.constant dense<0.000000e+00> : vector<64x128xf32>
    %13 = tpu.matmul %10, %12, %cst_9 {dimension_numbers = #tpu.dot_dimension_numbers<[1], [0], [0], [1], [0, 0, 1, 1], [], []>} : vector<64x128xbf16>, vector<128x128xbf16>, vector<64x128xf32> -> vector<64x128xf32>
    %14 = arith.addf %9, %13 : vector<64x128xf32>
    %c0_10 = arith.constant 0 : index
    %c0_11 = arith.constant 0 : index
    %15 = vector.load %arg6[%c0_10, %c0_11] : memref<64x128xf32, #tpu.memory_space<vmem>>, vector<64x128xf32>
    tpu.vector_store %arg6[%c0_10, %c0_11], %14 {strides = array<i32>} : memref<64x128xf32, #tpu.memory_space<vmem>>, vector<64x128xf32>,
    %c0_12 = arith.constant 0 : index
    %c0_13 = arith.constant 0 : index
    %16 = vector.load %arg6[%c0_12, %c0_13] : memref<64x128xf32, #tpu.memory_space<vmem>>, vector<64x128xf32>
    %cst_14 = arith.constant dense<0.000000e+00> : vector<128xf32>
    %17 = vector.multi_reduction <add>, %16, %cst_14 [0] : vector<64x128xf32> to vector<128xf32>
    %18 = vector.shape_cast %17 : vector<128xf32> to vector<1x128xf32>
    %c0_15 = arith.constant 0 : index
    %c0_16 = arith.constant 0 : index
    %c0_17 = arith.constant 0 : index
    %c0_18 = arith.constant 0 : index
    %19 = vector.load %arg5[%c0_15, %c0_16, %c0_17, %c0_18] : memref<1x1x2x128xf32, #tpu.memory_space<vmem>>, vector<1x1x1x128xf32>
    %20 = vector.shape_cast %19 : vector<1x1x1x128xf32> to vector<1x128xf32>
    %21 = vector.shape_cast %18 : vector<1x128xf32> to vector<1x1x1x128xf32>
    tpu.vector_store %arg5[%c0_15, %c0_16, %c0_17, %c0_18], %21 {strides = array<i32>} : memref<1x1x2x128xf32, #tpu.memory_space<vmem>>, vector<1x1x1x128xf32>,
    %22 = arith.mulf %16, %16 : vector<64x128xf32>
    %cst_19 = arith.constant dense<0.000000e+00> : vector<128xf32>
    %23 = vector.multi_reduction <add>, %22, %cst_19 [0] : vector<64x128xf32> to vector<128xf32>
    %24 = vector.shape_cast %23 : vector<128xf32> to vector<1x128xf32>
    %c0_20 = arith.constant 0 : index
    %c0_21 = arith.constant 0 : index
    %c1 = arith.constant 1 : index
    %c0_22 = arith.constant 0 : index
    %25 = vector.load %arg5[%c0_20, %c0_21, %c1, %c0_22] : memref<1x1x2x128xf32, #tpu.memory_space<vmem>>, vector<1x1x1x128xf32>
    %26 = vector.shape_cast %25 : vector<1x1x1x128xf32> to vector<1x128xf32>
    %27 = vector.shape_cast %24 : vector<1x128xf32> to vector<1x1x1x128xf32>
    tpu.vector_store %arg5[%c0_20, %c0_21, %c1, %c0_22], %27 {strides = array<i32>} : memref<1x1x2x128xf32, #tpu.memory_space<vmem>>, vector<1x1x1x128xf32>,
    %28 = arith.truncf %16 : vector<64x128xf32> to vector<64x128xbf16>
    %c0_23 = arith.constant 0 : index
    %c0_24 = arith.constant 0 : index
    %c0_25 = arith.constant 0 : index
    %29 = vector.load %arg4[%c0_23, %c0_24, %c0_25] : memref<1x64x128xbf16, #tpu.memory_space<vmem>>, vector<1x64x128xbf16>
    %30 = vector.shape_cast %29 : vector<1x64x128xbf16> to vector<64x128xbf16>
    %31 = vector.shape_cast %28 : vector<64x128xbf16> to vector<1x64x128xbf16>
    tpu.vector_store %arg4[%c0_23, %c0_24, %c0_25], %31 {strides = array<i32>} : memref<1x64x128xbf16, #tpu.memory_space<vmem>>, vector<1x64x128xbf16>,
    return
  }
  func.func @transform_0(%arg0: i32, %arg1: i32) -> (i32, i32, i32, i32) {
    %c0_i32 = arith.constant 0 : i32
    %c0_i32_0 = arith.constant 0 : i32
    %c0_i32_1 = arith.constant 0 : i32
    %c0_i32_2 = arith.constant 0 : i32
    return %arg0, %c0_i32, %c0_i32_0, %c0_i32_1 : i32, i32, i32, i32
  }
  func.func @transform_1(%arg0: i32, %arg1: i32) -> (i32, i32, i32) {
    %c0_i32 = arith.constant 0 : i32
    %c0_i32_0 = arith.constant 0 : i32
    %c0_i32_1 = arith.constant 0 : i32
    %c0_i32_2 = arith.constant 0 : i32
    return %c0_i32, %c0_i32_0, %c0_i32_1 : i32, i32, i32
  }
  func.func @transform_2(%arg0: i32, %arg1: i32) -> (i32, i32, i32) {
    %c0_i32 = arith.constant 0 : i32
    %c0_i32_0 = arith.constant 0 : i32
    return %arg0, %arg1, %c0_i32 : i32, i32, i32
  }
  func.func @transform_3(%arg0: i32, %arg1: i32) -> (i32, i32, i32, i32) {
    %c0_i32 = arith.constant 0 : i32
    %c0_i32_0 = arith.constant 0 : i32
    %c0_i32_1 = arith.constant 0 : i32
    return %arg0, %arg1, %c0_i32, %c0_i32_0 : i32, i32, i32, i32
  }
}

module attributes {stable_mosaic.version = 11 : i64} {
  func.func @kernel(%arg0: memref<128x128xbf16, #tpu.memory_space<vmem>>, %arg1: memref<128x128xbf16, #tpu.memory_space<vmem>>, %arg2: memref<1x128xf32, #tpu.memory_space<vmem>>, %arg3: memref<1x128xf32, #tpu.memory_space<vmem>>, %arg4: memref<128x128xbf16, #tpu.memory_space<vmem>>) attributes {dimension_semantics = [], scalar_prefetch = 0 : i64, scratch_operands = 0 : i64, tpu.core_type = #tpu.core_type<tc>} {
    %c0 = arith.constant 0 : index
    %c0_0 = arith.constant 0 : index
    %0 = vector.load %arg0[%c0, %c0_0] : memref<128x128xbf16, #tpu.memory_space<vmem>>, vector<128x128xbf16>
    %c0_1 = arith.constant 0 : index
    %c0_2 = arith.constant 0 : index
    %1 = vector.load %arg1[%c0_1, %c0_2] : memref<128x128xbf16, #tpu.memory_space<vmem>>, vector<128x128xbf16>
    %cst = arith.constant dense<0.000000e+00> : vector<128x128xf32>
    %2 = tpu.matmul %0, %1, %cst {dimension_numbers = #tpu.dot_dimension_numbers<[1], [0], [0], [1], [0, 0, 1, 1], [], []>} : vector<128x128xbf16>, vector<128x128xbf16>, vector<128x128xf32> -> vector<128x128xf32>
    %cst_3 = arith.constant dense<0.000000e+00> : vector<128xf32>
    %3 = vector.multi_reduction <add>, %2, %cst_3 [0] : vector<128x128xf32> to vector<128xf32>
    %4 = vector.shape_cast %3 : vector<128xf32> to vector<1x128xf32>
    %5 = arith.mulf %2, %2 : vector<128x128xf32>
    %cst_4 = arith.constant dense<0.000000e+00> : vector<128xf32>
    %6 = vector.multi_reduction <add>, %5, %cst_4 [0] : vector<128x128xf32> to vector<128xf32>
    %7 = vector.shape_cast %6 : vector<128xf32> to vector<1x128xf32>
    %cst_5 = arith.constant 7.812500e-03 : f32
    %8 = vector.broadcast %cst_5 : f32 to vector<1x128xf32>
    %9 = arith.mulf %4, %8 : vector<1x128xf32>
    %cst_6 = arith.constant 7.812500e-03 : f32
    %10 = vector.broadcast %cst_6 : f32 to vector<1x128xf32>
    %11 = arith.mulf %7, %10 : vector<1x128xf32>
    %12 = arith.mulf %9, %9 : vector<1x128xf32>
    %13 = arith.subf %11, %12 : vector<1x128xf32>
    %cst_7 = arith.constant 0.000000e+00 : f32
    %14 = vector.broadcast %cst_7 : f32 to vector<1x128xf32>
    %15 = arith.maximumf %13, %14 : vector<1x128xf32>
    %c0_8 = arith.constant 0 : index
    %c0_9 = arith.constant 0 : index
    %16 = vector.load %arg2[%c0_8, %c0_9] : memref<1x128xf32, #tpu.memory_space<vmem>>, vector<1x128xf32>
    %cst_10 = arith.constant 9.99999974E-6 : f32
    %17 = vector.broadcast %cst_10 : f32 to vector<1x128xf32>
    %18 = arith.addf %15, %17 : vector<1x128xf32>
    %19 = math.rsqrt %18 : vector<1x128xf32>
    %20 = arith.mulf %16, %19 : vector<1x128xf32>
    %c0_11 = arith.constant 0 : index
    %c0_12 = arith.constant 0 : index
    %21 = vector.load %arg3[%c0_11, %c0_12] : memref<1x128xf32, #tpu.memory_space<vmem>>, vector<1x128xf32>
    %22 = arith.mulf %9, %20 : vector<1x128xf32>
    %23 = arith.subf %21, %22 : vector<1x128xf32>
    %24 = vector.broadcast %20 : vector<1x128xf32> to vector<128x128xf32>
    %25 = arith.mulf %2, %24 : vector<128x128xf32>
    %26 = vector.broadcast %23 : vector<1x128xf32> to vector<128x128xf32>
    %27 = arith.addf %25, %26 : vector<128x128xf32>
    %cst_13 = arith.constant 0.000000e+00 : f32
    %28 = vector.broadcast %cst_13 : f32 to vector<128x128xf32>
    %29 = arith.cmpf ogt, %27, %28 : vector<128x128xf32>
    %cst_14 = arith.constant 1.000000e-01 : f32
    %30 = vector.broadcast %cst_14 : f32 to vector<128x128xf32>
    %31 = arith.mulf %30, %27 : vector<128x128xf32>
    %32 = arith.select %29, %27, %31 : vector<128x128xi1>, vector<128x128xf32>
    %33 = arith.truncf %32 : vector<128x128xf32> to vector<128x128xbf16>
    %c0_15 = arith.constant 0 : index
    %c0_16 = arith.constant 0 : index
    %34 = vector.load %arg4[%c0_15, %c0_16] : memref<128x128xbf16, #tpu.memory_space<vmem>>, vector<128x128xbf16>
    tpu.vector_store %arg4[%c0_15, %c0_16], %33 {strides = array<i32>} : memref<128x128xbf16, #tpu.memory_space<vmem>>, vector<128x128xbf16>,
    return
  }
}

module attributes {stable_mosaic.version = 11 : i64} {
  func.func @kernel(%arg0: i32, %arg1: i32, %arg2: memref<1x64x128xbf16, #tpu.memory_space<vmem>>, %arg3: memref<1x128xf32, #tpu.memory_space<vmem>>, %arg4: memref<1x128xf32, #tpu.memory_space<vmem>>, %arg5: memref<1x64x128xbf16, #tpu.memory_space<vmem>>) attributes {dimension_semantics = [#tpu.dimension_semantics<parallel>, #tpu.dimension_semantics<parallel>], iteration_bounds = array<i64: 2, 1>, scalar_prefetch = 0 : i64, scratch_operands = 0 : i64, tpu.core_type = #tpu.core_type<tc>, window_params = [{transform_indices = @transform_0, window_bounds = array<i64: 1, 64, 128>}, {pipeline_mode = #tpu.pipeline_mode<synchronous>, transform_indices = @transform_1, window_bounds = array<i64: 1, 128>}, {pipeline_mode = #tpu.pipeline_mode<synchronous>, transform_indices = @transform_2, window_bounds = array<i64: 1, 128>}, {transform_indices = @transform_3, window_bounds = array<i64: 1, 64, 128>}]} {
    %c0 = arith.constant 0 : index
    %c0_0 = arith.constant 0 : index
    %c0_1 = arith.constant 0 : index
    %0 = vector.load %arg2[%c0, %c0_0, %c0_1] : memref<1x64x128xbf16, #tpu.memory_space<vmem>>, vector<1x64x128xbf16>
    %1 = arith.extf %0 : vector<1x64x128xbf16> to vector<1x64x128xf32>
    %c0_2 = arith.constant 0 : index
    %c0_3 = arith.constant 0 : index
    %2 = vector.load %arg3[%c0_2, %c0_3] : memref<1x128xf32, #tpu.memory_space<vmem>>, vector<1x128xf32>
    %3 = vector.shape_cast %2 : vector<1x128xf32> to vector<1x1x128xf32>
    %4 = vector.broadcast %3 : vector<1x1x128xf32> to vector<1x64x128xf32>
    %5 = arith.mulf %1, %4 : vector<1x64x128xf32>
    %c0_4 = arith.constant 0 : index
    %c0_5 = arith.constant 0 : index
    %6 = vector.load %arg4[%c0_4, %c0_5] : memref<1x128xf32, #tpu.memory_space<vmem>>, vector<1x128xf32>
    %7 = vector.shape_cast %6 : vector<1x128xf32> to vector<1x1x128xf32>
    %8 = vector.broadcast %7 : vector<1x1x128xf32> to vector<1x64x128xf32>
    %9 = arith.addf %5, %8 : vector<1x64x128xf32>
    %cst = arith.constant 0.000000e+00 : f32
    %10 = vector.broadcast %cst : f32 to vector<1x64x128xf32>
    %11 = arith.cmpf ogt, %9, %10 : vector<1x64x128xf32>
    %cst_6 = arith.constant 1.000000e-01 : f32
    %12 = vector.broadcast %cst_6 : f32 to vector<1x64x128xf32>
    %13 = arith.mulf %12, %9 : vector<1x64x128xf32>
    %14 = arith.select %11, %9, %13 : vector<1x64x128xi1>, vector<1x64x128xf32>
    %15 = arith.truncf %14 : vector<1x64x128xf32> to vector<1x64x128xbf16>
    %c0_7 = arith.constant 0 : index
    %c0_8 = arith.constant 0 : index
    %c0_9 = arith.constant 0 : index
    %16 = vector.load %arg5[%c0_7, %c0_8, %c0_9] : memref<1x64x128xbf16, #tpu.memory_space<vmem>>, vector<1x64x128xbf16>
    tpu.vector_store %arg5[%c0_7, %c0_8, %c0_9], %15 {strides = array<i32>} : memref<1x64x128xbf16, #tpu.memory_space<vmem>>, vector<1x64x128xbf16>,
    return
  }
  func.func @transform_0(%arg0: i32, %arg1: i32) -> (i32, i32, i32) {
    %c0_i32 = arith.constant 0 : i32
    %c0_i32_0 = arith.constant 0 : i32
    return %arg0, %arg1, %c0_i32 : i32, i32, i32
  }
  func.func @transform_1(%arg0: i32, %arg1: i32) -> (i32, i32) {
    %c0_i32 = arith.constant 0 : i32
    %c0_i32_0 = arith.constant 0 : i32
    %c0_i32_1 = arith.constant 0 : i32
    return %c0_i32, %c0_i32_0 : i32, i32
  }
  func.func @transform_2(%arg0: i32, %arg1: i32) -> (i32, i32) {
    %c0_i32 = arith.constant 0 : i32
    %c0_i32_0 = arith.constant 0 : i32
    %c0_i32_1 = arith.constant 0 : i32
    return %c0_i32, %c0_i32_0 : i32, i32
  }
  func.func @transform_3(%arg0: i32, %arg1: i32) -> (i32, i32, i32) {
    %c0_i32 = arith.constant 0 : i32
    %c0_i32_0 = arith.constant 0 : i32
    return %arg0, %arg1, %c0_i32 : i32, i32, i32
  }
}

module attributes {stable_mosaic.version = 11 : i64} {
  func.func @kernel(%arg0: i32, %arg1: i32, %arg2: memref<1x10x10x128xbf16, #tpu.memory_space<vmem>>, %arg3: memref<9x128x128xbf16, #tpu.memory_space<vmem>>, %arg4: memref<1x64x128xbf16, #tpu.memory_space<vmem>>, %arg5: memref<1x1x2x128xf32, #tpu.memory_space<vmem>>, %arg6: memref<64x128xf32, #tpu.memory_space<vmem>>) attributes {dimension_semantics = [#tpu.dimension_semantics<parallel>, #tpu.dimension_semantics<parallel>], iteration_bounds = array<i64: 2, 1>, scalar_prefetch = 0 : i64, scratch_operands = 1 : i64, tpu.core_type = #tpu.core_type<tc>, window_params = [{transform_indices = @transform_0, window_bounds = array<i64: 1, 10, 10, 128>}, {pipeline_mode = #tpu.pipeline_mode<synchronous>, transform_indices = @transform_1, window_bounds = array<i64: 9, 128, 128>}, {transform_indices = @transform_2, window_bounds = array<i64: 1, 64, 128>}, {transform_indices = @transform_3, window_bounds = array<i64: 1, 1, 2, 128>}]} {
    %c8_i32 = arith.constant 8 : i32
    %0 = arith.muli %arg1, %c8_i32 : i32
    %cst = arith.constant 0.000000e+00 : f32
    %1 = vector.broadcast %cst : f32 to vector<64x128xf32>
    %c0 = arith.constant 0 : index
    %c0_0 = arith.constant 0 : index
    %2 = vector.load %arg6[%c0, %c0_0] : memref<64x128xf32, #tpu.memory_space<vmem>>, vector<64x128xf32>
    tpu.vector_store %arg6[%c0, %c0_0], %1 {strides = array<i32>} : memref<64x128xf32, #tpu.memory_space<vmem>>, vector<64x128xf32>,
    %c0_i32 = arith.constant 0 : i32
    %3 = arith.addi %0, %c0_i32 : i32
    %c0_1 = arith.constant 0 : index
    %4 = arith.index_cast %3 : i32 to index
    %c0_2 = arith.constant 0 : index
    %c0_3 = arith.constant 0 : index
    %5 = vector.load %arg2[%c0_1, %4, %c0_2, %c0_3] : memref<1x10x10x128xbf16, #tpu.memory_space<vmem>>, vector<1x8x8x128xbf16>
    %6 = vector.shape_cast %5 : vector<1x8x8x128xbf16> to vector<8x8x128xbf16>
    %7 = arith.extf %6 : vector<8x8x128xbf16> to vector<8x8x128xf32>
    %8 = vector.shape_cast %7 : vector<8x8x128xf32> to vector<64x128xf32>
    %c0_4 = arith.constant 0 : index
    %c0_5 = arith.constant 0 : index
    %9 = vector.load %arg6[%c0_4, %c0_5] : memref<64x128xf32, #tpu.memory_space<vmem>>, vector<64x128xf32>
    %10 = arith.truncf %8 : vector<64x128xf32> to vector<64x128xbf16>
    %c0_6 = arith.constant 0 : index
    %c0_7 = arith.constant 0 : index
    %c0_8 = arith.constant 0 : index
    %11 = vector.load %arg3[%c0_6, %c0_7, %c0_8] : memref<9x128x128xbf16, #tpu.memory_space<vmem>>, vector<1x128x128xbf16>
    %12 = vector.shape_cast %11 : vector<1x128x128xbf16> to vector<128x128xbf16>
    %cst_9 = arith.constant dense<0.000000e+00> : vector<64x128xf32>
    %13 = tpu.matmul %10, %12, %cst_9 {dimension_numbers = #tpu.dot_dimension_numbers<[1], [0], [0], [1], [0, 0, 1, 1], [], []>} : vector<64x128xbf16>, vector<128x128xbf16>, vector<64x128xf32> -> vector<64x128xf32>
    %14 = arith.addf %9, %13 : vector<64x128xf32>
    %c0_10 = arith.constant 0 : index
    %c0_11 = arith.constant 0 : index
    %15 = vector.load %arg6[%c0_10, %c0_11] : memref<64x128xf32, #tpu.memory_space<vmem>>, vector<64x128xf32>
    tpu.vector_store %arg6[%c0_10, %c0_11], %14 {strides = array<i32>} : memref<64x128xf32, #tpu.memory_space<vmem>>, vector<64x128xf32>,
    %c0_i32_12 = arith.constant 0 : i32
    %16 = arith.addi %0, %c0_i32_12 : i32
    %c0_13 = arith.constant 0 : index
    %17 = arith.index_cast %16 : i32 to index
    %c1 = arith.constant 1 : index
    %c0_14 = arith.constant 0 : index
    %18 = vector.load %arg2[%c0_13, %17, %c1, %c0_14] : memref<1x10x10x128xbf16, #tpu.memory_space<vmem>>, vector<1x8x8x128xbf16>
    %19 = vector.shape_cast %18 : vector<1x8x8x128xbf16> to vector<8x8x128xbf16>
    %20 = arith.extf %19 : vector<8x8x128xbf16> to vector<8x8x128xf32>
    %21 = vector.shape_cast %20 : vector<8x8x128xf32> to vector<64x128xf32>
    %c0_15 = arith.constant 0 : index
    %c0_16 = arith.constant 0 : index
    %22 = vector.load %arg6[%c0_15, %c0_16] : memref<64x128xf32, #tpu.memory_space<vmem>>, vector<64x128xf32>
    %23 = arith.truncf %21 : vector<64x128xf32> to vector<64x128xbf16>
    %c1_17 = arith.constant 1 : index
    %c0_18 = arith.constant 0 : index
    %c0_19 = arith.constant 0 : index
    %24 = vector.load %arg3[%c1_17, %c0_18, %c0_19] : memref<9x128x128xbf16, #tpu.memory_space<vmem>>, vector<1x128x128xbf16>
    %25 = vector.shape_cast %24 : vector<1x128x128xbf16> to vector<128x128xbf16>
    %cst_20 = arith.constant dense<0.000000e+00> : vector<64x128xf32>
    %26 = tpu.matmul %23, %25, %cst_20 {dimension_numbers = #tpu.dot_dimension_numbers<[1], [0], [0], [1], [0, 0, 1, 1], [], []>} : vector<64x128xbf16>, vector<128x128xbf16>, vector<64x128xf32> -> vector<64x128xf32>
    %27 = arith.addf %22, %26 : vector<64x128xf32>
    %c0_21 = arith.constant 0 : index
    %c0_22 = arith.constant 0 : index
    %28 = vector.load %arg6[%c0_21, %c0_22] : memref<64x128xf32, #tpu.memory_space<vmem>>, vector<64x128xf32>
    tpu.vector_store %arg6[%c0_21, %c0_22], %27 {strides = array<i32>} : memref<64x128xf32, #tpu.memory_space<vmem>>, vector<64x128xf32>,
    %c0_i32_23 = arith.constant 0 : i32
    %29 = arith.addi %0, %c0_i32_23 : i32
    %c0_24 = arith.constant 0 : index
    %30 = arith.index_cast %29 : i32 to index
    %c2 = arith.constant 2 : index
    %c0_25 = arith.constant 0 : index
    %31 = vector.load %arg2[%c0_24, %30, %c2, %c0_25] : memref<1x10x10x128xbf16, #tpu.memory_space<vmem>>, vector<1x8x8x128xbf16>
    %32 = vector.shape_cast %31 : vector<1x8x8x128xbf16> to vector<8x8x128xbf16>
    %33 = arith.extf %32 : vector<8x8x128xbf16> to vector<8x8x128xf32>
    %34 = vector.shape_cast %33 : vector<8x8x128xf32> to vector<64x128xf32>
    %c0_26 = arith.constant 0 : index
    %c0_27 = arith.constant 0 : index
    %35 = vector.load %arg6[%c0_26, %c0_27] : memref<64x128xf32, #tpu.memory_space<vmem>>, vector<64x128xf32>
    %36 = arith.truncf %34 : vector<64x128xf32> to vector<64x128xbf16>
    %c2_28 = arith.constant 2 : index
    %c0_29 = arith.constant 0 : index
    %c0_30 = arith.constant 0 : index
    %37 = vector.load %arg3[%c2_28, %c0_29, %c0_30] : memref<9x128x128xbf16, #tpu.memory_space<vmem>>, vector<1x128x128xbf16>
    %38 = vector.shape_cast %37 : vector<1x128x128xbf16> to vector<128x128xbf16>
    %cst_31 = arith.constant dense<0.000000e+00> : vector<64x128xf32>
    %39 = tpu.matmul %36, %38, %cst_31 {dimension_numbers = #tpu.dot_dimension_numbers<[1], [0], [0], [1], [0, 0, 1, 1], [], []>} : vector<64x128xbf16>, vector<128x128xbf16>, vector<64x128xf32> -> vector<64x128xf32>
    %40 = arith.addf %35, %39 : vector<64x128xf32>
    %c0_32 = arith.constant 0 : index
    %c0_33 = arith.constant 0 : index
    %41 = vector.load %arg6[%c0_32, %c0_33] : memref<64x128xf32, #tpu.memory_space<vmem>>, vector<64x128xf32>
    tpu.vector_store %arg6[%c0_32, %c0_33], %40 {strides = array<i32>} : memref<64x128xf32, #tpu.memory_space<vmem>>, vector<64x128xf32>,
    %c1_i32 = arith.constant 1 : i32
    %42 = arith.addi %0, %c1_i32 : i32
    %c0_34 = arith.constant 0 : index
    %43 = arith.index_cast %42 : i32 to index
    %c0_35 = arith.constant 0 : index
    %c0_36 = arith.constant 0 : index
    %44 = vector.load %arg2[%c0_34, %43, %c0_35, %c0_36] : memref<1x10x10x128xbf16, #tpu.memory_space<vmem>>, vector<1x8x8x128xbf16>
    %45 = vector.shape_cast %44 : vector<1x8x8x128xbf16> to vector<8x8x128xbf16>
    %46 = arith.extf %45 : vector<8x8x128xbf16> to vector<8x8x128xf32>
    %47 = vector.shape_cast %46 : vector<8x8x128xf32> to vector<64x128xf32>
    %c0_37 = arith.constant 0 : index
    %c0_38 = arith.constant 0 : index
    %48 = vector.load %arg6[%c0_37, %c0_38] : memref<64x128xf32, #tpu.memory_space<vmem>>, vector<64x128xf32>
    %49 = arith.truncf %47 : vector<64x128xf32> to vector<64x128xbf16>
    %c3 = arith.constant 3 : index
    %c0_39 = arith.constant 0 : index
    %c0_40 = arith.constant 0 : index
    %50 = vector.load %arg3[%c3, %c0_39, %c0_40] : memref<9x128x128xbf16, #tpu.memory_space<vmem>>, vector<1x128x128xbf16>
    %51 = vector.shape_cast %50 : vector<1x128x128xbf16> to vector<128x128xbf16>
    %cst_41 = arith.constant dense<0.000000e+00> : vector<64x128xf32>
    %52 = tpu.matmul %49, %51, %cst_41 {dimension_numbers = #tpu.dot_dimension_numbers<[1], [0], [0], [1], [0, 0, 1, 1], [], []>} : vector<64x128xbf16>, vector<128x128xbf16>, vector<64x128xf32> -> vector<64x128xf32>
    %53 = arith.addf %48, %52 : vector<64x128xf32>
    %c0_42 = arith.constant 0 : index
    %c0_43 = arith.constant 0 : index
    %54 = vector.load %arg6[%c0_42, %c0_43] : memref<64x128xf32, #tpu.memory_space<vmem>>, vector<64x128xf32>
    tpu.vector_store %arg6[%c0_42, %c0_43], %53 {strides = array<i32>} : memref<64x128xf32, #tpu.memory_space<vmem>>, vector<64x128xf32>,
    %c1_i32_44 = arith.constant 1 : i32
    %55 = arith.addi %0, %c1_i32_44 : i32
    %c0_45 = arith.constant 0 : index
    %56 = arith.index_cast %55 : i32 to index
    %c1_46 = arith.constant 1 : index
    %c0_47 = arith.constant 0 : index
    %57 = vector.load %arg2[%c0_45, %56, %c1_46, %c0_47] : memref<1x10x10x128xbf16, #tpu.memory_space<vmem>>, vector<1x8x8x128xbf16>
    %58 = vector.shape_cast %57 : vector<1x8x8x128xbf16> to vector<8x8x128xbf16>
    %59 = arith.extf %58 : vector<8x8x128xbf16> to vector<8x8x128xf32>
    %60 = vector.shape_cast %59 : vector<8x8x128xf32> to vector<64x128xf32>
    %c0_48 = arith.constant 0 : index
    %c0_49 = arith.constant 0 : index
    %61 = vector.load %arg6[%c0_48, %c0_49] : memref<64x128xf32, #tpu.memory_space<vmem>>, vector<64x128xf32>
    %62 = arith.truncf %60 : vector<64x128xf32> to vector<64x128xbf16>
    %c4 = arith.constant 4 : index
    %c0_50 = arith.constant 0 : index
    %c0_51 = arith.constant 0 : index
    %63 = vector.load %arg3[%c4, %c0_50, %c0_51] : memref<9x128x128xbf16, #tpu.memory_space<vmem>>, vector<1x128x128xbf16>
    %64 = vector.shape_cast %63 : vector<1x128x128xbf16> to vector<128x128xbf16>
    %cst_52 = arith.constant dense<0.000000e+00> : vector<64x128xf32>
    %65 = tpu.matmul %62, %64, %cst_52 {dimension_numbers = #tpu.dot_dimension_numbers<[1], [0], [0], [1], [0, 0, 1, 1], [], []>} : vector<64x128xbf16>, vector<128x128xbf16>, vector<64x128xf32> -> vector<64x128xf32>
    %66 = arith.addf %61, %65 : vector<64x128xf32>
    %c0_53 = arith.constant 0 : index
    %c0_54 = arith.constant 0 : index
    %67 = vector.load %arg6[%c0_53, %c0_54] : memref<64x128xf32, #tpu.memory_space<vmem>>, vector<64x128xf32>
    tpu.vector_store %arg6[%c0_53, %c0_54], %66 {strides = array<i32>} : memref<64x128xf32, #tpu.memory_space<vmem>>, vector<64x128xf32>,
    %c1_i32_55 = arith.constant 1 : i32
    %68 = arith.addi %0, %c1_i32_55 : i32
    %c0_56 = arith.constant 0 : index
    %69 = arith.index_cast %68 : i32 to index
    %c2_57 = arith.constant 2 : index
    %c0_58 = arith.constant 0 : index
    %70 = vector.load %arg2[%c0_56, %69, %c2_57, %c0_58] : memref<1x10x10x128xbf16, #tpu.memory_space<vmem>>, vector<1x8x8x128xbf16>
    %71 = vector.shape_cast %70 : vector<1x8x8x128xbf16> to vector<8x8x128xbf16>
    %72 = arith.extf %71 : vector<8x8x128xbf16> to vector<8x8x128xf32>
    %73 = vector.shape_cast %72 : vector<8x8x128xf32> to vector<64x128xf32>
    %c0_59 = arith.constant 0 : index
    %c0_60 = arith.constant 0 : index
    %74 = vector.load %arg6[%c0_59, %c0_60] : memref<64x128xf32, #tpu.memory_space<vmem>>, vector<64x128xf32>
    %75 = arith.truncf %73 : vector<64x128xf32> to vector<64x128xbf16>
    %c5 = arith.constant 5 : index
    %c0_61 = arith.constant 0 : index
    %c0_62 = arith.constant 0 : index
    %76 = vector.load %arg3[%c5, %c0_61, %c0_62] : memref<9x128x128xbf16, #tpu.memory_space<vmem>>, vector<1x128x128xbf16>
    %77 = vector.shape_cast %76 : vector<1x128x128xbf16> to vector<128x128xbf16>
    %cst_63 = arith.constant dense<0.000000e+00> : vector<64x128xf32>
    %78 = tpu.matmul %75, %77, %cst_63 {dimension_numbers = #tpu.dot_dimension_numbers<[1], [0], [0], [1], [0, 0, 1, 1], [], []>} : vector<64x128xbf16>, vector<128x128xbf16>, vector<64x128xf32> -> vector<64x128xf32>
    %79 = arith.addf %74, %78 : vector<64x128xf32>
    %c0_64 = arith.constant 0 : index
    %c0_65 = arith.constant 0 : index
    %80 = vector.load %arg6[%c0_64, %c0_65] : memref<64x128xf32, #tpu.memory_space<vmem>>, vector<64x128xf32>
    tpu.vector_store %arg6[%c0_64, %c0_65], %79 {strides = array<i32>} : memref<64x128xf32, #tpu.memory_space<vmem>>, vector<64x128xf32>,
    %c2_i32 = arith.constant 2 : i32
    %81 = arith.addi %0, %c2_i32 : i32
    %c0_66 = arith.constant 0 : index
    %82 = arith.index_cast %81 : i32 to index
    %c0_67 = arith.constant 0 : index
    %c0_68 = arith.constant 0 : index
    %83 = vector.load %arg2[%c0_66, %82, %c0_67, %c0_68] : memref<1x10x10x128xbf16, #tpu.memory_space<vmem>>, vector<1x8x8x128xbf16>
    %84 = vector.shape_cast %83 : vector<1x8x8x128xbf16> to vector<8x8x128xbf16>
    %85 = arith.extf %84 : vector<8x8x128xbf16> to vector<8x8x128xf32>
    %86 = vector.shape_cast %85 : vector<8x8x128xf32> to vector<64x128xf32>
    %c0_69 = arith.constant 0 : index
    %c0_70 = arith.constant 0 : index
    %87 = vector.load %arg6[%c0_69, %c0_70] : memref<64x128xf32, #tpu.memory_space<vmem>>, vector<64x128xf32>
    %88 = arith.truncf %86 : vector<64x128xf32> to vector<64x128xbf16>
    %c6 = arith.constant 6 : index
    %c0_71 = arith.constant 0 : index
    %c0_72 = arith.constant 0 : index
    %89 = vector.load %arg3[%c6, %c0_71, %c0_72] : memref<9x128x128xbf16, #tpu.memory_space<vmem>>, vector<1x128x128xbf16>
    %90 = vector.shape_cast %89 : vector<1x128x128xbf16> to vector<128x128xbf16>
    %cst_73 = arith.constant dense<0.000000e+00> : vector<64x128xf32>
    %91 = tpu.matmul %88, %90, %cst_73 {dimension_numbers = #tpu.dot_dimension_numbers<[1], [0], [0], [1], [0, 0, 1, 1], [], []>} : vector<64x128xbf16>, vector<128x128xbf16>, vector<64x128xf32> -> vector<64x128xf32>
    %92 = arith.addf %87, %91 : vector<64x128xf32>
    %c0_74 = arith.constant 0 : index
    %c0_75 = arith.constant 0 : index
    %93 = vector.load %arg6[%c0_74, %c0_75] : memref<64x128xf32, #tpu.memory_space<vmem>>, vector<64x128xf32>
    tpu.vector_store %arg6[%c0_74, %c0_75], %92 {strides = array<i32>} : memref<64x128xf32, #tpu.memory_space<vmem>>, vector<64x128xf32>,
    %c2_i32_76 = arith.constant 2 : i32
    %94 = arith.addi %0, %c2_i32_76 : i32
    %c0_77 = arith.constant 0 : index
    %95 = arith.index_cast %94 : i32 to index
    %c1_78 = arith.constant 1 : index
    %c0_79 = arith.constant 0 : index
    %96 = vector.load %arg2[%c0_77, %95, %c1_78, %c0_79] : memref<1x10x10x128xbf16, #tpu.memory_space<vmem>>, vector<1x8x8x128xbf16>
    %97 = vector.shape_cast %96 : vector<1x8x8x128xbf16> to vector<8x8x128xbf16>
    %98 = arith.extf %97 : vector<8x8x128xbf16> to vector<8x8x128xf32>
    %99 = vector.shape_cast %98 : vector<8x8x128xf32> to vector<64x128xf32>
    %c0_80 = arith.constant 0 : index
    %c0_81 = arith.constant 0 : index
    %100 = vector.load %arg6[%c0_80, %c0_81] : memref<64x128xf32, #tpu.memory_space<vmem>>, vector<64x128xf32>
    %101 = arith.truncf %99 : vector<64x128xf32> to vector<64x128xbf16>
    %c7 = arith.constant 7 : index
    %c0_82 = arith.constant 0 : index
    %c0_83 = arith.constant 0 : index
    %102 = vector.load %arg3[%c7, %c0_82, %c0_83] : memref<9x128x128xbf16, #tpu.memory_space<vmem>>, vector<1x128x128xbf16>
    %103 = vector.shape_cast %102 : vector<1x128x128xbf16> to vector<128x128xbf16>
    %cst_84 = arith.constant dense<0.000000e+00> : vector<64x128xf32>
    %104 = tpu.matmul %101, %103, %cst_84 {dimension_numbers = #tpu.dot_dimension_numbers<[1], [0], [0], [1], [0, 0, 1, 1], [], []>} : vector<64x128xbf16>, vector<128x128xbf16>, vector<64x128xf32> -> vector<64x128xf32>
    %105 = arith.addf %100, %104 : vector<64x128xf32>
    %c0_85 = arith.constant 0 : index
    %c0_86 = arith.constant 0 : index
    %106 = vector.load %arg6[%c0_85, %c0_86] : memref<64x128xf32, #tpu.memory_space<vmem>>, vector<64x128xf32>
    tpu.vector_store %arg6[%c0_85, %c0_86], %105 {strides = array<i32>} : memref<64x128xf32, #tpu.memory_space<vmem>>, vector<64x128xf32>,
    %c2_i32_87 = arith.constant 2 : i32
    %107 = arith.addi %0, %c2_i32_87 : i32
    %c0_88 = arith.constant 0 : index
    %108 = arith.index_cast %107 : i32 to index
    %c2_89 = arith.constant 2 : index
    %c0_90 = arith.constant 0 : index
    %109 = vector.load %arg2[%c0_88, %108, %c2_89, %c0_90] : memref<1x10x10x128xbf16, #tpu.memory_space<vmem>>, vector<1x8x8x128xbf16>
    %110 = vector.shape_cast %109 : vector<1x8x8x128xbf16> to vector<8x8x128xbf16>
    %111 = arith.extf %110 : vector<8x8x128xbf16> to vector<8x8x128xf32>
    %112 = vector.shape_cast %111 : vector<8x8x128xf32> to vector<64x128xf32>
    %c0_91 = arith.constant 0 : index
    %c0_92 = arith.constant 0 : index
    %113 = vector.load %arg6[%c0_91, %c0_92] : memref<64x128xf32, #tpu.memory_space<vmem>>, vector<64x128xf32>
    %114 = arith.truncf %112 : vector<64x128xf32> to vector<64x128xbf16>
    %c8 = arith.constant 8 : index
    %c0_93 = arith.constant 0 : index
    %c0_94 = arith.constant 0 : index
    %115 = vector.load %arg3[%c8, %c0_93, %c0_94] : memref<9x128x128xbf16, #tpu.memory_space<vmem>>, vector<1x128x128xbf16>
    %116 = vector.shape_cast %115 : vector<1x128x128xbf16> to vector<128x128xbf16>
    %cst_95 = arith.constant dense<0.000000e+00> : vector<64x128xf32>
    %117 = tpu.matmul %114, %116, %cst_95 {dimension_numbers = #tpu.dot_dimension_numbers<[1], [0], [0], [1], [0, 0, 1, 1], [], []>} : vector<64x128xbf16>, vector<128x128xbf16>, vector<64x128xf32> -> vector<64x128xf32>
    %118 = arith.addf %113, %117 : vector<64x128xf32>
    %c0_96 = arith.constant 0 : index
    %c0_97 = arith.constant 0 : index
    %119 = vector.load %arg6[%c0_96, %c0_97] : memref<64x128xf32, #tpu.memory_space<vmem>>, vector<64x128xf32>
    tpu.vector_store %arg6[%c0_96, %c0_97], %118 {strides = array<i32>} : memref<64x128xf32, #tpu.memory_space<vmem>>, vector<64x128xf32>,
    %c0_98 = arith.constant 0 : index
    %c0_99 = arith.constant 0 : index
    %120 = vector.load %arg6[%c0_98, %c0_99] : memref<64x128xf32, #tpu.memory_space<vmem>>, vector<64x128xf32>
    %cst_100 = arith.constant dense<0.000000e+00> : vector<128xf32>
    %121 = vector.multi_reduction <add>, %120, %cst_100 [0] : vector<64x128xf32> to vector<128xf32>
    %122 = vector.shape_cast %121 : vector<128xf32> to vector<1x128xf32>
    %c0_101 = arith.constant 0 : index
    %c0_102 = arith.constant 0 : index
    %c0_103 = arith.constant 0 : index
    %c0_104 = arith.constant 0 : index
    %123 = vector.load %arg5[%c0_101, %c0_102, %c0_103, %c0_104] : memref<1x1x2x128xf32, #tpu.memory_space<vmem>>, vector<1x1x1x128xf32>
    %124 = vector.shape_cast %123 : vector<1x1x1x128xf32> to vector<1x128xf32>
    %125 = vector.shape_cast %122 : vector<1x128xf32> to vector<1x1x1x128xf32>
    tpu.vector_store %arg5[%c0_101, %c0_102, %c0_103, %c0_104], %125 {strides = array<i32>} : memref<1x1x2x128xf32, #tpu.memory_space<vmem>>, vector<1x1x1x128xf32>,
    %126 = arith.mulf %120, %120 : vector<64x128xf32>
    %cst_105 = arith.constant dense<0.000000e+00> : vector<128xf32>
    %127 = vector.multi_reduction <add>, %126, %cst_105 [0] : vector<64x128xf32> to vector<128xf32>
    %128 = vector.shape_cast %127 : vector<128xf32> to vector<1x128xf32>
    %c0_106 = arith.constant 0 : index
    %c0_107 = arith.constant 0 : index
    %c1_108 = arith.constant 1 : index
    %c0_109 = arith.constant 0 : index
    %129 = vector.load %arg5[%c0_106, %c0_107, %c1_108, %c0_109] : memref<1x1x2x128xf32, #tpu.memory_space<vmem>>, vector<1x1x1x128xf32>
    %130 = vector.shape_cast %129 : vector<1x1x1x128xf32> to vector<1x128xf32>
    %131 = vector.shape_cast %128 : vector<1x128xf32> to vector<1x1x1x128xf32>
    tpu.vector_store %arg5[%c0_106, %c0_107, %c1_108, %c0_109], %131 {strides = array<i32>} : memref<1x1x2x128xf32, #tpu.memory_space<vmem>>, vector<1x1x1x128xf32>,
    %132 = arith.truncf %120 : vector<64x128xf32> to vector<64x128xbf16>
    %c0_110 = arith.constant 0 : index
    %c0_111 = arith.constant 0 : index
    %c0_112 = arith.constant 0 : index
    %133 = vector.load %arg4[%c0_110, %c0_111, %c0_112] : memref<1x64x128xbf16, #tpu.memory_space<vmem>>, vector<1x64x128xbf16>
    %134 = vector.shape_cast %133 : vector<1x64x128xbf16> to vector<64x128xbf16>
    %135 = vector.shape_cast %132 : vector<64x128xbf16> to vector<1x64x128xbf16>
    tpu.vector_store %arg4[%c0_110, %c0_111, %c0_112], %135 {strides = array<i32>} : memref<1x64x128xbf16, #tpu.memory_space<vmem>>, vector<1x64x128xbf16>,
    return
  }
  func.func @transform_0(%arg0: i32, %arg1: i32) -> (i32, i32, i32, i32) {
    %c0_i32 = arith.constant 0 : i32
    %c0_i32_0 = arith.constant 0 : i32
    %c0_i32_1 = arith.constant 0 : i32
    %c0_i32_2 = arith.constant 0 : i32
    return %arg0, %c0_i32, %c0_i32_0, %c0_i32_1 : i32, i32, i32, i32
  }
  func.func @transform_1(%arg0: i32, %arg1: i32) -> (i32, i32, i32) {
    %c0_i32 = arith.constant 0 : i32
    %c0_i32_0 = arith.constant 0 : i32
    %c0_i32_1 = arith.constant 0 : i32
    %c0_i32_2 = arith.constant 0 : i32
    return %c0_i32, %c0_i32_0, %c0_i32_1 : i32, i32, i32
  }
  func.func @transform_2(%arg0: i32, %arg1: i32) -> (i32, i32, i32) {
    %c0_i32 = arith.constant 0 : i32
    %c0_i32_0 = arith.constant 0 : i32
    return %arg0, %arg1, %c0_i32 : i32, i32, i32
  }
  func.func @transform_3(%arg0: i32, %arg1: i32) -> (i32, i32, i32, i32) {
    %c0_i32 = arith.constant 0 : i32
    %c0_i32_0 = arith.constant 0 : i32
    %c0_i32_1 = arith.constant 0 : i32
    return %arg0, %arg1, %c0_i32, %c0_i32_0 : i32, i32, i32, i32
  }
}

module attributes {stable_mosaic.version = 11 : i64} {
  func.func @kernel(%arg0: i32, %arg1: i32, %arg2: memref<1x64x128xbf16, #tpu.memory_space<vmem>>, %arg3: memref<1x128xf32, #tpu.memory_space<vmem>>, %arg4: memref<1x128xf32, #tpu.memory_space<vmem>>, %arg5: memref<1x64x128xbf16, #tpu.memory_space<vmem>>, %arg6: memref<1x64x128xbf16, #tpu.memory_space<vmem>>) attributes {dimension_semantics = [#tpu.dimension_semantics<parallel>, #tpu.dimension_semantics<parallel>], iteration_bounds = array<i64: 2, 1>, scalar_prefetch = 0 : i64, scratch_operands = 0 : i64, tpu.core_type = #tpu.core_type<tc>, window_params = [{transform_indices = @transform_0, window_bounds = array<i64: 1, 64, 128>}, {pipeline_mode = #tpu.pipeline_mode<synchronous>, transform_indices = @transform_1, window_bounds = array<i64: 1, 128>}, {pipeline_mode = #tpu.pipeline_mode<synchronous>, transform_indices = @transform_2, window_bounds = array<i64: 1, 128>}, {transform_indices = @transform_3, window_bounds = array<i64: 1, 64, 128>}, {transform_indices = @transform_4, window_bounds = array<i64: 1, 64, 128>}]} {
    %c0 = arith.constant 0 : index
    %c0_0 = arith.constant 0 : index
    %c0_1 = arith.constant 0 : index
    %0 = vector.load %arg2[%c0, %c0_0, %c0_1] : memref<1x64x128xbf16, #tpu.memory_space<vmem>>, vector<1x64x128xbf16>
    %1 = arith.extf %0 : vector<1x64x128xbf16> to vector<1x64x128xf32>
    %c0_2 = arith.constant 0 : index
    %c0_3 = arith.constant 0 : index
    %2 = vector.load %arg3[%c0_2, %c0_3] : memref<1x128xf32, #tpu.memory_space<vmem>>, vector<1x128xf32>
    %3 = vector.shape_cast %2 : vector<1x128xf32> to vector<1x1x128xf32>
    %4 = vector.broadcast %3 : vector<1x1x128xf32> to vector<1x64x128xf32>
    %5 = arith.mulf %1, %4 : vector<1x64x128xf32>
    %c0_4 = arith.constant 0 : index
    %c0_5 = arith.constant 0 : index
    %6 = vector.load %arg4[%c0_4, %c0_5] : memref<1x128xf32, #tpu.memory_space<vmem>>, vector<1x128xf32>
    %7 = vector.shape_cast %6 : vector<1x128xf32> to vector<1x1x128xf32>
    %8 = vector.broadcast %7 : vector<1x1x128xf32> to vector<1x64x128xf32>
    %9 = arith.addf %5, %8 : vector<1x64x128xf32>
    %cst = arith.constant 0.000000e+00 : f32
    %10 = vector.broadcast %cst : f32 to vector<1x64x128xf32>
    %11 = arith.cmpf ogt, %9, %10 : vector<1x64x128xf32>
    %cst_6 = arith.constant 1.000000e-01 : f32
    %12 = vector.broadcast %cst_6 : f32 to vector<1x64x128xf32>
    %13 = arith.mulf %12, %9 : vector<1x64x128xf32>
    %14 = arith.select %11, %9, %13 : vector<1x64x128xi1>, vector<1x64x128xf32>
    %c0_7 = arith.constant 0 : index
    %c0_8 = arith.constant 0 : index
    %c0_9 = arith.constant 0 : index
    %15 = vector.load %arg5[%c0_7, %c0_8, %c0_9] : memref<1x64x128xbf16, #tpu.memory_space<vmem>>, vector<1x64x128xbf16>
    %16 = arith.extf %15 : vector<1x64x128xbf16> to vector<1x64x128xf32>
    %17 = arith.addf %14, %16 : vector<1x64x128xf32>
    %18 = arith.truncf %17 : vector<1x64x128xf32> to vector<1x64x128xbf16>
    %c0_10 = arith.constant 0 : index
    %c0_11 = arith.constant 0 : index
    %c0_12 = arith.constant 0 : index
    %19 = vector.load %arg6[%c0_10, %c0_11, %c0_12] : memref<1x64x128xbf16, #tpu.memory_space<vmem>>, vector<1x64x128xbf16>
    tpu.vector_store %arg6[%c0_10, %c0_11, %c0_12], %18 {strides = array<i32>} : memref<1x64x128xbf16, #tpu.memory_space<vmem>>, vector<1x64x128xbf16>,
    return
  }
  func.func @transform_0(%arg0: i32, %arg1: i32) -> (i32, i32, i32) {
    %c0_i32 = arith.constant 0 : i32
    %c0_i32_0 = arith.constant 0 : i32
    return %arg0, %arg1, %c0_i32 : i32, i32, i32
  }
  func.func @transform_1(%arg0: i32, %arg1: i32) -> (i32, i32) {
    %c0_i32 = arith.constant 0 : i32
    %c0_i32_0 = arith.constant 0 : i32
    %c0_i32_1 = arith.constant 0 : i32
    return %c0_i32, %c0_i32_0 : i32, i32
  }
  func.func @transform_2(%arg0: i32, %arg1: i32) -> (i32, i32) {
    %c0_i32 = arith.constant 0 : i32
    %c0_i32_0 = arith.constant 0 : i32
    %c0_i32_1 = arith.constant 0 : i32
    return %c0_i32, %c0_i32_0 : i32, i32
  }
  func.func @transform_3(%arg0: i32, %arg1: i32) -> (i32, i32, i32) {
    %c0_i32 = arith.constant 0 : i32
    %c0_i32_0 = arith.constant 0 : i32
    return %arg0, %arg1, %c0_i32 : i32, i32, i32
  }
  func.func @transform_4(%arg0: i32, %arg1: i32) -> (i32, i32, i32) {
    %c0_i32 = arith.constant 0 : i32
    %c0_i32_0 = arith.constant 0 : i32
    return %arg0, %arg1, %c0_i32 : i32, i32, i32
  }
}

module attributes {stable_mosaic.version = 11 : i64} {
  func.func @kernel(%arg0: i32, %arg1: i32, %arg2: memref<1x8x8x128xbf16, #tpu.memory_space<vmem>>, %arg3: memref<1x128x128xbf16, #tpu.memory_space<vmem>>, %arg4: memref<1x128xf32, #tpu.memory_space<vmem>>, %arg5: memref<1x64x128xf32, #tpu.memory_space<vmem>>, %arg6: memref<64x128xf32, #tpu.memory_space<vmem>>) attributes {dimension_semantics = [#tpu.dimension_semantics<parallel>, #tpu.dimension_semantics<parallel>], iteration_bounds = array<i64: 2, 1>, scalar_prefetch = 0 : i64, scratch_operands = 1 : i64, tpu.core_type = #tpu.core_type<tc>, window_params = [{transform_indices = @transform_0, window_bounds = array<i64: 1, 8, 8, 128>}, {pipeline_mode = #tpu.pipeline_mode<synchronous>, transform_indices = @transform_1, window_bounds = array<i64: 1, 128, 128>}, {pipeline_mode = #tpu.pipeline_mode<synchronous>, transform_indices = @transform_2, window_bounds = array<i64: 1, 128>}, {transform_indices = @transform_3, window_bounds = array<i64: 1, 64, 128>}]} {
    %c8_i32 = arith.constant 8 : i32
    %0 = arith.muli %arg1, %c8_i32 : i32
    %cst = arith.constant 0.000000e+00 : f32
    %1 = vector.broadcast %cst : f32 to vector<64x128xf32>
    %c0 = arith.constant 0 : index
    %c0_0 = arith.constant 0 : index
    %2 = vector.load %arg6[%c0, %c0_0] : memref<64x128xf32, #tpu.memory_space<vmem>>, vector<64x128xf32>
    tpu.vector_store %arg6[%c0, %c0_0], %1 {strides = array<i32>} : memref<64x128xf32, #tpu.memory_space<vmem>>, vector<64x128xf32>,
    %c0_i32 = arith.constant 0 : i32
    %3 = arith.addi %0, %c0_i32 : i32
    %c0_1 = arith.constant 0 : index
    %4 = arith.index_cast %3 : i32 to index
    %c0_2 = arith.constant 0 : index
    %c0_3 = arith.constant 0 : index
    %5 = vector.load %arg2[%c0_1, %4, %c0_2, %c0_3] : memref<1x8x8x128xbf16, #tpu.memory_space<vmem>>, vector<1x8x8x128xbf16>
    %6 = vector.shape_cast %5 : vector<1x8x8x128xbf16> to vector<8x8x128xbf16>
    %7 = arith.extf %6 : vector<8x8x128xbf16> to vector<8x8x128xf32>
    %8 = vector.shape_cast %7 : vector<8x8x128xf32> to vector<64x128xf32>
    %c0_4 = arith.constant 0 : index
    %c0_5 = arith.constant 0 : index
    %9 = vector.load %arg6[%c0_4, %c0_5] : memref<64x128xf32, #tpu.memory_space<vmem>>, vector<64x128xf32>
    %10 = arith.truncf %8 : vector<64x128xf32> to vector<64x128xbf16>
    %c0_6 = arith.constant 0 : index
    %c0_7 = arith.constant 0 : index
    %c0_8 = arith.constant 0 : index
    %11 = vector.load %arg3[%c0_6, %c0_7, %c0_8] : memref<1x128x128xbf16, #tpu.memory_space<vmem>>, vector<1x128x128xbf16>
    %12 = vector.shape_cast %11 : vector<1x128x128xbf16> to vector<128x128xbf16>
    %cst_9 = arith.constant dense<0.000000e+00> : vector<64x128xf32>
    %13 = tpu.matmul %10, %12, %cst_9 {dimension_numbers = #tpu.dot_dimension_numbers<[1], [0], [0], [1], [0, 0, 1, 1], [], []>} : vector<64x128xbf16>, vector<128x128xbf16>, vector<64x128xf32> -> vector<64x128xf32>
    %14 = arith.addf %9, %13 : vector<64x128xf32>
    %c0_10 = arith.constant 0 : index
    %c0_11 = arith.constant 0 : index
    %15 = vector.load %arg6[%c0_10, %c0_11] : memref<64x128xf32, #tpu.memory_space<vmem>>, vector<64x128xf32>
    tpu.vector_store %arg6[%c0_10, %c0_11], %14 {strides = array<i32>} : memref<64x128xf32, #tpu.memory_space<vmem>>, vector<64x128xf32>,
    %c0_12 = arith.constant 0 : index
    %c0_13 = arith.constant 0 : index
    %16 = vector.load %arg6[%c0_12, %c0_13] : memref<64x128xf32, #tpu.memory_space<vmem>>, vector<64x128xf32>
    %c0_14 = arith.constant 0 : index
    %c0_15 = arith.constant 0 : index
    %17 = vector.load %arg4[%c0_14, %c0_15] : memref<1x128xf32, #tpu.memory_space<vmem>>, vector<1x128xf32>
    %18 = vector.broadcast %17 : vector<1x128xf32> to vector<64x128xf32>
    %19 = arith.addf %16, %18 : vector<64x128xf32>
    %c0_16 = arith.constant 0 : index
    %c0_17 = arith.constant 0 : index
    %c0_18 = arith.constant 0 : index
    %20 = vector.load %arg5[%c0_16, %c0_17, %c0_18] : memref<1x64x128xf32, #tpu.memory_space<vmem>>, vector<1x64x128xf32>
    %21 = vector.shape_cast %20 : vector<1x64x128xf32> to vector<64x128xf32>
    %22 = vector.shape_cast %19 : vector<64x128xf32> to vector<1x64x128xf32>
    tpu.vector_store %arg5[%c0_16, %c0_17, %c0_18], %22 {strides = array<i32>} : memref<1x64x128xf32, #tpu.memory_space<vmem>>, vector<1x64x128xf32>,
    return
  }
  func.func @transform_0(%arg0: i32, %arg1: i32) -> (i32, i32, i32, i32) {
    %c0_i32 = arith.constant 0 : i32
    %c0_i32_0 = arith.constant 0 : i32
    %c0_i32_1 = arith.constant 0 : i32
    %c0_i32_2 = arith.constant 0 : i32
    return %arg0, %c0_i32, %c0_i32_0, %c0_i32_1 : i32, i32, i32, i32
  }
  func.func @transform_1(%arg0: i32, %arg1: i32) -> (i32, i32, i32) {
    %c0_i32 = arith.constant 0 : i32
    %c0_i32_0 = arith.constant 0 : i32
    %c0_i32_1 = arith.constant 0 : i32
    %c0_i32_2 = arith.constant 0 : i32
    return %c0_i32, %c0_i32_0, %c0_i32_1 : i32, i32, i32
  }
  func.func @transform_2(%arg0: i32, %arg1: i32) -> (i32, i32) {
    %c0_i32 = arith.constant 0 : i32
    %c0_i32_0 = arith.constant 0 : i32
    %c0_i32_1 = arith.constant 0 : i32
    return %c0_i32, %c0_i32_0 : i32, i32
  }
  func.func @transform_3(%arg0: i32, %arg1: i32) -> (i32, i32, i32) {
    %c0_i32 = arith.constant 0 : i32
    %c0_i32_0 = arith.constant 0 : i32
    return %arg0, %arg1, %c0_i32 : i32, i32, i32
  }
}

</mosaic_0001>

<bundles_post_ra>
// kernel: multilayer_forward.21
= control target key start
LH: loop header
LB: loop body
LE: loop exit
PB: predicated region body
PF: predicated region fallthrough
CT: control target
= control target key end

     0   :  { %s1016_s12 = smov 0   ;;  %s1018_s13 = smov 0   ;;  %s1167_s0 = inlined_call_operand.vmem [shape: bf16[2,256,128], index: 0, kind: input, shape index: {}]   ;;  %s1168_s1 = inlined_call_operand.vmem [shape: f32[1,128], index: 1, kind: input, shape index: {}]   ;;  %s1169_s2 = inlined_call_operand.vmem [shape: f32[1,128], index: 2, kind: input, shape index: {}]   ;;  %s1170_s3 = inlined_call_operand.vmem [shape: bf16[2,256,128], index: 3, kind: output, shape index: {}]  }
   0x1   :  { %s1020_s14 = smov 0  }
   0x2 LB: > { %s25_s15 = sadd.s32 1, %s990_s13  ;;  %p699_p0 = scmp.ge.s32.totalorder %s994_s14, 1  ;;  %s994_s14 = sphi %s1020_s14, %s13_s14   ;;  %s990_s13 = sphi %s1018_s13, %s1172_s13   ;;  %s986_s12 = sphi %s1016_s12, %s1171_s12  }
   0x3   : > { %p27_p1 = scmp.ge.s32.totalorder %s25_s15, 2  ;;  %p158_p2 = scmp.lt.s32.totalorder %s994_s14, 3 }
   0x5   : > { %s1174_s15 = smov (%p27_p1, %s25_s15), 0  ;;  %p159_p3 = pnand %p699_p0, %p158_p2 }
   0x6   : > { %p191_p4 = scmp.lt.s32.totalorder (!%p159_p3), %s986_s12, 1 }
   0x7   : > { %162 = sbr.rel (%p159_p3) target bundleno = 75 (0x4b), region = 32 }
   0xc   : > { %s1176_s12 = smov (!%p191_p4, %s986_s12), 1  ;;  %v1047_v0 = vld [vmem:[%s1168_s1] ss:$0 sm:$0xff] }
   0xd   : > { %s740_s16 = sshll.u32 %s1176_s12, 7  ;;  %v1056_v9 = vld [vmem:[%s1169_s2] ss:$0 sm:$0xff] }
   0xe   : > { %s1042_s19 = scalar_lea.vmem %s1167_s0, %s740_s16  ;;  %s1079_s26 = scalar_lea.vmem %s1170_s3, %s740_s16 }
   0xf   : > { %v775_v1 = vld [vmem:[%s1042_s19] sm:$0xff]   ;;  %v918_v2 = vld [vmem:[%s1042_s19 + $0x8] sm:$0xff]   ;;  %v919_v3 = vld [vmem:[%s1042_s19 + $0x10] sm:$0xff]  }
  0x10   : > { %v776_v4 = vunpack.c.l.bf16 %v775_v1  ;;  %v777_v5 = vunpack.c.h.bf16 %v775_v1  ;;  %v780_v6 = vunpack.c.l.bf16 %v918_v2  ;;  %v781_v7 = vunpack.c.h.bf16 %v918_v2  ;;  %v920_v8 = vld [vmem:[%s1042_s19 + $0x18] sm:$0xff]   ;;  %v921_v36 = vld [vmem:[%s1042_s19 + $0x20] sm:$0xff]   ;;  %v922_v41 = vld [vmem:[%s1042_s19 + $0x28] sm:$0xff]  }
  0x11   : > { %v784_v10 = vunpack.c.l.bf16 %v919_v3  ;;  %v785_v11 = vunpack.c.h.bf16 %v919_v3  ;;  %v788_v12 = vunpack.c.l.bf16 %v920_v8  ;;  %v789_v13 = vunpack.c.h.bf16 %v920_v8  ;;  %v923_v52 = vld [vmem:[%s1042_s19 + $0x30] sm:$0xff]   ;;  %v924_v53 = vld [vmem:[%s1042_s19 + $0x38] sm:$0xff]  }
  0x12   : > { %v281_v14 = vmul.f32 %v776_v4, %v1047_v0  ;;  %v282_v15 = vmul.f32 %v777_v5, %v1047_v0  ;;  %v283_v16 = vmul.f32 %v780_v6, %v1047_v0  ;;  %v284_v17 = vmul.f32 %v781_v7, %v1047_v0 }
  0x13   : > { %v285_v18 = vmul.f32 %v784_v10, %v1047_v0  ;;  %v286_v19 = vmul.f32 %v785_v11, %v1047_v0  ;;  %v287_v20 = vmul.f32 %v788_v12, %v1047_v0  ;;  %v288_v21 = vmul.f32 %v789_v13, %v1047_v0 }
  0x14   : > { %v320_v22 = vadd.f32 %v1056_v9, %v281_v14  ;;  %v321_v23 = vadd.f32 %v1056_v9, %v282_v15  ;;  %v322_v24 = vadd.f32 %v1056_v9, %v283_v16  ;;  %v323_v25 = vadd.f32 %v1056_v9, %v284_v17 }
  0x15   : > { %v324_v26 = vadd.f32 %v1056_v9, %v285_v18  ;;  %v325_v27 = vadd.f32 %v1056_v9, %v286_v19  ;;  %v326_v28 = vadd.f32 %v1056_v9, %v287_v20  ;;  %v327_v29 = vadd.f32 %v1056_v9, %v288_v21  ;;  %v925_v20 = vld [vmem:[%s1042_s19 + $0x40] sm:$0xff]  }
  0x16   : > { %vm352_vm0 = vcmp.gt.f32.partialorder %v320_v22, 0.0  ;;  %vm353_vm1 = vcmp.gt.f32.partialorder %v321_v23, 0.0  ;;  %v384_v30 = vmul.f32 0.1, %v320_v22  ;;  %v385_v31 = vmul.f32 0.1, %v321_v23 }
  0x17   : > { %vm354_vm2 = vcmp.gt.f32.partialorder %v322_v24, 0.0  ;;  %vm355_vm3 = vcmp.gt.f32.partialorder %v323_v25, 0.0  ;;  %v386_v32 = vmul.f32 0.1, %v322_v24  ;;  %v387_v33 = vmul.f32 0.1, %v323_v25 }
  0x18   : > { %v416_v34 = vsel %vm352_vm0, %v320_v22, %v384_v30  ;;  %v417_v35 = vsel %vm353_vm1, %v321_v23, %v385_v31  ;;  %vm356_vm4 = vcmp.gt.f32.partialorder %v324_v26, 0.0  ;;  %vm357_vm5 = vcmp.gt.f32.partialorder %v325_v27, 0.0 }
  0x19   : > { %v841_v37 = vpack.c.bf16 %v417_v35, %v416_v34  ;;  %v418_v38 = vsel %vm354_vm2, %v322_v24, %v386_v32  ;;  %v419_v39 = vsel %vm355_vm3, %v323_v25, %v387_v33  ;;  %v388_v40 = vmul.f32 0.1, %v324_v26  ;;  %v926_v24 = vld [vmem:[%s1042_s19 + $0x48] sm:$0xff]  }
  0x1a   : > { %v846_v42 = vpack.c.bf16 %v419_v39, %v418_v38  ;;  %v389_v43 = vmul.f32 0.1, %v325_v27  ;;  %vm358_vm6 = vcmp.gt.f32.partialorder %v326_v28, 0.0  ;;  %vm359_vm7 = vcmp.gt.f32.partialorder %v327_v29, 0.0 }
  0x1b   : > { %842 = vst [vmem:[%s1079_s26] sm:$0xff] %v841_v37   ;;  %v420_v44 = vsel %vm356_vm4, %v324_v26, %v388_v40  ;;  %v390_v45 = vmul.f32 0.1, %v326_v28  ;;  %v391_v46 = vmul.f32 0.1, %v327_v29  ;;  %v792_v47 = vunpack.c.l.bf16 %v921_v36 }
  0x1c   : > { %933 = vst [vmem:[%s1079_s26 + $0x8] sm:$0xff] %v846_v42   ;;  %v421_v48 = vsel %vm357_vm5, %v325_v27, %v389_v43  ;;  %v793_v49 = vunpack.c.h.bf16 %v921_v36  ;;  %v796_v50 = vunpack.c.l.bf16 %v922_v41  ;;  %v797_v51 = vunpack.c.h.bf16 %v922_v41  ;;  %v927_v36 = vld [vmem:[%s1042_s19 + $0x50] sm:$0xff]  }
  0x1d   : > { %v851_v54 = vpack.c.bf16 %v421_v48, %v420_v44  ;;  %v422_v55 = vsel %vm358_vm6, %v326_v28, %v390_v45  ;;  %v423_v56 = vsel %vm359_vm7, %v327_v29, %v391_v46  ;;  %v289_v57 = vmul.f32 %v792_v47, %v1047_v0 }
  0x1e   : > { %v856_v58 = vpack.c.bf16 %v423_v56, %v422_v55  ;;  %v290_v59 = vmul.f32 %v793_v49, %v1047_v0  ;;  %v291_v60 = vmul.f32 %v796_v50, %v1047_v0  ;;  %v292_v61 = vmul.f32 %v797_v51, %v1047_v0  ;;  %v928_v55 = vld [vmem:[%s1042_s19 + $0x58] sm:$0xff]  }
  0x1f   : > { %934 = vst [vmem:[%s1079_s26 + $0x10] sm:$0xff] %v851_v54   ;;  %v328_v62 = vadd.f32 %v1056_v9, %v289_v57  ;;  %v800_v63 = vunpack.c.l.bf16 %v923_v52  ;;  %v801_v1 = vunpack.c.h.bf16 %v923_v52  ;;  %v804_v2 = vunpack.c.l.bf16 %v924_v53 }
  0x20   : > { %935 = vst [vmem:[%s1079_s26 + $0x18] sm:$0xff] %v856_v58   ;;  %v329_v3 = vadd.f32 %v1056_v9, %v290_v59  ;;  %v330_v4 = vadd.f32 %v1056_v9, %v291_v60  ;;  %v331_v5 = vadd.f32 %v1056_v9, %v292_v61  ;;  %v805_v6 = vunpack.c.h.bf16 %v924_v53 }
  0x21   : > { %vm360_vm8 = vcmp.gt.f32.partialorder %v328_v62, 0.0  ;;  %v392_v7 = vmul.f32 0.1, %v328_v62  ;;  %v293_v8 = vmul.f32 %v800_v63, %v1047_v0  ;;  %v294_v10 = vmul.f32 %v801_v1, %v1047_v0  ;;  %v929_v1 = vld [vmem:[%s1042_s19 + $0x60] sm:$0xff]  }
  0x22   : > { %vm361_vm9 = vcmp.gt.f32.partialorder %v329_v3, 0.0  ;;  %v393_v11 = vmul.f32 0.1, %v329_v3  ;;  %vm362_vm10 = vcmp.gt.f32.partialorder %v330_v4, 0.0  ;;  %vm363_vm11 = vcmp.gt.f32.partialorder %v331_v5, 0.0 }
  0x23   : > { %v424_v12 = vsel %vm360_vm8, %v328_v62, %v392_v7  ;;  %v394_v13 = vmul.f32 0.1, %v330_v4  ;;  %v395_v14 = vmul.f32 0.1, %v331_v5  ;;  %v332_v15 = vadd.f32 %v1056_v9, %v293_v8 }
  0x24   : > { %v425_v16 = vsel %vm361_vm9, %v329_v3, %v393_v11  ;;  %v333_v17 = vadd.f32 %v1056_v9, %v294_v10  ;;  %v295_v18 = vmul.f32 %v804_v2, %v1047_v0  ;;  %v296_v19 = vmul.f32 %v805_v6, %v1047_v0  ;;  %v930_v6 = vld [vmem:[%s1042_s19 + $0x68] sm:$0xff]  }
  0x25   : > { %v861_v21 = vpack.c.bf16 %v425_v16, %v424_v12  ;;  %v426_v22 = vsel %vm362_vm10, %v330_v4, %v394_v13  ;;  %v427_v23 = vsel %vm363_vm11, %v331_v5, %v395_v14  ;;  %vm364_vm12 = vcmp.gt.f32.partialorder %v332_v15, 0.0 }
  0x26   : > { %v866_v25 = vpack.c.bf16 %v427_v23, %v426_v22  ;;  %vm365_vm13 = vcmp.gt.f32.partialorder %v333_v17, 0.0  ;;  %v396_v26 = vmul.f32 0.1, %v332_v15  ;;  %v397_v27 = vmul.f32 0.1, %v333_v17  ;;  %v931_v22 = vld [vmem:[%s1042_s19 + $0x70] sm:$0xff]  }
  0x27   : > { %936 = vst [vmem:[%s1079_s26 + $0x20] sm:$0xff] %v861_v21   ;;  %v334_v28 = vadd.f32 %v1056_v9, %v295_v18  ;;  %v335_v29 = vadd.f32 %v1056_v9, %v296_v19  ;;  %v808_v30 = vunpack.c.l.bf16 %v925_v20  ;;  %v809_v31 = vunpack.c.h.bf16 %v925_v20 }
  0x28   : > { %937 = vst [vmem:[%s1079_s26 + $0x28] sm:$0xff] %v866_v25   ;;  %v428_v32 = vsel %vm364_vm12, %v332_v15, %v396_v26  ;;  %v429_v33 = vsel %vm365_vm13, %v333_v17, %v397_v27  ;;  %v812_v34 = vunpack.c.l.bf16 %v926_v24  ;;  %v813_v35 = vunpack.c.h.bf16 %v926_v24 }
  0x29   : > { %v871_v37 = vpack.c.bf16 %v429_v33, %v428_v32  ;;  %vm366_vm14 = vcmp.gt.f32.partialorder %v334_v28, 0.0  ;;  %vm367_vm15 = vcmp.gt.f32.partialorder %v335_v29, 0.0  ;;  %v398_v38 = vmul.f32 0.1, %v334_v28 }
  0x2a   : > { %v399_v39 = vmul.f32 0.1, %v335_v29  ;;  %v297_v40 = vmul.f32 %v808_v30, %v1047_v0  ;;  %v298_v41 = vmul.f32 %v809_v31, %v1047_v0  ;;  %v299_v42 = vmul.f32 %v812_v34, %v1047_v0 }
  0x2b   : > { %938 = vst [vmem:[%s1079_s26 + $0x30] sm:$0xff] %v871_v37   ;;  %v430_v43 = vsel %vm366_vm14, %v334_v28, %v398_v38  ;;  %v300_v44 = vmul.f32 %v813_v35, %v1047_v0  ;;  %v816_v45 = vunpack.c.l.bf16 %v927_v36  ;;  %v817_v46 = vunpack.c.h.bf16 %v927_v36 }
  0x2c   : > { %v431_v47 = vsel %vm367_vm15, %v335_v29, %v399_v39  ;;  %v336_v48 = vadd.f32 %v1056_v9, %v297_v40  ;;  %v337_v49 = vadd.f32 %v1056_v9, %v298_v41  ;;  %v338_v50 = vadd.f32 %v1056_v9, %v299_v42  ;;  %v932_v41 = vld [vmem:[%s1042_s19 + $0x78] sm:$0xff]  }
  0x2d   : > { %v876_v51 = vpack.c.bf16 %v431_v47, %v430_v43  ;;  %v339_v52 = vadd.f32 %v1056_v9, %v300_v44  ;;  %v301_v53 = vmul.f32 %v816_v45, %v1047_v0  ;;  %v302_v54 = vmul.f32 %v817_v46, %v1047_v0 }
  0x2e   : > { %vm368_vm0 = vcmp.gt.f32.partialorder %v336_v48, 0.0  ;;  %vm369_vm1 = vcmp.gt.f32.partialorder %v337_v49, 0.0  ;;  %v400_v56 = vmul.f32 0.1, %v336_v48  ;;  %v401_v57 = vmul.f32 0.1, %v337_v49 }
  0x2f   : > { %939 = vst [vmem:[%s1079_s26 + $0x38] sm:$0xff] %v876_v51   ;;  %vm370_vm2 = vcmp.gt.f32.partialorder %v338_v50, 0.0  ;;  %vm371_vm3 = vcmp.gt.f32.partialorder %v339_v52, 0.0  ;;  %v402_v58 = vmul.f32 0.1, %v338_v50  ;;  %v340_v62 = vadd.f32 %v1056_v9, %v301_v53 }
  0x30   : > { %v403_v59 = vmul.f32 0.1, %v339_v52  ;;  %v432_v60 = vsel %vm368_vm0, %v336_v48, %v400_v56  ;;  %v433_v61 = vsel %vm369_vm1, %v337_v49, %v401_v57  ;;  %v341_v63 = vadd.f32 %v1056_v9, %v302_v54 }
  0x31   : > { %v881_v2 = vpack.c.bf16 %v433_v61, %v432_v60  ;;  %v434_v3 = vsel %vm370_vm2, %v338_v50, %v402_v58  ;;  %v820_v5 = vunpack.c.l.bf16 %v928_v55  ;;  %vm372_vm4 = vcmp.gt.f32.partialorder %v340_v62, 0.0 }
  0x32   : > { %v435_v4 = vsel %vm371_vm3, %v339_v52, %v403_v59  ;;  %vm373_vm5 = vcmp.gt.f32.partialorder %v341_v63, 0.0  ;;  %v404_v8 = vmul.f32 0.1, %v340_v62  ;;  %v405_v10 = vmul.f32 0.1, %v341_v63 }
  0x33   : > { %v886_v7 = vpack.c.bf16 %v435_v4, %v434_v3  ;;  %940 = vst [vmem:[%s1079_s26 + $0x40] sm:$0xff] %v881_v2   ;;  %v821_v11 = vunpack.c.h.bf16 %v928_v55  ;;  %v303_v12 = vmul.f32 %v820_v5, %v1047_v0  ;;  %v824_v13 = vunpack.c.l.bf16 %v929_v1 }
  0x34   : > { %v436_v14 = vsel %vm372_vm4, %v340_v62, %v404_v8  ;;  %v825_v15 = vunpack.c.h.bf16 %v929_v1  ;;  %v828_v16 = vunpack.c.l.bf16 %v930_v6  ;;  %v829_v17 = vunpack.c.h.bf16 %v930_v6 }
  0x35   : > { %941 = vst [vmem:[%s1079_s26 + $0x48] sm:$0xff] %v886_v7   ;;  %v437_v18 = vsel %vm373_vm5, %v341_v63, %v405_v10  ;;  %v304_v19 = vmul.f32 %v821_v11, %v1047_v0  ;;  %v342_v20 = vadd.f32 %v1056_v9, %v303_v12  ;;  %v305_v21 = vmul.f32 %v824_v13, %v1047_v0 }
  0x36   : > { %v891_v23 = vpack.c.bf16 %v437_v18, %v436_v14  ;;  %v306_v24 = vmul.f32 %v825_v15, %v1047_v0  ;;  %v307_v25 = vmul.f32 %v828_v16, %v1047_v0  ;;  %v308_v26 = vmul.f32 %v829_v17, %v1047_v0 }
  0x37   : > { %v343_v27 = vadd.f32 %v1056_v9, %v304_v19  ;;  %vm374_vm6 = vcmp.gt.f32.partialorder %v342_v20, 0.0  ;;  %v406_v28 = vmul.f32 0.1, %v342_v20  ;;  %v344_v29 = vadd.f32 %v1056_v9, %v305_v21 }
  0x38   : > { %942 = vst [vmem:[%s1079_s26 + $0x50] sm:$0xff] %v891_v23   ;;  %v345_v30 = vadd.f32 %v1056_v9, %v306_v24  ;;  %v346_v31 = vadd.f32 %v1056_v9, %v307_v25  ;;  %v347_v32 = vadd.f32 %v1056_v9, %v308_v26  ;;  %v832_v33 = vunpack.c.l.bf16 %v931_v22 }
  0x39   : > { %vm375_vm7 = vcmp.gt.f32.partialorder %v343_v27, 0.0  ;;  %v407_v34 = vmul.f32 0.1, %v343_v27  ;;  %v438_v35 = vsel %vm374_vm6, %v342_v20, %v406_v28  ;;  %vm376_vm8 = vcmp.gt.f32.partialorder %v344_v29, 0.0 }
  0x3a   : > { %vm377_vm9 = vcmp.gt.f32.partialorder %v345_v30, 0.0  ;;  %v408_v36 = vmul.f32 0.1, %v344_v29  ;;  %v409_v37 = vmul.f32 0.1, %v345_v30  ;;  %vm378_vm10 = vcmp.gt.f32.partialorder %v346_v31, 0.0 }
  0x3b   : > { %v439_v38 = vsel %vm375_vm7, %v343_v27, %v407_v34  ;;  %vm379_vm11 = vcmp.gt.f32.partialorder %v347_v32, 0.0  ;;  %v410_v39 = vmul.f32 0.1, %v346_v31  ;;  %v411_v40 = vmul.f32 0.1, %v347_v32 }
  0x3c   : > { %v896_v42 = vpack.c.bf16 %v439_v38, %v438_v35  ;;  %v440_v43 = vsel %vm376_vm8, %v344_v29, %v408_v36  ;;  %v441_v44 = vsel %vm377_vm9, %v345_v30, %v409_v37  ;;  %v833_v45 = vunpack.c.h.bf16 %v931_v22 }
  0x3d   : > { %v901_v46 = vpack.c.bf16 %v441_v44, %v440_v43  ;;  %v442_v47 = vsel %vm378_vm10, %v346_v31, %v410_v39  ;;  %v443_v48 = vsel %vm379_vm11, %v347_v32, %v411_v40  ;;  %v309_v49 = vmul.f32 %v832_v33, %v1047_v0 }
  0x3e   : > { %943 = vst [vmem:[%s1079_s26 + $0x58] sm:$0xff] %v896_v42   ;;  %v906_v50 = vpack.c.bf16 %v443_v48, %v442_v47  ;;  %v310_v51 = vmul.f32 %v833_v45, %v1047_v0  ;;  %v836_v52 = vunpack.c.l.bf16 %v932_v41  ;;  %v837_v53 = vunpack.c.h.bf16 %v932_v41 }
  0x3f   : > { %944 = vst [vmem:[%s1079_s26 + $0x60] sm:$0xff] %v901_v46   ;;  %v348_v54 = vadd.f32 %v1056_v9, %v309_v49 }
  0x40   : > { %945 = vst [vmem:[%s1079_s26 + $0x68] sm:$0xff] %v906_v50   ;;  %v349_v55 = vadd.f32 %v1056_v9, %v310_v51  ;;  %v311_v56 = vmul.f32 %v836_v52, %v1047_v0  ;;  %v312_v57 = vmul.f32 %v837_v53, %v1047_v0 }
  0x41   : > { %vm380_vm12 = vcmp.gt.f32.partialorder %v348_v54, 0.0  ;;  %v412_v58 = vmul.f32 0.1, %v348_v54 }
  0x42   : > { %vm381_vm13 = vcmp.gt.f32.partialorder %v349_v55, 0.0  ;;  %v413_v59 = vmul.f32 0.1, %v349_v55  ;;  %v350_v60 = vadd.f32 %v1056_v9, %v311_v56  ;;  %v351_v61 = vadd.f32 %v1056_v9, %v312_v57 }
  0x43   : > { %v444_v62 = vsel %vm380_vm12, %v348_v54, %v412_v58 }
  0x44   : > { %v445_v63 = vsel %vm381_vm13, %v349_v55, %v413_v59  ;;  %vm382_vm14 = vcmp.gt.f32.partialorder %v350_v60, 0.0  ;;  %vm383_vm15 = vcmp.gt.f32.partialorder %v351_v61, 0.0  ;;  %v414_v1 = vmul.f32 0.1, %v350_v60 }
  0x45   : > { %v911_v2 = vpack.c.bf16 %v445_v63, %v444_v62  ;;  %v415_v3 = vmul.f32 0.1, %v351_v61 }
  0x46   : > { %v446_v4 = vsel %vm382_vm14, %v350_v60, %v414_v1 }
  0x47   : > { %946 = vst [vmem:[%s1079_s26 + $0x70] sm:$0xff] %v911_v2   ;;  %v447_v5 = vsel %vm383_vm15, %v351_v61, %v415_v3 }
  0x48   : > { %v916_v0 = vpack.c.bf16 %v447_v5, %v446_v4 }
  0x4a   : > { %947 = vst [vmem:[%s1079_s26 + $0x78] sm:$0xff] %v916_v0  }
  0x4b PF: > { %s13_s14 = sadd.s32 1, %s994_s14   ;;  %s1171_s12 = smov %s990_s13 }
  0x4c   : > { %p10_p5 = scmp.ge.s32.totalorder %s13_s14, 4   ;;  %s1172_s13 = smov %s1174_s15 }
  0x4e   :  { %12 = sbr.rel (!%p10_p5) target bundleno = 2 (0x2), region = 62 }

// kernel: multilayer_forward.23
= control target key start
LH: loop header
LB: loop body
LE: loop exit
PB: predicated region body
PF: predicated region fallthrough
CT: control target
= control target key end

     0   :  { %s803_s12 = smov 0   ;;  %s805_s13 = smov 0   ;;  %s877_s0 = inlined_call_operand.vmem [shape: bf16[2,8,8,128], index: 0, kind: input, shape index: {}]   ;;  %s878_s1 = inlined_call_operand.vmem [shape: bf16[1,128,128], index: 1, kind: input, shape index: {}]   ;;  %s879_s2 = inlined_call_operand.vmem [shape: bf16[2,64,128], index: 2, kind: output, shape index: {0}]   ;;  %s880_s3 = inlined_call_operand.vmem [shape: f32[2,1,2,128], index: 3, kind: output, shape index: {1}]  }
   0x1   :  { %s807_s14 = smov 0  }
   0x2 LB: > { %s26_s15 = sadd.s32 1, %s777_s13  ;;  %p610_p0 = scmp.ge.s32.totalorder %s781_s14, 1  ;;  %s781_s14 = sphi %s807_s14, %s14_s14   ;;  %s777_s13 = sphi %s805_s13, %s882_s13   ;;  %s773_s12 = sphi %s803_s12, %s881_s12  }
   0x3   : > { %p28_p1 = scmp.ge.s32.totalorder %s26_s15, 2  ;;  %p156_p2 = scmp.lt.s32.totalorder %s781_s14, 3 }
   0x5   : > { %s884_s15 = smov (%p28_p1, %s26_s15), 0  ;;  %p157_p3 = pnand %p610_p0, %p156_p2 }
   0x6   : > { %p191_p4 = scmp.lt.s32.totalorder (!%p157_p3), %s773_s12, 1 }
   0x7   : > { %160 = sbr.rel (%p157_p3) target bundleno = 273 (0x111), region = 28 }
   0xc   : > { %v747_v0 = vld [vmem:[%s878_s1 + $0x38] sm:$0xff]   ;;  %v748_v1 = vld [vmem:[%s878_s1 + $0x30] sm:$0xff]   ;;  %s886_s12 = smov (!%p191_p4, %s773_s12), 1  ;;  %v749_v2 = vld [vmem:[%s878_s1 + $0x28] sm:$0xff]  }
   0xd   : > { %683 = vmatprep.subr.bf16.mxu0 %v747_v0  ;;  %707 = vmatprep.subr.bf16.mxu1 %v747_v0  ;;  %s638_s22 = sshll.u32 %s886_s12, 5  ;;  %v750_v3 = vld [vmem:[%s878_s1 + $0x20] sm:$0xff]   ;;  %v751_v6 = vld [vmem:[%s878_s1 + $0x18] sm:$0xff]   ;;  %v752_v7 = vld [vmem:[%s878_s1 + $0x10] sm:$0xff]   ;;  %s615_s16 = sshll.u32 %s886_s12, 1 }
   0xe   : > { %684 = vmatpush3.bf16.msra.mxu0 %v747_v0  ;;  %715 = vmatpush3.bf16.msra.mxu1 %v747_v0  ;;  %s838_s25 = scalar_lea.vmem %s877_s0, %s638_s22  ;;  %v753_v8 = vld [vmem:[%s878_s1 + $0x8] sm:$0xff]   ;;  %v754_v9 = vld [vmem:[%s878_s1] sm:$0xff]   ;;  %s204_s11 = scalar_lea.vmem %s879_s2, %s638_s22 }
   0xf   : > { %685 = vmatprep.subr.bf16.mxu0 %v748_v1  ;;  %708 = vmatprep.subr.bf16.mxu1 %v748_v1  ;;  %v755_v4 = vld [vmem:[%s838_s25] sm:$0xff]   ;;  %v757_v5 = vld [vmem:[%s838_s25 + $0x10] sm:$0xff]   ;;  %v756_v10 = vld [vmem:[%s838_s25 + $0x8] sm:$0xff]   ;;  %s212_s19 = scalar_lea.vmem %s880_s3, %s615_s16 }
  0x10   : > { %699 = vmatprep.mubr.bf16.mxu0 %v755_v4  ;;  %703 = vmatprep.mubr.bf16.mxu1 %v757_v5  ;;  %v758_v11 = vld [vmem:[%s838_s25 + $0x18] sm:$0xff]  }
  0x12   : > { %686 = vmatpush3.bf16.msra.mxu0 %v748_v1  ;;  %716 = vmatpush3.bf16.msra.mxu1 %v748_v1 }
  0x13   : > { %687 = vmatprep.subr.bf16.mxu0 %v749_v2  ;;  %709 = vmatprep.subr.bf16.mxu1 %v749_v2 }
  0x16   : > { %688 = vmatpush3.bf16.msra.mxu0 %v749_v2  ;;  %717 = vmatpush3.bf16.msra.mxu1 %v749_v2 }
  0x17   : > { %689 = vmatprep.subr.bf16.mxu0 %v750_v3  ;;  %710 = vmatprep.subr.bf16.mxu1 %v750_v3 }
  0x1a   : > { %690 = vmatpush3.bf16.msra.mxu0 %v750_v3  ;;  %718 = vmatpush3.bf16.msra.mxu1 %v750_v3 }
  0x1b   : > { %691 = vmatprep.subr.bf16.mxu0 %v751_v6  ;;  %711 = vmatprep.subr.bf16.mxu1 %v751_v6 }
  0x1e   : > { %692 = vmatpush3.bf16.msra.mxu0 %v751_v6  ;;  %719 = vmatpush3.bf16.msra.mxu1 %v751_v6 }
  0x1f   : > { %693 = vmatprep.subr.bf16.mxu0 %v752_v7  ;;  %712 = vmatprep.subr.bf16.mxu1 %v752_v7 }
  0x22   : > { %694 = vmatpush3.bf16.msra.mxu0 %v752_v7  ;;  %720 = vmatpush3.bf16.msra.mxu1 %v752_v7 }
  0x23   : > { %695 = vmatprep.subr.bf16.mxu0 %v753_v8  ;;  %713 = vmatprep.subr.bf16.mxu1 %v753_v8 }
  0x26   : > { %696 = vmatpush3.bf16.msra.mxu0 %v753_v8  ;;  %721 = vmatpush3.bf16.msra.mxu1 %v753_v8 }
  0x27   : > { %697 = vmatprep.subr.bf16.mxu0 %v754_v9  ;;  %714 = vmatprep.subr.bf16.mxu1 %v754_v9 }
  0x2a   : > { %698 = vmatpush3.bf16.msra.mxu0 %v754_v9  ;;  %722 = vmatpush3.bf16.msra.mxu1 %v754_v9 }
  0x2d   : > { %700 = vmatmul.mubr.bf16.vlgmr.msra.gmra.mxu0 %v756_v10  ;;  %704 = vmatmul.mubr.bf16.vlgmr.msra.gmra.mxu1 %v758_v11 }
  0xed   : > { %v701_v12 = vpop.f32.mrf.mxu0  ;;  %v705_v13 = vpop.f32.mrf.mxu1 }
  0xee   : > { %v422_v27 = vmul.f32 %v701_v12, %v701_v12  ;;  %v426_v39 = vmul.f32 %v705_v13, %v705_v13 }
  0xef   : > { %v351_v14 = vpop.f32.mrf.mxu0  ;;  %v367_v15 = vpop.f32.mrf.mxu1 }
  0xf0   : > { %v420_v22 = vmul.f32 %v351_v14, %v351_v14  ;;  %v424_v33 = vmul.f32 %v367_v15, %v367_v15 }
  0xf1   : > { %v702_v16 = vpop.f32.mrf.mxu0  ;;  %v706_v17 = vpop.f32.mrf.mxu1 }
  0xf2   : > { %v656_v18 = vpack.c.bf16 %v702_v16, %v701_v12  ;;  %v666_v19 = vpack.c.bf16 %v706_v17, %v705_v13  ;;  %v423_v30 = vmul.f32 %v702_v16, %v702_v16  ;;  %v427_v42 = vmul.f32 %v706_v17, %v706_v17 }
  0xf3   : > { %v354_v20 = vpop.f32.mrf.mxu0  ;;  %v370_v21 = vpop.f32.mrf.mxu1 }
  0xf4   : > { %668 = vst [vmem:[%s204_s11 + $0x8] sm:$0xff] %v656_v18   ;;  %v406_v23 = vadd.f32 %v354_v20, %v351_v14  ;;  %v421_v24 = vmul.f32 %v354_v20, %v354_v20  ;;  %v651_v25 = vpack.c.bf16 %v354_v20, %v351_v14  ;;  %670 = vst [vmem:[%s204_s11 + $0x18] sm:$0xff] %v666_v19  }
  0xf5   : > { %v661_v26 = vpack.c.bf16 %v370_v21, %v367_v15  ;;  %v425_v37 = vmul.f32 %v370_v21, %v370_v21 }
  0xf6   : > { %v407_v28 = vadd.f32 %v701_v12, %v406_v23  ;;  %v428_v29 = vadd.f32 %v421_v24, %v420_v22  ;;  %652 = vst [vmem:[%s204_s11] sm:$0xff] %v651_v25  }
  0xf7   : > { %669 = vst [vmem:[%s204_s11 + $0x10] sm:$0xff] %v661_v26  }
  0xf8   : > { %v429_v31 = vadd.f32 %v428_v29, %v422_v27  ;;  %v408_v32 = vadd.f32 %v702_v16, %v407_v28 }
  0xfa   : > { %v409_v34 = vadd.f32 %v408_v32, %v367_v15  ;;  %v430_v35 = vadd.f32 %v429_v31, %v423_v30 }
  0xfc   : > { %v410_v36 = vadd.f32 %v409_v34, %v370_v21  ;;  %v431_v38 = vadd.f32 %v430_v35, %v424_v33 }
  0xfe   : > { %v411_v40 = vadd.f32 %v705_v13, %v410_v36  ;;  %v432_v41 = vadd.f32 %v431_v38, %v425_v37 }
 0x100   : > { %v412_v43 = vadd.f32 %v706_v17, %v411_v40  ;;  %v433_v44 = vadd.f32 %v432_v41, %v426_v39 }
 0x102   : > { %v413_v45 = vrot.slane %v412_v43, 4  ;;  %v434_v46 = vadd.f32 %v433_v44, %v427_v42 }
 0x104   : > { %v414_v47 = vadd.f32 %v413_v45, %v412_v43  ;;  %v435_v48 = vrot.slane %v434_v46, 4 }
 0x106   : > { %v415_v49 = vrot.slane %v414_v47, 2  ;;  %v436_v50 = vadd.f32 %v435_v48, %v434_v46 }
 0x108   : > { %v416_v51 = vadd.f32 %v415_v49, %v414_v47  ;;  %v437_v52 = vrot.slane %v436_v50, 2 }
 0x10a   : > { %v417_v53 = vrot.slane %v416_v51, 1  ;;  %v438_v54 = vadd.f32 %v437_v52, %v436_v50 }
 0x10c   : > { %v418_v55 = vadd.f32 %v417_v53, %v416_v51  ;;  %v439_v56 = vrot.slane %v438_v54, 1 }
 0x10e   : > { %419 = vst [vmem:[%s212_s19] sm:$0x1] %v418_v55  ;;  %v440_v57 = vadd.f32 %v439_v56, %v438_v54 }
 0x110   : > { %441 = vst [vmem:[%s212_s19 + $0x1] sm:$0x1] %v440_v57 }
 0x111 PF: > { %s14_s14 = sadd.s32 1, %s781_s14   ;;  %s881_s12 = smov %s777_s13 }
 0x112   : > { %p11_p5 = scmp.ge.s32.totalorder %s14_s14, 4   ;;  %s882_s13 = smov %s884_s15 }
 0x114   :  { %13 = sbr.rel (!%p11_p5) target bundleno = 2 (0x2), region = 71 }

// kernel: multilayer_forward.22
= control target key start
LH: loop header
LB: loop body
LE: loop exit
PB: predicated region body
PF: predicated region fallthrough
CT: control target
= control target key end

     0   :  { %s875_s1 = inlined_call_operand.vmem [shape: bf16[128,128], index: 1, kind: input, shape index: {}]   ;;  %s876_s0 = inlined_call_operand.vmem [shape: bf16[128,128], index: 0, kind: input, shape index: {}]   ;;  %s877_s2 = inlined_call_operand.vmem [shape: f32[1,128], index: 2, kind: input, shape index: {}]   ;;  %s878_s3 = inlined_call_operand.vmem [shape: f32[1,128], index: 3, kind: input, shape index: {}]   ;;  %s879_s4 = inlined_call_operand.vmem [shape: bf16[128,128], index: 4, kind: output, shape index: {}]  }
   0x1   :  { %v648_v0 = vld [vmem:[%s875_s1 + $0x38] sm:$0xff]   ;;  %v649_v1 = vld [vmem:[%s875_s1 + $0x30] sm:$0xff]   ;;  %v650_v2 = vld [vmem:[%s875_s1 + $0x28] sm:$0xff]  }
   0x2   :  { %600 = vmatprep.subr.bf16.mxu0 %v648_v0  ;;  %632 = vmatprep.subr.bf16.mxu1 %v648_v0  ;;  %v651_v3 = vld [vmem:[%s875_s1 + $0x20] sm:$0xff]   ;;  %v652_v5 = vld [vmem:[%s875_s1 + $0x18] sm:$0xff]   ;;  %v653_v7 = vld [vmem:[%s875_s1 + $0x10] sm:$0xff]  }
   0x3   :  { %601 = vmatpush3.bf16.msra.mxu0 %v648_v0  ;;  %640 = vmatpush3.bf16.msra.mxu1 %v648_v0  ;;  %v656_v4 = vld [vmem:[%s876_s0] sm:$0xff]   ;;  %v654_v8 = vld [vmem:[%s875_s1 + $0x8] sm:$0xff]   ;;  %v658_v12 = vld [vmem:[%s876_s0 + $0x10] sm:$0xff]  }
   0x4   :  { %602 = vmatprep.subr.bf16.mxu0 %v649_v1  ;;  %633 = vmatprep.subr.bf16.mxu1 %v649_v1  ;;  %v660_v6 = vld [vmem:[%s876_s0 + $0x20] sm:$0xff]   ;;  %v657_v10 = vld [vmem:[%s876_s0 + $0x8] sm:$0xff]   ;;  %v662_v13 = vld [vmem:[%s876_s0 + $0x30] sm:$0xff]  }
   0x5   :  { %616 = vmatprep.mubr.bf16.mxu0 %v656_v4  ;;  %624 = vmatprep.mubr.bf16.mxu1 %v660_v6  ;;  %v655_v9 = vld [vmem:[%s875_s1] sm:$0xff]   ;;  %v661_v11 = vld [vmem:[%s876_s0 + $0x28] sm:$0xff]   ;;  %v659_v14 = vld [vmem:[%s876_s0 + $0x18] sm:$0xff]  }
   0x6   :  { %v663_v15 = vld [vmem:[%s876_s0 + $0x38] sm:$0xff]  }
   0x7   :  { %603 = vmatpush3.bf16.msra.mxu0 %v649_v1  ;;  %641 = vmatpush3.bf16.msra.mxu1 %v649_v1 }
   0x8   :  { %604 = vmatprep.subr.bf16.mxu0 %v650_v2  ;;  %634 = vmatprep.subr.bf16.mxu1 %v650_v2 }
   0xb   :  { %605 = vmatpush3.bf16.msra.mxu0 %v650_v2  ;;  %642 = vmatpush3.bf16.msra.mxu1 %v650_v2 }
   0xc   :  { %606 = vmatprep.subr.bf16.mxu0 %v651_v3  ;;  %635 = vmatprep.subr.bf16.mxu1 %v651_v3 }
   0xf   :  { %607 = vmatpush3.bf16.msra.mxu0 %v651_v3  ;;  %643 = vmatpush3.bf16.msra.mxu1 %v651_v3 }
  0x10   :  { %608 = vmatprep.subr.bf16.mxu0 %v652_v5  ;;  %636 = vmatprep.subr.bf16.mxu1 %v652_v5 }
  0x13   :  { %609 = vmatpush3.bf16.msra.mxu0 %v652_v5  ;;  %644 = vmatpush3.bf16.msra.mxu1 %v652_v5 }
  0x14   :  { %610 = vmatprep.subr.bf16.mxu0 %v653_v7  ;;  %637 = vmatprep.subr.bf16.mxu1 %v653_v7 }
  0x17   :  { %611 = vmatpush3.bf16.msra.mxu0 %v653_v7  ;;  %645 = vmatpush3.bf16.msra.mxu1 %v653_v7 }
  0x18   :  { %612 = vmatprep.subr.bf16.mxu0 %v654_v8  ;;  %638 = vmatprep.subr.bf16.mxu1 %v654_v8 }
  0x1b   :  { %613 = vmatpush3.bf16.msra.mxu0 %v654_v8  ;;  %646 = vmatpush3.bf16.msra.mxu1 %v654_v8 }
  0x1c   :  { %614 = vmatprep.subr.bf16.mxu0 %v655_v9  ;;  %639 = vmatprep.subr.bf16.mxu1 %v655_v9 }
  0x1f   :  { %615 = vmatpush3.bf16.msra.mxu0 %v655_v9  ;;  %647 = vmatpush3.bf16.msra.mxu1 %v655_v9 }
  0x22   :  { %617 = vmatmul.mubr.bf16.vlgmr.msra.gmra.mxu0 %v657_v10  ;;  %625 = vmatmul.mubr.bf16.vlgmr.msra.gmra.mxu1 %v661_v11 }
  0x23   :  { %620 = vmatprep.mubr.bf16.mxu0 %v658_v12  ;;  %628 = vmatprep.mubr.bf16.mxu1 %v662_v13 }
  0x2a   :  { %621 = vmatmul.mubr.bf16.gmra.mxu0 %v659_v14  ;;  %629 = vmatmul.mubr.bf16.gmra.mxu1 %v663_v15 }
  0xe2   :  { %v739_v16 = vpop.f32.mrf.mxu0  ;;  %v741_v17 = vpop.f32.mrf.mxu1 }
  0xe3   :  { %v266_v27 = vmul.f32 %v739_v16, %v739_v16  ;;  %v274_v58 = vmul.f32 %v741_v17, %v741_v17 }
  0xe4   :  { %v743_v18 = vpop.f32.mrf.mxu0  ;;  %v747_v20 = vpop.f32.mrf.mxu1 }
  0xe5   :  { %v264_v22 = vmul.f32 %v743_v18, %v743_v18  ;;  %v272_v51 = vmul.f32 %v747_v20, %v747_v20 }
  0xe6   :  { %v745_v19 = vpop.f32.mrf.mxu0  ;;  %v759_v26 = vpop.f32.mrf.mxu1 }
  0xe7   :  { %v267_v31 = vmul.f32 %v745_v19, %v745_v19  ;;  %v275_v61 = vmul.f32 %v759_v26, %v759_v26 }
  0xe8   :  { %v749_v21 = vpop.f32.mrf.mxu0  ;;  %v771_v35 = vpop.f32.mrf.mxu1 }
  0xe9   :  { %v243_v23 = vadd.f32 %v749_v21, %v743_v18  ;;  %v265_v24 = vmul.f32 %v749_v21, %v749_v21  ;;  %v273_v55 = vmul.f32 %v771_v35, %v771_v35 }
  0xea   :  { %v757_v25 = vpop.f32.mrf.mxu0  ;;  %v781_v43 = vpop.f32.mrf.mxu1 }
  0xeb   :  { %v244_v28 = vadd.f32 %v739_v16, %v243_v23  ;;  %v280_v29 = vadd.f32 %v265_v24, %v264_v22  ;;  %v270_v44 = vmul.f32 %v757_v25, %v757_v25  ;;  %v278_v7 = vmul.f32 %v781_v43, %v781_v43 }
  0xec   :  { %v764_v30 = vpop.f32.mrf.mxu0  ;;  %v789_v50 = vpop.f32.mrf.mxu1 }
  0xed   :  { %v281_v32 = vadd.f32 %v280_v29, %v266_v27  ;;  %v245_v33 = vadd.f32 %v745_v19, %v244_v28  ;;  %v268_v37 = vmul.f32 %v764_v30, %v764_v30  ;;  %v276_v2 = vmul.f32 %v789_v50, %v789_v50 }
  0xee   :  { %v769_v34 = vpop.f32.mrf.mxu0  ;;  %v797_v57 = vpop.f32.mrf.mxu1 }
  0xef   :  { %v246_v36 = vadd.f32 %v245_v33, %v764_v30  ;;  %v282_v38 = vadd.f32 %v281_v32, %v267_v31  ;;  %v271_v47 = vmul.f32 %v769_v34, %v769_v34  ;;  %v279_v10 = vmul.f32 %v797_v57, %v797_v57 }
  0xf0   :  { %v776_v39 = vpop.f32.mrf.mxu0  ;;  %v231_v0 = vpop.f32.mrf.mxu1 }
  0xf1   :  { %v283_v40 = vadd.f32 %v282_v38, %v268_v37  ;;  %v247_v41 = vadd.f32 %v246_v36, %v776_v39  ;;  %v269_v42 = vmul.f32 %v776_v39, %v776_v39  ;;  %v277_v6 = vmul.f32 %v231_v0, %v231_v0 }
  0xf3   :  { %v248_v45 = vadd.f32 %v757_v25, %v247_v41  ;;  %v284_v46 = vadd.f32 %v283_v40, %v269_v42 }
  0xf5   :  { %v249_v48 = vadd.f32 %v769_v34, %v248_v45  ;;  %v285_v49 = vadd.f32 %v284_v46, %v270_v44  ;;  %v314_v45 = vlaneseq }
  0xf7   :  { %v286_v52 = vadd.f32 %v285_v49, %v271_v47  ;;  %v250_v53 = vadd.f32 %v249_v48, %v747_v20  ;;  %v315_v46 = vshrl.u32 %v314_v45, 7  ;;  %v306_v47 = vld [vmem:[%s877_s2] sm:$0x1] }
  0xf9   :  { %v251_v54 = vadd.f32 %v250_v53, %v771_v35  ;;  %v287_v56 = vadd.f32 %v286_v52, %v272_v51  ;;  %v316_v48 = vsub.s32 0, %v315_v46  ;;  %v310_v52 = vld [vmem:[%s878_s3] sm:$0x1] }
  0xfb   :  { %v252_v59 = vadd.f32 %v741_v17, %v251_v54  ;;  %v288_v60 = vadd.f32 %v287_v56, %v273_v55 }
  0xfd   :  { %v289_v62 = vadd.f32 %v288_v60, %v274_v58  ;;  %v253_v63 = vadd.f32 %v759_v26, %v252_v59 }
  0xff   :  { %v254_v1 = vadd.f32 %v253_v63, %v789_v50  ;;  %v290_v3 = vadd.f32 %v289_v62, %v275_v61 }
 0x101   :  { %v291_v4 = vadd.f32 %v290_v3, %v276_v2  ;;  %v255_v5 = vadd.f32 %v254_v1, %v231_v0 }
 0x103   :  { %v256_v8 = vadd.f32 %v781_v43, %v255_v5  ;;  %v292_v9 = vadd.f32 %v291_v4, %v277_v6 }
 0x105   :  { %v257_v11 = vadd.f32 %v797_v57, %v256_v8  ;;  %v293_v12 = vadd.f32 %v292_v9, %v278_v7 }
 0x107   :  { %v258_v13 = vrot.slane %v257_v11, 4  ;;  %v294_v14 = vadd.f32 %v293_v12, %v279_v10 }
 0x109   :  { %v259_v15 = vadd.f32 %v258_v13, %v257_v11  ;;  %v295_v22 = vrot.slane %v294_v14, 4 }
 0x10b   :  { %v260_v23 = vrot.slane %v259_v15, 2  ;;  %v296_v24 = vadd.f32 %v295_v22, %v294_v14 }
 0x10d   :  { %v261_v27 = vadd.f32 %v260_v23, %v259_v15  ;;  %v297_v28 = vrot.slane %v296_v24, 2 }
 0x10f   :  { %v262_v29 = vrot.slane %v261_v27, 1  ;;  %v298_v31 = vadd.f32 %v297_v28, %v296_v24 }
 0x111   :  { %v263_v32 = vadd.f32 %v262_v29, %v261_v27  ;;  %v299_v33 = vrot.slane %v298_v31, 1 }
 0x113   :  { %v300_v36 = vadd.f32 %v299_v33, %v298_v31  ;;  %v301_v37 = vmul.f32 0.0078125, %v263_v32 }
 0x115   :  { %v302_v38 = vmul.f32 0.0078125, %v300_v36  ;;  %v303_v40 = vmul.f32 %v301_v37, %v301_v37 }
 0x117   :  { %v304_v41 = vsub.f32 %v302_v38, %v303_v40 }
 0x119   :  { %v305_v42 = vmax.f32 %v304_v41, 0.0 }
 0x11b   :  { %v307_v44 = vadd.f32 1e-05, %v305_v42 }
 0x11d   :  { %664 = vrsqrt.f32 %v307_v44 }
 0x12a   :  { %v665_v49 = vpop.eup %664 }
 0x12b   :  { %v309_v51 = vmul.f32 %v665_v49, %v306_v47 }
 0x12d   :  { %v311_v53 = vmul.f32 %v309_v51, %v301_v37  ;;  %v317_v54 = vrot.slane %v309_v51, %v316_v48 }
 0x12f   :  { %v312_v55 = vsub.f32 %v310_v52, %v311_v53  ;;  %v319_v56 = vmul.f32 %v317_v54, %v743_v18  ;;  %v320_v58 = vmul.f32 %v317_v54, %v749_v21  ;;  %v321_v59 = vmul.f32 %v739_v16, %v317_v54 }
 0x130   :  { %v322_v60 = vmul.f32 %v745_v19, %v317_v54  ;;  %v323_v61 = vmul.f32 %v317_v54, %v764_v30  ;;  %v324_v62 = vmul.f32 %v317_v54, %v776_v39  ;;  %v325_v63 = vmul.f32 %v757_v25, %v317_v54 }
 0x131   :  { %v326_v1 = vmul.f32 %v769_v34, %v317_v54  ;;  %v327_v2 = vmul.f32 %v317_v54, %v747_v20  ;;  %v328_v3 = vmul.f32 %v317_v54, %v771_v35  ;;  %v329_v18 = vmul.f32 %v741_v17, %v317_v54 }
 0x132   :  { %v330_v21 = vmul.f32 %v759_v26, %v317_v54  ;;  %v339_v4 = vrot.slane %v312_v55, %v316_v48  ;;  %v331_v16 = vmul.f32 %v317_v54, %v789_v50  ;;  %v332_v19 = vmul.f32 %v317_v54, %v231_v0 }
 0x133   :  { %v333_v30 = vmul.f32 %v781_v43, %v317_v54  ;;  %v334_v39 = vmul.f32 %v797_v57, %v317_v54 }
 0x134   :  { %v341_v5 = vadd.f32 %v339_v4, %v319_v56  ;;  %v342_v25 = vadd.f32 %v339_v4, %v320_v58  ;;  %v343_v6 = vadd.f32 %v339_v4, %v321_v59  ;;  %v344_v34 = vadd.f32 %v339_v4, %v322_v60 }
 0x135   :  { %v345_v7 = vadd.f32 %v339_v4, %v323_v61  ;;  %v346_v20 = vadd.f32 %v339_v4, %v324_v62  ;;  %v347_v8 = vadd.f32 %v339_v4, %v325_v63  ;;  %v348_v35 = vadd.f32 %v339_v4, %v326_v1 }
 0x136   :  { %v349_v9 = vadd.f32 %v339_v4, %v327_v2  ;;  %v350_v17 = vadd.f32 %v339_v4, %v328_v3  ;;  %v351_v10 = vadd.f32 %v339_v4, %v329_v18  ;;  %v352_v26 = vadd.f32 %v339_v4, %v330_v21 }
 0x137   :  { %v353_v11 = vadd.f32 %v339_v4, %v331_v16  ;;  %v354_v12 = vadd.f32 %v339_v4, %v332_v19  ;;  %v355_v50 = vadd.f32 %v339_v4, %v333_v30  ;;  %v356_v0 = vadd.f32 %v339_v4, %v334_v39 }
 0x138   :  { %vm357_vm0 = vcmp.gt.f32.partialorder %v341_v5, 0.0  ;;  %vm358_vm1 = vcmp.gt.f32.partialorder %v342_v25, 0.0  ;;  %vm359_vm2 = vcmp.gt.f32.partialorder %v343_v6, 0.0  ;;  %vm360_vm3 = vcmp.gt.f32.partialorder %v344_v34, 0.0 }
 0x139   :  { %vm361_vm4 = vcmp.gt.f32.partialorder %v345_v7, 0.0  ;;  %vm362_vm5 = vcmp.gt.f32.partialorder %v346_v20, 0.0  ;;  %vm363_vm6 = vcmp.gt.f32.partialorder %v347_v8, 0.0  ;;  %vm364_vm7 = vcmp.gt.f32.partialorder %v348_v35, 0.0 }
 0x13a   :  { %vm365_vm8 = vcmp.gt.f32.partialorder %v349_v9, 0.0  ;;  %vm366_vm9 = vcmp.gt.f32.partialorder %v350_v17, 0.0  ;;  %vm367_vm10 = vcmp.gt.f32.partialorder %v351_v10, 0.0  ;;  %vm368_vm11 = vcmp.gt.f32.partialorder %v352_v26, 0.0 }
 0x13b   :  { %vm369_vm12 = vcmp.gt.f32.partialorder %v353_v11, 0.0  ;;  %vm370_vm13 = vcmp.gt.f32.partialorder %v354_v12, 0.0  ;;  %vm371_vm14 = vcmp.gt.f32.partialorder %v355_v50, 0.0  ;;  %vm372_vm15 = vcmp.gt.f32.partialorder %v356_v0, 0.0 }
 0x13c   :  { %v373_v43 = vmul.f32 0.1, %v341_v5  ;;  %v374_v57 = vmul.f32 0.1, %v342_v25  ;;  %v375_v13 = vmul.f32 0.1, %v343_v6 }
 0x13d   :  { %v376_v14 = vmul.f32 0.1, %v344_v34  ;;  %v377_v15 = vmul.f32 0.1, %v345_v7  ;;  %v378_v22 = vmul.f32 0.1, %v346_v20 }
 0x13e   :  { %v379_v23 = vmul.f32 0.1, %v347_v8  ;;  %v380_v24 = vmul.f32 0.1, %v348_v35  ;;  %v381_v27 = vmul.f32 0.1, %v349_v9  ;;  %v389_v28 = vsel %vm357_vm0, %v341_v5, %v373_v43 }
 0x13f   :  { %v382_v29 = vmul.f32 0.1, %v350_v17  ;;  %v383_v31 = vmul.f32 0.1, %v351_v10  ;;  %v384_v32 = vmul.f32 0.1, %v352_v26  ;;  %v390_v33 = vsel %vm358_vm1, %v342_v25, %v374_v57 }
 0x140   :  { %v385_v36 = vmul.f32 0.1, %v353_v11  ;;  %v386_v37 = vmul.f32 0.1, %v354_v12  ;;  %v387_v38 = vmul.f32 0.1, %v355_v50  ;;  %v391_v40 = vsel %vm359_vm2, %v343_v6, %v375_v13 }
 0x141   :  { %v388_v41 = vmul.f32 0.1, %v356_v0  ;;  %v392_v42 = vsel %vm360_vm3, %v344_v34, %v376_v14  ;;  %v393_v44 = vsel %vm361_vm4, %v345_v7, %v377_v15  ;;  %v394_v45 = vsel %vm362_vm5, %v346_v20, %v378_v22 }
 0x142   :  { %v395_v46 = vsel %vm363_vm6, %v347_v8, %v379_v23  ;;  %v396_v47 = vsel %vm364_vm7, %v348_v35, %v380_v24  ;;  %v397_v48 = vsel %vm365_vm8, %v349_v9, %v381_v27  ;;  %v398_v49 = vsel %vm366_vm9, %v350_v17, %v382_v29 }
 0x143   :  { %v399_v51 = vsel %vm367_vm10, %v351_v10, %v383_v31  ;;  %v400_v52 = vsel %vm368_vm11, %v352_v26, %v384_v32  ;;  %v401_v53 = vsel %vm369_vm12, %v353_v11, %v385_v36  ;;  %v402_v54 = vsel %vm370_vm13, %v354_v12, %v386_v37 }
 0x144   :  { %v403_v55 = vsel %vm371_vm14, %v355_v50, %v387_v38  ;;  %v404_v56 = vsel %vm372_vm15, %v356_v0, %v388_v41  ;;  %v540_v58 = vpack.c.bf16 %v390_v33, %v389_v28  ;;  %v545_v59 = vpack.c.bf16 %v392_v42, %v391_v40 }
 0x145   :  { %v550_v60 = vpack.c.bf16 %v394_v45, %v393_v44  ;;  %v555_v61 = vpack.c.bf16 %v396_v47, %v395_v46  ;;  %v560_v62 = vpack.c.bf16 %v398_v49, %v397_v48  ;;  %v565_v63 = vpack.c.bf16 %v400_v52, %v399_v51 }
 0x146   :  { %541 = vst [vmem:[%s879_s4] sm:$0xff] %v540_v58   ;;  %577 = vst [vmem:[%s879_s4 + $0x8] sm:$0xff] %v545_v59   ;;  %v570_v1 = vpack.c.bf16 %v402_v54, %v401_v53  ;;  %v575_v2 = vpack.c.bf16 %v404_v56, %v403_v55 }
 0x147   :  { %578 = vst [vmem:[%s879_s4 + $0x10] sm:$0xff] %v550_v60   ;;  %579 = vst [vmem:[%s879_s4 + $0x18] sm:$0xff] %v555_v61  }
 0x148   :  { %580 = vst [vmem:[%s879_s4 + $0x20] sm:$0xff] %v560_v62   ;;  %581 = vst [vmem:[%s879_s4 + $0x28] sm:$0xff] %v565_v63  }
 0x149   :  { %582 = vst [vmem:[%s879_s4 + $0x30] sm:$0xff] %v570_v1   ;;  %583 = vst [vmem:[%s879_s4 + $0x38] sm:$0xff] %v575_v2  }

// kernel: multilayer_forward.24
= control target key start
LH: loop header
LB: loop body
LE: loop exit
PB: predicated region body
PF: predicated region fallthrough
CT: control target
= control target key end

     0   :  { %s548_s12 = smov 0   ;;  %s550_s13 = smov 0   ;;  %s594_s0 = inlined_call_operand.vmem [shape: bf16[2,64,128], index: 0, kind: input, shape index: {}]   ;;  %s595_s1 = inlined_call_operand.vmem [shape: f32[1,128], index: 1, kind: input, shape index: {}]   ;;  %s596_s2 = inlined_call_operand.vmem [shape: f32[1,128], index: 2, kind: input, shape index: {}]   ;;  %s597_s3 = inlined_call_operand.vmem [shape: bf16[2,64,128], index: 3, kind: output, shape index: {}]  }
   0x1   :  { %s552_s14 = smov 0  }
   0x2 LB: > { %s25_s15 = sadd.s32 1, %s522_s13  ;;  %p411_p0 = scmp.ge.s32.totalorder %s526_s14, 1  ;;  %s526_s14 = sphi %s552_s14, %s13_s14   ;;  %s522_s13 = sphi %s550_s13, %s599_s13   ;;  %s518_s12 = sphi %s548_s12, %s598_s12  }
   0x3   : > { %p27_p1 = scmp.ge.s32.totalorder %s25_s15, 2  ;;  %p158_p2 = scmp.lt.s32.totalorder %s526_s14, 3 }
   0x5   : > { %s601_s15 = smov (%p27_p1, %s25_s15), 0  ;;  %p159_p3 = pnand %p411_p0, %p158_p2 }
   0x6   : > { %p191_p4 = scmp.lt.s32.totalorder (!%p159_p3), %s518_s12, 1 }
   0x7   : > { %162 = sbr.rel (%p159_p3) target bundleno = 33 (0x21), region = 32 }
   0xc   : > { %s603_s12 = smov (!%p191_p4, %s518_s12), 1  ;;  %v416_v0 = vld [vmem:[%s595_s1] ss:$0 sm:$0xff] }
   0xd   : > { %s428_s16 = sshll.u32 %s603_s12, 5  ;;  %v417_v13 = vld [vmem:[%s596_s2] ss:$0 sm:$0xff] }
   0xe   : > { %s198_s19 = scalar_lea.vmem %s594_s0, %s428_s16  ;;  %s208_s26 = scalar_lea.vmem %s597_s3, %s428_s16 }
   0xf   : > { %v439_v1 = vld [vmem:[%s198_s19] sm:$0xff]   ;;  %v474_v2 = vld [vmem:[%s198_s19 + $0x8] sm:$0xff]   ;;  %v475_v3 = vld [vmem:[%s198_s19 + $0x10] sm:$0xff]  }
  0x10   : > { %v440_v4 = vunpack.c.l.bf16 %v439_v1  ;;  %v441_v5 = vunpack.c.h.bf16 %v439_v1  ;;  %v444_v6 = vunpack.c.l.bf16 %v474_v2  ;;  %v445_v7 = vunpack.c.h.bf16 %v474_v2  ;;  %v476_v8 = vld [vmem:[%s198_s19 + $0x18] sm:$0xff]  }
  0x11   : > { %v448_v9 = vunpack.c.l.bf16 %v475_v3  ;;  %v449_v10 = vunpack.c.h.bf16 %v475_v3  ;;  %v452_v11 = vunpack.c.l.bf16 %v476_v8  ;;  %v453_v12 = vunpack.c.h.bf16 %v476_v8 }
  0x12   : > { %v233_v14 = vmul.f32 %v440_v4, %v416_v0  ;;  %v234_v15 = vmul.f32 %v441_v5, %v416_v0  ;;  %v235_v16 = vmul.f32 %v444_v6, %v416_v0  ;;  %v236_v17 = vmul.f32 %v445_v7, %v416_v0 }
  0x13   : > { %v237_v18 = vmul.f32 %v448_v9, %v416_v0  ;;  %v238_v19 = vmul.f32 %v449_v10, %v416_v0  ;;  %v239_v20 = vmul.f32 %v452_v11, %v416_v0  ;;  %v240_v21 = vmul.f32 %v453_v12, %v416_v0 }
  0x14   : > { %v248_v22 = vadd.f32 %v417_v13, %v233_v14  ;;  %v249_v23 = vadd.f32 %v417_v13, %v234_v15  ;;  %v250_v24 = vadd.f32 %v417_v13, %v235_v16  ;;  %v251_v25 = vadd.f32 %v417_v13, %v236_v17 }
  0x15   : > { %v252_v26 = vadd.f32 %v417_v13, %v237_v18  ;;  %v253_v27 = vadd.f32 %v417_v13, %v238_v19  ;;  %v254_v28 = vadd.f32 %v417_v13, %v239_v20  ;;  %v255_v29 = vadd.f32 %v417_v13, %v240_v21 }
  0x16   : > { %vm256_vm0 = vcmp.gt.f32.partialorder %v248_v22, 0.0  ;;  %vm257_vm1 = vcmp.gt.f32.partialorder %v249_v23, 0.0  ;;  %v264_v30 = vmul.f32 0.1, %v248_v22  ;;  %v265_v31 = vmul.f32 0.1, %v249_v23 }
  0x17   : > { %vm258_vm2 = vcmp.gt.f32.partialorder %v250_v24, 0.0  ;;  %vm259_vm3 = vcmp.gt.f32.partialorder %v251_v25, 0.0  ;;  %v266_v32 = vmul.f32 0.1, %v250_v24  ;;  %v267_v33 = vmul.f32 0.1, %v251_v25 }
  0x18   : > { %v272_v34 = vsel %vm256_vm0, %v248_v22, %v264_v30  ;;  %v273_v35 = vsel %vm257_vm1, %v249_v23, %v265_v31  ;;  %vm260_vm4 = vcmp.gt.f32.partialorder %v252_v26, 0.0  ;;  %vm261_vm5 = vcmp.gt.f32.partialorder %v253_v27, 0.0 }
  0x19   : > { %v457_v36 = vpack.c.bf16 %v273_v35, %v272_v34  ;;  %v274_v37 = vsel %vm258_vm2, %v250_v24, %v266_v32  ;;  %v275_v38 = vsel %vm259_vm3, %v251_v25, %v267_v33  ;;  %v268_v39 = vmul.f32 0.1, %v252_v26 }
  0x1a   : > { %v462_v40 = vpack.c.bf16 %v275_v38, %v274_v37  ;;  %v269_v41 = vmul.f32 0.1, %v253_v27  ;;  %vm262_vm6 = vcmp.gt.f32.partialorder %v254_v28, 0.0  ;;  %vm263_vm7 = vcmp.gt.f32.partialorder %v255_v29, 0.0 }
  0x1b   : > { %458 = vst [vmem:[%s208_s26] sm:$0xff] %v457_v36   ;;  %v276_v42 = vsel %vm260_vm4, %v252_v26, %v268_v39  ;;  %v270_v43 = vmul.f32 0.1, %v254_v28  ;;  %v271_v44 = vmul.f32 0.1, %v255_v29 }
  0x1c   : > { %477 = vst [vmem:[%s208_s26 + $0x8] sm:$0xff] %v462_v40   ;;  %v277_v45 = vsel %vm261_vm5, %v253_v27, %v269_v41 }
  0x1d   : > { %v467_v46 = vpack.c.bf16 %v277_v45, %v276_v42  ;;  %v278_v47 = vsel %vm262_vm6, %v254_v28, %v270_v43  ;;  %v279_v48 = vsel %vm263_vm7, %v255_v29, %v271_v44 }
  0x1e   : > { %v472_v49 = vpack.c.bf16 %v279_v48, %v278_v47 }
  0x1f   : > { %478 = vst [vmem:[%s208_s26 + $0x10] sm:$0xff] %v467_v46  }
  0x20   : > { %479 = vst [vmem:[%s208_s26 + $0x18] sm:$0xff] %v472_v49  }
  0x21 PF: > { %s13_s14 = sadd.s32 1, %s526_s14   ;;  %s598_s12 = smov %s522_s13 }
  0x22   : > { %p10_p5 = scmp.ge.s32.totalorder %s13_s14, 4   ;;  %s599_s13 = smov %s601_s15 }
  0x24   :  { %12 = sbr.rel (!%p10_p5) target bundleno = 2 (0x2), region = 62 }

// kernel: multilayer_forward.26
= control target key start
LH: loop header
LB: loop body
LE: loop exit
PB: predicated region body
PF: predicated region fallthrough
CT: control target
= control target key end

     0   :  { %s680_s15 = smov 0   ;;  %s682_s16 = smov 0   ;;  %s739_s0 = inlined_call_operand.vmem [shape: bf16[2,64,128], index: 0, kind: input, shape index: {}]   ;;  %s740_s1 = inlined_call_operand.vmem [shape: f32[1,128], index: 1, kind: input, shape index: {}]   ;;  %s741_s2 = inlined_call_operand.vmem [shape: f32[1,128], index: 2, kind: input, shape index: {}]   ;;  %s742_s3 = inlined_call_operand.vmem [shape: bf16[2,64,128], index: 3, kind: input, shape index: {}]   ;;  %s743_s4 = inlined_call_operand.vmem [shape: bf16[2,64,128], index: 4, kind: output, shape index: {}]  }
   0x1   :  { %s684_s17 = smov 0  }
   0x2 LB: > { %s26_s18 = sadd.s32 1, %s649_s16  ;;  %p516_p0 = scmp.ge.s32.totalorder %s653_s17, 1  ;;  %s653_s17 = sphi %s684_s17, %s14_s17   ;;  %s649_s16 = sphi %s682_s16, %s745_s16   ;;  %s645_s15 = sphi %s680_s15, %s744_s15  }
   0x3   : > { %p28_p1 = scmp.ge.s32.totalorder %s26_s18, 2  ;;  %p200_p2 = scmp.lt.s32.totalorder %s653_s17, 3 }
   0x5   : > { %s747_s18 = smov (%p28_p1, %s26_s18), 0  ;;  %p201_p3 = pnand %p516_p0, %p200_p2 }
   0x6   : > { %p244_p4 = scmp.lt.s32.totalorder (!%p201_p3), %s645_s15, 1 }
   0x7   : > { %204 = sbr.rel (%p201_p3) target bundleno = 40 (0x28), region = 36 }
   0xc   : > { %s749_s15 = smov (!%p244_p4, %s645_s15), 1  ;;  %v523_v2 = vld [vmem:[%s740_s1] ss:$0 sm:$0xff] }
   0xd   : > { %s698_s19 = sshll.u32 %s749_s15, 5  ;;  %v524_v10 = vld [vmem:[%s741_s2] ss:$0 sm:$0xff] }
   0xe   : > { %s251_s22 = scalar_lea.vmem %s739_s0, %s698_s19  ;;  %s708_s25 = scalar_lea.vmem %s742_s3, %s698_s19 }
   0xf   : > { %v547_v0 = vld [vmem:[%s251_s22] sm:$0xff]   ;;  %v598_v1 = vld [vmem:[%s251_s22 + $0x8] sm:$0xff]   ;;  %v599_v5 = vld [vmem:[%s251_s22 + $0x10] sm:$0xff]   ;;  %s723_s6 = scalar_lea.vmem %s743_s4, %s698_s19 }
  0x10   : > { %v548_v3 = vunpack.c.l.bf16 %v547_v0  ;;  %v549_v4 = vunpack.c.h.bf16 %v547_v0  ;;  %v563_v6 = vld [vmem:[%s708_s25] sm:$0xff]   ;;  %v552_v7 = vunpack.c.l.bf16 %v598_v1  ;;  %v553_v8 = vunpack.c.h.bf16 %v598_v1  ;;  %v601_v9 = vld [vmem:[%s708_s25 + $0x8] sm:$0xff]   ;;  %v602_v15 = vld [vmem:[%s708_s25 + $0x10] sm:$0xff]  }
  0x11   : > { %v564_v11 = vunpack.c.l.bf16 %v563_v6  ;;  %v565_v12 = vunpack.c.h.bf16 %v563_v6  ;;  %v568_v13 = vunpack.c.l.bf16 %v601_v9  ;;  %v569_v14 = vunpack.c.h.bf16 %v601_v9  ;;  %v600_v16 = vld [vmem:[%s251_s22 + $0x18] sm:$0xff]  }
  0x12   : > { %v296_v17 = vmul.f32 %v548_v3, %v523_v2  ;;  %v297_v18 = vmul.f32 %v549_v4, %v523_v2  ;;  %v298_v19 = vmul.f32 %v552_v7, %v523_v2  ;;  %v299_v20 = vmul.f32 %v553_v8, %v523_v2  ;;  %v603_v51 = vld [vmem:[%s708_s25 + $0x18] sm:$0xff]  }
  0x13   : > { %v556_v21 = vunpack.c.l.bf16 %v599_v5  ;;  %v557_v22 = vunpack.c.h.bf16 %v599_v5  ;;  %v572_v23 = vunpack.c.l.bf16 %v602_v15  ;;  %v573_v24 = vunpack.c.h.bf16 %v602_v15 }
  0x14   : > { %v311_v25 = vadd.f32 %v524_v10, %v296_v17  ;;  %v312_v26 = vadd.f32 %v524_v10, %v297_v18  ;;  %v313_v27 = vadd.f32 %v524_v10, %v298_v19  ;;  %v314_v28 = vadd.f32 %v524_v10, %v299_v20 }
  0x15   : > { %v300_v29 = vmul.f32 %v556_v21, %v523_v2  ;;  %v301_v30 = vmul.f32 %v557_v22, %v523_v2  ;;  %v560_v31 = vunpack.c.l.bf16 %v600_v16  ;;  %v561_v32 = vunpack.c.h.bf16 %v600_v16 }
  0x16   : > { %vm319_vm0 = vcmp.gt.f32.partialorder %v311_v25, 0.0  ;;  %vm320_vm1 = vcmp.gt.f32.partialorder %v312_v26, 0.0  ;;  %v327_v33 = vmul.f32 0.1, %v311_v25  ;;  %v328_v34 = vmul.f32 0.1, %v312_v26 }
  0x17   : > { %vm321_vm2 = vcmp.gt.f32.partialorder %v313_v27, 0.0  ;;  %vm322_vm3 = vcmp.gt.f32.partialorder %v314_v28, 0.0  ;;  %v329_v35 = vmul.f32 0.1, %v313_v27  ;;  %v330_v36 = vmul.f32 0.1, %v314_v28 }
  0x18   : > { %v335_v37 = vsel %vm319_vm0, %v311_v25, %v327_v33  ;;  %v336_v38 = vsel %vm320_vm1, %v312_v26, %v328_v34  ;;  %v315_v39 = vadd.f32 %v524_v10, %v300_v29  ;;  %v316_v40 = vadd.f32 %v524_v10, %v301_v30 }
  0x19   : > { %v359_v41 = vadd.f32 %v564_v11, %v335_v37  ;;  %v360_v42 = vadd.f32 %v565_v12, %v336_v38  ;;  %v337_v43 = vsel %vm321_vm2, %v313_v27, %v329_v35  ;;  %v338_v44 = vsel %vm322_vm3, %v314_v28, %v330_v36 }
  0x1a   : > { %v361_v45 = vadd.f32 %v568_v13, %v337_v43  ;;  %v362_v46 = vadd.f32 %v569_v14, %v338_v44  ;;  %vm323_vm4 = vcmp.gt.f32.partialorder %v315_v39, 0.0  ;;  %vm324_vm5 = vcmp.gt.f32.partialorder %v316_v40, 0.0 }
  0x1b   : > { %v581_v47 = vpack.c.bf16 %v360_v42, %v359_v41  ;;  %v331_v48 = vmul.f32 0.1, %v315_v39  ;;  %v332_v49 = vmul.f32 0.1, %v316_v40  ;;  %v302_v50 = vmul.f32 %v560_v31, %v523_v2 }
  0x1c   : > { %v586_v52 = vpack.c.bf16 %v362_v46, %v361_v45  ;;  %v303_v53 = vmul.f32 %v561_v32, %v523_v2  ;;  %v576_v60 = vunpack.c.l.bf16 %v603_v51  ;;  %v577_v62 = vunpack.c.h.bf16 %v603_v51 }
  0x1d   : > { %582 = vst [vmem:[%s723_s6] sm:$0xff] %v581_v47   ;;  %v339_v54 = vsel %vm323_vm4, %v315_v39, %v331_v48  ;;  %v340_v55 = vsel %vm324_vm5, %v316_v40, %v332_v49  ;;  %v317_v56 = vadd.f32 %v524_v10, %v302_v50 }
  0x1e   : > { %604 = vst [vmem:[%s723_s6 + $0x8] sm:$0xff] %v586_v52   ;;  %v363_v57 = vadd.f32 %v572_v23, %v339_v54  ;;  %v364_v58 = vadd.f32 %v573_v24, %v340_v55  ;;  %v318_v59 = vadd.f32 %v524_v10, %v303_v53 }
  0x1f   : > { %vm325_vm6 = vcmp.gt.f32.partialorder %v317_v56, 0.0  ;;  %v333_v61 = vmul.f32 0.1, %v317_v56 }
  0x20   : > { %v591_v63 = vpack.c.bf16 %v364_v58, %v363_v57  ;;  %vm326_vm7 = vcmp.gt.f32.partialorder %v318_v59, 0.0  ;;  %v334_v0 = vmul.f32 0.1, %v318_v59 }
  0x21   : > { %v341_v1 = vsel %vm325_vm6, %v317_v56, %v333_v61 }
  0x22   : > { %605 = vst [vmem:[%s723_s6 + $0x10] sm:$0xff] %v591_v63   ;;  %v342_v2 = vsel %vm326_vm7, %v318_v59, %v334_v0  ;;  %v365_v3 = vadd.f32 %v576_v60, %v341_v1 }
  0x23   : > { %v366_v4 = vadd.f32 %v577_v62, %v342_v2 }
  0x25   : > { %v596_v5 = vpack.c.bf16 %v366_v4, %v365_v3 }
  0x27   : > { %606 = vst [vmem:[%s723_s6 + $0x18] sm:$0xff] %v596_v5  }
  0x28 PF: > { %s14_s17 = sadd.s32 1, %s653_s17   ;;  %s744_s15 = smov %s649_s16 }
  0x29   : > { %p11_p5 = scmp.ge.s32.totalorder %s14_s17, 4   ;;  %s745_s16 = smov %s747_s18 }
  0x2b   :  { %13 = sbr.rel (!%p11_p5) target bundleno = 2 (0x2), region = 69 }

// kernel: multilayer_forward.20
= control target key start
LH: loop header
LB: loop body
LE: loop exit
PB: predicated region body
PF: predicated region fallthrough
CT: control target
= control target key end

     0   :  { %s7108_s12 = smov 0   ;;  %s7110_s13 = smov 0   ;;  %s8896_s0 = inlined_call_operand.vmem [shape: bf16[2,18,18,128], index: 0, kind: input, shape index: {}]   ;;  %s8897_s1 = inlined_call_operand.vmem [shape: bf16[9,128,128], index: 1, kind: input, shape index: {}]   ;;  %s8898_s2 = inlined_call_operand.vmem [shape: bf16[2,256,128], index: 2, kind: output, shape index: {0}]   ;;  %s8899_s3 = inlined_call_operand.vmem [shape: f32[2,1,2,128], index: 3, kind: output, shape index: {1}]  }
   0x1   :  { %s7112_s14 = smov 0  }
   0x2 LB: > { %s26_s15 = sadd.s32 1, %s7082_s13  ;;  %p5465_p0 = scmp.ge.s32.totalorder %s7086_s14, 1  ;;  %s7086_s14 = sphi %s7112_s14, %s14_s14   ;;  %s7082_s13 = sphi %s7110_s13, %s9009_s13   ;;  %s7078_s12 = sphi %s7108_s12, %s9008_s12  }
   0x3   : > { %p28_p1 = scmp.ge.s32.totalorder %s26_s15, 2  ;;  %p156_p2 = scmp.lt.s32.totalorder %s7086_s14, 3 }
   0x5   : > { %s9011_s15 = smov (%p28_p1, %s26_s15), 0  ;;  %p157_p3 = pnand %p5465_p0, %p156_p2 }
   0x7   : > { %160 = sbr.rel (%p157_p3) target bundleno = 551 (0x227), region = 28 }
   0xc   : > { %v6944_v0 = vld [vmem:[%s8897_s1 + $0x38] sm:$0xff]   ;;  %p191_p4 = scmp.lt.s32.totalorder %s7078_s12, 1  ;;  %v6945_v1 = vld [vmem:[%s8897_s1 + $0x30] sm:$0xff]   ;;  %v6946_v2 = vld [vmem:[%s8897_s1 + $0x28] sm:$0xff]   ;;  %vm795_vm0 = vcmask 1046528   ;;  %vm1390_vm1 = vcmask 1045504  }
   0xd   : > { %6471 = vmatprep.subr.bf16.mxu0 %v6944_v0  ;;  %6903 = vmatprep.subr.bf16.mxu1 %v6944_v0  ;;  %v6947_v3 = vld [vmem:[%s8897_s1 + $0x20] sm:$0xff]   ;;  %v6948_v6 = vld [vmem:[%s8897_s1 + $0x18] sm:$0xff]   ;;  %v6949_v7 = vld [vmem:[%s8897_s1 + $0x10] sm:$0xff]  }
   0xe   : > { %s9013_s12 = smov (!%p191_p4, %s7078_s12), 1  ;;  %6472 = vmatpush3.bf16.msra.mxu0 %v6944_v0  ;;  %6911 = vmatpush3.bf16.msra.mxu1 %v6944_v0  ;;  %v6950_v8 = vld [vmem:[%s8897_s1 + $0x8] sm:$0xff]   ;;  %v6951_v9 = vld [vmem:[%s8897_s1] sm:$0xff]   ;;  %v6956_v10 = vld [vmem:[%s8897_s1 + $0x78] sm:$0xff]  }
   0xf   : > { %6473 = vmatprep.subr.bf16.mxu0 %v6945_v1  ;;  %6904 = vmatprep.subr.bf16.mxu1 %v6945_v1  ;;  %s6919_s22 = smul.u32 216, %s9013_s12  ;;  %v6957_v12 = vld [vmem:[%s8897_s1 + $0xb8] sm:$0xff]   ;;  %v6958_v14 = vld [vmem:[%s8897_s1 + $0x70] sm:$0xff]   ;;  %v6964_v18 = vld [vmem:[%s8897_s1 + $0x68] sm:$0xff]   ;;  %s5469_s8 = sshll.u32 %s9013_s12, 1 }
  0x10   : > { %v6959_v15 = vld [vmem:[%s8897_s1 + $0xb0] sm:$0xff]   ;;  %v6965_v20 = vld [vmem:[%s8897_s1 + $0xa8] sm:$0xff]   ;;  %v6966_v22 = vld [vmem:[%s8897_s1 + $0x60] sm:$0xff]   ;;  %s212_s11 = scalar_lea.vmem %s8899_s3, %s5469_s8 }
  0x11   : > { %s7141_s25 = scalar_lea.vmem %s8896_s0, %s6919_s22  ;;  %v6967_v23 = vld [vmem:[%s8897_s1 + $0xa0] sm:$0xff]   ;;  %v7201_v36 = vld [vmem:[%s8897_s1 + $0x58] sm:$0xff]   ;;  %v7220_v59 = vld [vmem:[%s8897_s1 + $0x50] sm:$0xff]  }
  0x12   : > { %6474 = vmatpush3.bf16.msra.mxu0 %v6945_v1  ;;  %6912 = vmatpush3.bf16.msra.mxu1 %v6945_v1  ;;  %v6952_v4 = vld [vmem:[%s7141_s25] sm:$0xff]   ;;  %v6954_v11 = vld [vmem:[%s7141_s25 + $0xc] sm:$0xff]   ;;  %v6960_v16 = vld [vmem:[%s7141_s25 + $0x18] sm:$0xff]  }
  0x13   : > { %6475 = vmatprep.subr.bf16.mxu0 %v6946_v2  ;;  %6905 = vmatprep.subr.bf16.mxu1 %v6946_v2  ;;  %v6953_v5 = vld [vmem:[%s7141_s25 + $0x60] sm:$0xff]   ;;  %v6955_v13 = vld [vmem:[%s7141_s25 + $0x6c] sm:$0xff]   ;;  %v6961_v17 = vld [vmem:[%s7141_s25 + $0x78] sm:$0xff]  }
  0x14   : > { %6487 = vmatprep.mubr.bf16.mxu0 %v6952_v4  ;;  %6503 = vmatprep.mubr.bf16.mxu1 %v6953_v5  ;;  %v6962_v19 = vld [vmem:[%s7141_s25 + $0x24] sm:$0xff]   ;;  %v6968_v24 = vld [vmem:[%s7141_s25 + $0x30] sm:$0xff]   ;;  %v1246_v28 = vld [vmem:[%s7141_s25] sm:$0xe] }
  0x15   : > { %v6963_v21 = vld [vmem:[%s7141_s25 + $0x84] sm:$0xff]   ;;  %v6969_v25 = vld [vmem:[%s7141_s25 + $0x90] sm:$0xff]   ;;  %v1294_v34 = vunpack.c.l.bf16 %v1246_v28  ;;  %v1249_v42 = vld [vmem:[%s7141_s25 + $0xc] sm:$0xe] }
  0x16   : > { %6476 = vmatpush3.bf16.msra.mxu0 %v6946_v2  ;;  %6913 = vmatpush3.bf16.msra.mxu1 %v6946_v2  ;;  %v6042_v26 = vld [vmem:[%s7141_s25] sm:$0xff]   ;;  %v653_v27 = vld [vmem:[%s7141_s25 + $0x8] sm:$0x1]  ;;  %v654_v35 = vld [vmem:[%s7141_s25 + $0xc] sm:$0xff]   ;;  %v1297_v58 = vunpack.c.l.bf16 %v1249_v42 }
  0x17   : > { %6477 = vmatprep.subr.bf16.mxu0 %v6947_v3  ;;  %6906 = vmatprep.subr.bf16.mxu1 %v6947_v3  ;;  %v6043_v29 = vunpack.c.l.bf16 %v6042_v26  ;;  %v6044_v30 = vunpack.c.h.bf16 %v6042_v26  ;;  %v701_v31 = vunpack.c.l.bf16 %v653_v27  ;;  %v1247_v32 = vld [vmem:[%s7141_s25 + $0x4] ss:$12 sps:$4 sm:$0xff]   ;;  %v1248_v33 = vld [vmem:[%s7141_s25 + $0x8] sm:$0x1]  ;;  %v656_v39 = vld [vmem:[%s7141_s25 + $0x14] sm:$0x1]  ;;  %v702_v40 = vunpack.c.l.bf16 %v654_v35 }
  0x18   : > { %v1295_v37 = vunpack.c.l.bf16 %v1247_v32  ;;  %v1296_v38 = vunpack.c.l.bf16 %v1248_v33  ;;  %v703_v41 = vunpack.c.h.bf16 %v654_v35  ;;  %v1251_v43 = vld [vmem:[%s7141_s25 + $0x14] sm:$0x1]  ;;  %v1391_v47 = vrot.slane %v1294_v34, 2  ;;  %v6970_v48 = vld [vmem:[%s7141_s25 + $0x3c] sm:$0xff]  }
  0x19   : > { %v796_v44 = vrot.slane %v6043_v29, 1  ;;  %v797_v45 = vrot.slane %v6044_v30, 1  ;;  %v799_v46 = vrot.slane %v701_v31, 1  ;;  %v6973_v49 = vld [vmem:[%s8897_s1 + $0x98] sm:$0xff]   ;;  %v704_v52 = vunpack.c.l.bf16 %v656_v39  ;;  %v7225_v60 = vld [vmem:[%s8897_s1 + $0x90] sm:$0xff]   ;;  %v6980_v31 = vld [vmem:[%s8897_s1 + $0x48] sm:$0xff]  }
  0x1a   : > { %6478 = vmatpush3.bf16.msra.mxu0 %v6947_v3  ;;  %6914 = vmatpush3.bf16.msra.mxu1 %v6947_v3  ;;  %v1392_v50 = vrot.slane %v1295_v37, 2  ;;  %v1394_v51 = vrot.slane %v1296_v38, 2  ;;  %v801_v53 = vrot.slane %v702_v40, 1  ;;  %v6971_v54 = vld [vmem:[%s7141_s25 + $0x9c] sm:$0xff]   ;;  %v802_v57 = vrot.slane %v703_v41, 1  ;;  %v6976_v3 = vld [vmem:[%s7141_s25 + $0x48] sm:$0xff]  }
  0x1b   : > { %6479 = vmatprep.subr.bf16.mxu0 %v6948_v6  ;;  %6907 = vmatprep.subr.bf16.mxu1 %v6948_v6  ;;  %v7212_v55 = vsel %vm795_vm0, %v796_v44, %v797_v45  ;;  %v7215_v56 = vsel %vm795_vm0, %v797_v45, %v799_v46  ;;  %v804_v0 = vrot.slane %v704_v52, 1  ;;  %v6217_v1 = vld [vmem:[%s7141_s25 + $0x18] sm:$0xff]   ;;  %v659_v2 = vld [vmem:[%s7141_s25 + $0x20] sm:$0x1]  ;;  %v1255_v30 = vld [vmem:[%s7141_s25 + $0x24] sm:$0xe] }
  0x1c   : > { %v940_v61 = vpack.c.bf16 %v7215_v56, %v7212_v55  ;;  %v7230_v62 = vsel %vm1390_vm1, %v1391_v47, %v1392_v50  ;;  %v7233_v63 = vsel %vm1390_vm1, %v1392_v50, %v1394_v51  ;;  %v7241_v5 = vsel %vm795_vm0, %v801_v53, %v802_v57  ;;  %v6978_v37 = vld [vmem:[%s7141_s25 + $0x54] sm:$0xff]   ;;  %v6982_v44 = vld [vmem:[%s8897_s1 + $0x40] sm:$0xff]   ;;  %v1258_v52 = vld [vmem:[%s7141_s25 + $0x30] sm:$0xe] }
  0x1d   : > { %v1535_v4 = vpack.c.bf16 %v7233_v63, %v7230_v62  ;;  %v6979_v38 = vld [vmem:[%s7141_s25 + $0xb4] sm:$0xff]   ;;  %v6983_v45 = vld [vmem:[%s8897_s1 + $0x80] sm:$0xff]  }
  0x1e   : > { %6480 = vmatpush3.bf16.msra.mxu0 %v6948_v6  ;;  %6915 = vmatpush3.bf16.msra.mxu1 %v6948_v6  ;;  %v1298_v6 = vunpack.c.h.bf16 %v1247_v32  ;;  %v6981_v32 = vld [vmem:[%s8897_s1 + $0x88] sm:$0xff]   ;;  %v6218_v50 = vld [vmem:[%s7141_s25 + $0x30] sm:$0xff]   ;;  %v665_v51 = vld [vmem:[%s7141_s25 + $0x38] sm:$0x1] }
  0x1f   : > { %6481 = vmatprep.subr.bf16.mxu0 %v6949_v7  ;;  %6908 = vmatprep.subr.bf16.mxu1 %v6949_v7 }
  0x22   : > { %6482 = vmatpush3.bf16.msra.mxu0 %v6949_v7  ;;  %6916 = vmatpush3.bf16.msra.mxu1 %v6949_v7  ;;  %v1299_v7 = vunpack.c.l.bf16 %v1251_v43  ;;  %v1257_v43 = vld [vmem:[%s7141_s25 + $0x2c] sm:$0x1] }
  0x23   : > { %6483 = vmatprep.subr.bf16.mxu0 %v6950_v8  ;;  %6909 = vmatprep.subr.bf16.mxu1 %v6950_v8 }
  0x26   : > { %6484 = vmatpush3.bf16.msra.mxu0 %v6950_v8  ;;  %6917 = vmatpush3.bf16.msra.mxu1 %v6950_v8  ;;  %v1252_v8 = vld [vmem:[%s7141_s25 + $0x18] sm:$0xe] }
  0x27   : > { %6485 = vmatprep.subr.bf16.mxu0 %v6951_v9  ;;  %6910 = vmatprep.subr.bf16.mxu1 %v6951_v9 }
  0x2a   : > { %6486 = vmatpush3.bf16.msra.mxu0 %v6951_v9  ;;  %6918 = vmatpush3.bf16.msra.mxu1 %v6951_v9  ;;  %v7245_v9 = vld [vmem:[%s7141_s25 + $0x1c] ss:$12 sps:$4 sm:$0xff]  }
  0x2b   : > { %6519 = vmatprep.subr.bf16.mxu1 %v6956_v10  ;;  %6567 = vmatprep.subr.bf16.mxu0 %v6957_v12 }
  0x2d   : > { %6488 = vmatmul.mubr.bf16.vlgmr.msra.gmra.mxu0 %v6954_v11  ;;  %6504 = vmatmul.mubr.bf16.vlgmr.msra.gmra.mxu1 %v6955_v13  ;;  %v7250_v11 = vsel %vm795_vm0, %v802_v57, %v804_v0  ;;  %v6047_v13 = vunpack.c.l.bf16 %v6217_v1 }
  0x2e   : > { %6520 = vmatpush3.bf16.msra.mxu1 %v6956_v10  ;;  %6568 = vmatpush3.bf16.msra.mxu0 %v6957_v12  ;;  %v6977_v10 = vld [vmem:[%s7141_s25 + $0xa8] sm:$0xff]   ;;  %v1396_v12 = vrot.slane %v1297_v58, 2  ;;  %v1304_v58 = vunpack.c.h.bf16 %v7245_v9 }
  0x2f   : > { %6521 = vmatprep.subr.bf16.mxu1 %v6958_v14  ;;  %6569 = vmatprep.subr.bf16.mxu0 %v6959_v15 }
  0x30   : > { %6491 = vmatprep.mubr.bf16.mxu0 %v6960_v16  ;;  %6507 = vmatprep.mubr.bf16.mxu1 %v6961_v17  ;;  %v660_v16 = vld [vmem:[%s7141_s25 + $0x24] sm:$0xff]   ;;  %v941_v17 = vpack.c.bf16 %v7250_v11, %v7241_v5  ;;  %v672_v11 = vld [vmem:[%s7141_s25 + $0x54] sm:$0xff]  }
  0x31   : > { %v708_v41 = vunpack.c.l.bf16 %v660_v16  ;;  %v709_v42 = vunpack.c.h.bf16 %v660_v16  ;;  %v6984_v16 = vld [vmem:[%s8897_s1 + $0xf8] sm:$0xff]  }
  0x32   : > { %6522 = vmatpush3.bf16.msra.mxu1 %v6958_v14  ;;  %6570 = vmatpush3.bf16.msra.mxu0 %v6959_v15  ;;  %v6048_v14 = vunpack.c.h.bf16 %v6217_v1  ;;  %v1254_v15 = vld [vmem:[%s7141_s25 + $0x20] sm:$0x1] }
  0x33   : > { %6523 = vmatprep.subr.bf16.mxu1 %v6964_v18  ;;  %6571 = vmatprep.subr.bf16.mxu0 %v6965_v20  ;;  %v1302_v29 = vunpack.c.l.bf16 %v1254_v15  ;;  %v812_v57 = vrot.slane %v709_v42, 1  ;;  %v666_v15 = vld [vmem:[%s7141_s25 + $0x3c] sm:$0xff]   ;;  %v6219_v42 = vld [vmem:[%s7141_s25 + $0x48] sm:$0xff]  }
  0x35   : > { %6492 = vmatmul.mubr.bf16.gmra.mxu0 %v6962_v19  ;;  %6508 = vmatmul.mubr.bf16.gmra.mxu1 %v6963_v21  ;;  %v1399_v19 = vrot.slane %v1299_v7, 2  ;;  %v662_v21 = vld [vmem:[%s7141_s25 + $0x2c] sm:$0x1]  ;;  %v1404_v40 = vrot.slane %v1302_v29, 2  ;;  %v6051_v7 = vunpack.c.l.bf16 %v6218_v50 }
  0x36   : > { %6524 = vmatpush3.bf16.msra.mxu1 %v6964_v18  ;;  %6572 = vmatpush3.bf16.msra.mxu0 %v6965_v20  ;;  %v1397_v18 = vrot.slane %v1298_v6, 2  ;;  %v707_v20 = vunpack.c.l.bf16 %v659_v2  ;;  %v1305_v2 = vunpack.c.l.bf16 %v1257_v43  ;;  %v1407_v6 = vrot.slane %v1304_v58, 2 }
  0x37   : > { %6525 = vmatprep.subr.bf16.mxu1 %v6966_v22  ;;  %6573 = vmatprep.subr.bf16.mxu0 %v6967_v23 }
  0x38   : > { %6495 = vmatprep.mubr.bf16.mxu0 %v6968_v24  ;;  %6511 = vmatprep.mubr.bf16.mxu1 %v6969_v25  ;;  %v1300_v24 = vunpack.c.l.bf16 %v1252_v8  ;;  %v1301_v25 = vunpack.c.l.bf16 %v7245_v9  ;;  %v7262_v26 = vsel %vm1390_vm1, %v1396_v12, %v1397_v18  ;;  %v7265_v27 = vsel %vm1390_vm1, %v1397_v18, %v1399_v19 }
  0x39   : > { %v809_v28 = vrot.slane %v707_v20, 1  ;;  %v1536_v33 = vpack.c.bf16 %v7265_v27, %v7262_v26  ;;  %v6052_v8 = vunpack.c.h.bf16 %v6218_v50  ;;  %v1409_v12 = vrot.slane %v1305_v2, 2  ;;  %v1264_v50 = vld [vmem:[%s7141_s25 + $0x48] sm:$0xe]  ;;  %v7379_v2 = vld [vmem:[%s7141_s25 + $0x4c] ss:$12 sps:$4 sm:$0xff]  }
  0x3a   : > { %6526 = vmatpush3.bf16.msra.mxu1 %v6966_v22  ;;  %6574 = vmatpush3.bf16.msra.mxu0 %v6967_v23  ;;  %v806_v22 = vrot.slane %v6047_v13, 1  ;;  %v7257_v23 = vrot.slane %v6048_v14, 1  ;;  %v1401_v35 = vrot.slane %v1300_v24, 2  ;;  %v713_v13 = vunpack.c.l.bf16 %v665_v51  ;;  %v6985_v24 = vld [vmem:[%s8897_s1 + $0x138] sm:$0xff]   ;;  %v6986_v51 = vld [vmem:[%s8897_s1 + $0xf0] sm:$0xff]   ;;  %v6988_v27 = vld [vmem:[%s8897_s1 + $0xe8] sm:$0xff]  }
  0x3b   : > { %6527 = vmatprep.subr.bf16.mxu1 %v7201_v36  ;;  %6575 = vmatprep.subr.bf16.mxu0 %v6973_v49  ;;  %v1306_v14 = vunpack.c.l.bf16 %v1258_v52  ;;  %v816_v20 = vrot.slane %v6051_v7, 1  ;;  %v6987_v52 = vld [vmem:[%s8897_s1 + $0x130] sm:$0xff]   ;;  %v6056_v7 = vunpack.c.h.bf16 %v6219_v42  ;;  %v1312_v5 = vunpack.c.l.bf16 %v1264_v50 }
  0x3c   : > { %v7280_v34 = vsel %vm795_vm0, %v806_v22, %v7257_v23  ;;  %v7286_v39 = vsel %vm795_vm0, %v7257_v23, %v809_v28  ;;  %v668_v22 = vld [vmem:[%s7141_s25 + $0x44] sm:$0x1]  ;;  %v819_v28 = vrot.slane %v713_v13, 1  ;;  %v1316_v50 = vunpack.c.h.bf16 %v7379_v2 }
  0x3d   : > { %6496 = vmatmul.mubr.bf16.gmra.mxu0 %v6970_v48  ;;  %6512 = vmatmul.mubr.bf16.gmra.mxu1 %v6971_v54  ;;  %v942_v46 = vpack.c.bf16 %v7286_v39, %v7280_v34  ;;  %v710_v48 = vunpack.c.l.bf16 %v662_v21  ;;  %v811_v54 = vrot.slane %v708_v41, 1  ;;  %v7330_v21 = vrot.slane %v6052_v8, 1  ;;  %v1266_v8 = vld [vmem:[%s7141_s25 + $0x50] sm:$0x1] }
  0x3e   : > { %6528 = vmatpush3.bf16.msra.mxu1 %v7201_v36  ;;  %6576 = vmatpush3.bf16.msra.mxu0 %v6973_v49  ;;  %v1402_v36 = vrot.slane %v1301_v25, 2  ;;  %v1303_v49 = vunpack.c.l.bf16 %v1255_v30  ;;  %v7337_v25 = vsel %vm1390_vm1, %v1407_v6, %v1409_v12  ;;  %v716_v63 = vunpack.c.l.bf16 %v668_v22 }
  0x3f   : > { %6529 = vmatprep.subr.bf16.mxu1 %v7220_v59  ;;  %6577 = vmatprep.subr.bf16.mxu0 %v7225_v60  ;;  %v814_v1 = vrot.slane %v710_v48, 1 }
  0x40   : > { %6499 = vmatprep.mubr.bf16.mxu0 %v6976_v3  ;;  %6515 = vmatprep.mubr.bf16.mxu1 %v6977_v10  ;;  %v7298_v47 = vsel %vm1390_vm1, %v1401_v35, %v1402_v36  ;;  %v7306_v53 = vsel %vm1390_vm1, %v1402_v36, %v1404_v40  ;;  %v1406_v3 = vrot.slane %v1303_v49, 2  ;;  %v1260_v10 = vld [vmem:[%s7141_s25 + $0x38] sm:$0x1]  ;;  %v7352_v36 = vsel %vm795_vm0, %v816_v20, %v7330_v21 }
  0x41   : > { %v1537_v0 = vpack.c.bf16 %v7306_v53, %v7298_v47  ;;  %v7319_v9 = vsel %vm795_vm0, %v812_v57, %v814_v1  ;;  %v1308_v30 = vunpack.c.l.bf16 %v1260_v10  ;;  %v7356_v40 = vsel %vm795_vm0, %v7330_v21, %v819_v28 }
  0x42   : > { %6530 = vmatpush3.bf16.msra.mxu1 %v7220_v59  ;;  %6578 = vmatpush3.bf16.msra.mxu0 %v7225_v60  ;;  %v7312_v59 = vld [vmem:[%s7141_s25 + $0x34] ss:$12 sps:$4 sm:$0xff]   ;;  %v7315_v60 = vsel %vm795_vm0, %v811_v54, %v812_v57  ;;  %v7328_v19 = vsel %vm1390_vm1, %v1406_v3, %v1407_v6  ;;  %v944_v62 = vpack.c.bf16 %v7356_v40, %v7352_v36  ;;  %v824_v57 = vrot.slane %v716_v63, 1 }
  0x43   : > { %6531 = vmatprep.subr.bf16.mxu1 %v6980_v31  ;;  %6579 = vmatprep.subr.bf16.mxu0 %v6981_v32  ;;  %v943_v18 = vpack.c.bf16 %v7319_v9, %v7315_v60  ;;  %v1307_v29 = vunpack.c.l.bf16 %v7312_v59  ;;  %v1538_v35 = vpack.c.bf16 %v7337_v25, %v7328_v19  ;;  %v1414_v56 = vrot.slane %v1308_v30, 2  ;;  %v1271_v25 = vld [vmem:[%s7141_s25 + $0x64] ss:$12 sps:$4 sm:$0xff]  }
  0x44   : > { %v6055_v6 = vunpack.c.l.bf16 %v6219_v42  ;;  %v720_v28 = vunpack.c.l.bf16 %v672_v11  ;;  %v1270_v42 = vld [vmem:[%s7141_s25 + $0x60] sm:$0xe]  ;;  %v1427_v9 = vrot.slane %v1316_v50, 2  ;;  %v1276_v50 = vld [vmem:[%s7141_s25 + $0x78] sm:$0xe] }
  0x45   : > { %6500 = vmatmul.mubr.bf16.gmra.mxu0 %v6978_v37  ;;  %6516 = vmatmul.mubr.bf16.gmra.mxu1 %v6979_v38  ;;  %v1411_v37 = vrot.slane %v1306_v14, 2  ;;  %v714_v38 = vunpack.c.l.bf16 %v666_v15  ;;  %v1412_v55 = vrot.slane %v1307_v29, 2  ;;  %v1314_v14 = vunpack.c.l.bf16 %v1266_v8  ;;  %v1269_v29 = vld [vmem:[%s7141_s25 + $0x5c] sm:$0x1] }
  0x46   : > { %6532 = vmatpush3.bf16.msra.mxu1 %v6980_v31  ;;  %6580 = vmatpush3.bf16.msra.mxu0 %v6981_v32  ;;  %v1261_v31 = vld [vmem:[%s7141_s25 + $0x3c] sm:$0xe]  ;;  %v1263_v32 = vld [vmem:[%s7141_s25 + $0x44] sm:$0x1]  ;;  %v826_v39 = vrot.slane %v6055_v6, 1  ;;  %v831_v63 = vrot.slane %v720_v28, 1 }
  0x47   : > { %6533 = vmatprep.subr.bf16.mxu1 %v6982_v44  ;;  %6581 = vmatprep.subr.bf16.mxu0 %v6983_v45  ;;  %v1309_v41 = vunpack.c.l.bf16 %v1261_v31  ;;  %v7362_v43 = vsel %vm1390_vm1, %v1411_v37, %v1412_v55  ;;  %v7365_v48 = vsel %vm1390_vm1, %v1412_v55, %v1414_v56  ;;  %v1311_v58 = vunpack.c.l.bf16 %v1263_v32  ;;  %v677_v55 = vld [vmem:[%s7141_s25 + $0x68] sm:$0x1]  ;;  %v678_v6 = vld [vmem:[%s7141_s25 + $0x6c] sm:$0xff]  }
  0x48   : > { %6535 = vmatprep.mubr.bf16.mxu1 %v940_v61  ;;  %6583 = vmatprep.mubr.bf16.mxu0 %v1535_v4  ;;  %v715_v61 = vunpack.c.h.bf16 %v666_v15  ;;  %v821_v4 = vrot.slane %v714_v38, 1  ;;  %v1539_v54 = vpack.c.bf16 %v7365_v48, %v7362_v43  ;;  %v674_v15 = vld [vmem:[%s7141_s25 + $0x5c] sm:$0x1]  ;;  %v1424_v32 = vrot.slane %v1314_v14, 2  ;;  %v6990_v38 = vld [vmem:[%s8897_s1 + $0xe0] sm:$0xff]  }
  0x49   : > { %v1416_v1 = vrot.slane %v1309_v41, 2  ;;  %v1419_v12 = vrot.slane %v1311_v58, 2  ;;  %v721_v37 = vunpack.c.h.bf16 %v672_v11  ;;  %v6220_v41 = vld [vmem:[%s7141_s25 + $0x60] sm:$0xff]   ;;  %v1317_v58 = vunpack.c.l.bf16 %v1269_v29  ;;  %v680_v43 = vld [vmem:[%s7141_s25 + $0x74] sm:$0x1] }
  0x4a   : > { %6534 = vmatpush3.bf16.msra.mxu1 %v6982_v44  ;;  %6582 = vmatpush3.bf16.msra.mxu0 %v6983_v45  ;;  %v822_v49 = vrot.slane %v715_v61, 1  ;;  %v1310_v44 = vunpack.c.h.bf16 %v7312_v59  ;;  %v671_v45 = vld [vmem:[%s7141_s25 + $0x50] sm:$0x1]  ;;  %v722_v61 = vunpack.c.l.bf16 %v674_v15  ;;  %v6060_v19 = vunpack.c.h.bf16 %v6220_v41 }
  0x4b   : > { %6615 = vmatprep.subr.bf16.mxu1 %v6984_v16  ;;  %6663 = vmatprep.subr.bf16.mxu0 %v6985_v24  ;;  %v719_v13 = vunpack.c.l.bf16 %v671_v45  ;;  %v832_v45 = vrot.slane %v721_v37, 1  ;;  %v1429_v40 = vrot.slane %v1317_v58, 2  ;;  %v726_v15 = vunpack.c.l.bf16 %v678_v6 }
  0x4c   : > { %v7388_v3 = vsel %vm795_vm0, %v821_v4, %v822_v49  ;;  %v1417_v59 = vrot.slane %v1310_v44, 2  ;;  %v7392_v10 = vsel %vm795_vm0, %v822_v49, %v824_v57  ;;  %v834_v57 = vrot.slane %v722_v61, 1 }
  0x4d   : > { %6536 = vmatmul.mubr.bf16.vlgmr.msra.gmra.mxu1 %v941_v17  ;;  %6584 = vmatmul.mubr.bf16.vlgmr.msra.gmra.mxu0 %v1536_v33  ;;  %v945_v17 = vpack.c.bf16 %v7392_v10, %v7388_v3  ;;  %v6989_v33 = vld [vmem:[%s8897_s1 + $0x128] sm:$0xff]   ;;  %v829_v53 = vrot.slane %v719_v13, 1  ;;  %v7464_v60 = vsel %vm795_vm0, %v831_v63, %v832_v45  ;;  %v7478_v8 = vrot.slane %v6060_v19, 1  ;;  %v6992_v13 = vld [vmem:[%s8897_s1 + $0xd8] sm:$0xff]  }
  0x4e   : > { %6616 = vmatpush3.bf16.msra.mxu1 %v6984_v16  ;;  %6664 = vmatpush3.bf16.msra.mxu0 %v6985_v24  ;;  %v7404_v26 = vsel %vm1390_vm1, %v1416_v1, %v1417_v59  ;;  %v7415_v47 = vsel %vm1390_vm1, %v1417_v59, %v1419_v12  ;;  %v1267_v16 = vld [vmem:[%s7141_s25 + $0x54] sm:$0xe]  ;;  %v1421_v24 = vrot.slane %v1312_v5, 2  ;;  %v1318_v59 = vunpack.c.l.bf16 %v1270_v42  ;;  %v1273_v12 = vld [vmem:[%s7141_s25 + $0x6c] sm:$0xe]  ;;  %v6993_v5 = vld [vmem:[%s8897_s1 + $0x118] sm:$0xff]  }
  0x4f   : > { %6539 = vmatprep.mubr.bf16.mxu1 %v942_v46  ;;  %6587 = vmatprep.mubr.bf16.mxu0 %v1537_v0  ;;  %v7412_v46 = vrot.slane %v6056_v7, 1  ;;  %v1313_v0 = vunpack.c.l.bf16 %v7379_v2  ;;  %v1540_v20 = vpack.c.bf16 %v7415_v47, %v7404_v26  ;;  %v1315_v4 = vunpack.c.l.bf16 %v1267_v16  ;;  %v1278_v47 = vld [vmem:[%s7141_s25 + $0x80] sm:$0x1] }
  0x50   : > { %6617 = vmatprep.subr.bf16.mxu1 %v6986_v51  ;;  %6665 = vmatprep.subr.bf16.mxu0 %v6987_v52  ;;  %v7469_v2 = vsel %vm795_vm0, %v832_v45, %v834_v57  ;;  %v7488_v11 = vsel %vm1390_vm1, %v1427_v9, %v1429_v40  ;;  %v1431_v14 = vrot.slane %v1318_v59, 2  ;;  %v727_v29 = vunpack.c.h.bf16 %v678_v6 }
  0x51   : > { %v7424_v22 = vsel %vm795_vm0, %v826_v39, %v7412_v46  ;;  %v7429_v30 = vsel %vm795_vm0, %v7412_v46, %v829_v53  ;;  %v1422_v31 = vrot.slane %v1313_v0, 2  ;;  %v1426_v1 = vrot.slane %v1315_v4, 2  ;;  %v6994_v4 = vld [vmem:[%s8897_s1 + $0xd0] sm:$0xff]  }
  0x52   : > { %6618 = vmatpush3.bf16.msra.mxu1 %v6986_v51  ;;  %6666 = vmatpush3.bf16.msra.mxu0 %v6987_v52  ;;  %v946_v56 = vpack.c.bf16 %v7429_v30, %v7424_v22  ;;  %v6991_v51 = vld [vmem:[%s8897_s1 + $0x120] sm:$0xff]   ;;  %v947_v48 = vpack.c.bf16 %v7469_v2, %v7464_v60  ;;  %v841_v61 = vrot.slane %v726_v15, 1  ;;  %v1321_v63 = vunpack.c.l.bf16 %v1273_v12  ;;  %v6996_v30 = vld [vmem:[%s8897_s1 + $0xc8] sm:$0xff]  }
  0x53   : > { %6619 = vmatprep.subr.bf16.mxu1 %v6988_v27  ;;  %6667 = vmatprep.subr.bf16.mxu0 %v6989_v33  ;;  %v7440_v49 = vsel %vm1390_vm1, %v1421_v24, %v1422_v31  ;;  %v7443_v44 = vsel %vm1390_vm1, %v1422_v31, %v1424_v32  ;;  %v1275_v31 = vld [vmem:[%s7141_s25 + $0x74] sm:$0x1]  ;;  %v6221_v32 = vld [vmem:[%s7141_s25 + $0x78] sm:$0xff]   ;;  %v1322_v45 = vunpack.c.h.bf16 %v1271_v25  ;;  %v1324_v19 = vunpack.c.l.bf16 %v1276_v50 }
  0x54   : > { %v1541_v52 = vpack.c.bf16 %v7443_v44, %v7440_v49  ;;  %v842_v44 = vrot.slane %v727_v29, 1  ;;  %v1436_v26 = vrot.slane %v1321_v63, 2  ;;  %v1282_v63 = vld [vmem:[%s7141_s25 + $0x90] sm:$0xe] }
  0x55   : > { %6540 = vmatmul.mubr.bf16.gmra.mxu1 %v943_v18  ;;  %6588 = vmatmul.mubr.bf16.gmra.mxu0 %v1538_v35  ;;  %v6059_v18 = vunpack.c.l.bf16 %v6220_v41  ;;  %v1272_v35 = vld [vmem:[%s7141_s25 + $0x68] sm:$0x1]  ;;  %v6995_v41 = vld [vmem:[%s8897_s1 + $0x110] sm:$0xff]   ;;  %v1437_v58 = vrot.slane %v1322_v45, 2 }
  0x56   : > { %6543 = vmatprep.mubr.bf16.mxu1 %v944_v62  ;;  %6591 = vmatprep.mubr.bf16.mxu0 %v1539_v54  ;;  %v725_v62 = vunpack.c.l.bf16 %v677_v55  ;;  %v7476_v54 = vsel %vm1390_vm1, %v1426_v1, %v1427_v9  ;;  %v1320_v39 = vunpack.c.l.bf16 %v1272_v35  ;;  %v728_v55 = vunpack.c.l.bf16 %v680_v43  ;;  %v6997_v35 = vld [vmem:[%s8897_s1 + $0x108] sm:$0xff]   ;;  %v1279_v43 = vld [vmem:[%s7141_s25 + $0x84] sm:$0xe] }
  0x57   : > { %6620 = vmatpush3.bf16.msra.mxu1 %v6988_v27  ;;  %6668 = vmatpush3.bf16.msra.mxu0 %v6989_v33  ;;  %v836_v7 = vrot.slane %v6059_v18, 1  ;;  %v1319_v33 = vunpack.c.l.bf16 %v1271_v25  ;;  %v1542_v53 = vpack.c.bf16 %v7488_v11, %v7476_v54  ;;  %v7532_v57 = vsel %vm795_vm0, %v841_v61, %v842_v44  ;;  %v686_v25 = vld [vmem:[%s7141_s25 + $0x8c] sm:$0x1]  ;;  %v689_v61 = vld [vmem:[%s7141_s25 + $0x98] sm:$0x1] }
  0x58   : > { %6621 = vmatprep.subr.bf16.mxu1 %v6990_v38  ;;  %6669 = vmatprep.subr.bf16.mxu0 %v6991_v51  ;;  %v839_v27 = vrot.slane %v725_v62, 1  ;;  %v1434_v28 = vrot.slane %v1320_v39, 2  ;;  %v844_v10 = vrot.slane %v728_v55, 1  ;;  %v6063_v1 = vunpack.c.l.bf16 %v6221_v32  ;;  %v7591_v11 = vld [vmem:[%s7141_s25 + $0x94] ss:$12 sps:$4 sm:$0xff]  }
  0x59   : > { %v7494_v0 = vsel %vm795_vm0, %v836_v7, %v7478_v8  ;;  %v1432_v24 = vrot.slane %v1319_v33, 2  ;;  %v6064_v9 = vunpack.c.h.bf16 %v6221_v32  ;;  %v7547_v62 = vsel %vm1390_vm1, %v1436_v26, %v1437_v58  ;;  %v7605_v26 = vld [vmem:[%s8897_s1 + $0x1b8] sm:$0xff]  }
  0x5a   : > { %v7498_v16 = vsel %vm795_vm0, %v7478_v8, %v839_v27  ;;  %v846_v59 = vrot.slane %v6063_v1, 1  ;;  %v1281_v27 = vld [vmem:[%s7141_s25 + $0x8c] sm:$0x1]  ;;  %v1330_v1 = vunpack.c.l.bf16 %v1282_v63 }
  0x5b   : > { %6622 = vmatpush3.bf16.msra.mxu1 %v6990_v38  ;;  %6670 = vmatpush3.bf16.msra.mxu0 %v6991_v51  ;;  %v948_v37 = vpack.c.bf16 %v7498_v16, %v7494_v0  ;;  %v683_v38 = vld [vmem:[%s7141_s25 + $0x80] sm:$0x1]  ;;  %v7518_v42 = vsel %vm1390_vm1, %v1431_v14, %v1432_v24  ;;  %v1435_v49 = vsel %vm1390_vm1, %v1432_v24, %v1434_v28  ;;  %v7523_v51 = vld [vmem:[%s7141_s25 + $0x7c] ss:$12 sps:$4 sm:$0xff]   ;;  %v7549_v6 = vrot.slane %v6064_v9, 1 }
  0x5c   : > { %6623 = vmatprep.subr.bf16.mxu1 %v6992_v13  ;;  %6671 = vmatprep.subr.bf16.mxu0 %v6993_v5  ;;  %v1543_v3 = vpack.c.bf16 %v1435_v49, %v7518_v42  ;;  %v731_v18 = vunpack.c.l.bf16 %v683_v38  ;;  %v1441_v14 = vrot.slane %v1324_v19, 2  ;;  %v6998_v24 = vld [vmem:[%s8897_s1 + $0xc0] sm:$0xff]   ;;  %v1327_v42 = vunpack.c.l.bf16 %v1279_v43  ;;  %v6222_v49 = vld [vmem:[%s7141_s25 + $0x90] sm:$0xff]  }
  0x5d   : > { %6544 = vmatmul.mubr.bf16.gmra.mxu1 %v945_v17  ;;  %6592 = vmatmul.mubr.bf16.gmra.mxu0 %v1540_v20  ;;  %v1323_v17 = vunpack.c.l.bf16 %v1275_v31  ;;  %v684_v20 = vld [vmem:[%s7141_s25 + $0x84] sm:$0xff]   ;;  %v7561_v39 = vsel %vm795_vm0, %v846_v59, %v7549_v6  ;;  %v1328_v54 = vunpack.c.h.bf16 %v7523_v51  ;;  %v1329_v45 = vunpack.c.l.bf16 %v1281_v27  ;;  %v690_v9 = vld [vmem:[%s7141_s25 + $0x9c] sm:$0xff]  }
  0x5e   : > { %6547 = vmatprep.mubr.bf16.mxu1 %v946_v56  ;;  %6595 = vmatprep.mubr.bf16.mxu0 %v1541_v52  ;;  %v7538_v56 = vsel %vm795_vm0, %v842_v44, %v844_v10  ;;  %v849_v12 = vrot.slane %v731_v18, 1  ;;  %v732_v15 = vunpack.c.l.bf16 %v684_v20  ;;  %v6999_v28 = vld [vmem:[%s8897_s1 + $0x100] sm:$0xff]   ;;  %v733_v55 = vunpack.c.h.bf16 %v684_v20  ;;  %v1284_v10 = vld [vmem:[%s7141_s25 + $0x98] sm:$0x1] }
  0x5f   : > { %6624 = vmatpush3.bf16.msra.mxu1 %v6992_v13  ;;  %6672 = vmatpush3.bf16.msra.mxu0 %v6993_v5  ;;  %v1439_v52 = vrot.slane %v1323_v17, 2  ;;  %v949_v40 = vpack.c.bf16 %v7538_v56, %v7532_v57  ;;  %v1325_v13 = vunpack.c.l.bf16 %v7523_v51  ;;  %v1326_v5 = vunpack.c.l.bf16 %v1278_v47  ;;  %v7600_v51 = vld [vmem:[%s8897_s1 + $0x178] sm:$0xff]  }
  0x60   : > { %6625 = vmatprep.subr.bf16.mxu1 %v6994_v4  ;;  %6673 = vmatprep.subr.bf16.mxu0 %v6995_v41  ;;  %v7571_v29 = vsel %vm795_vm0, %v7549_v6, %v849_v12  ;;  %v1446_v50 = vrot.slane %v1327_v42, 2  ;;  %v6068_v17 = vunpack.c.h.bf16 %v6222_v49  ;;  %v1449_v20 = vrot.slane %v1329_v45, 2  ;;  %v1289_v42 = vld [vmem:[%s7141_s25 + $0xac] ss:$12 sps:$4 sm:$0xff]  }
  0x61   : > { %v7553_v7 = vsel %vm1390_vm1, %v1437_v58, %v1439_v52  ;;  %v1442_v31 = vrot.slane %v1325_v13, 2  ;;  %v1444_v32 = vrot.slane %v1326_v5, 2  ;;  %v950_v38 = vpack.c.bf16 %v7571_v29, %v7561_v39  ;;  %v1285_v52 = vld [vmem:[%s7141_s25 + $0x9c] sm:$0xe]  ;;  %v1287_v29 = vld [vmem:[%s7141_s25 + $0xa4] sm:$0x1] }
  0x62   : > { %v1544_v33 = vpack.c.bf16 %v7553_v7, %v7547_v62  ;;  %v737_v58 = vunpack.c.l.bf16 %v689_v61  ;;  %v1331_v12 = vunpack.c.l.bf16 %v7591_v11  ;;  %v1332_v13 = vunpack.c.l.bf16 %v1284_v10 }
  0x63   : > { %6626 = vmatpush3.bf16.msra.mxu1 %v6994_v4  ;;  %6674 = vmatpush3.bf16.msra.mxu0 %v6995_v41  ;;  %v734_v4 = vunpack.c.l.bf16 %v686_v25  ;;  %v851_v41 = vrot.slane %v732_v15, 1  ;;  %v1443_v60 = vsel %vm1390_vm1, %v1441_v14, %v1442_v31  ;;  %v1445_v2 = vsel %vm1390_vm1, %v1442_v31, %v1444_v32 }
  0x64   : > { %6627 = vmatprep.subr.bf16.mxu1 %v6996_v30  ;;  %6675 = vmatprep.subr.bf16.mxu0 %v6997_v35  ;;  %v859_v43 = vrot.slane %v737_v58, 1  ;;  %v1451_v14 = vrot.slane %v1330_v1, 2  ;;  %v738_v15 = vunpack.c.l.bf16 %v690_v9  ;;  %v1454_v31 = vrot.slane %v1332_v13, 2  ;;  %v1291_v58 = vld [vmem:[%s7141_s25 + $0xb4] sm:$0xe] }
  0x65   : > { %6548 = vmatmul.mubr.bf16.gmra.mxu1 %v947_v48  ;;  %6596 = vmatmul.mubr.bf16.gmra.mxu0 %v1542_v53  ;;  %v852_v48 = vrot.slane %v733_v55, 1  ;;  %v1545_v53 = vpack.c.bf16 %v1445_v2, %v1443_v60  ;;  %v854_v44 = vrot.slane %v734_v4, 1  ;;  %v739_v32 = vunpack.c.h.bf16 %v690_v9  ;;  %v695_v55 = vld [vmem:[%s7141_s25 + $0xb0] sm:$0x1]  ;;  %v1288_v4 = vld [vmem:[%s7141_s25 + $0xa8] sm:$0xe] }
  0x66   : > { %6551 = vmatprep.mubr.bf16.mxu1 %v948_v37  ;;  %6599 = vmatprep.mubr.bf16.mxu0 %v1543_v3  ;;  %v1447_v37 = vrot.slane %v1328_v54, 2  ;;  %v6067_v3 = vunpack.c.l.bf16 %v6222_v49  ;;  %v861_v57 = vrot.slane %v738_v15, 1  ;;  %v1333_v56 = vunpack.c.l.bf16 %v1285_v52 }
  0x67   : > { %6628 = vmatpush3.bf16.msra.mxu1 %v6996_v30  ;;  %6676 = vmatpush3.bf16.msra.mxu0 %v6997_v35  ;;  %v7595_v16 = vsel %vm795_vm0, %v851_v41, %v852_v48  ;;  %v7608_v47 = vsel %vm795_vm0, %v852_v48, %v854_v44  ;;  %v692_v30 = vld [vmem:[%s7141_s25 + $0xa4] sm:$0x1]  ;;  %v7616_v35 = vrot.slane %v6068_v17, 1  ;;  %v1334_v41 = vunpack.c.h.bf16 %v7591_v11  ;;  %v1290_v48 = vld [vmem:[%s7141_s25 + $0xb0] sm:$0x1]  ;;  %v696_v11 = vld [vmem:[%s7141_s25 + $0xb4] sm:$0xff]  }
  0x68   : > { %6629 = vmatprep.subr.bf16.mxu1 %v6998_v24  ;;  %6677 = vmatprep.subr.bf16.mxu0 %v6999_v28  ;;  %v951_v18 = vpack.c.bf16 %v7608_v47, %v7595_v16  ;;  %v1448_v19 = vsel %vm1390_vm1, %v1446_v50, %v1447_v37  ;;  %v856_v25 = vrot.slane %v6067_v3, 1  ;;  %v1450_v59 = vsel %vm1390_vm1, %v1447_v37, %v1449_v20  ;;  %v698_v3 = vld [vmem:[%s7141_s25 + $0xbc] sm:$0x1] }
  0x69   : > { %v1546_v5 = vpack.c.bf16 %v1450_v59, %v1448_v19  ;;  %v740_v63 = vunpack.c.l.bf16 %v692_v30  ;;  %v1335_v60 = vunpack.c.l.bf16 %v1287_v29  ;;  %v1456_v2 = vrot.slane %v1333_v56, 2  ;;  %v1293_v19 = vld [vmem:[%s7141_s25 + $0xbc] sm:$0x1] }
  0x6a   : > { %v7622_v27 = vsel %vm795_vm0, %v856_v25, %v7616_v35  ;;  %v743_v16 = vunpack.c.l.bf16 %v695_v55  ;;  %v1336_v37 = vunpack.c.l.bf16 %v1288_v4  ;;  %v1337_v30 = vunpack.c.l.bf16 %v1289_v42 }
  0x6b   : > { %6630 = vmatpush3.bf16.msra.mxu1 %v6998_v24  ;;  %6678 = vmatpush3.bf16.msra.mxu0 %v6999_v28  ;;  %v860_v24 = vsel %vm795_vm0, %v7616_v35, %v859_v43  ;;  %v1452_v28 = vrot.slane %v1331_v12, 2  ;;  %v864_v49 = vrot.slane %v740_v63, 1  ;;  %v1459_v10 = vrot.slane %v1335_v60, 2 }
  0x6c   : > { %6711 = vmatprep.subr.bf16.mxu1 %v7600_v51  ;;  %6759 = vmatprep.subr.bf16.mxu0 %v7605_v26  ;;  %v952_v61 = vpack.c.bf16 %v860_v24, %v7622_v27  ;;  %v869_v9 = vrot.slane %v743_v16, 1  ;;  %v1338_v52 = vunpack.c.l.bf16 %v1290_v48  ;;  %v1461_v43 = vrot.slane %v1336_v37, 2 }
  0x6d   : > { %6552 = vmatmul.mubr.bf16.gmra.mxu1 %v949_v40  ;;  %6600 = vmatmul.mubr.bf16.gmra.mxu0 %v1544_v33  ;;  %v6223_v40 = vld [vmem:[%s7141_s25 + $0xa8] sm:$0xff]   ;;  %v1453_v62 = vsel %vm1390_vm1, %v1451_v14, %v1452_v28  ;;  %v1455_v7 = vsel %vm1390_vm1, %v1452_v28, %v1454_v31  ;;  %v862_v33 = vrot.slane %v739_v32, 1  ;;  %v744_v12 = vunpack.c.l.bf16 %v696_v11  ;;  %v5616_v32 = vld [vmem:[%s7141_s25 + $0x14] sm:$0x1] }
  0x6e   : > { %6555 = vmatprep.mubr.bf16.mxu1 %v950_v38  ;;  %6603 = vmatprep.mubr.bf16.mxu0 %v1545_v53  ;;  %v1547_v38 = vpack.c.bf16 %v1455_v7, %v1453_v62  ;;  %v1457_v53 = vrot.slane %v1334_v41, 2  ;;  %v6071_v44 = vunpack.c.l.bf16 %v6223_v40  ;;  %v6072_v45 = vunpack.c.h.bf16 %v6223_v40  ;;  %v5614_v31 = vld [vmem:[%s7141_s25 + $0xc] sm:$0xff]   ;;  %v5619_v7 = vld [vmem:[%s7141_s25 + $0x20] sm:$0x1] }
  0x6f   : > { %v863_v54 = vsel %vm795_vm0, %v861_v57, %v862_v33  ;;  %v865_v50 = vsel %vm795_vm0, %v862_v33, %v864_v49  ;;  %v1462_v14 = vrot.slane %v1337_v30, 2  ;;  %v1464_v15 = vrot.slane %v1338_v52, 2  ;;  %v7000_v30 = vld [vmem:[%s7141_s25 + $0xc] sm:$0xff]  }
  0x70   : > { %v1458_v17 = vsel %vm1390_vm1, %v1456_v2, %v1457_v53  ;;  %v866_v47 = vrot.slane %v6071_v44, 1  ;;  %v7649_v20 = vrot.slane %v6072_v45, 1  ;;  %v1460_v1 = vsel %vm1390_vm1, %v1457_v53, %v1459_v10  ;;  %v5620_v44 = vld [vmem:[%s7141_s25 + $0x24] sm:$0xff]   ;;  %v5622_v45 = vld [vmem:[%s7141_s25 + $0x2c] sm:$0x1] }
  0x71   : > { %v953_v25 = vpack.c.bf16 %v865_v50, %v863_v54  ;;  %v745_v29 = vunpack.c.h.bf16 %v696_v11  ;;  %v746_v24 = vunpack.c.l.bf16 %v698_v3  ;;  %v1339_v28 = vunpack.c.l.bf16 %v1291_v58 }
  0x72   : > { %v7656_v59 = vsel %vm795_vm0, %v866_v47, %v7649_v20  ;;  %v870_v13 = vsel %vm795_vm0, %v7649_v20, %v869_v9  ;;  %v1463_v55 = vsel %vm1390_vm1, %v1461_v43, %v1462_v14  ;;  %v1465_v63 = vsel %vm1390_vm1, %v1462_v14, %v1464_v15  ;;  %v5626_v14 = vld [vmem:[%s7141_s25 + $0x3c] sm:$0xff]   ;;  %v5628_v15 = vld [vmem:[%s7141_s25 + $0x44] sm:$0x1] }
  0x73   : > { %v1340_v57 = vunpack.c.h.bf16 %v1289_v42  ;;  %v1549_v56 = vpack.c.bf16 %v1465_v63, %v1463_v55  ;;  %v872_v40 = vrot.slane %v745_v29, 1  ;;  %v874_v4 = vrot.slane %v746_v24, 1  ;;  %v7001_v55 = vld [vmem:[%s7141_s25 + $0x18] sm:$0xff]  }
  0x74   : > { %v1341_v62 = vunpack.c.l.bf16 %v1293_v19  ;;  %v1466_v33 = vrot.slane %v1339_v28, 2  ;;  %v2296_v49 = vunpack.c.h.bf16 %v5614_v31  ;;  %v2297_v2 = vunpack.c.l.bf16 %v5616_v32 }
  0x75   : > { %6556 = vmatmul.mubr.bf16.gmra.mxu1 %v951_v18  ;;  %6604 = vmatmul.mubr.bf16.gmra.mxu0 %v1546_v5  ;;  %v1548_v18 = vpack.c.bf16 %v1460_v1, %v1458_v17  ;;  %v954_v5 = vpack.c.bf16 %v870_v13, %v7656_v59  ;;  %v1467_v41 = vrot.slane %v1340_v57, 2  ;;  %v875_v50 = vsel %vm795_vm0, %v872_v40, %v874_v4 }
  0x76   : > { %6559 = vmatprep.mubr.bf16.mxu1 %v952_v61  ;;  %6607 = vmatprep.mubr.bf16.mxu0 %v1547_v38  ;;  %v871_v61 = vrot.slane %v744_v12, 1  ;;  %v2295_v38 = vunpack.c.l.bf16 %v5614_v31  ;;  %v1469_v60 = vrot.slane %v1341_v62, 2  ;;  %v2392_v54 = vrot.slane %v2296_v49, 1 }
  0x77   : > { %v2394_v42 = vrot.slane %v2297_v2, 1  ;;  %v1468_v10 = vsel %vm1390_vm1, %v1466_v33, %v1467_v41  ;;  %v2300_v37 = vunpack.c.l.bf16 %v5619_v7  ;;  %v2301_v17 = vunpack.c.l.bf16 %v5620_v44 }
  0x78   : > { %v2391_v48 = vrot.slane %v2295_v38, 1  ;;  %v873_v53 = vsel %vm795_vm0, %v871_v61, %v872_v40  ;;  %v1470_v16 = vsel %vm1390_vm1, %v1467_v41, %v1469_v60  ;;  %v2302_v47 = vunpack.c.h.bf16 %v5620_v44  ;;  %v7004_v61 = vld [vmem:[%s7141_s25 + $0x24] sm:$0xff]   ;;  %v5631_v40 = vld [vmem:[%s7141_s25 + $0x50] sm:$0x1]  ;;  %v5632_v41 = vld [vmem:[%s7141_s25 + $0x54] sm:$0xff]  }
  0x79   : > { %v2395_v3 = vsel %vm795_vm0, %v2392_v54, %v2394_v42  ;;  %v2303_v58 = vunpack.c.l.bf16 %v5622_v45  ;;  %v955_v1 = vpack.c.bf16 %v875_v50, %v873_v53  ;;  %v1550_v9 = vpack.c.bf16 %v1470_v16, %v1468_v10  ;;  %v5634_v38 = vld [vmem:[%s7141_s25 + $0x5c] sm:$0x1]  ;;  %v5637_v44 = vld [vmem:[%s7141_s25 + $0x68] sm:$0x1] }
  0x7a   : > { %v2393_v11 = vsel %vm795_vm0, %v2391_v48, %v2392_v54  ;;  %v2399_v19 = vrot.slane %v2300_v37, 1  ;;  %v2401_v43 = vrot.slane %v2301_v17, 1  ;;  %v2402_v12 = vrot.slane %v2302_v47, 1  ;;  %v7010_v54 = vld [vmem:[%s8897_s1 + $0x168] sm:$0xff]   ;;  %v7008_v45 = vld [vmem:[%s7141_s25 + $0x3c] sm:$0xff]  }
  0x7b   : > { %v2535_v52 = vpack.c.bf16 %v2395_v3, %v2393_v11  ;;  %v2404_v13 = vrot.slane %v2303_v58, 1  ;;  %v2308_v24 = vunpack.c.h.bf16 %v5626_v14  ;;  %v2309_v28 = vunpack.c.l.bf16 %v5628_v15  ;;  %v7014_v3 = vld [vmem:[%s8897_s1 + $0x160] sm:$0xff]   ;;  %v5638_v17 = vld [vmem:[%s7141_s25 + $0x6c] sm:$0xff]   ;;  %v5640_v47 = vld [vmem:[%s7141_s25 + $0x74] sm:$0x1] }
  0x7c   : > { %v2400_v29 = vsel %vm795_vm0, %v7257_v23, %v2399_v19  ;;  %v2403_v31 = vsel %vm795_vm0, %v2401_v43, %v2402_v12  ;;  %v7007_v23 = vld [vmem:[%s8897_s1 + $0x1b0] sm:$0xff]   ;;  %v2312_v49 = vunpack.c.l.bf16 %v5631_v40  ;;  %v2313_v60 = vunpack.c.l.bf16 %v5632_v41  ;;  %v7018_v43 = vld [vmem:[%s8897_s1 + $0x158] sm:$0xff]  }
  0x7d   : > { %6560 = vmatmul.mubr.bf16.gmra.mxu1 %v953_v25  ;;  %6608 = vmatmul.mubr.bf16.gmra.mxu0 %v1548_v18  ;;  %v5625_v25 = vld [vmem:[%s7141_s25 + $0x38] sm:$0x1]  ;;  %v2405_v32 = vsel %vm795_vm0, %v2402_v12, %v2404_v13  ;;  %v2536_v63 = vpack.c.bf16 %v2400_v29, %v7280_v34  ;;  %v2412_v7 = vrot.slane %v2308_v24, 1  ;;  %v2414_v33 = vrot.slane %v2309_v28, 1  ;;  %v7009_v12 = vld [vmem:[%s7141_s25 + $0x48] sm:$0xff]  }
  0x7e   : > { %6563 = vmatprep.mubr.bf16.mxu1 %v954_v5  ;;  %6611 = vmatprep.mubr.bf16.mxu0 %v1549_v56  ;;  %v2306_v18 = vunpack.c.l.bf16 %v5625_v25  ;;  %v2307_v5 = vunpack.c.l.bf16 %v5626_v14  ;;  %v7006_v56 = vld [vmem:[%s8897_s1 + $0x170] sm:$0xff]   ;;  %v2537_v4 = vpack.c.bf16 %v2405_v32, %v2403_v31  ;;  %v2315_v53 = vunpack.c.l.bf16 %v5634_v38  ;;  %v5644_v24 = vld [vmem:[%s7141_s25 + $0x84] sm:$0xff]   ;;  %v5646_v32 = vld [vmem:[%s7141_s25 + $0x8c] sm:$0x1] }
  0x7f   : > { %v2415_v48 = vsel %vm795_vm0, %v2412_v7, %v2414_v33  ;;  %v2419_v10 = vrot.slane %v2312_v49, 1  ;;  %v2421_v16 = vrot.slane %v2313_v60, 1  ;;  %v2320_v19 = vunpack.c.h.bf16 %v5638_v17  ;;  %v7012_v14 = vld [vmem:[%s7141_s25 + $0x54] sm:$0xff]   ;;  %v5650_v60 = vld [vmem:[%s7141_s25 + $0x9c] sm:$0xff]  }
  0x80   : > { %v2409_v57 = vrot.slane %v2306_v18, 1  ;;  %v2411_v62 = vrot.slane %v2307_v5, 1  ;;  %v2424_v11 = vrot.slane %v2315_v53, 1  ;;  %v2321_v25 = vunpack.c.l.bf16 %v5640_v47  ;;  %v5643_v5 = vld [vmem:[%s7141_s25 + $0x80] sm:$0x1] }
  0x81   : > { %v2420_v58 = vsel %vm795_vm0, %v7412_v46, %v2419_v10  ;;  %v7019_v46 = vld [vmem:[%s8897_s1 + $0x198] sm:$0xff]   ;;  %v2432_v28 = vrot.slane %v2320_v19, 1  ;;  %v2326_v40 = vunpack.c.h.bf16 %v5644_v24 }
  0x82   : > { %v2410_v34 = vsel %vm795_vm0, %v7330_v21, %v2409_v57  ;;  %v2413_v2 = vsel %vm795_vm0, %v2411_v62, %v2412_v7  ;;  %v7005_v21 = vld [vmem:[%s7141_s25 + $0x30] sm:$0xff]   ;;  %v2540_v13 = vpack.c.bf16 %v2420_v58, %v7424_v22  ;;  %v2434_v31 = vrot.slane %v2321_v25, 1  ;;  %v7013_v62 = vld [vmem:[%s7141_s25 + $0x60] sm:$0xff]   ;;  %v7027_v7 = vld [vmem:[%s8897_s1 + $0x188] sm:$0xff]  }
  0x83   : > { %v2538_v42 = vpack.c.bf16 %v2410_v34, %v7352_v36  ;;  %v2539_v50 = vpack.c.bf16 %v2415_v48, %v2413_v2  ;;  %v7015_v36 = vld [vmem:[%s8897_s1 + $0x1a0] sm:$0xff]   ;;  %v7023_v22 = vld [vmem:[%s8897_s1 + $0x190] sm:$0xff]   ;;  %v2325_v57 = vunpack.c.l.bf16 %v5644_v24  ;;  %v5649_v38 = vld [vmem:[%s7141_s25 + $0x98] sm:$0x1] }
  0x84   : > { %v5652_v2 = vld [vmem:[%s7141_s25 + $0xa4] sm:$0x1] }
  0x85   : > { %6564 = vmatmul.mubr.bf16.gmra.mxu1 %v955_v1  ;;  %6612 = vmatmul.mubr.bf16.gmra.mxu0 %v1550_v9  ;;  %v2318_v1 = vunpack.c.l.bf16 %v5637_v44  ;;  %v2319_v9 = vunpack.c.l.bf16 %v5638_v17  ;;  %v2441_v48 = vrot.slane %v2325_v57, 1  ;;  %v2333_v10 = vunpack.c.l.bf16 %v5652_v2  ;;  %v7020_v17 = vld [vmem:[%s7141_s25 + $0x84] sm:$0xff]   ;;  %v5691_v2 = vld [vmem:[%s7141_s25 + $0x20] sm:$0x1] }
  0x86   : > { %6631 = vmatprep.mubr.bf16.mxu1 %v7000_v30  ;;  %6679 = vmatprep.mubr.bf16.mxu0 %v2535_v52 }
  0x87   : > { %v2429_v29 = vrot.slane %v2318_v1, 1  ;;  %v2431_v18 = vrot.slane %v2319_v9, 1  ;;  %v2454_v9 = vrot.slane %v2333_v10, 1 }
  0x8d   : > { %6632 = vmatmul.mubr.bf16.vlgmr.msra.gmra.mxu1 %v7001_v55  ;;  %6680 = vmatmul.mubr.bf16.vlgmr.msra.gmra.mxu0 %v2536_v63  ;;  %v7022_v55 = vld [vmem:[%s8897_s1 + $0x150] sm:$0xff]   ;;  %v2430_v63 = vsel %vm795_vm0, %v7478_v8, %v2429_v29  ;;  %v7026_v8 = vld [vmem:[%s8897_s1 + $0x148] sm:$0xff]  }
  0x8e   : > { %6712 = vmatpush3.bf16.msra.mxu1 %v7600_v51  ;;  %6760 = vmatpush3.bf16.msra.mxu0 %v7605_v26  ;;  %v7011_v51 = vld [vmem:[%s8897_s1 + $0x1a8] sm:$0xff]   ;;  %v2314_v26 = vunpack.c.h.bf16 %v5632_v41  ;;  %v2542_v33 = vpack.c.bf16 %v2430_v63, %v7494_v0  ;;  %v7031_v0 = vld [vmem:[%s8897_s1 + $0x180] sm:$0xff]   ;;  %v5688_v63 = vld [vmem:[%s7141_s25 + $0x14] sm:$0x1] }
  0x8f   : > { %6635 = vmatprep.mubr.bf16.mxu1 %v7004_v61  ;;  %6683 = vmatprep.mubr.bf16.mxu0 %v2537_v4  ;;  %v2324_v61 = vunpack.c.l.bf16 %v5643_v5  ;;  %v2327_v4 = vunpack.c.l.bf16 %v5646_v32  ;;  %v7016_v41 = vld [vmem:[%s7141_s25 + $0x6c] sm:$0xff]  }
  0x90   : > { %6713 = vmatprep.subr.bf16.mxu1 %v7006_v56  ;;  %6761 = vmatprep.subr.bf16.mxu0 %v7007_v23  ;;  %v2422_v37 = vrot.slane %v2314_v26, 1  ;;  %v7030_v26 = vld [vmem:[%s8897_s1 + $0x140] sm:$0xff]   ;;  %v5686_v5 = vld [vmem:[%s7141_s25 + $0xc] sm:$0xe] }
  0x91   : > { %v2439_v49 = vrot.slane %v2324_v61, 1 }
  0x92   : > { %6714 = vmatpush3.bf16.msra.mxu1 %v7006_v56  ;;  %6762 = vmatpush3.bf16.msra.mxu0 %v7007_v23  ;;  %v2423_v30 = vsel %vm795_vm0, %v2421_v16, %v2422_v37  ;;  %v2425_v52 = vsel %vm795_vm0, %v2422_v37, %v2424_v11  ;;  %v2433_v56 = vsel %vm795_vm0, %v2431_v18, %v2432_v28  ;;  %v7769_v16 = vld [vmem:[%s8897_s1 + $0x1f8] sm:$0xff]   ;;  %v5661_v18 = vld [vmem:[%s7141_s25 + $0xc8] sm:$0x1] }
  0x93   : > { %6715 = vmatprep.subr.bf16.mxu1 %v7010_v54  ;;  %6763 = vmatprep.subr.bf16.mxu0 %v7011_v51  ;;  %v2541_v15 = vpack.c.bf16 %v2425_v52, %v2423_v30  ;;  %v2435_v23 = vsel %vm795_vm0, %v2432_v28, %v2434_v31  ;;  %v2440_v53 = vsel %vm795_vm0, %v7549_v6, %v2439_v49  ;;  %v7774_v6 = vld [vmem:[%s8897_s1 + $0x238] sm:$0xff]   ;;  %v6231_v31 = vld [vmem:[%s7141_s25 + $0xc0] sm:$0xff]  }
  0x94   : > { %v2543_v34 = vpack.c.bf16 %v2435_v23, %v2433_v56  ;;  %v7017_v37 = vld [vmem:[%s7141_s25 + $0x78] sm:$0xff]   ;;  %v2544_v11 = vpack.c.bf16 %v2440_v53, %v7561_v39  ;;  %v6103_v61 = vunpack.c.l.bf16 %v6231_v31  ;;  %v6104_v57 = vunpack.c.h.bf16 %v6231_v31  ;;  %v5694_v53 = vld [vmem:[%s7141_s25 + $0x2c] sm:$0x1] }
  0x95   : > { %6636 = vmatmul.mubr.bf16.gmra.mxu1 %v7005_v21  ;;  %6684 = vmatmul.mubr.bf16.gmra.mxu0 %v2538_v42  ;;  %v2330_v21 = vunpack.c.l.bf16 %v5649_v38  ;;  %v2331_v42 = vunpack.c.l.bf16 %v5650_v60  ;;  %v5656_v30 = vld [vmem:[%s7141_s25 + $0xb4] sm:$0xff]   ;;  %v5658_v52 = vld [vmem:[%s7141_s25 + $0xbc] sm:$0x1]  ;;  %v2342_v56 = vunpack.c.l.bf16 %v5661_v18  ;;  %v2889_v23 = vunpack.c.l.bf16 %v5686_v5 }
  0x96   : > { %6639 = vmatprep.mubr.bf16.mxu1 %v7008_v45  ;;  %6687 = vmatprep.mubr.bf16.mxu0 %v2539_v50  ;;  %v2332_v50 = vunpack.c.h.bf16 %v5650_v60  ;;  %v2337_v25 = vunpack.c.l.bf16 %v5656_v30  ;;  %v7028_v38 = vld [vmem:[%s7141_s25 + $0xb4] sm:$0xff]   ;;  %v2467_v49 = vrot.slane %v6104_v57, 1 }
  0x97   : > { %6716 = vmatpush3.bf16.msra.mxu1 %v7010_v54  ;;  %6764 = vmatpush3.bf16.msra.mxu0 %v7011_v51  ;;  %v2442_v54 = vrot.slane %v2326_v40, 1  ;;  %v2444_v51 = vrot.slane %v2327_v4, 1  ;;  %v2449_v47 = vrot.slane %v2330_v21, 1  ;;  %v2451_v58 = vrot.slane %v2331_v42, 1  ;;  %v7025_v4 = vld [vmem:[%s7141_s25 + $0xa8] sm:$0xff]  }
  0x98   : > { %6717 = vmatprep.subr.bf16.mxu1 %v7014_v3  ;;  %6765 = vmatprep.subr.bf16.mxu0 %v7015_v36  ;;  %v2452_v1 = vrot.slane %v2332_v50, 1  ;;  %v2469_v60 = vrot.slane %v2342_v56, 1  ;;  %v2894_v50 = vunpack.c.l.bf16 %v5691_v2  ;;  %v5704_v57 = vld [vmem:[%s7141_s25 + $0x54] sm:$0xe] }
  0x99   : > { %v2443_v44 = vsel %vm795_vm0, %v2441_v48, %v2442_v54  ;;  %v2445_v45 = vsel %vm795_vm0, %v2442_v54, %v2444_v51  ;;  %v2450_v39 = vsel %vm795_vm0, %v7616_v35, %v2449_v47  ;;  %v2461_v35 = vrot.slane %v2337_v25, 1  ;;  %v5692_v51 = vld [vmem:[%s7141_s25 + $0x24] sm:$0xe] }
  0x9a   : > { %v2546_v29 = vpack.c.bf16 %v2450_v39, %v7622_v27  ;;  %v2985_v48 = vrot.slane %v2889_v23, 2  ;;  %v2470_v42 = vsel %vm795_vm0, %v2467_v49, %v2469_v60  ;;  %v7029_v47 = vld [vmem:[%s7141_s25 + $0xc0] sm:$0xff]   ;;  %v7032_v39 = vld [vmem:[%s7141_s25 + $0x18] sm:$0xff]   ;;  %v2993_v25 = vrot.slane %v2894_v50, 2  ;;  %v7036_v60 = vld [vmem:[%s7141_s25 + $0x30] sm:$0xff]  }
  0x9b   : > { %6718 = vmatpush3.bf16.msra.mxu1 %v7014_v3  ;;  %6766 = vmatpush3.bf16.msra.mxu0 %v7015_v36  ;;  %v5655_v3 = vld [vmem:[%s7141_s25 + $0xb0] sm:$0x1]  ;;  %v2545_v36 = vpack.c.bf16 %v2445_v45, %v2443_v44 }
  0x9c   : > { %6719 = vmatprep.subr.bf16.mxu1 %v7018_v43  ;;  %6767 = vmatprep.subr.bf16.mxu0 %v7019_v46  ;;  %v2336_v19 = vunpack.c.l.bf16 %v5655_v3  ;;  %v2897_v3 = vunpack.c.l.bf16 %v5694_v53 }
  0x9d   : > { %6640 = vmatmul.mubr.bf16.gmra.mxu1 %v7009_v12  ;;  %6688 = vmatmul.mubr.bf16.gmra.mxu0 %v2540_v13  ;;  %v2455_v12 = vsel %vm795_vm0, %v2452_v1, %v2454_v9  ;;  %v2338_v13 = vunpack.c.h.bf16 %v5656_v30  ;;  %v5698_v9 = vld [vmem:[%s7141_s25 + $0x3c] sm:$0xe]  ;;  %v5699_v30 = vld [vmem:[%s7141_s25 + $0x40] ss:$12 sps:$4 sm:$0xff]  }
  0x9e   : > { %6643 = vmatprep.mubr.bf16.mxu1 %v7012_v14  ;;  %6691 = vmatprep.mubr.bf16.mxu0 %v2541_v15  ;;  %v2339_v14 = vunpack.c.l.bf16 %v5658_v52  ;;  %v7024_v15 = vld [vmem:[%s7141_s25 + $0x9c] sm:$0xff]   ;;  %v2459_v28 = vrot.slane %v2336_v19, 1  ;;  %v2901_v18 = vunpack.c.l.bf16 %v5698_v9  ;;  %v2902_v5 = vunpack.c.l.bf16 %v5699_v30  ;;  %v5716_v9 = vld [vmem:[%s7141_s25 + $0x84] sm:$0xe] }
  0x9f   : > { %6720 = vmatpush3.bf16.msra.mxu1 %v7018_v43  ;;  %6768 = vmatpush3.bf16.msra.mxu0 %v7019_v46  ;;  %v7021_v43 = vld [vmem:[%s7141_s25 + $0x90] sm:$0xff]   ;;  %v2453_v46 = vsel %vm795_vm0, %v2451_v58, %v2452_v1  ;;  %v2462_v32 = vrot.slane %v2338_v13, 1 }
  0xa0   : > { %6721 = vmatprep.subr.bf16.mxu1 %v7022_v55  ;;  %6769 = vmatprep.subr.bf16.mxu0 %v7023_v22  ;;  %v2547_v24 = vpack.c.bf16 %v2455_v12, %v2453_v46  ;;  %v2460_v27 = vsel %vm795_vm0, %v7649_v20, %v2459_v28  ;;  %v5700_v46 = vld [vmem:[%s7141_s25 + $0x44] sm:$0x1]  ;;  %v5701_v28 = vld [vmem:[%s7141_s25 + $0x48] sm:$0xe]  ;;  %v3006_v23 = vrot.slane %v2902_v5, 2 }
  0xa3   : > { %6722 = vmatpush3.bf16.msra.mxu1 %v7022_v55  ;;  %6770 = vmatpush3.bf16.msra.mxu0 %v7023_v22  ;;  %v2464_v55 = vrot.slane %v2339_v14, 1  ;;  %v5687_v22 = vld [vmem:[%s7141_s25 + $0x10] ss:$12 sps:$4 sm:$0xff]   ;;  %v2998_v14 = vrot.slane %v2897_v3, 2 }
  0xa4   : > { %6723 = vmatprep.subr.bf16.mxu1 %v7026_v8  ;;  %6771 = vmatprep.subr.bf16.mxu0 %v7027_v7  ;;  %v2890_v40 = vunpack.c.l.bf16 %v5687_v22  ;;  %v2893_v45 = vunpack.c.h.bf16 %v5687_v22  ;;  %v5711_v3 = vld [vmem:[%s7141_s25 + $0x70] ss:$12 sps:$4 sm:$0xff]  }
  0xa5   : > { %6644 = vmatmul.mubr.bf16.gmra.mxu1 %v7013_v62  ;;  %6692 = vmatmul.mubr.bf16.gmra.mxu0 %v2542_v33  ;;  %v2463_v62 = vsel %vm795_vm0, %v2461_v35, %v2462_v32  ;;  %v5689_v33 = vld [vmem:[%s7141_s25 + $0x18] sm:$0xe] }
  0xa6   : > { %6647 = vmatprep.mubr.bf16.mxu1 %v7016_v41  ;;  %6695 = vmatprep.mubr.bf16.mxu0 %v2543_v34  ;;  %v2548_v41 = vpack.c.bf16 %v2460_v27, %v7656_v59  ;;  %v2466_v34 = vrot.slane %v6103_v61, 1  ;;  %v2986_v54 = vrot.slane %v2890_v40, 2  ;;  %v2892_v59 = vunpack.c.l.bf16 %v5689_v33  ;;  %v5703_v61 = vld [vmem:[%s7141_s25 + $0x50] sm:$0x1] }
  0xa7   : > { %6724 = vmatpush3.bf16.msra.mxu1 %v7026_v8  ;;  %6772 = vmatpush3.bf16.msra.mxu0 %v7027_v7  ;;  %v2465_v8 = vsel %vm795_vm0, %v2462_v32, %v2464_v55  ;;  %v2891_v7 = vunpack.c.l.bf16 %v5688_v63  ;;  %v2991_v19 = vrot.slane %v2893_v45, 2  ;;  %v3005_v27 = vrot.slane %v2901_v18, 2  ;;  %v5707_v45 = vld [vmem:[%s7141_s25 + $0x60] sm:$0xe] }
  0xa8   : > { %6725 = vmatprep.subr.bf16.mxu1 %v7030_v26  ;;  %6773 = vmatprep.subr.bf16.mxu0 %v7031_v0  ;;  %v2549_v20 = vpack.c.bf16 %v2465_v8, %v2463_v62  ;;  %v2468_v21 = vsel %vm795_vm0, %v2466_v34, %v2467_v49  ;;  %v2987_v44 = vsel %vm1390_vm1, %v2985_v48, %v2986_v54  ;;  %v2990_v1 = vrot.slane %v2892_v59, 2  ;;  %v7033_v62 = vld [vmem:[%s7141_s25 + $0x24] sm:$0xff]   ;;  %v7038_v48 = vld [vmem:[%s8897_s1 + $0x1f0] sm:$0xff]  }
  0xa9   : > { %v2550_v58 = vpack.c.bf16 %v2470_v42, %v2468_v21  ;;  %v2994_v35 = vsel %vm1390_vm1, %v2991_v19, %v2993_v25  ;;  %v2904_v40 = vunpack.c.l.bf16 %v5701_v28  ;;  %v2906_v33 = vunpack.c.l.bf16 %v5703_v61  ;;  %v7845_v21 = vld [vmem:[%s8897_s1 + $0x1e8] sm:$0xff]  }
  0xaa   : > { %v2992_v31 = vsel %vm1390_vm1, %v2990_v1, %v2991_v19  ;;  %v2907_v34 = vunpack.c.l.bf16 %v5704_v57  ;;  %v7850_v59 = vld [vmem:[%s8897_s1 + $0x228] sm:$0xff]   ;;  %v5715_v1 = vld [vmem:[%s7141_s25 + $0x80] sm:$0x1] }
  0xab   : > { %6726 = vmatpush3.bf16.msra.mxu1 %v7030_v26  ;;  %6774 = vmatpush3.bf16.msra.mxu0 %v7031_v0  ;;  %v2988_v26 = vrot.slane %v2891_v7, 2  ;;  %v5693_v0 = vld [vmem:[%s7141_s25 + $0x28] ss:$12 sps:$4 sm:$0xff]   ;;  %v2905_v7 = vunpack.c.h.bf16 %v5699_v30  ;;  %v3013_v50 = vrot.slane %v2906_v33, 2  ;;  %v2918_v5 = vunpack.c.l.bf16 %v5715_v1  ;;  %v5722_v33 = vld [vmem:[%s7141_s25 + $0x9c] sm:$0xe] }
  0xac   : > { %6807 = vmatprep.subr.bf16.mxu1 %v7769_v16  ;;  %6855 = vmatprep.subr.bf16.mxu0 %v7774_v6  ;;  %v7864_v30 = vld [vmem:[%s7141_s25 + $0x88] ss:$12 sps:$4 sm:$0xff]  }
  0xad   : > { %6648 = vmatmul.mubr.bf16.gmra.mxu1 %v7017_v37  ;;  %6696 = vmatmul.mubr.bf16.gmra.mxu0 %v2544_v11  ;;  %v2989_v10 = vsel %vm1390_vm1, %v2986_v54, %v2988_v26  ;;  %v2895_v37 = vunpack.c.l.bf16 %v5692_v51  ;;  %v2896_v11 = vunpack.c.l.bf16 %v5693_v0  ;;  %v7039_v54 = vld [vmem:[%s8897_s1 + $0x230] sm:$0xff]   ;;  %v7839_v51 = vsel %vm1390_vm1, %v3005_v27, %v3006_v23 }
  0xae   : > { %6651 = vmatprep.mubr.bf16.mxu1 %v7020_v17  ;;  %6699 = vmatprep.mubr.bf16.mxu0 %v2545_v36  ;;  %v5695_v17 = vld [vmem:[%s7141_s25 + $0x30] sm:$0xe]  ;;  %v5697_v36 = vld [vmem:[%s7141_s25 + $0x38] sm:$0x1]  ;;  %v3129_v52 = vpack.c.bf16 %v2989_v10, %v2987_v44  ;;  %v3010_v26 = vrot.slane %v2904_v40, 2  ;;  %v3011_v53 = vrot.slane %v2905_v7, 2  ;;  %v2920_v28 = vunpack.c.l.bf16 %v7864_v30 }
  0xaf   : > { %v2995_v12 = vrot.slane %v2895_v37, 2  ;;  %v2996_v13 = vrot.slane %v2896_v11, 2  ;;  %v3015_v10 = vrot.slane %v2907_v34, 2  ;;  %v5709_v37 = vld [vmem:[%s7141_s25 + $0x68] sm:$0x1]  ;;  %v7054_v1 = vld [vmem:[%s8897_s1 + $0x1d0] sm:$0xff]  }
  0xb0   : > { %v5710_v11 = vld [vmem:[%s7141_s25 + $0x6c] sm:$0xe]  ;;  %v2912_v25 = vunpack.c.l.bf16 %v5709_v37  ;;  %v7870_v18 = vsel %vm1390_vm1, %v3010_v26, %v3011_v53  ;;  %v5721_v40 = vld [vmem:[%s7141_s25 + $0x98] sm:$0x1]  ;;  %v3036_v34 = vrot.slane %v2920_v28, 2 }
  0xb1   : > { %v2997_v32 = vsel %vm1390_vm1, %v2995_v12, %v2996_v13  ;;  %v2999_v55 = vsel %vm1390_vm1, %v2996_v13, %v2998_v14  ;;  %v7040_v12 = vld [vmem:[%s7141_s25 + $0x48] sm:$0xff]   ;;  %v2914_v13 = vunpack.c.l.bf16 %v5711_v3  ;;  %v5731_v28 = vld [vmem:[%s7141_s25 + $0xc0] sm:$0xe] }
  0xb2   : > { %v3131_v49 = vpack.c.bf16 %v2999_v55, %v2997_v32  ;;  %v7046_v55 = vld [vmem:[%s8897_s1 + $0x1e0] sm:$0xff]  }
  0xb5   : > { %6652 = vmatmul.mubr.bf16.gmra.mxu1 %v7021_v43  ;;  %6700 = vmatmul.mubr.bf16.gmra.mxu0 %v2546_v29  ;;  %v2898_v43 = vunpack.c.l.bf16 %v5695_v17  ;;  %v2900_v29 = vunpack.c.l.bf16 %v5697_v36  ;;  %v5712_v17 = vld [vmem:[%s7141_s25 + $0x74] sm:$0x1]  ;;  %v5713_v36 = vld [vmem:[%s7141_s25 + $0x78] sm:$0xe] }
  0xb6   : > { %6655 = vmatprep.mubr.bf16.mxu1 %v7024_v15  ;;  %6703 = vmatprep.mubr.bf16.mxu0 %v2547_v24  ;;  %v2899_v15 = vunpack.c.h.bf16 %v5693_v0  ;;  %v2903_v24 = vunpack.c.l.bf16 %v5700_v46  ;;  %v5718_v46 = vld [vmem:[%s7141_s25 + $0x8c] sm:$0x1]  ;;  %v2915_v14 = vunpack.c.l.bf16 %v5712_v17 }
  0xb7   : > { %v3000_v22 = vrot.slane %v2898_v43, 2  ;;  %v3003_v56 = vrot.slane %v2900_v29, 2  ;;  %v2913_v43 = vunpack.c.l.bf16 %v5710_v11  ;;  %v2917_v29 = vunpack.c.h.bf16 %v5711_v3  ;;  %v5725_v11 = vld [vmem:[%s7141_s25 + $0xa8] sm:$0xe] }
  0xb8   : > { %v3001_v63 = vrot.slane %v2899_v15, 2  ;;  %v3008_v8 = vrot.slane %v2903_v24, 2  ;;  %v2916_v15 = vunpack.c.l.bf16 %v5713_v36  ;;  %v2919_v24 = vunpack.c.l.bf16 %v5716_v9  ;;  %v7055_v9 = vld [vmem:[%s8897_s1 + $0x210] sm:$0xff]  }
  0xb9   : > { %v3025_v27 = vrot.slane %v2913_v43, 2  ;;  %v3031_v7 = vrot.slane %v2917_v29, 2 }
  0xba   : > { %v3002_v2 = vsel %vm1390_vm1, %v3000_v22, %v3001_v63  ;;  %v3009_v0 = vsel %vm1390_vm1, %v3006_v23, %v3008_v8  ;;  %v7047_v22 = vld [vmem:[%s8897_s1 + $0x220] sm:$0xff]   ;;  %v5719_v23 = vld [vmem:[%s7141_s25 + $0x90] sm:$0xe]  ;;  %v3030_v8 = vrot.slane %v2916_v15, 2 }
  0xbb   : > { %v5729_v15 = vld [vmem:[%s7141_s25 + $0xb8] ss:$12 sps:$4 sm:$0xff]  }
  0xbc   : > { %v7918_v3 = vsel %vm1390_vm1, %v3030_v8, %v3031_v7  ;;  %v7048_v8 = vld [vmem:[%s7141_s25 + $0x78] sm:$0xff]  }
  0xbd   : > { %6656 = vmatmul.mubr.bf16.gmra.mxu1 %v7025_v4  ;;  %6704 = vmatmul.mubr.bf16.gmra.mxu0 %v2548_v41  ;;  %v3130_v4 = vpack.c.bf16 %v2994_v35, %v2992_v31  ;;  %v5705_v41 = vld [vmem:[%s7141_s25 + $0x58] ss:$12 sps:$4 sm:$0xff]   ;;  %v3014_v31 = vsel %vm1390_vm1, %v3011_v53, %v3013_v50 }
  0xbe   : > { %6659 = vmatprep.mubr.bf16.mxu1 %v7028_v38  ;;  %6707 = vmatprep.mubr.bf16.mxu0 %v2549_v20  ;;  %v5706_v38 = vld [vmem:[%s7141_s25 + $0x5c] sm:$0x1]  ;;  %v3004_v20 = vsel %vm1390_vm1, %v3001_v63, %v3003_v56  ;;  %v2908_v42 = vunpack.c.l.bf16 %v5705_v41  ;;  %v2921_v63 = vunpack.c.l.bf16 %v5718_v46  ;;  %v3023_v56 = vrot.slane %v2912_v25, 2 }
  0xbf   : > { %v2909_v44 = vunpack.c.l.bf16 %v5706_v38  ;;  %v3035_v38 = vrot.slane %v2919_v24, 2  ;;  %v3134_v26 = vpack.c.bf16 %v3014_v31, %v7870_v18  ;;  %v5730_v24 = vld [vmem:[%s7141_s25 + $0xbc] sm:$0x1]  ;;  %v5733_v31 = vld [vmem:[%s7141_s25 + $0xc8] sm:$0x1] }
  0xc1   : > { %v3018_v19 = vrot.slane %v2909_v44, 2  ;;  %v7044_v44 = vld [vmem:[%s7141_s25 + $0x60] sm:$0xff]   ;;  %v7924_v36 = vsel %vm1390_vm1, %v3035_v38, %v3036_v34  ;;  %v2936_v38 = vunpack.c.l.bf16 %v5733_v31 }
  0xc5   : > { %6660 = vmatmul.mubr.bf16.gmra.mxu1 %v7029_v47  ;;  %6708 = vmatmul.mubr.bf16.gmra.mxu0 %v2550_v58  ;;  %v3132_v47 = vpack.c.bf16 %v3004_v20, %v3002_v2  ;;  %v2911_v58 = vunpack.c.h.bf16 %v5705_v41  ;;  %v3033_v41 = vrot.slane %v2918_v5, 2  ;;  %v7050_v2 = vld [vmem:[%s8897_s1 + $0x1d8] sm:$0xff]  }
  0xc6   : > { %6727 = vmatprep.mubr.bf16.mxu1 %v3129_v52  ;;  %6775 = vmatprep.mubr.bf16.mxu0 %v7032_v39  ;;  %v7037_v52 = vld [vmem:[%s7141_s25 + $0x3c] sm:$0xff]   ;;  %v3016_v39 = vrot.slane %v2908_v42, 2  ;;  %v2925_v42 = vunpack.c.l.bf16 %v5722_v33  ;;  %v2934_v33 = vunpack.c.l.bf16 %v5731_v28 }
  0xc7   : > { %v3021_v32 = vrot.slane %v2911_v58, 2  ;;  %v7051_v20 = vld [vmem:[%s8897_s1 + $0x218] sm:$0xff]   ;;  %v7921_v17 = vsel %vm1390_vm1, %v3031_v7, %v3033_v41  ;;  %v2933_v7 = vunpack.c.l.bf16 %v5730_v24  ;;  %v2935_v41 = vunpack.c.h.bf16 %v5729_v15 }
  0xc8   : > { %v3017_v61 = vsel %vm1390_vm1, %v3015_v10, %v3016_v39  ;;  %v3019_v57 = vsel %vm1390_vm1, %v3016_v39, %v3018_v19  ;;  %v5727_v39 = vld [vmem:[%s7141_s25 + $0xb0] sm:$0x1]  ;;  %v2928_v19 = vunpack.c.l.bf16 %v5725_v11  ;;  %v3138_v18 = vpack.c.bf16 %v7921_v17, %v7918_v3 }
  0xc9   : > { %v3135_v53 = vpack.c.bf16 %v3019_v57, %v3017_v61  ;;  %v5832_v61 = vld [vmem:[%s7141_s25 + $0x20] sm:$0x1]  ;;  %v5902_v57 = vld [vmem:[%s7141_s25 + $0x18] sm:$0xe]  ;;  %v3061_v11 = vrot.slane %v2935_v41, 2 }
  0xcd   : > { %6728 = vmatmul.mubr.bf16.vlgmr.msra.gmra.mxu1 %v3130_v4  ;;  %6776 = vmatmul.mubr.bf16.vlgmr.msra.gmra.mxu0 %v7033_v62  ;;  %v3026_v4 = vrot.slane %v2914_v13, 2  ;;  %v3028_v62 = vrot.slane %v2915_v14, 2  ;;  %v7059_v13 = vld [vmem:[%s8897_s1 + $0x208] sm:$0xff]   ;;  %v5728_v14 = vld [vmem:[%s7141_s25 + $0xb4] sm:$0xe] }
  0xce   : > { %6808 = vmatpush3.bf16.msra.mxu1 %v7769_v16  ;;  %6856 = vmatpush3.bf16.msra.mxu0 %v7774_v6  ;;  %v3133_v16 = vpack.c.bf16 %v3009_v0, %v7839_v51  ;;  %v2910_v6 = vunpack.c.l.bf16 %v5707_v45  ;;  %v2924_v51 = vunpack.c.l.bf16 %v5721_v40  ;;  %v7041_v0 = vld [vmem:[%s7141_s25 + $0x54] sm:$0xff]   ;;  %v7907_v45 = vsel %vm1390_vm1, %v3021_v32, %v3023_v56  ;;  %v7045_v56 = vld [vmem:[%s7141_s25 + $0x6c] sm:$0xff]  }
  0xcf   : > { %6731 = vmatprep.mubr.bf16.mxu1 %v3131_v49  ;;  %6779 = vmatprep.mubr.bf16.mxu0 %v7036_v60  ;;  %v2923_v49 = vunpack.c.h.bf16 %v7864_v30  ;;  %v7891_v60 = vld [vmem:[%s7141_s25 + $0xa0] ss:$12 sps:$4 sm:$0xff]   ;;  %v7910_v50 = vsel %vm1390_vm1, %v3025_v27, %v3026_v4  ;;  %v7913_v10 = vsel %vm1390_vm1, %v3026_v4, %v3028_v62  ;;  %v3050_v27 = vrot.slane %v2928_v19, 2  ;;  %v7967_v62 = vld [vmem:[%s7141_s25 + $0x1c] ss:$12 sps:$4 sm:$0xff]  }
  0xd0   : > { %6809 = vmatprep.subr.bf16.mxu1 %v7038_v48  ;;  %6857 = vmatprep.subr.bf16.mxu0 %v7039_v54  ;;  %v3020_v35 = vrot.slane %v2910_v6, 2  ;;  %v2926_v37 = vunpack.c.l.bf16 %v7891_v60  ;;  %v3043_v58 = vrot.slane %v2924_v51, 2  ;;  %v2929_v25 = vunpack.c.h.bf16 %v7891_v60 }
  0xd1   : > { %v3137_v29 = vpack.c.bf16 %v7913_v10, %v7910_v50  ;;  %v2931_v40 = vunpack.c.l.bf16 %v5728_v14  ;;  %v2932_v4 = vunpack.c.l.bf16 %v5729_v15  ;;  %v5835_v50 = vld [vmem:[%s7141_s25 + $0x2c] sm:$0x1]  ;;  %v3058_v10 = vrot.slane %v2933_v7, 2 }
  0xd2   : > { %6810 = vmatpush3.bf16.msra.mxu1 %v7038_v48  ;;  %6858 = vmatpush3.bf16.msra.mxu0 %v7039_v54  ;;  %v3038_v48 = vrot.slane %v2921_v63, 2  ;;  %v2922_v54 = vunpack.c.l.bf16 %v5719_v23  ;;  %v3046_v46 = vrot.slane %v2926_v37, 2  ;;  %v6232_v63 = vld [vmem:[%s7141_s25 + $0x18] sm:$0xff]   ;;  %v3051_v23 = vrot.slane %v2929_v25, 2 }
  0xd3   : > { %6811 = vmatprep.subr.bf16.mxu1 %v7845_v21  ;;  %6859 = vmatprep.subr.bf16.mxu0 %v7850_v59  ;;  %v6108_v60 = vunpack.c.h.bf16 %v6232_v63  ;;  %v3060_v37 = vrot.slane %v2934_v33, 2 }
  0xd4   : > { %v3040_v6 = vrot.slane %v2922_v54, 2 }
  0xd5   : > { %6732 = vmatmul.mubr.bf16.gmra.mxu1 %v3132_v47  ;;  %6780 = vmatmul.mubr.bf16.gmra.mxu0 %v7037_v52  ;;  %v3041_v47 = vrot.slane %v2923_v49, 2  ;;  %v3045_v52 = vrot.slane %v2925_v42, 2  ;;  %v6107_v49 = vunpack.c.l.bf16 %v6232_v63  ;;  %v3056_v42 = vrot.slane %v2932_v4, 2 }
  0xd6   : > { %6735 = vmatprep.mubr.bf16.mxu1 %v3133_v16  ;;  %6783 = vmatprep.mubr.bf16.mxu0 %v7040_v12  ;;  %v7927_v16 = vsel %vm1390_vm1, %v3036_v34, %v3038_v48  ;;  %v7058_v12 = vld [vmem:[%s8897_s1 + $0x1c8] sm:$0xff]   ;;  %v5904_v34 = vld [vmem:[%s7141_s25 + $0x20] sm:$0x1]  ;;  %v8004_v31 = vsel %vm1390_vm1, %v3060_v37, %v3061_v11 }
  0xd7   : > { %6812 = vmatpush3.bf16.msra.mxu1 %v7845_v21  ;;  %6860 = vmatpush3.bf16.msra.mxu0 %v7850_v59  ;;  %v7902_v21 = vsel %vm1390_vm1, %v3020_v35, %v3021_v32  ;;  %v5724_v59 = vld [vmem:[%s7141_s25 + $0xa4] sm:$0x1]  ;;  %v3139_v5 = vpack.c.bf16 %v7927_v16, %v7924_v36  ;;  %v7957_v35 = vsel %vm1390_vm1, %v3040_v6, %v3041_v47  ;;  %v5905_v6 = vld [vmem:[%s7141_s25 + $0x24] sm:$0xe] }
  0xd8   : > { %6813 = vmatprep.subr.bf16.mxu1 %v7046_v55  ;;  %6861 = vmatprep.subr.bf16.mxu0 %v7047_v22  ;;  %v2927_v30 = vunpack.c.l.bf16 %v5724_v59  ;;  %v3136_v43 = vpack.c.bf16 %v7907_v45, %v7902_v21  ;;  %v7960_v32 = vsel %vm1390_vm1, %v3041_v47, %v3043_v58  ;;  %v7972_v48 = vsel %vm1390_vm1, %v3045_v52, %v3046_v46  ;;  %v5833_v45 = vld [vmem:[%s7141_s25 + $0x24] sm:$0xff]   ;;  %v5907_v52 = vld [vmem:[%s7141_s25 + $0x2c] sm:$0x1] }
  0xd9   : > { %v7985_v21 = vsel %vm1390_vm1, %v3050_v27, %v3051_v23  ;;  %v3055_v59 = vrot.slane %v2931_v40, 2  ;;  %v3063_v47 = vrot.slane %v2936_v38, 2  ;;  %v3985_v58 = vrot.slane %v6107_v49, 1 }
  0xda   : > { %v3892_v19 = vunpack.c.l.bf16 %v5833_v45  ;;  %v3893_v25 = vunpack.c.h.bf16 %v5833_v45  ;;  %v8001_v28 = vsel %vm1390_vm1, %v3056_v42, %v3058_v10  ;;  %v3140_v38 = vpack.c.bf16 %v7960_v32, %v7957_v35  ;;  %v5909_v32 = vld [vmem:[%s7141_s25 + $0x34] ss:$12 sps:$4 sm:$0xff]  }
  0xdb   : > { %6814 = vmatpush3.bf16.msra.mxu1 %v7046_v55  ;;  %6862 = vmatpush3.bf16.msra.mxu0 %v7047_v22  ;;  %v3048_v55 = vrot.slane %v2927_v30, 2  ;;  %v2930_v22 = vunpack.c.l.bf16 %v5727_v39  ;;  %v7998_v24 = vsel %vm1390_vm1, %v3055_v59, %v3056_v42  ;;  %v8008_v63 = vsel %vm1390_vm1, %v3061_v11, %v3063_v47  ;;  %v5911_v59 = vld [vmem:[%s7141_s25 + $0x3c] sm:$0xe]  ;;  %v5913_v11 = vld [vmem:[%s7141_s25 + $0x44] sm:$0x1]  ;;  %v6234_v47 = vld [vmem:[%s7141_s25 + $0x48] sm:$0xff]  }
  0xdc   : > { %6815 = vmatprep.subr.bf16.mxu1 %v7050_v2  ;;  %6863 = vmatprep.subr.bf16.mxu0 %v7051_v20  ;;  %v3990_v27 = vrot.slane %v3892_v19, 1  ;;  %v8080_v19 = vld [vmem:[%s7141_s25 + $0x4c] ss:$12 sps:$4 sm:$0xff]   ;;  %v7060_v35 = vld [vmem:[%s7141_s25 + $0xc0] sm:$0xff]  }
  0xdd   : > { %6736 = vmatmul.mubr.bf16.gmra.mxu1 %v3134_v26  ;;  %6784 = vmatmul.mubr.bf16.gmra.mxu0 %v7041_v0  ;;  %v7975_v54 = vsel %vm1390_vm1, %v3046_v46, %v3048_v55  ;;  %v3053_v51 = vrot.slane %v2930_v22, 2  ;;  %v7062_v26 = vld [vmem:[%s8897_s1 + $0x1c0] sm:$0xff]   ;;  %v4488_v55 = vunpack.c.l.bf16 %v5907_v52  ;;  %v6233_v22 = vld [vmem:[%s7141_s25 + $0x30] sm:$0xff]  }
  0xde   : > { %6739 = vmatprep.mubr.bf16.mxu1 %v3135_v53  ;;  %6787 = vmatprep.mubr.bf16.mxu0 %v7044_v44  ;;  %v7063_v0 = vld [vmem:[%s8897_s1 + $0x200] sm:$0xff]   ;;  %v4484_v53 = vunpack.c.l.bf16 %v7967_v62  ;;  %v4485_v44 = vunpack.c.l.bf16 %v5904_v34  ;;  %v6111_v41 = vunpack.c.l.bf16 %v6233_v22  ;;  %v6112_v17 = vunpack.c.h.bf16 %v6233_v22  ;;  %v5908_v34 = vld [vmem:[%s7141_s25 + $0x30] sm:$0xe] }
  0xdf   : > { %6816 = vmatpush3.bf16.msra.mxu1 %v7050_v2  ;;  %6864 = vmatpush3.bf16.msra.mxu0 %v7051_v20  ;;  %v3891_v2 = vunpack.c.l.bf16 %v5832_v61  ;;  %v4483_v20 = vunpack.c.l.bf16 %v5902_v57  ;;  %v7049_v46 = vld [vmem:[%s7141_s25 + $0x84] sm:$0xff]   ;;  %v7993_v14 = vsel %vm1390_vm1, %v3051_v23, %v3053_v51  ;;  %v3991_v23 = vrot.slane %v3893_v25, 1 }
  0xe0   : > { %6817 = vmatprep.subr.bf16.mxu1 %v7054_v1  ;;  %6865 = vmatprep.subr.bf16.mxu0 %v7055_v9  ;;  %v4580_v39 = vrot.slane %v4484_v53, 2  ;;  %v4582_v15 = vrot.slane %v4485_v44, 2  ;;  %v4587_v3 = vrot.slane %v4488_v55, 2  ;;  %v3141_v36 = vpack.c.bf16 %v7975_v54, %v7972_v48  ;;  %v5841_v53 = vld [vmem:[%s7141_s25 + $0x44] sm:$0x1] }
  0xe1   : > { %v4579_v30 = vrot.slane %v4483_v20, 2  ;;  %v3142_v16 = vpack.c.bf16 %v7993_v14, %v7985_v21  ;;  %v5910_v20 = vld [vmem:[%s7141_s25 + $0x38] sm:$0x1]  ;;  %v8056_v54 = vsel %vm795_vm0, %v3990_v27, %v3991_v23  ;;  %v3995_v10 = vrot.slane %v6111_v41, 1 }
  0xe2   : > { %v4489_v37 = vunpack.c.l.bf16 %v5908_v34  ;;  %v4491_v52 = vunpack.c.l.bf16 %v5910_v20  ;;  %v4493_v55 = vunpack.c.h.bf16 %v5909_v32  ;;  %v4494_v22 = vunpack.c.l.bf16 %v5913_v11 }
  0xe3   : > { %6818 = vmatpush3.bf16.msra.mxu1 %v7054_v1  ;;  %6866 = vmatpush3.bf16.msra.mxu0 %v7055_v9  ;;  %v3986_v1 = vrot.slane %v6108_v60, 1  ;;  %v3988_v9 = vrot.slane %v3891_v2, 1  ;;  %v7053_v2 = vld [vmem:[%s7141_s25 + $0x9c] sm:$0xff]   ;;  %v6115_v27 = vunpack.c.l.bf16 %v6234_v47 }
  0xe4   : > { %6819 = vmatprep.subr.bf16.mxu1 %v7058_v12  ;;  %6867 = vmatprep.subr.bf16.mxu0 %v7059_v13 }
  0xe5   : > { %6740 = vmatmul.mubr.bf16.gmra.mxu1 %v3136_v43  ;;  %6788 = vmatmul.mubr.bf16.gmra.mxu0 %v7045_v56  ;;  %v3894_v43 = vunpack.c.l.bf16 %v5835_v50  ;;  %v8011_v61 = vsel %vm795_vm0, %v3985_v58, %v3986_v1  ;;  %v8014_v57 = vsel %vm795_vm0, %v3986_v1, %v3988_v9  ;;  %v8017_v56 = vsel %vm1390_vm1, %v4579_v30, %v4580_v39  ;;  %v7056_v58 = vld [vmem:[%s7141_s25 + $0xa8] sm:$0xff]  }
  0xe6   : > { %6743 = vmatprep.mubr.bf16.mxu1 %v3137_v29  ;;  %6791 = vmatprep.mubr.bf16.mxu0 %v7048_v8  ;;  %v7052_v29 = vld [vmem:[%s7141_s25 + $0x90] sm:$0xff]   ;;  %v8027_v8 = vsel %vm1390_vm1, %v4580_v39, %v4582_v15  ;;  %v3996_v9 = vrot.slane %v6112_v17, 1  ;;  %v4490_v30 = vunpack.c.l.bf16 %v5909_v32  ;;  %v5914_v39 = vld [vmem:[%s7141_s25 + $0x48] sm:$0xe]  ;;  %v4496_v17 = vunpack.c.l.bf16 %v8080_v19 }
  0xe7   : > { %6820 = vmatpush3.bf16.msra.mxu1 %v7058_v12  ;;  %6868 = vmatpush3.bf16.msra.mxu0 %v7059_v13  ;;  %v4486_v12 = vunpack.c.l.bf16 %v5905_v6  ;;  %v4487_v13 = vunpack.c.h.bf16 %v7967_v62  ;;  %v3993_v40 = vrot.slane %v3894_v43, 1  ;;  %v5844_v6 = vld [vmem:[%s7141_s25 + $0x50] sm:$0x1]  ;;  %v4592_v32 = vrot.slane %v4491_v52, 2 }
  0xe8   : > { %6821 = vmatprep.subr.bf16.mxu1 %v7062_v26  ;;  %6869 = vmatprep.subr.bf16.mxu0 %v7063_v0  ;;  %v3903_v41 = vunpack.c.l.bf16 %v5844_v6  ;;  %v4590_v34 = vrot.slane %v4490_v30, 2  ;;  %v4597_v6 = vrot.slane %v4494_v22, 2  ;;  %v4600_v51 = vrot.slane %v4496_v17, 2  ;;  %v5917_v22 = vld [vmem:[%s7141_s25 + $0x54] sm:$0xe] }
  0xe9   : > { %v4584_v7 = vrot.slane %v4486_v12, 2  ;;  %v4585_v33 = vrot.slane %v4487_v13, 2  ;;  %v3900_v12 = vunpack.c.l.bf16 %v5841_v53  ;;  %v4492_v13 = vunpack.c.l.bf16 %v5911_v59 }
  0xeb   : > { %6822 = vmatpush3.bf16.msra.mxu1 %v7062_v26  ;;  %6870 = vmatpush3.bf16.msra.mxu0 %v7063_v0  ;;  %v8059_v26 = vsel %vm795_vm0, %v3991_v23, %v3993_v40  ;;  %v5839_v0 = vld [vmem:[%s7141_s25 + $0x3c] sm:$0xff]   ;;  %v8069_v45 = vsel %vm1390_vm1, %v4584_v7, %v4585_v33  ;;  %v8076_v1 = vsel %vm1390_vm1, %v4585_v33, %v4587_v3  ;;  %v6116_v23 = vunpack.c.h.bf16 %v6234_v47 }
  0xec   : > { %v3899_v15 = vunpack.c.h.bf16 %v5839_v0  ;;  %v4495_v3 = vunpack.c.l.bf16 %v5914_v39  ;;  %v4594_v11 = vrot.slane %v4492_v13, 2  ;;  %v4595_v47 = vrot.slane %v4493_v55, 2  ;;  %v7057_v39 = vld [vmem:[%s7141_s25 + $0xb4] sm:$0xff]  }
  0xed   : > { %v8019_v4 = vpop.f32.mrf.mxu0  ;;  %v8021_v62 = vpop.f32.mrf.mxu1  ;;  %6744 = vmatmul.mubr.bf16.gmra.mxu1 %v3138_v18  ;;  %6792 = vmatmul.mubr.bf16.gmra.mxu0 %v7049_v46  ;;  %v5838_v18 = vld [vmem:[%s7141_s25 + $0x38] sm:$0x1]  ;;  %v3898_v46 = vunpack.c.l.bf16 %v5839_v0 }
  0xee   : > { %8900 = vst [vmem:[#allocation3_spill] sm:$0xff] %v8021_v62  ;;  %6747 = vmatprep.mubr.bf16.mxu1 %v3139_v5  ;;  %6795 = vmatprep.mubr.bf16.mxu0 %v7052_v29  ;;  %v3143_v5 = vpack.c.bf16 %v8001_v28, %v7998_v24  ;;  %v3897_v50 = vunpack.c.l.bf16 %v5838_v18  ;;  %v5916_v29 = vld [vmem:[%s7141_s25 + $0x50] sm:$0x1]  ;;  %v4589_v18 = vrot.slane %v4489_v37, 2  ;;  %v5845_v0 = vld [vmem:[%s7141_s25 + $0x54] sm:$0xff]   ;;  %v4599_v48 = vrot.slane %v4495_v3, 2 }
  0xef   : > { %v8036_v49 = vpop.f32.mrf.mxu0  ;;  %v8038_v60 = vpop.f32.mrf.mxu1  ;;  %v4497_v20 = vunpack.c.l.bf16 %v5916_v29  ;;  %v5847_v37 = vld [vmem:[%s7141_s25 + $0x5c] sm:$0x1]  ;;  %v4008_v29 = vrot.slane %v3903_v41, 1  ;;  %v3905_v55 = vunpack.c.h.bf16 %v5845_v0  ;;  %v8119_v3 = vsel %vm1390_vm1, %v4590_v34, %v4592_v32  ;;  %v5856_v62 = vld [vmem:[%s7141_s25 + $0x80] sm:$0x1] }
  0xf0   : > { %8901 = vst [vmem:[#allocation4_spill] sm:$0xff] %v8038_v60  ;;  %v3998_v33 = vrot.slane %v3897_v50, 1  ;;  %v4003_v50 = vrot.slane %v3900_v12, 1  ;;  %v8116_v41 = vsel %vm1390_vm1, %v4589_v18, %v4590_v34  ;;  %v3906_v17 = vunpack.c.l.bf16 %v5847_v37  ;;  %v6235_v34 = vld [vmem:[%s7141_s25 + $0x60] sm:$0xff]  }
  0xf1   : > { %v8064_v42 = vpop.f32.mrf.mxu0  ;;  %v8066_v44 = vpop.f32.mrf.mxu1  ;;  %v4602_v13 = vrot.slane %v4497_v20, 2  ;;  %v8129_v20 = vsel %vm1390_vm1, %v4594_v11, %v4595_v47  ;;  %v4011_v14 = vrot.slane %v3905_v55, 1  ;;  %v6119_v24 = vunpack.c.l.bf16 %v6235_v34 }
  0xf2   : > { %8902 = vst [vmem:[#allocation5_spill] sm:$0xff] %v8066_v44  ;;  %v8108_v12 = vsel %vm795_vm0, %v3996_v9, %v3998_v33  ;;  %v6120_v28 = vunpack.c.h.bf16 %v6235_v34 }
  0xf3   : > { %v8082_v25 = vpop.f32.mrf.mxu0  ;;  %v8084_v43 = vpop.f32.mrf.mxu1  ;;  %v8156_v21 = vsel %vm1390_vm1, %v4600_v51, %v4602_v13  ;;  %v5851_v13 = vld [vmem:[%s7141_s25 + $0x6c] sm:$0xff]  }
  0xf4   : > { %8903 = vst [vmem:[#allocation6_spill] sm:$0xff] %v8084_v43  ;;  %v6236_v43 = vld [vmem:[%s7141_s25 + $0x78] sm:$0xff]  }
  0xf5   : > { %v8087_v40 = vpop.f32.mrf.mxu0  ;;  %v8089_v7 = vpop.f32.mrf.mxu1  ;;  %6748 = vmatmul.mubr.bf16.gmra.mxu1 %v3140_v38  ;;  %6796 = vmatmul.mubr.bf16.gmra.mxu0 %v7053_v2  ;;  %v4000_v38 = vrot.slane %v3898_v46, 1  ;;  %v4001_v2 = vrot.slane %v3899_v15, 1  ;;  %v3904_v46 = vunpack.c.l.bf16 %v5845_v0  ;;  %v8105_v15 = vsel %vm795_vm0, %v3995_v10, %v3996_v9  ;;  %v5919_v9 = vld [vmem:[%s7141_s25 + $0x5c] sm:$0x1] }
  0xf6   : > { %8904 = vst [vmem:[#allocation7_spill] sm:$0xff] %v8089_v7  ;;  %6751 = vmatprep.mubr.bf16.mxu1 %v3141_v36  ;;  %6799 = vmatprep.mubr.bf16.mxu0 %v7056_v58  ;;  %v4005_v36 = vrot.slane %v6115_v27, 1  ;;  %v4006_v58 = vrot.slane %v6116_v23, 1  ;;  %v8132_v0 = vsel %vm1390_vm1, %v4595_v47, %v4597_v6  ;;  %v4498_v47 = vunpack.c.l.bf16 %v5917_v22  ;;  %v5850_v6 = vld [vmem:[%s7141_s25 + $0x68] sm:$0x1] }
  0xf7   : > { %v8093_v53 = vpop.f32.mrf.mxu0  ;;  %v8095_v59 = vpop.f32.mrf.mxu1  ;;  %v8122_v10 = vsel %vm795_vm0, %v4000_v38, %v4001_v2  ;;  %v8126_v33 = vsel %vm795_vm0, %v4001_v2, %v4003_v50  ;;  %v8149_v50 = vsel %vm1390_vm1, %v4599_v48, %v4600_v51  ;;  %v4010_v11 = vrot.slane %v3904_v46, 1  ;;  %v5920_v46 = vld [vmem:[%s7141_s25 + $0x60] sm:$0xe]  ;;  %v5922_v51 = vld [vmem:[%s7141_s25 + $0x68] sm:$0x1] }
  0xf8   : > { %8905 = vst [vmem:[#allocation8_spill] sm:$0xff] %v8095_v59  ;;  %v8135_v18 = vsel %vm795_vm0, %v4005_v36, %v4006_v58  ;;  %v8146_v2 = vsel %vm795_vm0, %v4006_v58, %v4008_v29  ;;  %v4500_v36 = vunpack.c.l.bf16 %v5919_v9  ;;  %v3909_v29 = vunpack.c.l.bf16 %v5850_v6  ;;  %v5925_v7 = vld [vmem:[%s7141_s25 + $0x74] sm:$0x1] }
  0xf9   : > { %v8098_v30 = vpop.f32.mrf.mxu0  ;;  %v8100_v52 = vpop.f32.mrf.mxu1  ;;  %v8190_v37 = vsel %vm795_vm0, %v4010_v11, %v4011_v14  ;;  %v4015_v6 = vrot.slane %v6119_v24, 1  ;;  %v4501_v59 = vunpack.c.l.bf16 %v5920_v46  ;;  %v4503_v60 = vunpack.c.l.bf16 %v5922_v51 }
  0xfa   : > { %8906 = vst [vmem:[#allocation9_spill] sm:$0xff] %v8100_v52  ;;  %v4016_v52 = vrot.slane %v6120_v28, 1  ;;  %v4018_v44 = vrot.slane %v3909_v29, 1  ;;  %v8914_v29 = vpack.c.bf16 %v8014_v57, %v8011_v61  ;;  %v8915_v51 = vpack.c.bf16 %v8027_v8, %v8017_v56 }
  0xfb   : > { %v8111_v27 = vpop.f32.mrf.mxu0  ;;  %v8113_v23 = vpop.f32.mrf.mxu1  ;;  %v4609_v57 = vrot.slane %v4501_v59, 2  ;;  %v6124_v56 = vunpack.c.h.bf16 %v6236_v43  ;;  %v3915_v8 = vunpack.c.l.bf16 %v5856_v62 }
  0xfc   : > { %8907 = vst [vmem:[#allocation10_spill] sm:$0xff] %v8113_v23  ;;  %v8227_v61 = vsel %vm795_vm0, %v4015_v6, %v4016_v52 }
  0xfd   : > { %v8138_v32 = vpop.f32.mrf.mxu0  ;;  %v8140_v38 = vpop.f32.mrf.mxu1  ;;  %6752 = vmatmul.mubr.bf16.gmra.mxu1 %v3142_v16  ;;  %6800 = vmatmul.mubr.bf16.gmra.mxu0 %v7057_v39  ;;  %v4499_v16 = vunpack.c.h.bf16 %v8080_v19  ;;  %v4013_v39 = vrot.slane %v3906_v17, 1  ;;  %v5921_v19 = vld [vmem:[%s7141_s25 + $0x64] ss:$12 sps:$4 sm:$0xff]  }
  0xfe   : > { %8908 = vst [vmem:[#allocation11_spill] sm:$0xff] %v8140_v38  ;;  %6755 = vmatprep.mubr.bf16.mxu1 %v3143_v5  ;;  %6803 = vmatprep.mubr.bf16.mxu0 %v7060_v35  ;;  %v7061_v5 = vld [vmem:[%s7141_s25 + $0xcc] sm:$0xff]   ;;  %v5853_v35 = vld [vmem:[%s7141_s25 + $0x74] sm:$0x1]  ;;  %v4502_v11 = vunpack.c.l.bf16 %v5921_v19  ;;  %v4505_v28 = vunpack.c.h.bf16 %v5921_v19  ;;  %v8231_v19 = vsel %vm795_vm0, %v4016_v52, %v4018_v44 }
  0xff   : > { %v8159_v48 = vpop.f32.mrf.mxu0  ;;  %v8161_v58 = vpop.f32.mrf.mxu1  ;;  %v4605_v17 = vrot.slane %v4499_v16, 2  ;;  %v5923_v38 = vld [vmem:[%s7141_s25 + $0x6c] sm:$0xe]  ;;  %v8198_v34 = vsel %vm795_vm0, %v4011_v14, %v4013_v39  ;;  %v3911_v14 = vunpack.c.h.bf16 %v5851_v13  ;;  %v3912_v39 = vunpack.c.l.bf16 %v5853_v35  ;;  %v5926_v35 = vld [vmem:[%s7141_s25 + $0x78] sm:$0xe] }
 0x100   : > { %8909 = vst [vmem:[#allocation12_spill] sm:$0xff] %v8161_v58  ;;  %v4607_v58 = vrot.slane %v4500_v36, 2  ;;  %v4504_v24 = vunpack.c.l.bf16 %v5923_v38  ;;  %v4615_v59 = vrot.slane %v4505_v28, 2 }
 0x101   : > { %v8174_v55 = vpop.f32.mrf.mxu0  ;;  %v8176_v22 = vpop.f32.mrf.mxu1  ;;  %v4021_v6 = vrot.slane %v3911_v14, 1  ;;  %v4507_v14 = vunpack.c.l.bf16 %v5926_v35  ;;  %v8919_v35 = vpack.c.bf16 %v8076_v1, %v8069_v45 }
 0x102   : > { %8910 = vst [vmem:[#allocation13_spill] sm:$0xff] %v8176_v22  ;;  %v4604_v22 = vrot.slane %v4498_v47, 2  ;;  %v3910_v47 = vunpack.c.l.bf16 %v5851_v13  ;;  %v4610_v13 = vrot.slane %v4502_v11, 2 }
 0x103   : > { %v8193_v9 = vpop.f32.mrf.mxu0  ;;  %v8195_v23 = vpop.f32.mrf.mxu1 }
 0x104   : > { %8911 = vst [vmem:[#allocation14_spill] sm:$0xff] %v8195_v23  ;;  %v8913_v23 = vpack.c.bf16 %v8008_v63, %v8004_v31  ;;  %v8217_v46 = vsel %vm1390_vm1, %v4604_v22, %v4605_v17  ;;  %v8220_v31 = vsel %vm1390_vm1, %v4605_v17, %v4607_v58  ;;  %v4506_v63 = vunpack.c.l.bf16 %v5925_v7  ;;  %v8234_v7 = vld [vmem:[%s7141_s25 + $0x7c] ss:$12 sps:$4 sm:$0xff]  }
 0x105   : > { %v8203_v16 = vpop.f32.mrf.mxu0  ;;  %v8205_v36 = vpop.f32.mrf.mxu1  ;;  %6804 = vmatmul.mubr.bf16.gmra.mxu0 %v7061_v5  ;;  %v4612_v58 = vrot.slane %v4503_v60, 2  ;;  %v4020_v22 = vrot.slane %v3910_v47, 1  ;;  %v8254_v62 = vsel %vm1390_vm1, %v4609_v57, %v4610_v13 }
 0x106   : > { %8912 = vst [vmem:[#allocation15_spill] sm:$0xff] %v8205_v36  ;;  %6756 = vmatmul.mubr.bf16.gmra.mxu1 %v8913_v23  ;;  %6871 = vmatprep.mubr.bf16.mxu0 %v8915_v51  ;;  %v6123_v23 = vunpack.c.l.bf16 %v6236_v43  ;;  %v4023_v51 = vrot.slane %v3912_v39, 1  ;;  %v5928_v43 = vld [vmem:[%s7141_s25 + $0x80] sm:$0x1]  ;;  %v4617_v60 = vrot.slane %v4506_v63, 2  ;;  %v4026_v36 = vrot.slane %v6124_v56, 1 }
 0x107   : > { %6823 = vmatprep.mubr.bf16.mxu1 %v8914_v29  ;;  %v8222_v5 = vpop.f32.mrf.mxu0  ;;  %v8224_v38 = vpop.f32.mrf.mxu1  ;;  %v4508_v39 = vunpack.c.l.bf16 %v8234_v7  ;;  %v8257_v63 = vsel %vm1390_vm1, %v4610_v13, %v4612_v58  ;;  %v8266_v28 = vsel %vm795_vm0, %v4020_v22, %v4021_v6  ;;  %v5859_v58 = vld [vmem:[%s7141_s25 + $0x8c] sm:$0x1] }
 0x108   : > { %8916 = vst [vmem:[#allocation16_spill] sm:$0xff] %v8224_v38  ;;  %v4614_v38 = vrot.slane %v4504_v24, 2  ;;  %v4025_v52 = vrot.slane %v6123_v23, 1  ;;  %v5857_v24 = vld [vmem:[%s7141_s25 + $0x84] sm:$0xff]   ;;  %v4509_v23 = vunpack.c.l.bf16 %v5928_v43  ;;  %v8269_v57 = vsel %vm795_vm0, %v4021_v6, %v4023_v51  ;;  %v5931_v51 = vld [vmem:[%s7141_s25 + $0x8c] sm:$0x1] }
 0x109   : > { %v8236_v17 = vpop.f32.mrf.mxu0  ;;  %v8238_v29 = vpop.f32.mrf.mxu1  ;;  %v8283_v45 = vsel %vm1390_vm1, %v4615_v59, %v4617_v60  ;;  %v3916_v1 = vunpack.c.l.bf16 %v5857_v24  ;;  %v3917_v22 = vunpack.c.h.bf16 %v5857_v24  ;;  %v5929_v6 = vld [vmem:[%s7141_s25 + $0x84] sm:$0xe] }
 0x10a   : > { %8917 = vst [vmem:[#allocation17_spill] sm:$0xff] %v8238_v29  ;;  %v4028_v29 = vrot.slane %v3915_v8, 1  ;;  %v8918_v8 = vpack.c.bf16 %v8059_v26, %v8056_v54  ;;  %v8272_v13 = vsel %vm1390_vm1, %v4614_v38, %v4615_v59  ;;  %v8920_v54 = vpack.c.bf16 %v8108_v12, %v8105_v15 }
 0x10b   : > { %v8245_v11 = vpop.f32.mrf.mxu0  ;;  %v8247_v47 = vpop.f32.mrf.mxu1  ;;  %v8921_v26 = vpack.c.bf16 %v8119_v3, %v8116_v41  ;;  %v4619_v15 = vrot.slane %v4507_v14, 2  ;;  %v4620_v12 = vrot.slane %v4508_v39, 2  ;;  %v4622_v59 = vrot.slane %v4509_v23, 2  ;;  %v6237_v23 = vld [vmem:[%s7141_s25 + $0x90] sm:$0xff]  }
 0x10d   : > { %v6537_v44 = vpop.f32.mrf.mxu1  ;;  %v6585_v56 = vpop.f32.mrf.mxu0  ;;  %6872 = vmatmul.mubr.bf16.vlgmr.msra.gmra.mxu0 %v8919_v35  ;;  %v8288_v35 = vsel %vm795_vm0, %v4025_v52, %v4026_v36  ;;  %v4510_v52 = vunpack.c.l.bf16 %v5929_v6  ;;  %v5934_v6 = vld [vmem:[%s7141_s25 + $0x98] sm:$0x1] }
 0x10e   : > { %6824 = vmatmul.mubr.bf16.vlgmr.msra.gmra.mxu1 %v8918_v8  ;;  %v1184_v43 = vadd.f32 %v6537_v44, %v8019_v4  ;;  %6875 = vmatprep.mubr.bf16.mxu0 %v8921_v26  ;;  %v8291_v4 = vsel %vm795_vm0, %v4026_v36, %v4028_v29  ;;  %v3918_v44 = vunpack.c.l.bf16 %v5859_v58  ;;  %v4511_v36 = vunpack.c.h.bf16 %v8234_v7 }
 0x10f   : > { %6827 = vmatprep.mubr.bf16.mxu1 %v8920_v54  ;;  %v1055_v38 = vpop.f32.mrf.mxu1  ;;  %v1650_v8 = vpop.f32.mrf.mxu0  ;;  %v4512_v29 = vunpack.c.l.bf16 %v5931_v51  ;;  %v8310_v51 = vsel %vm1390_vm1, %v4619_v15, %v4620_v12  ;;  %v8923_v15 = vpack.c.bf16 %v8126_v33, %v8122_v10  ;;  %v8924_v7 = vpack.c.bf16 %v8132_v0, %v8129_v20 }
 0x110   : > { %v8293_v41 = vadd.f32 %v6585_v56, %v1184_v43  ;;  %v1182_v3 = vadd.f32 %v1055_v38, %v8036_v49  ;;  %v4030_v56 = vrot.slane %v3916_v1, 1  ;;  %v4031_v49 = vrot.slane %v3917_v22, 1  ;;  %v5932_v1 = vld [vmem:[%s7141_s25 + $0x90] sm:$0xe] }
 0x111   : > { %v6538_v60 = vpop.f32.mrf.mxu1  ;;  %v6586_v24 = vpop.f32.mrf.mxu0  ;;  %v8926_v10 = vpack.c.bf16 %v8156_v21, %v8149_v50  ;;  %v6128_v20 = vunpack.c.h.bf16 %v6237_v23 }
 0x112   : > { %v8299_v14 = vadd.f32 %v1650_v8, %v1182_v3  ;;  %v1185_v39 = vadd.f32 %v6538_v60, %v8064_v42  ;;  %v5862_v42 = vld [vmem:[%s7141_s25 + $0x98] sm:$0x1]  ;;  %v8318_v8 = vsel %vm1390_vm1, %v4620_v12, %v4622_v59  ;;  %v4033_v3 = vrot.slane %v3918_v44, 1  ;;  %v8321_v60 = vld [vmem:[%s7141_s25 + $0x94] ss:$12 sps:$4 sm:$0xff]  }
 0x113   : > { %v1058_v58 = vpop.f32.mrf.mxu1  ;;  %v1653_v43 = vpop.f32.mrf.mxu0  ;;  %v6127_v12 = vunpack.c.l.bf16 %v6237_v23  ;;  %v5863_v59 = vld [vmem:[%s7141_s25 + $0x9c] sm:$0xff]   ;;  %v8341_v33 = vsel %vm795_vm0, %v4030_v56, %v4031_v49 }
 0x114   : > { %v8314_v38 = vadd.f32 %v6586_v24, %v1185_v39  ;;  %v1183_v22 = vadd.f32 %v1058_v58, %v8082_v25  ;;  %v4624_v24 = vrot.slane %v4510_v52, 2  ;;  %v4625_v39 = vrot.slane %v4511_v36, 2 }
 0x115   : > { %v6541_v26 = vpop.f32.mrf.mxu1  ;;  %v6589_v54 = vpop.f32.mrf.mxu0  ;;  %6876 = vmatmul.mubr.bf16.gmra.mxu0 %v8924_v7  ;;  %v4627_v25 = vrot.slane %v4512_v29, 2  ;;  %v3921_v36 = vunpack.c.l.bf16 %v5862_v42  ;;  %v4513_v29 = vunpack.c.l.bf16 %v5932_v1  ;;  %v4515_v7 = vunpack.c.l.bf16 %v5934_v6 }
 0x116   : > { %8922 = vst [vmem:[#allocation18_spill] sm:$0xff] %v8314_v38  ;;  %6828 = vmatmul.mubr.bf16.gmra.mxu1 %v8923_v15  ;;  %v8331_v44 = vadd.f32 %v1653_v43, %v1183_v22  ;;  %v1188_v58 = vadd.f32 %v6541_v26, %v8087_v40  ;;  %v8925_v38 = vpack.c.bf16 %v8146_v2, %v8135_v18  ;;  %v4514_v43 = vunpack.c.l.bf16 %v8321_v60  ;;  %v5865_v40 = vld [vmem:[%s7141_s25 + $0xa4] sm:$0x1]  ;;  %v5935_v15 = vld [vmem:[%s7141_s25 + $0x9c] sm:$0xe] }
 0x117   : > { %6879 = vmatprep.mubr.bf16.mxu0 %v8926_v10  ;;  %v1071_v0 = vpop.f32.mrf.mxu1  ;;  %v1666_v52 = vpop.f32.mrf.mxu0  ;;  %v3922_v2 = vunpack.c.l.bf16 %v5863_v59  ;;  %v3923_v50 = vunpack.c.h.bf16 %v5863_v59  ;;  %v8349_v56 = vsel %vm795_vm0, %v4031_v49, %v4033_v3  ;;  %v8352_v23 = vsel %vm1390_vm1, %v4624_v24, %v4625_v39 }
 0x118   : > { %6831 = vmatprep.mubr.bf16.mxu1 %v8925_v38  ;;  %v8345_v26 = vadd.f32 %v6589_v54, %v1188_v58  ;;  %v1186_v18 = vadd.f32 %v1071_v0, %v8093_v53  ;;  %v8355_v42 = vsel %vm1390_vm1, %v4625_v39, %v4627_v25  ;;  %v4035_v6 = vrot.slane %v6127_v12, 1 }
 0x119   : > { %v6542_v21 = vpop.f32.mrf.mxu1  ;;  %v6590_v38 = vpop.f32.mrf.mxu0  ;;  %v4036_v53 = vrot.slane %v6128_v20, 1  ;;  %v3924_v22 = vunpack.c.l.bf16 %v5865_v40  ;;  %v4038_v10 = vrot.slane %v3921_v36, 1  ;;  %v4629_v0 = vrot.slane %v4513_v29, 2 }
 0x11a   : > { %8927 = vst [vmem:[#allocation19_spill] sm:$0xff] %v8345_v26  ;;  %v8357_v1 = vadd.f32 %v1666_v52, %v1186_v18  ;;  %v1189_v54 = vadd.f32 %v6542_v21, %v8098_v30  ;;  %v4630_v49 = vrot.slane %v4514_v43, 2  ;;  %v4632_v3 = vrot.slane %v4515_v7, 2  ;;  %v5937_v26 = vld [vmem:[%s7141_s25 + $0xa4] sm:$0x1] }
 0x11b   : > { %v1074_v59 = vpop.f32.mrf.mxu1  ;;  %v1669_v58 = vpop.f32.mrf.mxu0  ;;  %v4040_v25 = vrot.slane %v3922_v2, 1  ;;  %v4041_v12 = vrot.slane %v3923_v50, 1  ;;  %v8928_v30 = vpack.c.bf16 %v8198_v34, %v8190_v37  ;;  %v8929_v20 = vpack.c.bf16 %v8220_v31, %v8217_v46  ;;  %v5868_v21 = vld [vmem:[%s7141_s25 + $0xb0] sm:$0x1] }
 0x11c   : > { %v8362_v24 = vadd.f32 %v6590_v38, %v1189_v54  ;;  %v1187_v39 = vadd.f32 %v1074_v59, %v8111_v27  ;;  %v4731_v36 = vpack.c.bf16 %v8318_v8, %v8310_v51  ;;  %v4138_v29 = vpack.c.bf16 %v8349_v56, %v8341_v33  ;;  %v6238_v51 = vld [vmem:[%s7141_s25 + $0xa8] sm:$0xff]  }
 0x11d   : > { %v6545_v52 = vpop.f32.mrf.mxu1  ;;  %v6593_v18 = vpop.f32.mrf.mxu0  ;;  %6880 = vmatmul.mubr.bf16.gmra.mxu0 %v8929_v20  ;;  %v4516_v27 = vunpack.c.l.bf16 %v5935_v15  ;;  %v4517_v43 = vunpack.c.h.bf16 %v8321_v60  ;;  %v8930_v37 = vpack.c.bf16 %v8231_v19, %v8227_v61  ;;  %v8931_v34 = vpack.c.bf16 %v8257_v63, %v8254_v62  ;;  %v5938_v38 = vld [vmem:[%s7141_s25 + $0xa8] sm:$0xe] }
 0x11e   : > { %6832 = vmatmul.mubr.bf16.gmra.mxu1 %v8928_v30  ;;  %v8376_v7 = vadd.f32 %v1669_v58, %v1187_v39  ;;  %v1192_v40 = vadd.f32 %v6545_v52, %v8138_v32  ;;  %v4043_v46 = vrot.slane %v3924_v22, 1  ;;  %v4518_v31 = vunpack.c.l.bf16 %v5937_v26 }
 0x11f   : > { %6835 = vmatprep.mubr.bf16.mxu1 %v8930_v37  ;;  %6883 = vmatprep.mubr.bf16.mxu0 %v8931_v34  ;;  %v1087_v8 = vpop.f32.mrf.mxu1  ;;  %v1682_v60 = vpop.f32.mrf.mxu0  ;;  %v4732_v2 = vpack.c.bf16 %v8355_v42, %v8352_v23  ;;  %v8389_v32 = vsel %vm795_vm0, %v4035_v6, %v4036_v53  ;;  %v8392_v61 = vsel %vm795_vm0, %v4036_v53, %v4038_v10  ;;  %v8409_v6 = vld [vmem:[%s7141_s25 + $0xac] ss:$12 sps:$4 sm:$0xff]   ;;  %v4634_v22 = vrot.slane %v4516_v27, 2  ;;  %v5940_v10 = vld [vmem:[%s7141_s25 + $0xb0] sm:$0x1] }
 0x120   : > { %v8395_v19 = vsel %vm1390_vm1, %v4629_v0, %v4630_v49  ;;  %v8397_v62 = vadd.f32 %v6593_v18, %v1192_v40  ;;  %v1190_v63 = vadd.f32 %v1087_v8, %v8159_v48  ;;  %v8401_v26 = vsel %vm1390_vm1, %v4630_v49, %v4632_v3  ;;  %v5869_v40 = vld [vmem:[%s7141_s25 + $0xb4] sm:$0xff]  }
 0x121   : > { %v8404_v50 = vsel %vm795_vm0, %v4040_v25, %v4041_v12  ;;  %v6546_v54 = vpop.f32.mrf.mxu1  ;;  %v6594_v53 = vpop.f32.mrf.mxu0  ;;  %v4635_v15 = vrot.slane %v4517_v43, 2  ;;  %v6131_v59 = vunpack.c.l.bf16 %v6238_v51  ;;  %v6132_v58 = vunpack.c.h.bf16 %v6238_v51 }
 0x122   : > { %v8412_v0 = vadd.f32 %v1682_v60, %v1190_v63  ;;  %v1193_v48 = vadd.f32 %v6546_v54, %v8174_v55  ;;  %v8416_v49 = vsel %vm795_vm0, %v4041_v12, %v4043_v46  ;;  %v4637_v3 = vrot.slane %v4518_v31, 2 }
 0x123   : > { %v1090_v39 = vpop.f32.mrf.mxu1  ;;  %v1685_v25 = vpop.f32.mrf.mxu0  ;;  %v4139_v52 = vpack.c.bf16 %v8392_v61, %v8389_v32  ;;  %v3927_v18 = vunpack.c.l.bf16 %v5868_v21  ;;  %v4519_v30 = vunpack.c.l.bf16 %v5938_v38  ;;  %v4520_v20 = vunpack.c.l.bf16 %v8409_v6 }
 0x124   : > { %v8421_v27 = vadd.f32 %v6594_v53, %v1193_v48  ;;  %v1191_v43 = vadd.f32 %v1090_v39, %v8193_v9  ;;  %v4733_v55 = vpack.c.bf16 %v8401_v26, %v8395_v19  ;;  %v4521_v12 = vunpack.c.l.bf16 %v5940_v10  ;;  %v5943_v10 = vld [vmem:[%s7141_s25 + $0xbc] sm:$0x1]  ;;  %v6239_v48 = vld [vmem:[%s7141_s25 + $0xc0] sm:$0xff]  }
 0x125   : > { %v6549_v37 = vpop.f32.mrf.mxu1  ;;  %v6597_v34 = vpop.f32.mrf.mxu0  ;;  %v8932_v46 = vpack.c.bf16 %v8269_v57, %v8266_v28  ;;  %v8933_v31 = vpack.c.bf16 %v8283_v45, %v8272_v13  ;;  %v4140_v9 = vpack.c.bf16 %v8416_v49, %v8404_v50  ;;  %v8436_v51 = vsel %vm1390_vm1, %v4634_v22, %v4635_v15  ;;  %v5871_v13 = vld [vmem:[%s7141_s25 + $0xbc] sm:$0x1]  ;;  %v5941_v45 = vld [vmem:[%s7141_s25 + $0xb4] sm:$0xe] }
 0x126   : > { %v4045_v8 = vrot.slane %v6131_v59, 1  ;;  %v4046_v60 = vrot.slane %v6132_v58, 1  ;;  %v8438_v63 = vadd.f32 %v1685_v25, %v1191_v43  ;;  %v1196_v21 = vadd.f32 %v6549_v37, %v8203_v16 }
 0x127   : > { %6836 = vmatmul.mubr.bf16.gmra.mxu1 %v8932_v46  ;;  %6884 = vmatmul.mubr.bf16.gmra.mxu0 %v8933_v31  ;;  %v8934_v28 = vpack.c.bf16 %v8291_v4, %v8288_v35  ;;  %v8445_v57 = vsel %vm1390_vm1, %v4635_v15, %v4637_v3  ;;  %v1103_v38 = vpop.f32.mrf.mxu1  ;;  %v1698_v54 = vpop.f32.mrf.mxu0  ;;  %v4048_v53 = vrot.slane %v3927_v18, 1  ;;  %v4639_v22 = vrot.slane %v4519_v30, 2 }
 0x128   : > { %6887 = vmatprep.mubr.bf16.mxu0 %v4731_v36  ;;  %v4640_v59 = vrot.slane %v4520_v20, 2  ;;  %v3928_v58 = vunpack.c.l.bf16 %v5869_v40  ;;  %v8451_v16 = vadd.f32 %v6597_v34, %v1196_v21  ;;  %v1194_v35 = vadd.f32 %v1103_v38, %v8222_v5  ;;  %v8476_v38 = vld [vmem:[%s7141_s25 + $0xc4] ss:$12 sps:$4 sm:$0xff]  }
 0x129   : > { %6839 = vmatprep.mubr.bf16.mxu1 %v8934_v28  ;;  %v4642_v4 = vrot.slane %v4521_v12, 2  ;;  %v3929_v36 = vunpack.c.h.bf16 %v5869_v40  ;;  %v6550_v39 = vpop.f32.mrf.mxu1  ;;  %v6598_v15 = vpop.f32.mrf.mxu0  ;;  %v8455_v3 = vsel %vm795_vm0, %v4045_v8, %v4046_v60  ;;  %v3930_v25 = vunpack.c.l.bf16 %v5871_v13  ;;  %v5874_v12 = vld [vmem:[%s7141_s25 + $0xc8] sm:$0x1] }
 0x12a   : > { %v4522_v18 = vunpack.c.l.bf16 %v5941_v45  ;;  %v4523_v30 = vunpack.c.h.bf16 %v8409_v6  ;;  %v8458_v20 = vadd.f32 %v1698_v54, %v1194_v35  ;;  %v1197_v43 = vadd.f32 %v6550_v39, %v8236_v17  ;;  %v5944_v6 = vld [vmem:[%s7141_s25 + $0xc0] sm:$0xe]  ;;  %v5946_v54 = vld [vmem:[%s7141_s25 + $0xc8] sm:$0x1] }
 0x12b   : > { %v4524_v37 = vunpack.c.l.bf16 %v5943_v10  ;;  %v6135_v5 = vunpack.c.l.bf16 %v6239_v48  ;;  %v1106_v40 = vpop.f32.mrf.mxu1  ;;  %v1701_v34 = vpop.f32.mrf.mxu0  ;;  %v8463_v46 = vsel %vm795_vm0, %v4046_v60, %v4048_v53  ;;  %v8466_v31 = vsel %vm1390_vm1, %v4639_v22, %v4640_v59 }
 0x12c   : > { %v4050_v8 = vrot.slane %v3928_v58, 1  ;;  %v6136_v21 = vunpack.c.h.bf16 %v6239_v48  ;;  %v8469_v28 = vadd.f32 %v6598_v15, %v1197_v43  ;;  %v1195_v13 = vadd.f32 %v1106_v40, %v8245_v11  ;;  %v8935_v48 = vld [vmem:[#allocation3_spill] sm:$0xff]  ;;  %v8936_v15 = vld [vmem:[#allocation4_spill] sm:$0xff] }
 0x12d   : > { %v8473_v17 = vsel %vm1390_vm1, %v4640_v59, %v4642_v4  ;;  %v4051_v45 = vrot.slane %v3929_v36, 1  ;;  %v6553_v10 = vpop.f32.mrf.mxu1  ;;  %v6601_v60 = vpop.f32.mrf.mxu0  ;;  %v4053_v53 = vrot.slane %v3930_v25, 1  ;;  %v4644_v22 = vrot.slane %v4522_v18, 2  ;;  %v5875_v43 = vld [vmem:[%s7141_s25 + $0xcc] sm:$0xff]  }
 0x12e   : > { %v4645_v11 = vrot.slane %v4523_v30, 2  ;;  %v3933_v58 = vunpack.c.l.bf16 %v5874_v12  ;;  %v8485_v59 = vadd.f32 %v1701_v34, %v1195_v13  ;;  %v1200_v35 = vadd.f32 %v6553_v10, %v8935_v48  ;;  %v5947_v40 = vld [vmem:[%s7141_s25 + $0xcc] sm:$0xe]  ;;  %v5949_v13 = vld [vmem:[%s7141_s25 + $0xd4] sm:$0x1] }
 0x12f   : > { %6840 = vmatmul.mubr.bf16.gmra.mxu1 %v4138_v29  ;;  %6888 = vmatmul.mubr.bf16.gmra.mxu0 %v4732_v2  ;;  %v4647_v33 = vrot.slane %v4524_v37, 2  ;;  %v4055_v56 = vrot.slane %v6135_v5, 1  ;;  %v1119_v23 = vpop.f32.mrf.mxu1  ;;  %v1714_v42 = vpop.f32.mrf.mxu0  ;;  %v4056_v29 = vrot.slane %v6136_v21, 1  ;;  %v4525_v2 = vunpack.c.l.bf16 %v5944_v6  ;;  %v8937_v5 = vld [vmem:[#allocation5_spill] sm:$0xff] }
 0x130   : > { %6843 = vmatprep.mubr.bf16.mxu1 %v4139_v52  ;;  %6891 = vmatprep.mubr.bf16.mxu0 %v4733_v55  ;;  %v4526_v4 = vunpack.c.l.bf16 %v8476_v38  ;;  %v4527_v36 = vunpack.c.l.bf16 %v5946_v54  ;;  %v8495_v39 = vadd.f32 %v6601_v60, %v1200_v35  ;;  %v1198_v32 = vadd.f32 %v1119_v23, %v8936_v15 }
 0x131   : > { %v4734_v61 = vpack.c.bf16 %v8445_v57, %v8436_v51  ;;  %v4141_v19 = vpack.c.bf16 %v8463_v46, %v8455_v3  ;;  %v6554_v26 = vpop.f32.mrf.mxu1  ;;  %v6602_v52 = vpop.f32.mrf.mxu0  ;;  %v4735_v55 = vpack.c.bf16 %v8473_v17, %v8466_v31  ;;  %v4052_v25 = vsel %vm795_vm0, %v4050_v8, %v4051_v45  ;;  %v5877_v3 = vld [vmem:[%s7141_s25 + $0xd4] sm:$0x1]  ;;  %s6008_s25 = sshll.u32 %s9013_s12, 7 }
 0x132   : > { %v4054_v18 = vsel %vm795_vm0, %v4051_v45, %v4053_v53  ;;  %v4058_v30 = vrot.slane %v3933_v58, 1  ;;  %v8507_v37 = vadd.f32 %v1714_v42, %v1198_v32  ;;  %v1201_v12 = vadd.f32 %v6554_v26, %v8937_v5  ;;  %v8938_v45 = vld [vmem:[#allocation6_spill] sm:$0xff]  ;;  %s8801_s7 = scalar_lea.vmem %s8898_s2, %s6008_s25 }
 0x133   : > { %v4646_v51 = vsel %vm1390_vm1, %v4644_v22, %v4645_v11  ;;  %v4648_v57 = vsel %vm1390_vm1, %v4645_v11, %v4647_v33  ;;  %v1122_v34 = vpop.f32.mrf.mxu1  ;;  %v1717_v46 = vpop.f32.mrf.mxu0  ;;  %v4057_v31 = vsel %vm795_vm0, %v4055_v56, %v4056_v29  ;;  %v4649_v8 = vrot.slane %v4525_v2, 2  ;;  %v8939_v56 = vld [vmem:[#allocation7_spill] sm:$0xff] }
 0x134   : > { %v4650_v21 = vrot.slane %v4526_v4, 2  ;;  %v4652_v6 = vrot.slane %v4527_v36, 2  ;;  %v8516_v17 = vadd.f32 %v6602_v52, %v1201_v12  ;;  %v1199_v54 = vadd.f32 %v1122_v34, %v8938_v45  ;;  %v8942_v34 = vld [vmem:[#allocation10_spill] sm:$0xff] }
 0x135   : > { %v3934_v10 = vunpack.c.l.bf16 %v5875_v43  ;;  %v3935_v60 = vunpack.c.h.bf16 %v5875_v43  ;;  %v6557_v53 = vpop.f32.mrf.mxu1  ;;  %v6605_v22 = vpop.f32.mrf.mxu0  ;;  %v4059_v11 = vsel %vm795_vm0, %v4056_v29, %v4058_v30  ;;  %v3936_v58 = vunpack.c.l.bf16 %v5877_v3  ;;  %v8940_v29 = vld [vmem:[#allocation8_spill] sm:$0xff] }
 0x136   : > { %v4528_v48 = vunpack.c.l.bf16 %v5947_v40  ;;  %v4529_v35 = vunpack.c.h.bf16 %v8476_v38  ;;  %v8524_v33 = vadd.f32 %v1717_v46, %v1199_v54  ;;  %v1204_v23 = vadd.f32 %v6557_v53, %v8939_v56  ;;  %v8943_v54 = vld [vmem:[#allocation11_spill] sm:$0xff] }
 0x137   : > { %6844 = vmatmul.mubr.bf16.gmra.mxu1 %v4140_v9  ;;  %6892 = vmatmul.mubr.bf16.gmra.mxu0 %v4734_v61  ;;  %v4530_v42 = vunpack.c.l.bf16 %v5949_v13  ;;  %v1135_v2 = vpop.f32.mrf.mxu1  ;;  %v1730_v4 = vpop.f32.mrf.mxu0  ;;  %v4142_v36 = vpack.c.bf16 %v4054_v18, %v4052_v25  ;;  %v4736_v15 = vpack.c.bf16 %v4648_v57, %v4646_v51  ;;  %v4651_v50 = vsel %vm1390_vm1, %v4649_v8, %v4650_v21  ;;  %v8941_v25 = vld [vmem:[#allocation9_spill] sm:$0xff] }
 0x138   : > { %6847 = vmatprep.mubr.bf16.mxu1 %v4141_v19  ;;  %6895 = vmatprep.mubr.bf16.mxu0 %v4735_v55  ;;  %v4653_v49 = vsel %vm1390_vm1, %v4650_v21, %v4652_v6  ;;  %v8529_v9 = vadd.f32 %v6605_v22, %v1204_v23  ;;  %v1202_v32 = vadd.f32 %v1135_v2, %v8940_v29  ;;  %v4060_v61 = vrot.slane %v3934_v10, 1  ;;  %v8946_v29 = vld [vmem:[#allocation14_spill] sm:$0xff] }
 0x139   : > { %v4143_v38 = vpack.c.bf16 %v4059_v11, %v4057_v31  ;;  %v6558_v26 = vpop.f32.mrf.mxu1  ;;  %v6606_v52 = vpop.f32.mrf.mxu0  ;;  %v4061_v30 = vrot.slane %v3935_v60, 1  ;;  %v4063_v19 = vrot.slane %v3936_v58, 1  ;;  %v4654_v55 = vrot.slane %v4528_v48, 2  ;;  %v8944_v58 = vld [vmem:[#allocation12_spill] sm:$0xff] }
 0x13a   : > { %v4655_v43 = vrot.slane %v4529_v35, 2  ;;  %v8532_v5 = vadd.f32 %v1730_v4, %v1202_v32  ;;  %v1205_v18 = vadd.f32 %v6558_v26, %v8941_v25  ;;  %v4737_v12 = vpack.c.bf16 %v4653_v49, %v4651_v50  ;;  %v8945_v4 = vld [vmem:[#allocation13_spill] sm:$0xff]  ;;  %v8948_v25 = vld [vmem:[#allocation16_spill] sm:$0xff] }
 0x13b   : > { %v4657_v51 = vrot.slane %v4530_v42, 2  ;;  %v1138_v57 = vpop.f32.mrf.mxu1  ;;  %v1733_v3 = vpop.f32.mrf.mxu0  ;;  %v4062_v21 = vsel %vm795_vm0, %v4060_v61, %v4061_v30  ;;  %v4064_v6 = vsel %vm795_vm0, %v4061_v30, %v4063_v19 }
 0x13c   : > { %v8535_v40 = vadd.f32 %v6606_v52, %v1205_v18  ;;  %v1203_v46 = vadd.f32 %v1138_v57, %v8942_v34  ;;  %v4656_v13 = vsel %vm1390_vm1, %v4654_v55, %v4655_v43  ;;  %v4144_v23 = vpack.c.bf16 %v4064_v6, %v4062_v21  ;;  %v8947_v52 = vld [vmem:[#allocation15_spill] sm:$0xff] }
 0x13d   : > { %v6561_v31 = vpop.f32.mrf.mxu1  ;;  %v6609_v8 = vpop.f32.mrf.mxu0  ;;  %v4658_v60 = vsel %vm1390_vm1, %v4655_v43, %v4657_v51 }
 0x13e   : > { %v8541_v45 = vadd.f32 %v1733_v3, %v1203_v46  ;;  %v1208_v10 = vadd.f32 %v6561_v31, %v8943_v54  ;;  %v4738_v42 = vpack.c.bf16 %v4658_v60, %v4656_v13  ;;  %v8949_v3 = vld [vmem:[#allocation17_spill] sm:$0xff] }
 0x13f   : > { %6848 = vmatmul.mubr.bf16.gmra.mxu1 %v4142_v36  ;;  %6896 = vmatmul.mubr.bf16.gmra.mxu0 %v4736_v15  ;;  %v1151_v53 = vpop.f32.mrf.mxu1  ;;  %v1746_v22 = vpop.f32.mrf.mxu0 }
 0x140   : > { %6851 = vmatprep.mubr.bf16.mxu1 %v4143_v38  ;;  %6899 = vmatprep.mubr.bf16.mxu0 %v4737_v12  ;;  %v8545_v11 = vadd.f32 %v6609_v8, %v1208_v10  ;;  %v1206_v48 = vadd.f32 %v1151_v53, %v8944_v58 }
 0x141   : > { %v6562_v35 = vpop.f32.mrf.mxu1  ;;  %v6610_v56 = vpop.f32.mrf.mxu0 }
 0x142   : > { %v8548_v2 = vadd.f32 %v1746_v22, %v1206_v48  ;;  %v1209_v36 = vadd.f32 %v6562_v35, %v8945_v4 }
 0x143   : > { %v1154_v15 = vpop.f32.mrf.mxu1  ;;  %v1749_v50 = vpop.f32.mrf.mxu0 }
 0x144   : > { %v8551_v49 = vadd.f32 %v6610_v56, %v1209_v36  ;;  %v1207_v32 = vadd.f32 %v1154_v15, %v8946_v29 }
 0x145   : > { %v6565_v38 = vpop.f32.mrf.mxu1  ;;  %v6613_v61 = vpop.f32.mrf.mxu0 }
 0x146   : > { %v8554_v26 = vadd.f32 %v1749_v50, %v1207_v32  ;;  %v1212_v30 = vadd.f32 %v6565_v38, %v8947_v52  ;;  %v8951_v32 = vld [vmem:[#allocation19_spill] sm:$0xff] }
 0x147   : > { %6852 = vmatmul.mubr.bf16.gmra.mxu1 %v4144_v23  ;;  %6900 = vmatmul.mubr.bf16.gmra.mxu0 %v4738_v42  ;;  %v1167_v19 = vpop.f32.mrf.mxu1  ;;  %v1762_v55 = vpop.f32.mrf.mxu0  ;;  %v8950_v23 = vld [vmem:[#allocation18_spill] sm:$0xff] }
 0x148   : > { %v8557_v43 = vadd.f32 %v6613_v61, %v1212_v30  ;;  %v1210_v18 = vadd.f32 %v1167_v19, %v8948_v25 }
 0x149   : > { %v6566_v12 = vpop.f32.mrf.mxu1  ;;  %v6614_v51 = vpop.f32.mrf.mxu0 }
 0x14a   : > { %v8560_v57 = vadd.f32 %v1762_v55, %v1210_v18  ;;  %v1213_v34 = vadd.f32 %v6566_v12, %v8949_v3 }
 0x14b   : > { %v1170_v46 = vpop.f32.mrf.mxu1  ;;  %v1765_v31 = vpop.f32.mrf.mxu0 }
 0x14c   : > { %v8563_v8 = vadd.f32 %v6614_v51, %v1213_v34  ;;  %v1211_v21 = vadd.f32 %v1170_v46, %v8247_v47 }
 0x14d   : > { %v6633_v6 = vpop.f32.mrf.mxu1  ;;  %v6681_v13 = vpop.f32.mrf.mxu0 }
 0x14e   : > { %v8566_v54 = vadd.f32 %v1765_v31, %v1211_v21  ;;  %v2185_v10 = vadd.f32 %v6633_v6, %v8293_v41 }
 0x14f   : > { %v2056_v60 = vpop.f32.mrf.mxu1  ;;  %v2650_v53 = vpop.f32.mrf.mxu0 }
 0x150   : > { %v8569_v22 = vadd.f32 %v6681_v13, %v2185_v10  ;;  %v2183_v58 = vadd.f32 %v2056_v60, %v8299_v14 }
 0x151   : > { %v6634_v48 = vpop.f32.mrf.mxu1  ;;  %v6682_v35 = vpop.f32.mrf.mxu0 }
 0x152   : > { %v8572_v56 = vadd.f32 %v2650_v53, %v2183_v58  ;;  %v2186_v42 = vadd.f32 %v6634_v48, %v8950_v23 }
 0x153   : > { %v2059_v4 = vpop.f32.mrf.mxu1  ;;  %v2653_v47 = vpop.f32.mrf.mxu0 }
 0x154   : > { %v8575_v36 = vadd.f32 %v6682_v35, %v2186_v42  ;;  %v2184_v15 = vadd.f32 %v2059_v4, %v8331_v44 }
 0x155   : > { %v6637_v50 = vpop.f32.mrf.mxu1  ;;  %v6685_v41 = vpop.f32.mrf.mxu0 }
 0x156   : > { %v8578_v29 = vadd.f32 %v2653_v47, %v2184_v15  ;;  %v2189_v38 = vadd.f32 %v6637_v50, %v8951_v32 }
 0x157   : > { %v2072_v61 = vpop.f32.mrf.mxu1  ;;  %v2666_v14 = vpop.f32.mrf.mxu0 }
 0x158   : > { %v8581_v52 = vadd.f32 %v6685_v41, %v2189_v38  ;;  %v2187_v30 = vadd.f32 %v2072_v61, %v8357_v1 }
 0x159   : > { %v6638_v19 = vpop.f32.mrf.mxu1  ;;  %v6686_v55 = vpop.f32.mrf.mxu0 }
 0x15a   : > { %v8584_v25 = vadd.f32 %v2666_v14, %v2187_v30  ;;  %v2190_v18 = vadd.f32 %v6638_v19, %v8362_v24 }
 0x15b   : > { %v2075_v12 = vpop.f32.mrf.mxu1  ;;  %v2669_v44 = vpop.f32.mrf.mxu0 }
 0x15c   : > { %v8587_v51 = vadd.f32 %v6686_v55, %v2190_v18  ;;  %v2188_v3 = vadd.f32 %v2075_v12, %v8376_v7 }
 0x15d   : > { %v6641_v34 = vpop.f32.mrf.mxu1  ;;  %v6689_v46 = vpop.f32.mrf.mxu0 }
 0x15e   : > { %v8590_v31 = vadd.f32 %v2669_v44, %v2188_v3  ;;  %v2193_v21 = vadd.f32 %v6641_v34, %v8397_v62 }
 0x15f   : > { %v2088_v6 = vpop.f32.mrf.mxu1  ;;  %v2682_v1 = vpop.f32.mrf.mxu0 }
 0x160   : > { %v8593_v13 = vadd.f32 %v6689_v46, %v2193_v21  ;;  %v2191_v10 = vadd.f32 %v2088_v6, %v8412_v0 }
 0x161   : > { %v6642_v60 = vpop.f32.mrf.mxu1  ;;  %v6690_v24 = vpop.f32.mrf.mxu0 }
 0x162   : > { %v8596_v53 = vadd.f32 %v2682_v1, %v2191_v10  ;;  %v2194_v58 = vadd.f32 %v6642_v60, %v8421_v27 }
 0x163   : > { %v2091_v48 = vpop.f32.mrf.mxu1  ;;  %v2685_v7 = vpop.f32.mrf.mxu0 }
 0x164   : > { %v8599_v35 = vadd.f32 %v6690_v24, %v2194_v58  ;;  %v2192_v23 = vadd.f32 %v2091_v48, %v8438_v63 }
 0x165   : > { %v6645_v42 = vpop.f32.mrf.mxu1  ;;  %v6693_v62 = vpop.f32.mrf.mxu0 }
 0x166   : > { %v8602_v4 = vadd.f32 %v2685_v7, %v2192_v23  ;;  %v2197_v47 = vadd.f32 %v6645_v42, %v8451_v16 }
 0x167   : > { %v2104_v15 = vpop.f32.mrf.mxu1  ;;  %v2698_v0 = vpop.f32.mrf.mxu0 }
 0x168   : > { %v8605_v50 = vadd.f32 %v6693_v62, %v2197_v47  ;;  %v2195_v41 = vadd.f32 %v2104_v15, %v8458_v20 }
 0x169   : > { %v6646_v32 = vpop.f32.mrf.mxu1  ;;  %v6694_v27 = vpop.f32.mrf.mxu0 }
 0x16a   : > { %v8608_v38 = vadd.f32 %v2698_v0, %v2195_v41  ;;  %v2198_v61 = vadd.f32 %v6646_v32, %v8469_v28 }
 0x16b   : > { %v2107_v14 = vpop.f32.mrf.mxu1  ;;  %v2701_v63 = vpop.f32.mrf.mxu0 }
 0x16c   : > { %v8611_v30 = vadd.f32 %v6694_v27, %v2198_v61  ;;  %v2196_v19 = vadd.f32 %v2107_v14, %v8485_v59 }
 0x16d   : > { %v6649_v55 = vpop.f32.mrf.mxu1  ;;  %v6697_v16 = vpop.f32.mrf.mxu0 }
 0x16e   : > { %v8614_v18 = vadd.f32 %v2701_v63, %v2196_v19  ;;  %v2201_v12 = vadd.f32 %v6649_v55, %v8495_v39 }
 0x16f   : > { %v2120_v44 = vpop.f32.mrf.mxu1  ;;  %v2714_v20 = vpop.f32.mrf.mxu0 }
 0x170   : > { %v8617_v3 = vadd.f32 %v6697_v16, %v2201_v12  ;;  %v2199_v34 = vadd.f32 %v2120_v44, %v8507_v37 }
 0x171   : > { %v6650_v46 = vpop.f32.mrf.mxu1  ;;  %v6698_v28 = vpop.f32.mrf.mxu0 }
 0x172   : > { %v8620_v21 = vadd.f32 %v2714_v20, %v2199_v34  ;;  %v2202_v6 = vadd.f32 %v6650_v46, %v8516_v17 }
 0x173   : > { %v2123_v1 = vpop.f32.mrf.mxu1  ;;  %v2717_v59 = vpop.f32.mrf.mxu0 }
 0x174   : > { %v8623_v10 = vadd.f32 %v6698_v28, %v2202_v6  ;;  %v2200_v60 = vadd.f32 %v2123_v1, %v8524_v33 }
 0x175   : > { %v6653_v24 = vpop.f32.mrf.mxu1  ;;  %v6701_v39 = vpop.f32.mrf.mxu0 }
 0x176   : > { %v8626_v58 = vadd.f32 %v2717_v59, %v2200_v60  ;;  %v2205_v48 = vadd.f32 %v6653_v24, %v8529_v9 }
 0x177   : > { %v2136_v7 = vpop.f32.mrf.mxu1  ;;  %v2730_v37 = vpop.f32.mrf.mxu0 }
 0x178   : > { %v8629_v23 = vadd.f32 %v6701_v39, %v2205_v48  ;;  %v2203_v42 = vadd.f32 %v2136_v7, %v8532_v5 }
 0x179   : > { %v6654_v62 = vpop.f32.mrf.mxu1  ;;  %v6702_v17 = vpop.f32.mrf.mxu0 }
 0x17a   : > { %v8632_v47 = vadd.f32 %v2730_v37, %v2203_v42  ;;  %v2206_v15 = vadd.f32 %v6654_v62, %v8535_v40 }
 0x17b   : > { %v2139_v0 = vpop.f32.mrf.mxu1  ;;  %v2733_v33 = vpop.f32.mrf.mxu0 }
 0x17c   : > { %8952 = vst [vmem:[#allocation3_spill] sm:$0xff] %v8632_v47  ;;  %v8635_v41 = vadd.f32 %v6702_v17, %v2206_v15  ;;  %v2204_v32 = vadd.f32 %v2139_v0, %v8541_v45 }
 0x17d   : > { %v6657_v27 = vpop.f32.mrf.mxu1  ;;  %v6705_v9 = vpop.f32.mrf.mxu0 }
 0x17e   : > { %8953 = vst [vmem:[#allocation4_spill] sm:$0xff] %v8635_v41  ;;  %v8638_v61 = vadd.f32 %v2733_v33, %v2204_v32  ;;  %v2209_v14 = vadd.f32 %v6657_v27, %v8545_v11 }
 0x17f   : > { %v2152_v63 = vpop.f32.mrf.mxu1  ;;  %v2746_v5 = vpop.f32.mrf.mxu0 }
 0x180   : > { %8954 = vst [vmem:[#allocation5_spill] sm:$0xff] %v8638_v61  ;;  %v8641_v19 = vadd.f32 %v6705_v9, %v2209_v14  ;;  %v2207_v55 = vadd.f32 %v2152_v63, %v8548_v2 }
 0x181   : > { %v6658_v16 = vpop.f32.mrf.mxu1  ;;  %v6706_v40 = vpop.f32.mrf.mxu0 }
 0x182   : > { %v8644_v12 = vadd.f32 %v2746_v5, %v2207_v55  ;;  %v2210_v44 = vadd.f32 %v6658_v16, %v8551_v49 }
 0x183   : > { %v2155_v20 = vpop.f32.mrf.mxu1  ;;  %v2749_v45 = vpop.f32.mrf.mxu0 }
 0x184   : > { %8955 = vst [vmem:[#allocation6_spill] sm:$0xff] %v8644_v12  ;;  %v8647_v34 = vadd.f32 %v6706_v40, %v2210_v44  ;;  %v2208_v46 = vadd.f32 %v2155_v20, %v8554_v26 }
 0x185   : > { %v6661_v28 = vpop.f32.mrf.mxu1  ;;  %v6709_v11 = vpop.f32.mrf.mxu0 }
 0x186   : > { %8956 = vst [vmem:[#allocation7_spill] sm:$0xff] %v8647_v34  ;;  %v8650_v6 = vadd.f32 %v2749_v45, %v2208_v46  ;;  %v2213_v1 = vadd.f32 %v6661_v28, %v8557_v43 }
 0x187   : > { %v2168_v59 = vpop.f32.mrf.mxu1  ;;  %v2762_v2 = vpop.f32.mrf.mxu0 }
 0x188   : > { %8957 = vst [vmem:[#allocation8_spill] sm:$0xff] %v8650_v6  ;;  %v8653_v60 = vadd.f32 %v6709_v11, %v2213_v1  ;;  %v2211_v24 = vadd.f32 %v2168_v59, %v8560_v57 }
 0x189   : > { %v6662_v39 = vpop.f32.mrf.mxu1  ;;  %v6710_v49 = vpop.f32.mrf.mxu0 }
 0x18a   : > { %v8656_v48 = vadd.f32 %v2762_v2, %v2211_v24  ;;  %v2214_v7 = vadd.f32 %v6662_v39, %v8563_v8 }
 0x18b   : > { %v2171_v37 = vpop.f32.mrf.mxu1  ;;  %v2765_v26 = vpop.f32.mrf.mxu0 }
 0x18c   : > { %8958 = vst [vmem:[#allocation9_spill] sm:$0xff] %v8656_v48  ;;  %v8659_v42 = vadd.f32 %v6710_v49, %v2214_v7  ;;  %v2212_v62 = vadd.f32 %v2171_v37, %v8566_v54 }
 0x18d   : > { %v6729_v17 = vpop.f32.mrf.mxu1  ;;  %v6777_v43 = vpop.f32.mrf.mxu0 }
 0x18e   : > { %8959 = vst [vmem:[#allocation10_spill] sm:$0xff] %v8659_v42  ;;  %v8662_v15 = vadd.f32 %v2765_v26, %v2212_v62  ;;  %v3373_v0 = vadd.f32 %v6729_v17, %v8569_v22 }
 0x18f   : > { %v3244_v33 = vpop.f32.mrf.mxu1  ;;  %v3650_v57 = vpop.f32.mrf.mxu0 }
 0x190   : > { %8960 = vst [vmem:[#allocation11_spill] sm:$0xff] %v8662_v15  ;;  %v8665_v32 = vadd.f32 %v6777_v43, %v3373_v0  ;;  %v3371_v27 = vadd.f32 %v3244_v33, %v8572_v56 }
 0x191   : > { %v8668_v9 = vpop.f32.mrf.mxu1  ;;  %v8670_v8 = vpop.f32.mrf.mxu0 }
 0x192   : > { %v8672_v14 = vadd.f32 %v3650_v57, %v3371_v27 }
 0x193   : > { %v8674_v63 = vpop.f32.mrf.mxu1  ;;  %v8676_v54 = vpop.f32.mrf.mxu0 }
 0x195   : > { %v6733_v5 = vpop.f32.mrf.mxu1  ;;  %v6781_v55 = vpop.f32.mrf.mxu0 }
 0x196   : > { %v3377_v22 = vadd.f32 %v6733_v5, %v8581_v52 }
 0x197   : > { %v8679_v16 = vpop.f32.mrf.mxu1  ;;  %v8681_v40 = vpop.f32.mrf.mxu0 }
 0x198   : > { %v8683_v44 = vadd.f32 %v6781_v55, %v3377_v22 }
 0x199   : > { %v8685_v56 = vpop.f32.mrf.mxu1  ;;  %v8687_v20 = vpop.f32.mrf.mxu0 }
 0x19b   : > { %v8689_v45 = vpop.f32.mrf.mxu1  ;;  %v8691_v46 = vpop.f32.mrf.mxu0 }
 0x19d   : > { %v6737_v28 = vpop.f32.mrf.mxu1  ;;  %v6785_v11 = vpop.f32.mrf.mxu0 }
 0x19e   : > { %v3381_v1 = vadd.f32 %v6737_v28, %v8593_v13 }
 0x19f   : > { %v8694_v59 = vpop.f32.mrf.mxu1  ;;  %v8696_v52 = vpop.f32.mrf.mxu0 }
 0x1a0   : > { %v8698_v2 = vadd.f32 %v6785_v11, %v3381_v1 }
 0x1a1   : > { %v8700_v24 = vpop.f32.mrf.mxu1  ;;  %v8702_v39 = vpop.f32.mrf.mxu0 }
 0x1a3   : > { %v8704_v49 = vpop.f32.mrf.mxu1  ;;  %v8706_v7 = vpop.f32.mrf.mxu0 }
 0x1a5   : > { %v6741_v37 = vpop.f32.mrf.mxu1  ;;  %v6789_v26 = vpop.f32.mrf.mxu0 }
 0x1a6   : > { %v3385_v62 = vadd.f32 %v6741_v37, %v8605_v50 }
 0x1a7   : > { %v8709_v17 = vpop.f32.mrf.mxu1  ;;  %v8711_v13 = vpop.f32.mrf.mxu0 }
 0x1a8   : > { %v8713_v43 = vadd.f32 %v6789_v26, %v3385_v62 }
 0x1a9   : > { %v8715_v0 = vpop.f32.mrf.mxu1  ;;  %v8717_v33 = vpop.f32.mrf.mxu0 }
 0x1ab   : > { %v8719_v57 = vpop.f32.mrf.mxu1  ;;  %v8721_v27 = vpop.f32.mrf.mxu0 }
 0x1ad   : > { %v6745_v5 = vpop.f32.mrf.mxu1  ;;  %v6793_v55 = vpop.f32.mrf.mxu0 }
 0x1ae   : > { %v3389_v22 = vadd.f32 %v6745_v5, %v8617_v3 }
 0x1af   : > { %v8724_v28 = vpop.f32.mrf.mxu1  ;;  %v8726_v50 = vpop.f32.mrf.mxu0 }
 0x1b0   : > { %v8728_v11 = vadd.f32 %v6793_v55, %v3389_v22 }
 0x1b1   : > { %v8730_v1 = vpop.f32.mrf.mxu1  ;;  %v8732_v37 = vpop.f32.mrf.mxu0 }
 0x1b3   : > { %v8734_v26 = vpop.f32.mrf.mxu1  ;;  %v8736_v62 = vpop.f32.mrf.mxu0 }
 0x1b4   : > { %8961 = vst [vmem:[#allocation12_spill] sm:$0xff] %v8736_v62 }
 0x1b5   : > { %v6749_v15 = vpop.f32.mrf.mxu1  ;;  %v6797_v42 = vpop.f32.mrf.mxu0 }
 0x1b6   : > { %v3393_v48 = vadd.f32 %v6749_v15, %v8629_v23 }
 0x1b7   : > { %v8739_v6 = vpop.f32.mrf.mxu1  ;;  %v8741_v3 = vpop.f32.mrf.mxu0 }
 0x1b8   : > { %8962 = vst [vmem:[#allocation13_spill] sm:$0xff] %v8741_v3  ;;  %v8743_v5 = vadd.f32 %v6797_v42, %v3393_v48 }
 0x1b9   : > { %v8745_v55 = vpop.f32.mrf.mxu1  ;;  %v8747_v22 = vpop.f32.mrf.mxu0 }
 0x1ba   : > { %8963 = vst [vmem:[#allocation14_spill] sm:$0xff] %v8743_v5  ;;  %8964 = vst [vmem:[#allocation15_spill] sm:$0xff] %v8745_v55 }
 0x1bb   : > { %8965 = vst [vmem:[#allocation16_spill] sm:$0xff] %v8747_v22  ;;  %v8749_v34 = vpop.f32.mrf.mxu1  ;;  %v8751_v12 = vpop.f32.mrf.mxu0 }
 0x1bc   : > { %8966 = vst [vmem:[#allocation17_spill] sm:$0xff] %v8749_v34  ;;  %8967 = vst [vmem:[#allocation18_spill] sm:$0xff] %v8751_v12 }
 0x1bd   : > { %v6753_v61 = vpop.f32.mrf.mxu1  ;;  %v6801_v41 = vpop.f32.mrf.mxu0 }
 0x1be   : > { %v3397_v47 = vadd.f32 %v6753_v61, %v8641_v19 }
 0x1bf   : > { %v8754_v62 = vpop.f32.mrf.mxu1  ;;  %v8756_v23 = vpop.f32.mrf.mxu0 }
 0x1c0   : > { %8968 = vst [vmem:[#allocation19_spill] sm:$0xff] %v8756_v23  ;;  %v8758_v15 = vadd.f32 %v6801_v41, %v3397_v47 }
 0x1c1   : > { %v8760_v48 = vpop.f32.mrf.mxu1  ;;  %v8762_v42 = vpop.f32.mrf.mxu0 }
 0x1c2   : > { %8969 = vst [vmem:[#allocation20_spill] sm:$0xff] %v8758_v15  ;;  %8970 = vst [vmem:[#allocation21_spill] sm:$0xff] %v8762_v42 }
 0x1c3   : > { %v8764_v5 = vpop.f32.mrf.mxu1  ;;  %v8766_v22 = vpop.f32.mrf.mxu0 }
 0x1c4   : > { %8971 = vst [vmem:[#allocation22_spill] sm:$0xff] %v8764_v5  ;;  %8972 = vst [vmem:[#allocation23_spill] sm:$0xff] %v8766_v22  ;;  %v3374_v22 = vadd.f32 %v8668_v9, %v8575_v36  ;;  %v3375_v36 = vadd.f32 %v8679_v16, %v8584_v25 }
 0x1c5   : > { %v6805_v12 = vpop.f32.mrf.mxu0 }
 0x1c6   : > { %v6757_v34 = vpop.f32.mrf.mxu1 }
 0x1c7   : > { %v3401_v3 = vadd.f32 %v6757_v34, %v8653_v60  ;;  %v8771_v61 = vpop.f32.mrf.mxu0  ;;  %v3372_v60 = vadd.f32 %v8674_v63, %v8578_v29  ;;  %v3378_v29 = vadd.f32 %v8685_v56, %v8587_v51  ;;  %v3781_v51 = vadd.f32 %v8681_v40, %v3375_v36 }
 0x1c8   : > { %v8769_v55 = vpop.f32.mrf.mxu1  ;;  %8974 = vst [vmem:[#allocation25_spill] sm:$0xff] %v8771_v61  ;;  %v3382_v36 = vadd.f32 %v8700_v24, %v8599_v35 }
 0x1c9   : > { %8973 = vst [vmem:[#allocation24_spill] sm:$0xff] %v8769_v55  ;;  %v8773_v19 = vadd.f32 %v6805_v12, %v3401_v3  ;;  %v8777_v41 = vpop.f32.mrf.mxu0  ;;  %v3780_v3 = vadd.f32 %v8670_v8, %v3374_v22  ;;  %v3784_v56 = vadd.f32 %v8687_v20, %v3378_v29 }
 0x1ca   : > { %v8775_v47 = vpop.f32.mrf.mxu1  ;;  %8977 = vst [vmem:[#allocation28_spill] sm:$0xff] %v8777_v41 }
 0x1cb   : > { %8975 = vst [vmem:[#allocation26_spill] sm:$0xff] %v8773_v19  ;;  %8976 = vst [vmem:[#allocation27_spill] sm:$0xff] %v8775_v47  ;;  %v8781_v42 = vpop.f32.mrf.mxu0 }
 0x1cc   : > { %v8779_v15 = vpop.f32.mrf.mxu1  ;;  %8979 = vst [vmem:[#allocation30_spill] sm:$0xff] %v8781_v42  ;;  %v3778_v42 = vadd.f32 %v8676_v54, %v3372_v60 }
 0x1cd   : > { %8978 = vst [vmem:[#allocation29_spill] sm:$0xff] %v8779_v15  ;;  %v6873_v34 = vpop.f32.mrf.mxu0 }
 0x1ce   : > { %v6825_v5 = vpop.f32.mrf.mxu1 }
 0x1cf   : > { %v4838_v12 = vpop.f32.mrf.mxu0  ;;  %v4373_v19 = vadd.f32 %v6825_v5, %v8665_v32 }
 0x1d0   : > { %v4244_v61 = vpop.f32.mrf.mxu1 }
 0x1d1   : > { %v4371_v41 = vadd.f32 %v4244_v61, %v8672_v14  ;;  %v6874_v15 = vpop.f32.mrf.mxu0  ;;  %v4967_v23 = vadd.f32 %v6873_v34, %v4373_v19  ;;  %v3376_v14 = vadd.f32 %v8689_v45, %v8590_v31 }
 0x1d2   : > { %v6826_v47 = vpop.f32.mrf.mxu1 }
 0x1d3   : > { %v4374_v55 = vadd.f32 %v6826_v47, %v3780_v3  ;;  %v4841_v63 = vpop.f32.mrf.mxu0  ;;  %v4965_v8 = vadd.f32 %v4838_v12, %v4371_v41  ;;  %v3782_v47 = vadd.f32 %v8691_v46, %v3376_v14  ;;  %v3379_v41 = vadd.f32 %v8694_v59, %v8596_v53 }
 0x1d4   : > { %v4247_v9 = vpop.f32.mrf.mxu1  ;;  %v5101_v12 = vmul.f32 %v4967_v23, %v4967_v23 }
 0x1d5   : > { %v4968_v22 = vadd.f32 %v6874_v15, %v4374_v55  ;;  %v4372_v32 = vadd.f32 %v4247_v9, %v3778_v42  ;;  %v6877_v25 = vpop.f32.mrf.mxu0  ;;  %v5099_v31 = vmul.f32 %v4965_v8, %v4965_v8 }
 0x1d6   : > { %v6829_v54 = vpop.f32.mrf.mxu1 }
 0x1d7   : > { %v6145_v16 = vpack.c.bf16 %v4968_v22, %v4967_v23  ;;  %v4966_v5 = vadd.f32 %v4841_v63, %v4372_v32  ;;  %v4377_v55 = vadd.f32 %v6829_v54, %v8683_v44  ;;  %v4854_v42 = vpop.f32.mrf.mxu0  ;;  %v5102_v29 = vmul.f32 %v4968_v22, %v4968_v22 }
 0x1d8   : > { %v4260_v15 = vpop.f32.mrf.mxu1  ;;  %v3785_v54 = vadd.f32 %v8696_v52, %v3379_v41  ;;  %v3383_v41 = vadd.f32 %v8709_v17, %v8608_v38 }
 0x1d9   : > { %6240 = vst [vmem:[%s8801_s7 + $0x8] sm:$0xff] %v6145_v16   ;;  %v5061_v45 = vadd.f32 %v4966_v5, %v4965_v8  ;;  %v5100_v61 = vmul.f32 %v4966_v5, %v4966_v5  ;;  %v6140_v19 = vpack.c.bf16 %v4966_v5, %v4965_v8  ;;  %v4375_v34 = vadd.f32 %v4260_v15, %v3781_v51  ;;  %v6878_v40 = vpop.f32.mrf.mxu0 }
 0x1da   : > { %v6830_v60 = vpop.f32.mrf.mxu1  ;;  %v4971_v9 = vadd.f32 %v6877_v25, %v4377_v55  ;;  %v3789_v17 = vadd.f32 %v8711_v13, %v3383_v41 }
 0x1db   : > { %v5062_v20 = vadd.f32 %v5061_v45, %v4967_v23  ;;  %v5131_v3 = vadd.f32 %v5100_v61, %v5099_v31  ;;  %6141 = vst [vmem:[%s8801_s7] sm:$0xff] %v6140_v19   ;;  %v4378_v44 = vadd.f32 %v6830_v60, %v3784_v56  ;;  %v4969_v63 = vadd.f32 %v4854_v42, %v4375_v34  ;;  %v4857_v32 = vpop.f32.mrf.mxu0 }
 0x1dc   : > { %v4263_v8 = vpop.f32.mrf.mxu1  ;;  %v3380_v23 = vadd.f32 %v8704_v49, %v8602_v4  ;;  %v3788_v42 = vadd.f32 %v8702_v39, %v3382_v36  ;;  %v3386_v34 = vadd.f32 %v8715_v0, %v8611_v30  ;;  %v5105_v60 = vmul.f32 %v4971_v9, %v4971_v9 }
 0x1dd   : > { %v5132_v46 = vadd.f32 %v5131_v3, %v5101_v12  ;;  %v5063_v14 = vadd.f32 %v5062_v20, %v4968_v22  ;;  %v4972_v53 = vadd.f32 %v6878_v40, %v4378_v44  ;;  %v4376_v59 = vadd.f32 %v4263_v8, %v3782_v47  ;;  %v6881_v5 = vpop.f32.mrf.mxu0 }
 0x1de   : > { %v6833_v16 = vpop.f32.mrf.mxu1  ;;  %v5103_v56 = vmul.f32 %v4969_v63, %v4969_v63  ;;  %v3786_v47 = vadd.f32 %v8706_v7, %v3380_v23  ;;  %v3384_v30 = vadd.f32 %v8719_v57, %v8614_v18 }
 0x1df   : > { %v5064_v51 = vadd.f32 %v5063_v14, %v4969_v63  ;;  %v5133_v35 = vadd.f32 %v5132_v46, %v5102_v29  ;;  %v6155_v24 = vpack.c.bf16 %v4972_v53, %v4971_v9  ;;  %v4970_v25 = vadd.f32 %v4857_v32, %v4376_v59  ;;  %v4870_v15 = vpop.f32.mrf.mxu0 }
 0x1e0   : > { %v4276_v55 = vpop.f32.mrf.mxu1  ;;  %v4381_v31 = vadd.f32 %v6833_v16, %v8698_v2  ;;  %v3792_v46 = vadd.f32 %v8717_v33, %v3386_v34  ;;  %v3790_v57 = vadd.f32 %v8721_v27, %v3384_v30  ;;  %v3387_v33 = vadd.f32 %v8724_v28, %v8620_v21 }
 0x1e1   : > { %v5134_v22 = vadd.f32 %v5133_v35, %v5103_v56  ;;  %6242 = vst [vmem:[%s8801_s7 + $0x18] sm:$0xff] %v6155_v24   ;;  %v4379_v52 = vadd.f32 %v4276_v55, %v3785_v54  ;;  %v5065_v45 = vadd.f32 %v5064_v51, %v4970_v25  ;;  %v5104_v61 = vmul.f32 %v4970_v25, %v4970_v25  ;;  %v6882_v19 = vpop.f32.mrf.mxu0 }
 0x1e2   : > { %v6150_v4 = vpack.c.bf16 %v4970_v25, %v4969_v63  ;;  %v6834_v49 = vpop.f32.mrf.mxu1  ;;  %v4975_v44 = vadd.f32 %v6881_v5, %v4381_v31  ;;  %v5106_v63 = vmul.f32 %v4972_v53, %v4972_v53  ;;  %v3390_v25 = vadd.f32 %v8730_v1, %v8623_v10 }
 0x1e3   : > { %v4382_v39 = vadd.f32 %v6834_v49, %v3788_v42  ;;  %v5066_v40 = vadd.f32 %v5065_v45, %v4971_v9  ;;  %v5135_v12 = vadd.f32 %v5134_v22, %v5104_v61  ;;  %v4973_v2 = vadd.f32 %v4870_v15, %v4379_v52  ;;  %v4873_v3 = vpop.f32.mrf.mxu0 }
 0x1e4   : > { %6241 = vst [vmem:[%s8801_s7 + $0x10] sm:$0xff] %v6150_v4   ;;  %v4279_v20 = vpop.f32.mrf.mxu1  ;;  %v5109_v15 = vmul.f32 %v4975_v44, %v4975_v44  ;;  %v3793_v28 = vadd.f32 %v8726_v50, %v3387_v33  ;;  %v3388_v10 = vadd.f32 %v8734_v26, %v8626_v58  ;;  %v3796_v34 = vadd.f32 %v8732_v37, %v3390_v25  ;;  %v8980_v26 = vld [vmem:[#allocation12_spill] sm:$0xff] }
 0x1e5   : > { %v4976_v36 = vadd.f32 %v6882_v19, %v4382_v39  ;;  %v4380_v29 = vadd.f32 %v4279_v20, %v3786_v47  ;;  %v5136_v7 = vadd.f32 %v5135_v12, %v5105_v60  ;;  %v5067_v8 = vadd.f32 %v5066_v40, %v4972_v53 }
 0x1e6   : > { %v5107_v59 = vmul.f32 %v4973_v2, %v4973_v2 }
 0x1e7   : > { %v6837_v32 = vpop.f32.mrf.mxu1  ;;  %v6885_v38 = vpop.f32.mrf.mxu0  ;;  %v6165_v0 = vpack.c.bf16 %v4976_v36, %v4975_v44  ;;  %v4974_v9 = vadd.f32 %v4873_v3, %v4380_v29  ;;  %v5068_v14 = vadd.f32 %v5067_v8, %v4973_v2  ;;  %v5137_v54 = vadd.f32 %v5136_v7, %v5106_v63  ;;  %v8981_v8 = vld [vmem:[#allocation3_spill] sm:$0xff] }
 0x1e8   : > { %v4385_v51 = vadd.f32 %v6837_v32, %v8713_v43  ;;  %v5110_v49 = vmul.f32 %v4976_v36, %v4976_v36  ;;  %v3794_v7 = vadd.f32 %v8980_v26, %v3388_v10  ;;  %v3391_v37 = vadd.f32 %v8739_v6, %v8981_v8  ;;  %v8982_v32 = vld [vmem:[#allocation4_spill] sm:$0xff]  ;;  %v8989_v10 = vld [vmem:[#allocation18_spill] sm:$0xff] }
 0x1e9   : > { %v4292_v23 = vpop.f32.mrf.mxu1  ;;  %v4886_v16 = vpop.f32.mrf.mxu0  ;;  %6244 = vst [vmem:[%s8801_s7 + $0x28] sm:$0xff] %v6165_v0   ;;  %v5108_v5 = vmul.f32 %v4974_v9, %v4974_v9  ;;  %v6160_v53 = vpack.c.bf16 %v4974_v9, %v4973_v2  ;;  %v5138_v13 = vadd.f32 %v5137_v54, %v5107_v59  ;;  %v5069_v35 = vadd.f32 %v5068_v14, %v4974_v9 }
 0x1ea   : > { %v4383_v56 = vadd.f32 %v4292_v23, %v3789_v17  ;;  %v4979_v45 = vadd.f32 %v6885_v38, %v4385_v51  ;;  %v8983_v38 = vld [vmem:[#allocation15_spill] sm:$0xff] }
 0x1eb   : > { %v6838_v24 = vpop.f32.mrf.mxu1  ;;  %v6886_v18 = vpop.f32.mrf.mxu0  ;;  %6243 = vst [vmem:[%s8801_s7 + $0x20] sm:$0xff] %v6160_v53   ;;  %v5070_v42 = vadd.f32 %v5069_v35, %v4975_v44  ;;  %v5139_v22 = vadd.f32 %v5138_v13, %v5108_v5  ;;  %v3394_v17 = vadd.f32 %v8983_v38, %v8982_v32  ;;  %v8984_v13 = vld [vmem:[#allocation13_spill] sm:$0xff]  ;;  %v8994_v38 = vld [vmem:[#allocation22_spill] sm:$0xff] }
 0x1ec   : > { %v4386_v55 = vadd.f32 %v6838_v24, %v3792_v46  ;;  %v4977_v31 = vadd.f32 %v4886_v16, %v4383_v56  ;;  %v5113_v0 = vmul.f32 %v4979_v45, %v4979_v45  ;;  %v3797_v35 = vadd.f32 %v8984_v13, %v3391_v37  ;;  %v8985_v24 = vld [vmem:[#allocation5_spill] sm:$0xff]  ;;  %v8992_v37 = vld [vmem:[#allocation19_spill] sm:$0xff] }
 0x1ed   : > { %v4295_v43 = vpop.f32.mrf.mxu1  ;;  %v4889_v52 = vpop.f32.mrf.mxu0  ;;  %v5140_v27 = vadd.f32 %v5139_v22, %v5109_v15  ;;  %v5071_v19 = vadd.f32 %v5070_v42, %v4976_v36 }
 0x1ee   : > { %v4980_v61 = vadd.f32 %v6886_v18, %v4386_v55  ;;  %v4384_v4 = vadd.f32 %v4295_v43, %v3790_v57  ;;  %v5111_v60 = vmul.f32 %v4977_v31, %v4977_v31  ;;  %v8986_v18 = vld [vmem:[#allocation17_spill] sm:$0xff]  ;;  %v8987_v55 = vld [vmem:[#allocation16_spill] sm:$0xff] }
 0x1ef   : > { %v6841_v47 = vpop.f32.mrf.mxu1  ;;  %v6889_v21 = vpop.f32.mrf.mxu0  ;;  %v5072_v39 = vadd.f32 %v5071_v19, %v4977_v31  ;;  %v5141_v40 = vadd.f32 %v5140_v27, %v5110_v49  ;;  %v3392_v57 = vadd.f32 %v8986_v18, %v8985_v24  ;;  %v3800_v15 = vadd.f32 %v8987_v55, %v3394_v17  ;;  %v8997_v18 = vld [vmem:[#allocation23_spill] sm:$0xff] }
 0x1f0   : > { %v6175_v1 = vpack.c.bf16 %v4980_v61, %v4979_v45  ;;  %v4978_v41 = vadd.f32 %v4889_v52, %v4384_v4  ;;  %v4389_v44 = vadd.f32 %v6841_v47, %v8728_v11  ;;  %v5114_v5 = vmul.f32 %v4980_v61, %v4980_v61  ;;  %v8988_v4 = vld [vmem:[#allocation14_spill] sm:$0xff] }
 0x1f1   : > { %v4308_v12 = vpop.f32.mrf.mxu1  ;;  %v4902_v2 = vpop.f32.mrf.mxu0  ;;  %v5142_v50 = vadd.f32 %v5141_v40, %v5111_v60 }
 0x1f2   : > { %6246 = vst [vmem:[%s8801_s7 + $0x38] sm:$0xff] %v6175_v1   ;;  %v5112_v20 = vmul.f32 %v4978_v41, %v4978_v41  ;;  %v6170_v3 = vpack.c.bf16 %v4978_v41, %v4977_v31  ;;  %v4387_v36 = vadd.f32 %v4308_v12, %v3793_v28  ;;  %v5073_v29 = vadd.f32 %v5072_v39, %v4978_v41  ;;  %v8990_v41 = vld [vmem:[#allocation6_spill] sm:$0xff]  ;;  %v8991_v39 = vld [vmem:[#allocation7_spill] sm:$0xff] }
 0x1f3   : > { %v6842_v63 = vpop.f32.mrf.mxu1  ;;  %v6890_v58 = vpop.f32.mrf.mxu0  ;;  %v4983_v54 = vadd.f32 %v6889_v21, %v4389_v44  ;;  %v3798_v1 = vadd.f32 %v8989_v10, %v3392_v57  ;;  %v3398_v60 = vadd.f32 %v8760_v48, %v8991_v39  ;;  %v8993_v48 = vld [vmem:[#allocation8_spill] sm:$0xff] }
 0x1f4   : > { %6245 = vst [vmem:[%s8801_s7 + $0x30] sm:$0xff] %v6170_v3   ;;  %v4390_v30 = vadd.f32 %v6842_v63, %v3796_v34  ;;  %v5074_v9 = vadd.f32 %v5073_v29, %v4979_v45  ;;  %v5143_v46 = vadd.f32 %v5142_v50, %v5112_v20  ;;  %v4981_v14 = vadd.f32 %v4902_v2, %v4387_v36 }
 0x1f5   : > { %v4311_v11 = vpop.f32.mrf.mxu1  ;;  %v4905_v59 = vpop.f32.mrf.mxu0  ;;  %v3395_v34 = vadd.f32 %v8754_v62, %v8990_v41  ;;  %v5117_v12 = vmul.f32 %v4983_v54, %v4983_v54  ;;  %v3396_v17 = vadd.f32 %v8994_v38, %v8993_v48 }
 0x1f6   : > { %v4984_v23 = vadd.f32 %v6890_v58, %v4390_v30  ;;  %v4388_v16 = vadd.f32 %v4311_v11, %v3794_v7  ;;  %v5144_v53 = vadd.f32 %v5143_v46, %v5113_v0  ;;  %v5075_v51 = vadd.f32 %v5074_v9, %v4980_v61  ;;  %v8995_v9 = vld [vmem:[#allocation21_spill] sm:$0xff] }
 0x1f7   : > { %v6845_v56 = vpop.f32.mrf.mxu1  ;;  %v6893_v6 = vpop.f32.mrf.mxu0  ;;  %v5115_v22 = vmul.f32 %v4981_v14, %v4981_v14  ;;  %v3801_v32 = vadd.f32 %v8992_v37, %v3395_v34  ;;  %v3804_v46 = vadd.f32 %v8995_v9, %v3398_v60  ;;  %v3802_v57 = vadd.f32 %v8997_v18, %v3396_v17  ;;  %v9002_v34 = vld [vmem:[#allocation25_spill] sm:$0xff]  ;;  %v9003_v60 = vld [vmem:[#allocation11_spill] sm:$0xff] }
 0x1f8   : > { %v6185_v33 = vpack.c.bf16 %v4984_v23, %v4983_v54  ;;  %v4982_v25 = vadd.f32 %v4905_v59, %v4388_v16  ;;  %v5076_v42 = vadd.f32 %v5075_v51, %v4981_v14  ;;  %v5145_v31 = vadd.f32 %v5144_v53, %v5114_v5  ;;  %v8996_v53 = vld [vmem:[#allocation20_spill] sm:$0xff] }
 0x1f9   : > { %v4324_v43 = vpop.f32.mrf.mxu1  ;;  %v4918_v52 = vpop.f32.mrf.mxu0  ;;  %v4393_v49 = vadd.f32 %v6845_v56, %v8988_v4  ;;  %v5118_v58 = vmul.f32 %v4984_v23, %v4984_v23 }
 0x1fa   : > { %6248 = vst [vmem:[%s8801_s7 + $0x48] sm:$0xff] %v6185_v33   ;;  %v5116_v45 = vmul.f32 %v4982_v25, %v4982_v25  ;;  %v6180_v61 = vpack.c.bf16 %v4982_v25, %v4981_v14  ;;  %v4391_v27 = vadd.f32 %v4324_v43, %v3797_v35  ;;  %v5146_v19 = vadd.f32 %v5145_v31, %v5115_v22  ;;  %v8998_v33 = vld [vmem:[#allocation9_spill] sm:$0xff] }
 0x1fb   : > { %v5077_v47 = vadd.f32 %v5076_v42, %v4982_v25  ;;  %v6846_v21 = vpop.f32.mrf.mxu1  ;;  %v6894_v28 = vpop.f32.mrf.mxu0  ;;  %v4987_v50 = vadd.f32 %v6893_v6, %v4393_v49  ;;  %v8999_v25 = vld [vmem:[#allocation24_spill] sm:$0xff]  ;;  %v9001_v42 = vld [vmem:[#allocation27_spill] sm:$0xff] }
 0x1fc   : > { %6247 = vst [vmem:[%s8801_s7 + $0x40] sm:$0xff] %v6180_v61   ;;  %v4394_v40 = vadd.f32 %v6846_v21, %v3800_v15  ;;  %v5147_v20 = vadd.f32 %v5146_v19, %v5116_v45  ;;  %v4985_v3 = vadd.f32 %v4918_v52, %v4391_v27  ;;  %v3399_v55 = vadd.f32 %v8999_v25, %v8998_v33  ;;  %v9000_v15 = vld [vmem:[#allocation10_spill] sm:$0xff] }
 0x1fd   : > { %v5078_v2 = vadd.f32 %v5077_v47, %v4983_v54  ;;  %v4327_v44 = vpop.f32.mrf.mxu1  ;;  %v4921_v36 = vpop.f32.mrf.mxu0  ;;  %v3402_v22 = vadd.f32 %v9001_v42, %v9000_v15  ;;  %v5121_v43 = vmul.f32 %v4987_v50, %v4987_v50 }
 0x1fe   : > { %v4988_v29 = vadd.f32 %v6894_v28, %v4394_v40  ;;  %v4392_v63 = vadd.f32 %v4327_v44, %v3798_v1  ;;  %v5148_v26 = vadd.f32 %v5147_v20, %v5117_v12  ;;  %v5119_v11 = vmul.f32 %v4985_v3, %v4985_v3  ;;  %v9004_v40 = vld [vmem:[#allocation29_spill] sm:$0xff] }
 0x1ff   : > { %v5079_v7 = vadd.f32 %v5078_v2, %v4984_v23  ;;  %v6849_v8 = vpop.f32.mrf.mxu1  ;;  %v6897_v62 = vpop.f32.mrf.mxu0  ;;  %v3805_v39 = vadd.f32 %v9002_v34, %v3399_v55  ;;  %v3400_v12 = vadd.f32 %v9004_v40, %v9003_v60 }
 0x200   : > { %v6195_v30 = vpack.c.bf16 %v4988_v29, %v4987_v50  ;;  %v4986_v0 = vadd.f32 %v4921_v36, %v4392_v63  ;;  %v5149_v59 = vadd.f32 %v5148_v26, %v5118_v58  ;;  %v4397_v51 = vadd.f32 %v6849_v8, %v8996_v53  ;;  %v9006_v8 = vld [vmem:[#allocation26_spill] sm:$0xff] }
 0x201   : > { %v5080_v14 = vadd.f32 %v5079_v7, %v4985_v3  ;;  %v4340_v54 = vpop.f32.mrf.mxu1  ;;  %v4934_v16 = vpop.f32.mrf.mxu0  ;;  %v5122_v21 = vmul.f32 %v4988_v29, %v4988_v29 }
 0x202   : > { %6250 = vst [vmem:[%s8801_s7 + $0x58] sm:$0xff] %v6195_v30   ;;  %v5120_v5 = vmul.f32 %v4986_v0, %v4986_v0  ;;  %v6190_v23 = vpack.c.bf16 %v4986_v0, %v4985_v3  ;;  %v4395_v56 = vadd.f32 %v4340_v54, %v3801_v32  ;;  %v5150_v6 = vadd.f32 %v5149_v59, %v5119_v11  ;;  %v9005_v3 = vld [vmem:[#allocation28_spill] sm:$0xff]  ;;  %v9007_v30 = vld [vmem:[#allocation30_spill] sm:$0xff] }
 0x203   : > { %v5081_v13 = vadd.f32 %v5080_v14, %v4986_v0  ;;  %v6850_v35 = vpop.f32.mrf.mxu1  ;;  %v6898_v24 = vpop.f32.mrf.mxu0  ;;  %v4991_v27 = vadd.f32 %v6897_v62, %v4397_v51  ;;  %v3808_v44 = vadd.f32 %v9005_v3, %v3402_v22  ;;  %v3806_v0 = vadd.f32 %v9007_v30, %v3400_v12 }
 0x204   : > { %6249 = vst [vmem:[%s8801_s7 + $0x50] sm:$0xff] %v6190_v23   ;;  %v4398_v31 = vadd.f32 %v6850_v35, %v3804_v46  ;;  %v5151_v45 = vadd.f32 %v5150_v6, %v5120_v5  ;;  %v4989_v61 = vadd.f32 %v4934_v16, %v4395_v56 }
 0x205   : > { %v5082_v52 = vadd.f32 %v5081_v13, %v4987_v50  ;;  %v4343_v4 = vpop.f32.mrf.mxu1  ;;  %v4937_v49 = vpop.f32.mrf.mxu0  ;;  %v5125_v46 = vmul.f32 %v4991_v27, %v4991_v27 }
 0x206   : > { %v4992_v19 = vadd.f32 %v6898_v24, %v4398_v31  ;;  %v4396_v47 = vadd.f32 %v4343_v4, %v3802_v57  ;;  %v5152_v28 = vadd.f32 %v5151_v45, %v5121_v43  ;;  %v5123_v50 = vmul.f32 %v4989_v61, %v4989_v61 }
 0x207   : > { %v5083_v10 = vadd.f32 %v5082_v52, %v4988_v29  ;;  %v6853_v1 = vpop.f32.mrf.mxu1  ;;  %v6901_v41 = vpop.f32.mrf.mxu0 }
 0x208   : > { %v6205_v2 = vpack.c.bf16 %v4992_v19, %v4991_v27  ;;  %v4990_v20 = vadd.f32 %v4937_v49, %v4396_v47  ;;  %v5153_v63 = vadd.f32 %v5152_v28, %v5122_v21  ;;  %v4401_v62 = vadd.f32 %v6853_v1, %v9006_v8 }
 0x209   : > { %v5084_v36 = vadd.f32 %v5083_v10, %v4989_v61  ;;  %v4356_v58 = vpop.f32.mrf.mxu1  ;;  %v4950_v26 = vpop.f32.mrf.mxu0  ;;  %v5126_v53 = vmul.f32 %v4992_v19, %v4992_v19 }
 0x20a   : > { %6252 = vst [vmem:[%s8801_s7 + $0x68] sm:$0xff] %v6205_v2   ;;  %v5124_v7 = vmul.f32 %v4990_v20, %v4990_v20  ;;  %v6200_v29 = vpack.c.bf16 %v4990_v20, %v4989_v61  ;;  %v4399_v37 = vadd.f32 %v4356_v58, %v3805_v39  ;;  %v5154_v32 = vadd.f32 %v5153_v63, %v5123_v50 }
 0x20b   : > { %v5085_v48 = vadd.f32 %v5084_v36, %v4990_v20  ;;  %v6854_v38 = vpop.f32.mrf.mxu1  ;;  %v6902_v17 = vpop.f32.mrf.mxu0  ;;  %v4995_v16 = vadd.f32 %v6901_v41, %v4401_v62 }
 0x20c   : > { %6251 = vst [vmem:[%s8801_s7 + $0x60] sm:$0xff] %v6200_v29   ;;  %v4402_v9 = vadd.f32 %v6854_v38, %v3808_v44  ;;  %v5155_v11 = vadd.f32 %v5154_v32, %v5124_v7  ;;  %v4993_v59 = vadd.f32 %v4950_v26, %v4399_v37 }
 0x20d   : > { %v5086_v14 = vadd.f32 %v5085_v48, %v4991_v27  ;;  %v4359_v54 = vpop.f32.mrf.mxu1  ;;  %v4953_v6 = vpop.f32.mrf.mxu0  ;;  %v5129_v42 = vmul.f32 %v4995_v16, %v4995_v16 }
 0x20e   : > { %v4996_v5 = vadd.f32 %v6902_v17, %v4402_v9  ;;  %v4400_v23 = vadd.f32 %v4359_v54, %v3806_v0  ;;  %v5156_v51 = vadd.f32 %v5155_v11, %v5125_v46  ;;  %v5127_v18 = vmul.f32 %v4993_v59, %v4993_v59 }
 0x20f   : > { %v5087_v56 = vadd.f32 %v5086_v14, %v4992_v19 }
 0x210   : > { %v6215_v13 = vpack.c.bf16 %v4996_v5, %v4995_v16  ;;  %v4994_v35 = vadd.f32 %v4953_v6, %v4400_v23  ;;  %v5157_v57 = vadd.f32 %v5156_v51, %v5126_v53  ;;  %v5130_v43 = vmul.f32 %v4996_v5, %v4996_v5 }
 0x211   : > { %v5088_v24 = vadd.f32 %v5087_v56, %v4993_v59 }
 0x212   : > { %6254 = vst [vmem:[%s8801_s7 + $0x78] sm:$0xff] %v6215_v13   ;;  %v5128_v33 = vmul.f32 %v4994_v35, %v4994_v35  ;;  %v6210_v25 = vpack.c.bf16 %v4994_v35, %v4993_v59  ;;  %v5158_v55 = vadd.f32 %v5157_v57, %v5127_v18 }
 0x213   : > { %v5089_v15 = vadd.f32 %v5088_v24, %v4994_v35 }
 0x214   : > { %6253 = vst [vmem:[%s8801_s7 + $0x70] sm:$0xff] %v6210_v25   ;;  %v5159_v31 = vadd.f32 %v5158_v55, %v5128_v33 }
 0x215   : > { %v5090_v22 = vadd.f32 %v5089_v15, %v4995_v16 }
 0x216   : > { %v5160_v45 = vadd.f32 %v5159_v31, %v5129_v42 }
 0x217   : > { %v5091_v52 = vadd.f32 %v5090_v22, %v4996_v5 }
 0x218   : > { %v5161_v4 = vadd.f32 %v5160_v45, %v5130_v43 }
 0x219   : > { %v5092_v61 = vrot.slane %v5091_v52, 4 }
 0x21a   : > { %v5162_v27 = vrot.slane %v5161_v4, 4 }
 0x21b   : > { %v5093_v49 = vadd.f32 %v5092_v61, %v5091_v52 }
 0x21c   : > { %v5163_v47 = vadd.f32 %v5162_v27, %v5161_v4 }
 0x21d   : > { %v5094_v19 = vrot.slane %v5093_v49, 2 }
 0x21e   : > { %v5164_v28 = vrot.slane %v5163_v47, 2 }
 0x21f   : > { %v5095_v21 = vadd.f32 %v5094_v19, %v5093_v49 }
 0x220   : > { %v5165_v1 = vadd.f32 %v5164_v28, %v5163_v47 }
 0x221   : > { %v5096_v10 = vrot.slane %v5095_v21, 1 }
 0x222   : > { %v5166_v34 = vrot.slane %v5165_v1, 1 }
 0x223   : > { %v5097_v41 = vadd.f32 %v5096_v10, %v5095_v21 }
 0x224   : > { %v5167_v39 = vadd.f32 %v5166_v34, %v5165_v1 }
 0x225   : > { %5098 = vst [vmem:[%s212_s11] sm:$0x1] %v5097_v41 }
 0x226   : > { %5168 = vst [vmem:[%s212_s11 + $0x1] sm:$0x1] %v5167_v39 }
 0x227 PF: > { %s14_s14 = sadd.s32 1, %s7086_s14   ;;  %s9008_s12 = smov %s7082_s13 }
 0x228   : > { %p11_p5 = scmp.ge.s32.totalorder %s14_s14, 4   ;;  %s9009_s13 = smov %s9011_s15 }
 0x22a   :  { %13 = sbr.rel (!%p11_p5) target bundleno = 2 (0x2), region = 81 }

// kernel: multilayer_forward.39
= control target key start
LH: loop header
LB: loop body
LE: loop exit
PB: predicated region body
PF: predicated region fallthrough
CT: control target
= control target key end

     0   :  { %s651_s12 = smov 0   ;;  %s653_s13 = smov 0   ;;  %s721_s0 = inlined_call_operand.vmem [shape: bf16[2,8,8,128], index: 0, kind: input, shape index: {}]   ;;  %s722_s1 = inlined_call_operand.vmem [shape: bf16[1,128,128], index: 1, kind: input, shape index: {}]   ;;  %s723_s2 = inlined_call_operand.vmem [shape: f32[1,128], index: 2, kind: input, shape index: {}]   ;;  %s724_s3 = inlined_call_operand.vmem [shape: f32[2,64,128], index: 3, kind: output, shape index: {}]  }
   0x1   :  { %s655_s14 = smov 0  }
   0x2 LB: > { %s25_s15 = sadd.s32 1, %s625_s13  ;;  %p497_p0 = scmp.ge.s32.totalorder %s629_s14, 1  ;;  %s629_s14 = sphi %s655_s14, %s13_s14   ;;  %s625_s13 = sphi %s653_s13, %s726_s13   ;;  %s621_s12 = sphi %s651_s12, %s725_s12  }
   0x3   : > { %p27_p1 = scmp.ge.s32.totalorder %s25_s15, 2  ;;  %p151_p2 = scmp.lt.s32.totalorder %s629_s14, 3 }
   0x5   : > { %s728_s15 = smov (%p27_p1, %s25_s15), 0  ;;  %p152_p3 = pnand %p497_p0, %p151_p2 }
   0x6   : > { %p179_p4 = scmp.lt.s32.totalorder (!%p152_p3), %s621_s12, 1 }
   0x7   : > { %155 = sbr.rel (%p152_p3) target bundleno = 247 (0xf7), region = 32 }
   0xc   : > { %v595_v0 = vld [vmem:[%s722_s1 + $0x38] sm:$0xff]   ;;  %v596_v1 = vld [vmem:[%s722_s1 + $0x30] sm:$0xff]   ;;  %s730_s12 = smov (!%p179_p4, %s621_s12), 1  ;;  %v597_v2 = vld [vmem:[%s722_s1 + $0x28] sm:$0xff]  }
   0xd   : > { %531 = vmatprep.subr.bf16.mxu0 %v595_v0  ;;  %555 = vmatprep.subr.bf16.mxu1 %v595_v0  ;;  %s517_s22 = sshll.u32 %s730_s12, 5  ;;  %v598_v3 = vld [vmem:[%s722_s1 + $0x20] sm:$0xff]   ;;  %v599_v6 = vld [vmem:[%s722_s1 + $0x18] sm:$0xff]   ;;  %v600_v7 = vld [vmem:[%s722_s1 + $0x10] sm:$0xff]   ;;  %s518_s9 = sshll.u32 %s730_s12, 6 }
   0xe   : > { %532 = vmatpush3.bf16.msra.mxu0 %v595_v0  ;;  %563 = vmatpush3.bf16.msra.mxu1 %v595_v0  ;;  %s684_s25 = scalar_lea.vmem %s721_s0, %s517_s22  ;;  %v601_v8 = vld [vmem:[%s722_s1 + $0x8] sm:$0xff]   ;;  %v602_v9 = vld [vmem:[%s722_s1] sm:$0xff]   ;;  %s192_s18 = scalar_lea.vmem %s724_s3, %s518_s9 }
   0xf   : > { %533 = vmatprep.subr.bf16.mxu0 %v596_v1  ;;  %556 = vmatprep.subr.bf16.mxu1 %v596_v1  ;;  %v603_v4 = vld [vmem:[%s684_s25] sm:$0xff]   ;;  %v604_v5 = vld [vmem:[%s684_s25 + $0x10] sm:$0xff]   ;;  %v605_v10 = vld [vmem:[%s684_s25 + $0x8] sm:$0xff]  }
  0x10   : > { %547 = vmatprep.mubr.bf16.mxu0 %v603_v4  ;;  %551 = vmatprep.mubr.bf16.mxu1 %v604_v5  ;;  %v606_v11 = vld [vmem:[%s684_s25 + $0x18] sm:$0xff]   ;;  %v514_v12 = vld [vmem:[%s723_s2] ss:$0 sm:$0xff] }
  0x12   : > { %534 = vmatpush3.bf16.msra.mxu0 %v596_v1  ;;  %564 = vmatpush3.bf16.msra.mxu1 %v596_v1 }
  0x13   : > { %535 = vmatprep.subr.bf16.mxu0 %v597_v2  ;;  %557 = vmatprep.subr.bf16.mxu1 %v597_v2 }
  0x16   : > { %536 = vmatpush3.bf16.msra.mxu0 %v597_v2  ;;  %565 = vmatpush3.bf16.msra.mxu1 %v597_v2 }
  0x17   : > { %537 = vmatprep.subr.bf16.mxu0 %v598_v3  ;;  %558 = vmatprep.subr.bf16.mxu1 %v598_v3 }
  0x1a   : > { %538 = vmatpush3.bf16.msra.mxu0 %v598_v3  ;;  %566 = vmatpush3.bf16.msra.mxu1 %v598_v3 }
  0x1b   : > { %539 = vmatprep.subr.bf16.mxu0 %v599_v6  ;;  %559 = vmatprep.subr.bf16.mxu1 %v599_v6 }
  0x1e   : > { %540 = vmatpush3.bf16.msra.mxu0 %v599_v6  ;;  %567 = vmatpush3.bf16.msra.mxu1 %v599_v6 }
  0x1f   : > { %541 = vmatprep.subr.bf16.mxu0 %v600_v7  ;;  %560 = vmatprep.subr.bf16.mxu1 %v600_v7 }
  0x22   : > { %542 = vmatpush3.bf16.msra.mxu0 %v600_v7  ;;  %568 = vmatpush3.bf16.msra.mxu1 %v600_v7 }
  0x23   : > { %543 = vmatprep.subr.bf16.mxu0 %v601_v8  ;;  %561 = vmatprep.subr.bf16.mxu1 %v601_v8 }
  0x26   : > { %544 = vmatpush3.bf16.msra.mxu0 %v601_v8  ;;  %569 = vmatpush3.bf16.msra.mxu1 %v601_v8 }
  0x27   : > { %545 = vmatprep.subr.bf16.mxu0 %v602_v9  ;;  %562 = vmatprep.subr.bf16.mxu1 %v602_v9 }
  0x2a   : > { %546 = vmatpush3.bf16.msra.mxu0 %v602_v9  ;;  %570 = vmatpush3.bf16.msra.mxu1 %v602_v9 }
  0x2d   : > { %548 = vmatmul.mubr.bf16.vlgmr.msra.gmra.mxu0 %v605_v10  ;;  %552 = vmatmul.mubr.bf16.vlgmr.msra.gmra.mxu1 %v606_v11 }
  0xed   : > { %v549_v13 = vpop.f32.mrf.mxu0  ;;  %v553_v14 = vpop.f32.mrf.mxu1 }
  0xee   : > { %v396_v15 = vadd.f32 %v549_v13, %v514_v12  ;;  %v400_v16 = vadd.f32 %v553_v14, %v514_v12 }
  0xef   : > { %v332_v17 = vpop.f32.mrf.mxu0  ;;  %v348_v18 = vpop.f32.mrf.mxu1 }
  0xf0   : > { %404 = vst [vmem:[%s192_s18 + $0x10] sm:$0xff] %v396_v15  ;;  %408 = vst [vmem:[%s192_s18 + $0x30] sm:$0xff] %v400_v16  ;;  %v394_v19 = vadd.f32 %v514_v12, %v332_v17  ;;  %v398_v20 = vadd.f32 %v514_v12, %v348_v18 }
  0xf1   : > { %v550_v21 = vpop.f32.mrf.mxu0  ;;  %v554_v22 = vpop.f32.mrf.mxu1 }
  0xf2   : > { %402 = vst [vmem:[%s192_s18] sm:$0xff] %v394_v19  ;;  %406 = vst [vmem:[%s192_s18 + $0x20] sm:$0xff] %v398_v20  ;;  %v397_v23 = vadd.f32 %v550_v21, %v514_v12  ;;  %v401_v24 = vadd.f32 %v554_v22, %v514_v12 }
  0xf3   : > { %v335_v25 = vpop.f32.mrf.mxu0  ;;  %v351_v26 = vpop.f32.mrf.mxu1 }
  0xf4   : > { %405 = vst [vmem:[%s192_s18 + $0x18] sm:$0xff] %v397_v23  ;;  %409 = vst [vmem:[%s192_s18 + $0x38] sm:$0xff] %v401_v24  ;;  %v395_v27 = vadd.f32 %v514_v12, %v335_v25  ;;  %v399_v28 = vadd.f32 %v514_v12, %v351_v26 }
  0xf6   : > { %403 = vst [vmem:[%s192_s18 + $0x8] sm:$0xff] %v395_v27  ;;  %407 = vst [vmem:[%s192_s18 + $0x28] sm:$0xff] %v399_v28 }
  0xf7 PF: > { %s13_s14 = sadd.s32 1, %s629_s14   ;;  %s725_s12 = smov %s625_s13 }
  0xf8   : > { %p10_p5 = scmp.ge.s32.totalorder %s13_s14, 4   ;;  %s726_s13 = smov %s728_s15 }
  0xfa   :  { %12 = sbr.rel (!%p10_p5) target bundleno = 2 (0x2), region = 63 }

// kernel: multilayer_forward.25
= control target key start
LH: loop header
LB: loop body
LE: loop exit
PB: predicated region body
PF: predicated region fallthrough
CT: control target
= control target key end

     0   :  { %s3237_s12 = smov 0   ;;  %s3239_s13 = smov 0   ;;  %s3652_s0 = inlined_call_operand.vmem [shape: bf16[2,10,10,128], index: 0, kind: input, shape index: {}]   ;;  %s3653_s1 = inlined_call_operand.vmem [shape: bf16[9,128,128], index: 1, kind: input, shape index: {}]   ;;  %s3654_s2 = inlined_call_operand.vmem [shape: bf16[2,64,128], index: 2, kind: output, shape index: {0}]   ;;  %s3655_s3 = inlined_call_operand.vmem [shape: f32[2,1,2,128], index: 3, kind: output, shape index: {1}]  }
   0x1   :  { %s3241_s14 = smov 0  }
   0x2 LB: > { %s26_s15 = sadd.s32 1, %s3211_s13  ;;  %p2405_p0 = scmp.ge.s32.totalorder %s3215_s14, 1  ;;  %s3215_s14 = sphi %s3241_s14, %s14_s14   ;;  %s3211_s13 = sphi %s3239_s13, %s3665_s13   ;;  %s3207_s12 = sphi %s3237_s12, %s3664_s12  }
   0x3   : > { %p28_p1 = scmp.ge.s32.totalorder %s26_s15, 2  ;;  %p156_p2 = scmp.lt.s32.totalorder %s3215_s14, 3 }
   0x5   : > { %s3667_s15 = smov (%p28_p1, %s26_s15), 0  ;;  %p157_p3 = pnand %p2405_p0, %p156_p2 }
   0x7   : > { %160 = sbr.rel (%p157_p3) target bundleno = 403 (0x193), region = 28 }
   0xc   : > { %v3109_v0 = vld [vmem:[%s3653_s1 + $0x38] sm:$0xff]   ;;  %v3111_v2 = vld [vmem:[%s3653_s1 + $0x30] sm:$0xff]   ;;  %p191_p4 = scmp.lt.s32.totalorder %s3207_s12, 1  ;;  %v3113_v4 = vld [vmem:[%s3653_s1 + $0x28] sm:$0xff]   ;;  %vm447_vm0 = vcmask 1046528   ;;  %vm686_vm1 = vcmask 1045504  }
   0xd   : > { %v3110_v1 = vld [vmem:[%s3653_s1 + $0x78] sm:$0xff]   ;;  %2852 = vmatprep.subr.bf16.mxu0 %v3109_v0  ;;  %v3112_v3 = vld [vmem:[%s3653_s1 + $0x70] sm:$0xff]   ;;  %v3114_v5 = vld [vmem:[%s3653_s1 + $0x68] sm:$0xff]  }
   0xe   : > { %2876 = vmatprep.subr.bf16.mxu1 %v3110_v1  ;;  %2853 = vmatpush3.bf16.msra.mxu0 %v3109_v0  ;;  %s3669_s12 = smov (!%p191_p4, %s3207_s12), 1  ;;  %v3115_v6 = vld [vmem:[%s3653_s1 + $0x20] sm:$0xff]   ;;  %v3117_v8 = vld [vmem:[%s3653_s1 + $0x18] sm:$0xff]   ;;  %v3119_v10 = vld [vmem:[%s3653_s1 + $0x10] sm:$0xff]  }
   0xf   : > { %2877 = vmatpush3.bf16.msra.mxu1 %v3110_v1  ;;  %2854 = vmatprep.subr.bf16.mxu0 %v3111_v2  ;;  %v3116_v7 = vld [vmem:[%s3653_s1 + $0x60] sm:$0xff]   ;;  %s3084_s5 = smul.u32 80, %s3669_s12  ;;  %v3118_v9 = vld [vmem:[%s3653_s1 + $0x58] sm:$0xff]   ;;  %v3120_v11 = vld [vmem:[%s3653_s1 + $0x50] sm:$0xff]   ;;  %s2712_s30 = sshll.u32 %s3669_s12, 5 }
  0x10   : > { %2878 = vmatprep.subr.bf16.mxu1 %v3112_v3  ;;  %v3121_v16 = vld [vmem:[%s3653_s1 + $0x8] sm:$0xff]   ;;  %v3123_v35 = vld [vmem:[%s3653_s1] sm:$0xff]   ;;  %v3127_v45 = vld [vmem:[%s3653_s1 + $0xb8] sm:$0xff]   ;;  %s204_s6 = scalar_lea.vmem %s3654_s2, %s2712_s30  ;;  %s2409_s7 = sshll.u32 %s3669_s12, 1 }
  0x11   : > { %s3294_s18 = scalar_lea.vmem %s3652_s0, %s3084_s5  ;;  %v3122_v28 = vld [vmem:[%s3653_s1 + $0x48] sm:$0xff]   ;;  %v3124_v41 = vld [vmem:[%s3653_s1 + $0x40] sm:$0xff]   ;;  %v3128_v46 = vld [vmem:[%s3653_s1 + $0xf8] sm:$0xff]   ;;  %s212_s10 = scalar_lea.vmem %s3655_s3, %s2409_s7 }
  0x12   : > { %2855 = vmatpush3.bf16.msra.mxu0 %v3111_v2  ;;  %v3125_v12 = vld [vmem:[%s3294_s18] ss:$8 sps:$4 sm:$0xff]   ;;  %v400_v14 = vld [vmem:[%s3294_s18 + $0x4] sm:$0x1]  ;;  %v402_v15 = vld [vmem:[%s3294_s18 + $0xc] sm:$0x1] }
  0x13   : > { %2879 = vmatpush3.bf16.msra.mxu1 %v3112_v3  ;;  %2856 = vmatprep.subr.bf16.mxu0 %v3113_v4  ;;  %v399_v13 = vld [vmem:[%s3294_s18] ss:$8 sps:$4 sm:$0xff]   ;;  %v416_v18 = vunpack.c.l.bf16 %v400_v14  ;;  %v418_v20 = vunpack.c.l.bf16 %v402_v15  ;;  %v403_v21 = vld [vmem:[%s3294_s18 + $0x10] ss:$8 sps:$4 sm:$0xff]   ;;  %v404_v22 = vld [vmem:[%s3294_s18 + $0x14] sm:$0x1] }
  0x14   : > { %2880 = vmatprep.subr.bf16.mxu1 %v3114_v5  ;;  %2868 = vmatprep.mubr.bf16.mxu0 %v3125_v12  ;;  %v415_v17 = vunpack.c.l.bf16 %v399_v13  ;;  %v417_v19 = vunpack.c.h.bf16 %v399_v13  ;;  %v406_v23 = vld [vmem:[%s3294_s18 + $0x1c] sm:$0x1]  ;;  %v419_v29 = vunpack.c.l.bf16 %v403_v21  ;;  %v420_v30 = vunpack.c.l.bf16 %v404_v22  ;;  %v3126_v42 = vld [vmem:[%s3294_s18 + $0x10] ss:$8 sps:$4 sm:$0xff]   ;;  %v407_v50 = vld [vmem:[%s3294_s18 + $0x20] ss:$8 sps:$4 sm:$0xff]  }
  0x15   : > { %v449_v25 = vrot.slane %v416_v18, 1  ;;  %v452_v27 = vrot.slane %v418_v20, 1  ;;  %v421_v31 = vunpack.c.h.bf16 %v403_v21  ;;  %v422_v32 = vunpack.c.l.bf16 %v406_v23  ;;  %v3129_v47 = vld [vmem:[%s3653_s1 + $0xb0] sm:$0xff]   ;;  %v408_v51 = vld [vmem:[%s3294_s18 + $0x24] sm:$0x1]  ;;  %v3131_v58 = vld [vmem:[%s3653_s1 + $0xa8] sm:$0xff]  }
  0x16   : > { %2857 = vmatpush3.bf16.msra.mxu0 %v3113_v4  ;;  %v448_v24 = vrot.slane %v415_v17, 1  ;;  %v451_v26 = vrot.slane %v417_v19, 1  ;;  %v454_v37 = vrot.slane %v419_v29, 1  ;;  %v455_v38 = vrot.slane %v420_v30, 1  ;;  %v3130_v49 = vld [vmem:[%s3653_s1 + $0xf0] sm:$0xff]   ;;  %v3132_v2 = vld [vmem:[%s3653_s1 + $0xe8] sm:$0xff]  }
  0x17   : > { %2881 = vmatpush3.bf16.msra.mxu1 %v3114_v5  ;;  %2858 = vmatprep.subr.bf16.mxu0 %v3115_v6  ;;  %v457_v39 = vrot.slane %v421_v31, 1  ;;  %v458_v40 = vrot.slane %v422_v32, 1  ;;  %v410_v52 = vld [vmem:[%s3294_s18 + $0x2c] sm:$0x1]  ;;  %v3137_v53 = vld [vmem:[%s3294_s18 + $0x20] ss:$8 sps:$4 sm:$0xff]   ;;  %v423_v54 = vunpack.c.l.bf16 %v407_v50  ;;  %v424_v55 = vunpack.c.l.bf16 %v408_v51 }
  0x18   : > { %2882 = vmatprep.subr.bf16.mxu1 %v3116_v7  ;;  %v450_v33 = vsel %vm447_vm0, %v448_v24, %v449_v25  ;;  %v453_v34 = vsel %vm447_vm0, %v451_v26, %v452_v27  ;;  %v456_v43 = vsel %vm447_vm0, %v454_v37, %v455_v38  ;;  %v425_v56 = vunpack.c.h.bf16 %v407_v50  ;;  %v411_v59 = vld [vmem:[%s3294_s18 + $0x30] ss:$8 sps:$4 sm:$0xff]   ;;  %v412_v60 = vld [vmem:[%s3294_s18 + $0x34] sm:$0x1]  ;;  %v414_v61 = vld [vmem:[%s3294_s18 + $0x3c] sm:$0x1] }
  0x19   : > { %v488_v36 = vpack.c.bf16 %v453_v34, %v450_v33  ;;  %v459_v44 = vsel %vm447_vm0, %v457_v39, %v458_v40  ;;  %v426_v57 = vunpack.c.l.bf16 %v410_v52  ;;  %v460_v62 = vrot.slane %v423_v54, 1  ;;  %v3133_v15 = vld [vmem:[%s3653_s1 + $0xa0] sm:$0xff]   ;;  %v640_v22 = vld [vmem:[%s3294_s18 + $0x8] sm:$0xe]  ;;  %v3135_v23 = vld [vmem:[%s3653_s1 + $0x98] sm:$0xff]  }
  0x1a   : > { %2859 = vmatpush3.bf16.msra.mxu0 %v3115_v6  ;;  %v489_v48 = vpack.c.bf16 %v459_v44, %v456_v43  ;;  %v461_v63 = vrot.slane %v424_v55, 1  ;;  %v463_v0 = vrot.slane %v425_v56, 1  ;;  %v427_v3 = vunpack.c.l.bf16 %v411_v59  ;;  %v3134_v17 = vld [vmem:[%s3653_s1 + $0xe0] sm:$0xff]   ;;  %v641_v24 = vld [vmem:[%s3294_s18 + $0xc] sm:$0x1]  ;;  %v3136_v32 = vld [vmem:[%s3653_s1 + $0xd8] sm:$0xff]  }
  0x1b   : > { %2883 = vmatpush3.bf16.msra.mxu1 %v3116_v7  ;;  %2860 = vmatprep.subr.bf16.mxu0 %v3117_v8  ;;  %v464_v1 = vrot.slane %v426_v57, 1  ;;  %v428_v4 = vunpack.c.l.bf16 %v412_v60  ;;  %v429_v5 = vunpack.c.h.bf16 %v411_v59  ;;  %v430_v6 = vunpack.c.l.bf16 %v414_v61  ;;  %v638_v20 = vld [vmem:[%s3294_s18] sm:$0xe]  ;;  %v639_v21 = vld [vmem:[%s3294_s18 + $0x4] sm:$0x1]  ;;  %v3139_v40 = vld [vmem:[%s3653_s1 + $0x90] sm:$0xff]  }
  0x1c   : > { %2884 = vmatprep.subr.bf16.mxu1 %v3118_v9  ;;  %2892 = vmatprep.mubr.bf16.mxu1 %v488_v36  ;;  %v462_v7 = vsel %vm447_vm0, %v460_v62, %v461_v63  ;;  %v654_v25 = vunpack.c.l.bf16 %v638_v20  ;;  %v655_v26 = vunpack.c.l.bf16 %v639_v21  ;;  %v656_v27 = vunpack.c.l.bf16 %v640_v22  ;;  %v643_v30 = vld [vmem:[%s3294_s18 + $0x14] sm:$0x1]  ;;  %v644_v31 = vld [vmem:[%s3294_s18 + $0x18] sm:$0xe]  ;;  %v645_v37 = vld [vmem:[%s3294_s18 + $0x1c] sm:$0x1] }
  0x1d   : > { %v467_v12 = vrot.slane %v428_v4, 1  ;;  %v469_v13 = vrot.slane %v429_v5, 1  ;;  %v470_v14 = vrot.slane %v430_v6, 1  ;;  %v657_v29 = vunpack.c.l.bf16 %v641_v24  ;;  %v3145_v38 = vld [vmem:[%s3294_s18 + $0x8] ss:$8 sps:$4 sm:$0xff]   ;;  %v3143_v60 = vld [vmem:[%s3653_s1 + $0x80] sm:$0xff]  }
  0x1e   : > { %2861 = vmatpush3.bf16.msra.mxu0 %v3117_v8  ;;  %v465_v8 = vsel %vm447_vm0, %v463_v0, %v464_v1  ;;  %v687_v33 = vrot.slane %v654_v25, 2  ;;  %v688_v34 = vrot.slane %v655_v26, 2  ;;  %v659_v43 = vunpack.c.l.bf16 %v643_v30  ;;  %v3140_v44 = vld [vmem:[%s3653_s1 + $0xd0] sm:$0xff]   ;;  %v647_v50 = vld [vmem:[%s3294_s18 + $0x24] sm:$0x1]  ;;  %v3142_v55 = vld [vmem:[%s3653_s1 + $0xc8] sm:$0xff]  }
  0x1f   : > { %2885 = vmatpush3.bf16.msra.mxu1 %v3118_v9  ;;  %2862 = vmatprep.subr.bf16.mxu0 %v3119_v10  ;;  %v3138_v9 = vld [vmem:[%s3294_s18 + $0x30] ss:$8 sps:$4 sm:$0xff]   ;;  %v471_v18 = vsel %vm447_vm0, %v469_v13, %v470_v14  ;;  %v691_v36 = vrot.slane %v657_v29, 2  ;;  %v649_v54 = vld [vmem:[%s3294_s18 + $0x2c] sm:$0x1]  ;;  %v663_v59 = vunpack.c.l.bf16 %v647_v50  ;;  %v3144_v63 = vld [vmem:[%s3653_s1 + $0xc0] sm:$0xff]  }
  0x20   : > { %2886 = vmatprep.subr.bf16.mxu1 %v3120_v11  ;;  %v689_v39 = vsel %vm686_vm1, %v687_v33, %v688_v34  ;;  %v694_v52 = vrot.slane %v659_v43, 2  ;;  %v665_v62 = vunpack.c.l.bf16 %v649_v54  ;;  %v650_v0 = vld [vmem:[%s3294_s18 + $0x30] sm:$0xe]  ;;  %v651_v1 = vld [vmem:[%s3294_s18 + $0x34] sm:$0x1]  ;;  %v3147_v13 = vld [vmem:[%s3653_s1 + $0x178] sm:$0xff]  }
  0x21   : > { %v3149_v24 = vld [vmem:[%s3653_s1 + $0x130] sm:$0xff]   ;;  %v3151_v30 = vld [vmem:[%s3653_s1 + $0x128] sm:$0xff]   ;;  %v3156_v43 = vld [vmem:[%s3653_s1 + $0x160] sm:$0xff]  }
  0x22   : > { %2863 = vmatpush3.bf16.msra.mxu0 %v3119_v10  ;;  %v490_v10 = vpack.c.bf16 %v465_v8, %v462_v7  ;;  %v700_v7 = vrot.slane %v663_v59, 2  ;;  %v3146_v8 = vld [vmem:[%s3653_s1 + $0x138] sm:$0xff]   ;;  %v3150_v25 = vld [vmem:[%s3653_s1 + $0x170] sm:$0xff]   ;;  %v2507_v33 = vld [vmem:[%s3294_s18 + $0xc] sm:$0x1] }
  0x23   : > { %2887 = vmatpush3.bf16.msra.mxu1 %v3120_v11  ;;  %2864 = vmatprep.subr.bf16.mxu0 %v3121_v16  ;;  %v466_v11 = vrot.slane %v427_v3, 1  ;;  %v653_v3 = vld [vmem:[%s3294_s18 + $0x3c] sm:$0x1]  ;;  %v2509_v34 = vld [vmem:[%s3294_s18 + $0x14] sm:$0x1] }
  0x24   : > { %2888 = vmatprep.subr.bf16.mxu1 %v3122_v28  ;;  %v2510_v50 = vld [vmem:[%s3294_s18 + $0x18] ss:$8 sps:$4 sm:$0xff]  }
  0x26   : > { %2865 = vmatpush3.bf16.msra.mxu0 %v3121_v16  ;;  %v468_v16 = vsel %vm447_vm0, %v466_v11, %v467_v12  ;;  %v666_v11 = vunpack.c.l.bf16 %v650_v0  ;;  %v667_v12 = vunpack.c.l.bf16 %v651_v1  ;;  %v2551_v0 = vld [vmem:[%s3294_s18 + $0x1c] sm:$0x1] }
  0x27   : > { %2889 = vmatpush3.bf16.msra.mxu1 %v3122_v28  ;;  %2866 = vmatprep.subr.bf16.mxu0 %v3123_v35  ;;  %v491_v19 = vpack.c.bf16 %v471_v18, %v468_v16  ;;  %v642_v28 = vld [vmem:[%s3294_s18 + $0x10] sm:$0xe]  ;;  %v3158_v1 = vld [vmem:[%s3653_s1 + $0x158] sm:$0xff]  }
  0x28   : > { %2890 = vmatprep.subr.bf16.mxu1 %v3124_v41  ;;  %v705_v20 = vrot.slane %v666_v11, 2  ;;  %v706_v21 = vrot.slane %v667_v12, 2 }
  0x2a   : > { %2867 = vmatpush3.bf16.msra.mxu0 %v3123_v35  ;;  %v690_v35 = vrot.slane %v656_v27, 2  ;;  %v3153_v27 = vld [vmem:[%s3294_s18 + $0x28] ss:$8 sps:$4 sm:$0xff]  }
  0x2b   : > { %2891 = vmatpush3.bf16.msra.mxu1 %v3124_v41  ;;  %2900 = vmatprep.subr.bf16.mxu0 %v3127_v45 }
  0x2c   : > { %2924 = vmatprep.subr.bf16.mxu1 %v3128_v46  ;;  %v692_v41 = vsel %vm686_vm1, %v690_v35, %v691_v36 }
  0x2d   : > { %2869 = vmatmul.mubr.bf16.vlgmr.msra.gmra.mxu0 %v3126_v42  ;;  %v658_v42 = vunpack.c.l.bf16 %v642_v28  ;;  %v707_v28 = vsel %vm686_vm1, %v705_v20, %v706_v21  ;;  %v2515_v20 = vld [vmem:[%s3294_s18 + $0x2c] sm:$0x1]  ;;  %v2517_v21 = vld [vmem:[%s3294_s18 + $0x34] sm:$0x1] }
  0x2e   : > { %2893 = vmatmul.mubr.bf16.vlgmr.msra.gmra.mxu1 %v489_v48  ;;  %2901 = vmatpush3.bf16.msra.mxu0 %v3127_v45  ;;  %v727_v45 = vpack.c.bf16 %v692_v41, %v689_v39  ;;  %v3141_v48 = vld [vmem:[%s3653_s1 + $0x88] sm:$0xff]   ;;  %v3155_v39 = vld [vmem:[%s3653_s1 + $0x120] sm:$0xff]   ;;  %v1074_v41 = vunpack.c.l.bf16 %v2509_v34 }
  0x2f   : > { %2925 = vmatpush3.bf16.msra.mxu1 %v3128_v46  ;;  %2902 = vmatprep.subr.bf16.mxu0 %v3129_v47  ;;  %v660_v46 = vunpack.c.l.bf16 %v644_v31  ;;  %v693_v51 = vrot.slane %v658_v42, 2  ;;  %v2506_v31 = vld [vmem:[%s3294_s18 + $0x8] ss:$8 sps:$4 sm:$0xff]  }
  0x30   : > { %2926 = vmatprep.subr.bf16.mxu1 %v3130_v49  ;;  %2872 = vmatprep.mubr.bf16.mxu0 %v3137_v53  ;;  %v648_v53 = vld [vmem:[%s3294_s18 + $0x28] sm:$0xe]  ;;  %v1071_v35 = vunpack.c.l.bf16 %v2506_v31  ;;  %v1073_v36 = vunpack.c.h.bf16 %v2506_v31 }
  0x31   : > { %2896 = vmatprep.mubr.bf16.mxu1 %v490_v10  ;;  %v696_v56 = vrot.slane %v660_v46, 2  ;;  %v664_v61 = vunpack.c.l.bf16 %v648_v53  ;;  %v695_v4 = vsel %vm686_vm1, %v693_v51, %v694_v52  ;;  %v703_v10 = vrot.slane %v665_v62, 2  ;;  %v2546_v42 = vld [vmem:[%s3294_s18 + $0x8] sm:$0xe]  ;;  %v2547_v46 = vld [vmem:[%s3294_s18 + $0xc] sm:$0x1] }
  0x32   : > { %2903 = vmatpush3.bf16.msra.mxu0 %v3129_v47  ;;  %v661_v47 = vunpack.c.l.bf16 %v645_v37  ;;  %v2549_v51 = vld [vmem:[%s3294_s18 + $0x14] sm:$0x1]  ;;  %v2511_v52 = vld [vmem:[%s3294_s18 + $0x1c] sm:$0x1]  ;;  %v1309_v53 = vunpack.c.l.bf16 %v2546_v42  ;;  %v1310_v54 = vunpack.c.l.bf16 %v2547_v46  ;;  %v2521_v46 = vld [vmem:[%s3294_s18 + $0x44] sm:$0x1] }
  0x33   : > { %2927 = vmatpush3.bf16.msra.mxu1 %v3130_v49  ;;  %2904 = vmatprep.subr.bf16.mxu0 %v3131_v58  ;;  %v646_v49 = vld [vmem:[%s3294_s18 + $0x20] sm:$0xe]  ;;  %v1312_v59 = vunpack.c.l.bf16 %v2549_v51  ;;  %v2557_v42 = vld [vmem:[%s3294_s18 + $0x34] sm:$0x1] }
  0x34   : > { %2928 = vmatprep.subr.bf16.mxu1 %v3132_v2  ;;  %v697_v57 = vrot.slane %v661_v47, 2  ;;  %v2548_v47 = vld [vmem:[%s3294_s18 + $0x10] sm:$0xe]  ;;  %v1341_v62 = vrot.slane %v1309_v53, 2  ;;  %v1320_v53 = vunpack.c.l.bf16 %v2557_v42 }
  0x35   : > { %2873 = vmatmul.mubr.bf16.gmra.mxu0 %v3138_v9  ;;  %v702_v9 = vrot.slane %v664_v61, 2 }
  0x36   : > { %2905 = vmatpush3.bf16.msra.mxu0 %v3131_v58  ;;  %2897 = vmatmul.mubr.bf16.gmra.mxu1 %v491_v19  ;;  %v662_v58 = vunpack.c.l.bf16 %v646_v49  ;;  %v698_v5 = vsel %vm686_vm1, %v696_v56, %v697_v57  ;;  %v1107_v49 = vrot.slane %v1074_v41, 1  ;;  %v2513_v57 = vld [vmem:[%s3294_s18 + $0x24] sm:$0x1]  ;;  %v2556_v41 = vld [vmem:[%s3294_s18 + $0x30] sm:$0xe] }
  0x37   : > { %2929 = vmatpush3.bf16.msra.mxu1 %v3132_v2  ;;  %2906 = vmatprep.subr.bf16.mxu0 %v3133_v15  ;;  %v652_v2 = vld [vmem:[%s3294_s18 + $0x38] sm:$0xe]  ;;  %v728_v16 = vpack.c.bf16 %v698_v5, %v695_v4  ;;  %v704_v19 = vsel %vm686_vm1, %v702_v9, %v703_v10  ;;  %v1345_v4 = vrot.slane %v1312_v59, 2  ;;  %v2552_v5 = vld [vmem:[%s3294_s18 + $0x20] sm:$0xe]  ;;  %v1078_v9 = vunpack.c.l.bf16 %v2513_v57 }
  0x38   : > { %2930 = vmatprep.subr.bf16.mxu1 %v3134_v17  ;;  %2940 = vmatprep.mubr.bf16.mxu1 %v3145_v38  ;;  %v699_v6 = vrot.slane %v662_v58, 2  ;;  %v668_v14 = vunpack.c.l.bf16 %v652_v2  ;;  %v3154_v38 = vld [vmem:[%s3294_s18 + $0x38] ss:$8 sps:$4 sm:$0xff]   ;;  %v1311_v58 = vunpack.c.l.bf16 %v2548_v47  ;;  %v1342_v2 = vrot.slane %v1310_v54, 2  ;;  %v2553_v10 = vld [vmem:[%s3294_s18 + $0x24] sm:$0x1] }
  0x39   : > { %2916 = vmatprep.mubr.bf16.mxu0 %v727_v45  ;;  %v1106_v45 = vrot.slane %v1073_v36, 1  ;;  %v1082_v36 = vunpack.c.l.bf16 %v2517_v21  ;;  %v2558_v54 = vld [vmem:[%s3294_s18 + $0x38] sm:$0xe] }
  0x3a   : > { %2907 = vmatpush3.bf16.msra.mxu0 %v3133_v15  ;;  %v669_v15 = vunpack.c.l.bf16 %v653_v3  ;;  %v701_v18 = vsel %vm686_vm1, %v699_v6, %v700_v7  ;;  %v708_v22 = vrot.slane %v668_v14, 2  ;;  %v1344_v3 = vrot.slane %v1311_v58, 2  ;;  %v2560_v58 = vld [vmem:[%s3294_s18 + $0x40] sm:$0xe] }
  0x3b   : > { %2931 = vmatpush3.bf16.msra.mxu1 %v3134_v17  ;;  %2908 = vmatprep.subr.bf16.mxu0 %v3135_v23  ;;  %v3148_v17 = vld [vmem:[%s3294_s18 + $0x18] ss:$8 sps:$4 sm:$0xff]   ;;  %v729_v26 = vpack.c.bf16 %v704_v19, %v701_v18  ;;  %v1108_v56 = vsel %vm447_vm0, %v1106_v45, %v1107_v49  ;;  %v1075_v6 = vunpack.c.l.bf16 %v2510_v50  ;;  %v1076_v7 = vunpack.c.l.bf16 %v2511_v52  ;;  %v2514_v18 = vld [vmem:[%s3294_s18 + $0x28] ss:$8 sps:$4 sm:$0xff]  }
  0x3c   : > { %2932 = vmatprep.subr.bf16.mxu1 %v3136_v32  ;;  %v1343_v11 = vsel %vm686_vm1, %v1341_v62, %v1342_v2  ;;  %v1346_v12 = vsel %vm686_vm1, %v1344_v3, %v1345_v4  ;;  %v1314_v14 = vunpack.c.l.bf16 %v2551_v0  ;;  %v3159_v19 = vld [vmem:[%s3653_s1 + $0x110] sm:$0xff]   ;;  %v1081_v31 = vunpack.c.h.bf16 %v2514_v18  ;;  %v3164_v49 = vld [vmem:[%s3653_s1 + $0x140] sm:$0xff]   ;;  %v3165_v0 = vld [vmem:[%s3653_s1 + $0x1b8] sm:$0xff]  }
  0x3d   : > { %v1119_v51 = vrot.slane %v1082_v36, 1  ;;  %v1319_v52 = vunpack.c.l.bf16 %v2556_v41  ;;  %v1086_v2 = vunpack.c.l.bf16 %v2521_v46  ;;  %v2623_v36 = vld [vmem:[%s3294_s18 + $0x14] sm:$0x1] }
  0x3e   : > { %2909 = vmatpush3.bf16.msra.mxu0 %v3135_v23  ;;  %v709_v23 = vrot.slane %v669_v15, 2  ;;  %v1381_v15 = vpack.c.bf16 %v1346_v12, %v1343_v11  ;;  %v1118_v45 = vrot.slane %v1081_v31, 1  ;;  %v1323_v12 = vunpack.c.l.bf16 %v2560_v58  ;;  %v2626_v58 = vld [vmem:[%s3294_s18 + $0x20] ss:$8 sps:$4 sm:$0xff]  }
  0x3f   : > { %2933 = vmatpush3.bf16.msra.mxu1 %v3136_v32  ;;  %2910 = vmatprep.subr.bf16.mxu0 %v3139_v40  ;;  %v3152_v32 = vld [vmem:[%s3653_s1 + $0x168] sm:$0xff]   ;;  %v1726_v41 = vunpack.c.l.bf16 %v2623_v36  ;;  %v2671_v36 = vld [vmem:[%s3294_s18 + $0x34] sm:$0x1] }
  0x40   : > { %2934 = vmatprep.subr.bf16.mxu1 %v3140_v44  ;;  %v710_v29 = vsel %vm686_vm1, %v708_v22, %v709_v23  ;;  %v3160_v22 = vld [vmem:[%s3653_s1 + $0x150] sm:$0xff]   ;;  %v1109_v23 = vrot.slane %v1075_v6, 1  ;;  %v1356_v6 = vrot.slane %v1319_v52, 2 }
  0x41   : > { %v730_v37 = vpack.c.bf16 %v710_v29, %v707_v28  ;;  %v1348_v29 = vrot.slane %v1314_v14, 2 }
  0x42   : > { %2911 = vmatpush3.bf16.msra.mxu0 %v3139_v40  ;;  %v1072_v40 = vunpack.c.l.bf16 %v2507_v33 }
  0x43   : > { %2935 = vmatpush3.bf16.msra.mxu1 %v3140_v44  ;;  %2912 = vmatprep.subr.bf16.mxu0 %v3141_v48  ;;  %v1103_v44 = vrot.slane %v1071_v35, 1  ;;  %v1080_v35 = vunpack.c.l.bf16 %v2515_v20  ;;  %v1125_v20 = vrot.slane %v1086_v2, 1  ;;  %v1731_v2 = vunpack.c.h.bf16 %v2626_v58 }
  0x44   : > { %2936 = vmatprep.subr.bf16.mxu1 %v3142_v55 }
  0x46   : > { %2913 = vmatpush3.bf16.msra.mxu0 %v3141_v48  ;;  %v1104_v48 = vrot.slane %v1072_v40, 1  ;;  %v2519_v40 = vld [vmem:[%s3294_s18 + $0x3c] sm:$0x1] }
  0x47   : > { %2937 = vmatpush3.bf16.msra.mxu1 %v3142_v55  ;;  %2914 = vmatprep.subr.bf16.mxu0 %v3143_v60  ;;  %v1084_v57 = vunpack.c.l.bf16 %v2519_v40  ;;  %v3170_v40 = vld [vmem:[%s3653_s1 + $0x1e8] sm:$0xff]  }
  0x48   : > { %2938 = vmatprep.subr.bf16.mxu1 %v3144_v63  ;;  %v1105_v55 = vsel %vm447_vm0, %v1103_v44, %v1104_v48 }
  0x49   : > { %v1143_v61 = vpack.c.bf16 %v1108_v56, %v1105_v55  ;;  %v2559_v55 = vld [vmem:[%s3294_s18 + $0x3c] sm:$0x1]  ;;  %v1122_v11 = vrot.slane %v1084_v57, 1  ;;  %v3175_v57 = vld [vmem:[%s3653_s1 + $0x190] sm:$0xff]  }
  0x4a   : > { %2915 = vmatpush3.bf16.msra.mxu0 %v3143_v60  ;;  %v3157_v60 = vld [vmem:[%s3653_s1 + $0x118] sm:$0xff]  }
  0x4b   : > { %2939 = vmatpush3.bf16.msra.mxu1 %v3144_v63  ;;  %2948 = vmatprep.subr.bf16.mxu0 %v3146_v8  ;;  %v2550_v63 = vld [vmem:[%s3294_s18 + $0x18] sm:$0xe] }
  0x4c   : > { %2972 = vmatprep.subr.bf16.mxu1 %v3147_v13 }
  0x4d   : > { %2917 = vmatmul.mubr.bf16.vlgmr.msra.gmra.mxu0 %v728_v16  ;;  %v1315_v16 = vunpack.c.l.bf16 %v2552_v5  ;;  %v3166_v5 = vld [vmem:[%s3653_s1 + $0x1f8] sm:$0xff]  }
  0x4e   : > { %2941 = vmatmul.mubr.bf16.vlgmr.msra.gmra.mxu1 %v3148_v17  ;;  %2949 = vmatpush3.bf16.msra.mxu0 %v3146_v8  ;;  %v1077_v8 = vunpack.c.h.bf16 %v2510_v50  ;;  %v1316_v17 = vunpack.c.l.bf16 %v2553_v10  ;;  %v1116_v50 = vrot.slane %v1080_v35, 1 }
  0x4f   : > { %2973 = vmatpush3.bf16.msra.mxu1 %v3147_v13  ;;  %2950 = vmatprep.subr.bf16.mxu0 %v3149_v24  ;;  %v1313_v13 = vunpack.c.l.bf16 %v2550_v63  ;;  %v1350_v33 = vrot.slane %v1315_v16, 2  ;;  %v2561_v63 = vld [vmem:[%s3294_s18 + $0x44] sm:$0x1]  ;;  %v3167_v16 = vld [vmem:[%s3653_s1 + $0x1b0] sm:$0xff]  }
  0x50   : > { %2974 = vmatprep.subr.bf16.mxu1 %v3150_v25  ;;  %2920 = vmatprep.mubr.bf16.mxu0 %v729_v26  ;;  %v1113_v26 = vrot.slane %v1078_v9, 1  ;;  %v1351_v34 = vrot.slane %v1316_v17, 2  ;;  %v1322_v9 = vunpack.c.l.bf16 %v2559_v55  ;;  %v3173_v55 = vld [vmem:[%s3653_s1 + $0x198] sm:$0xff]  }
  0x51   : > { %2944 = vmatprep.mubr.bf16.mxu1 %v3153_v27  ;;  %v3161_v27 = vld [vmem:[%s3653_s1 + $0x108] sm:$0xff]   ;;  %v1347_v28 = vrot.slane %v1313_v13, 2  ;;  %v1324_v13 = vunpack.c.l.bf16 %v2561_v63  ;;  %v2631_v63 = vld [vmem:[%s3294_s18 + $0x34] sm:$0x1] }
  0x52   : > { %2951 = vmatpush3.bf16.msra.mxu0 %v3149_v24  ;;  %v1110_v24 = vrot.slane %v1076_v7, 1  ;;  %v1352_v62 = vsel %vm686_vm1, %v1350_v33, %v1351_v34  ;;  %v1357_v7 = vrot.slane %v1320_v53, 2  ;;  %v2622_v33 = vld [vmem:[%s3294_s18 + $0x10] ss:$8 sps:$4 sm:$0xff]  }
  0x53   : > { %2975 = vmatpush3.bf16.msra.mxu1 %v3150_v25  ;;  %2952 = vmatprep.subr.bf16.mxu0 %v3151_v30  ;;  %v1112_v25 = vrot.slane %v1077_v8, 1  ;;  %v1321_v8 = vunpack.c.l.bf16 %v2558_v54 }
  0x54   : > { %2976 = vmatprep.subr.bf16.mxu1 %v3152_v32  ;;  %v1111_v59 = vsel %vm447_vm0, %v1109_v23, %v1110_v24  ;;  %v1360_v24 = vrot.slane %v1322_v9, 2 }
  0x55   : > { %2921 = vmatmul.mubr.bf16.gmra.mxu0 %v730_v37  ;;  %v2518_v37 = vld [vmem:[%s3294_s18 + $0x38] ss:$8 sps:$4 sm:$0xff]   ;;  %v1359_v23 = vrot.slane %v1321_v8, 2  ;;  %v1734_v8 = vunpack.c.l.bf16 %v2631_v63 }
  0x56   : > { %2953 = vmatpush3.bf16.msra.mxu0 %v3151_v30  ;;  %2945 = vmatmul.mubr.bf16.gmra.mxu1 %v3154_v38  ;;  %v1079_v30 = vunpack.c.l.bf16 %v2514_v18  ;;  %v2554_v38 = vld [vmem:[%s3294_s18 + $0x28] sm:$0xe]  ;;  %v1083_v56 = vunpack.c.l.bf16 %v2518_v37  ;;  %v1120_v18 = vsel %vm447_vm0, %v1118_v45, %v1119_v51  ;;  %v3181_v51 = vld [vmem:[%s3294_s18 + $0x10] ss:$8 sps:$4 sm:$0xff]  }
  0x57   : > { %2977 = vmatpush3.bf16.msra.mxu1 %v3152_v32  ;;  %2954 = vmatprep.subr.bf16.mxu0 %v3155_v39  ;;  %v3162_v32 = vld [vmem:[%s3653_s1 + $0x148] sm:$0xff]   ;;  %v1317_v47 = vunpack.c.l.bf16 %v2554_v38  ;;  %v1361_v34 = vsel %vm686_vm1, %v1359_v23, %v1360_v24  ;;  %v1725_v38 = vunpack.c.l.bf16 %v2622_v33  ;;  %v3183_v24 = vld [vmem:[%s3653_s1 + $0x238] sm:$0xff]  }
  0x58   : > { %2978 = vmatprep.subr.bf16.mxu1 %v3156_v43  ;;  %2964 = vmatprep.mubr.bf16.mxu0 %v1143_v61  ;;  %v1115_v44 = vrot.slane %v1079_v30, 1  ;;  %v1349_v61 = vsel %vm686_vm1, %v1347_v28, %v1348_v29  ;;  %v1121_v10 = vrot.slane %v1083_v56, 1  ;;  %v3174_v56 = vld [vmem:[%s3653_s1 + $0x1d8] sm:$0xff]   ;;  %v2637_v23 = vld [vmem:[%s3294_s18 + $0x4c] sm:$0x1] }
  0x59   : > { %2988 = vmatprep.mubr.bf16.mxu1 %v1381_v15  ;;  %v1353_v3 = vrot.slane %v1317_v47, 2  ;;  %v1382_v15 = vpack.c.bf16 %v1352_v62, %v1349_v61  ;;  %v1758_v47 = vrot.slane %v1726_v41, 1  ;;  %v2629_v61 = vld [vmem:[%s3294_s18 + $0x2c] sm:$0x1]  ;;  %v2630_v62 = vld [vmem:[%s3294_s18 + $0x30] ss:$8 sps:$4 sm:$0xff]  }
  0x5a   : > { %2955 = vmatpush3.bf16.msra.mxu0 %v3155_v39  ;;  %v2555_v39 = vld [vmem:[%s3294_s18 + $0x2c] sm:$0x1]  ;;  %v1117_v17 = vsel %vm447_vm0, %v1115_v44, %v1116_v50  ;;  %v1123_v30 = vsel %vm447_vm0, %v1121_v10, %v1122_v11  ;;  %v1757_v44 = vrot.slane %v1725_v38, 1  ;;  %v3172_v50 = vld [vmem:[%s3653_s1 + $0x1e0] sm:$0xff]   ;;  %v1735_v9 = vunpack.c.h.bf16 %v2630_v62  ;;  %v2673_v38 = vld [vmem:[%s3294_s18 + $0x3c] sm:$0x1] }
  0x5b   : > { %2979 = vmatpush3.bf16.msra.mxu1 %v3156_v43  ;;  %2956 = vmatprep.subr.bf16.mxu0 %v3157_v60  ;;  %v3163_v43 = vld [vmem:[%s3653_s1 + $0x100] sm:$0xff]   ;;  %v1318_v48 = vunpack.c.l.bf16 %v2555_v39  ;;  %v1145_v28 = vpack.c.bf16 %v1120_v18, %v1117_v17  ;;  %v1727_v39 = vunpack.c.h.bf16 %v2622_v33 }
  0x5c   : > { %2980 = vmatprep.subr.bf16.mxu1 %v3158_v1  ;;  %v1759_v52 = vsel %vm447_vm0, %v1757_v44, %v1758_v47  ;;  %v2634_v17 = vld [vmem:[%s3294_s18 + $0x40] ss:$8 sps:$4 sm:$0xff]   ;;  %v2635_v18 = vld [vmem:[%s3294_s18 + $0x44] sm:$0x1] }
  0x5d   : > { %v1354_v4 = vrot.slane %v1318_v48, 2  ;;  %v1760_v45 = vrot.slane %v1727_v39, 1  ;;  %v1738_v33 = vunpack.c.l.bf16 %v2635_v18  ;;  %v2668_v18 = vld [vmem:[%s3294_s18 + $0x28] sm:$0xe] }
  0x5e   : > { %2957 = vmatpush3.bf16.msra.mxu0 %v3157_v60  ;;  %v1114_v60 = vsel %vm447_vm0, %v1112_v25, %v1113_v26  ;;  %v1362_v25 = vrot.slane %v1323_v12, 2  ;;  %v1363_v26 = vrot.slane %v1324_v13, 2  ;;  %v1766_v13 = vrot.slane %v1731_v2, 1  ;;  %v3187_v2 = vld [vmem:[%s3653_s1 + $0x228] sm:$0xff]  }
  0x5f   : > { %2981 = vmatpush3.bf16.msra.mxu1 %v3158_v1  ;;  %2958 = vmatprep.subr.bf16.mxu0 %v3159_v19  ;;  %v1085_v1 = vunpack.c.h.bf16 %v2518_v37  ;;  %v1144_v14 = vpack.c.bf16 %v1114_v60, %v1111_v59  ;;  %v1355_v21 = vsel %vm686_vm1, %v1353_v3, %v1354_v4  ;;  %v2625_v37 = vld [vmem:[%s3294_s18 + $0x1c] sm:$0x1]  ;;  %v3176_v59 = vld [vmem:[%s3653_s1 + $0x1d0] sm:$0xff]   ;;  %v2627_v60 = vld [vmem:[%s3294_s18 + $0x24] sm:$0x1]  ;;  %v1732_v3 = vunpack.c.l.bf16 %v2629_v61 }
  0x60   : > { %2982 = vmatprep.subr.bf16.mxu1 %v3160_v22  ;;  %v1364_v35 = vsel %vm686_vm1, %v1362_v25, %v1363_v26  ;;  %v1728_v42 = vunpack.c.l.bf16 %v2625_v37  ;;  %v2633_v4 = vld [vmem:[%s3294_s18 + $0x3c] sm:$0x1]  ;;  %v2672_v37 = vld [vmem:[%s3294_s18 + $0x38] sm:$0xe] }
  0x61   : > { %v1384_v46 = vpack.c.bf16 %v1364_v35, %v1361_v34  ;;  %v1736_v10 = vunpack.c.l.bf16 %v2633_v4  ;;  %v1739_v34 = vunpack.c.h.bf16 %v2634_v17  ;;  %v1740_v35 = vunpack.c.l.bf16 %v2637_v23  ;;  %v2677_v23 = vld [vmem:[%s3294_s18 + $0x4c] sm:$0x1] }
  0x62   : > { %2959 = vmatpush3.bf16.msra.mxu0 %v3159_v19  ;;  %v1124_v19 = vrot.slane %v1085_v1, 1  ;;  %v1761_v48 = vrot.slane %v1728_v42, 1  ;;  %v1730_v1 = vunpack.c.l.bf16 %v2627_v60  ;;  %v3182_v42 = vld [vmem:[%s3294_s18 + $0x20] ss:$8 sps:$4 sm:$0xff]  }
  0x63   : > { %2983 = vmatpush3.bf16.msra.mxu1 %v3160_v22  ;;  %2960 = vmatprep.subr.bf16.mxu0 %v3161_v27  ;;  %v1358_v22 = vsel %vm686_vm1, %v1356_v6, %v1357_v7  ;;  %v3178_v6 = vld [vmem:[%s3653_s1 + $0x1c8] sm:$0xff]   ;;  %v1733_v7 = vunpack.c.l.bf16 %v2630_v62 }
  0x64   : > { %2984 = vmatprep.subr.bf16.mxu1 %v3162_v32  ;;  %v1383_v29 = vpack.c.bf16 %v1358_v22, %v1355_v21  ;;  %v1126_v31 = vsel %vm447_vm0, %v1124_v19, %v1125_v20  ;;  %v1762_v53 = vsel %vm447_vm0, %v1760_v45, %v1761_v48  ;;  %v1764_v12 = vrot.slane %v1730_v1, 1 }
  0x65   : > { %v1797_v54 = vpack.c.bf16 %v1762_v53, %v1759_v52  ;;  %v1769_v19 = vrot.slane %v1733_v7, 1  ;;  %v1770_v20 = vrot.slane %v1734_v8, 1  ;;  %v1772_v21 = vrot.slane %v1735_v9, 1 }
  0x66   : > { %2961 = vmatpush3.bf16.msra.mxu0 %v3161_v27  ;;  %v3168_v27 = vld [vmem:[%s3653_s1 + $0x1f0] sm:$0xff]   ;;  %v1773_v22 = vrot.slane %v1736_v10, 1  ;;  %v1972_v48 = vunpack.c.l.bf16 %v2671_v36  ;;  %v1776_v53 = vrot.slane %v1738_v33, 1 }
  0x67   : > { %2985 = vmatpush3.bf16.msra.mxu1 %v3162_v32  ;;  %2962 = vmatprep.subr.bf16.mxu0 %v3163_v43  ;;  %v3169_v32 = vld [vmem:[%s3653_s1 + $0x1a8] sm:$0xff]  }
  0x68   : > { %2986 = vmatprep.subr.bf16.mxu1 %v3164_v49  ;;  %v1774_v41 = vsel %vm447_vm0, %v1772_v21, %v1773_v22  ;;  %v2008_v63 = vrot.slane %v1972_v48, 2  ;;  %v2675_v21 = vld [vmem:[%s3294_s18 + $0x44] sm:$0x1]  ;;  %v2676_v22 = vld [vmem:[%s3294_s18 + $0x48] sm:$0xe] }
  0x6a   : > { %2963 = vmatpush3.bf16.msra.mxu0 %v3163_v43  ;;  %v1146_v43 = vpack.c.bf16 %v1126_v31, %v1123_v30  ;;  %v2665_v30 = vld [vmem:[%s3294_s18 + $0x1c] sm:$0x1]  ;;  %v2670_v31 = vld [vmem:[%s3294_s18 + $0x30] sm:$0xe] }
  0x6b   : > { %2987 = vmatpush3.bf16.msra.mxu1 %v3164_v49  ;;  %2996 = vmatprep.subr.bf16.mxu0 %v3165_v0  ;;  %v3171_v49 = vld [vmem:[%s3653_s1 + $0x1a0] sm:$0xff]   ;;  %v1971_v47 = vunpack.c.l.bf16 %v2670_v31  ;;  %v1977_v31 = vunpack.c.l.bf16 %v2676_v22 }
  0x6c   : > { %3020 = vmatprep.subr.bf16.mxu1 %v3166_v5 }
  0x6d   : > { %2965 = vmatmul.mubr.bf16.vlgmr.msra.gmra.mxu0 %v1144_v14  ;;  %v1767_v14 = vrot.slane %v1732_v3, 1  ;;  %v2007_v62 = vrot.slane %v1971_v47, 2 }
  0x6e   : > { %2989 = vmatmul.mubr.bf16.vlgmr.msra.gmra.mxu1 %v1382_v15  ;;  %2997 = vmatpush3.bf16.msra.mxu0 %v3165_v0  ;;  %v1729_v0 = vunpack.c.l.bf16 %v2626_v58  ;;  %v3179_v15 = vld [vmem:[%s3653_s1 + $0x180] sm:$0xff]  }
  0x6f   : > { %3021 = vmatpush3.bf16.msra.mxu1 %v3166_v5  ;;  %2998 = vmatprep.subr.bf16.mxu0 %v3167_v16  ;;  %v3177_v5 = vld [vmem:[%s3653_s1 + $0x188] sm:$0xff]   ;;  %v1768_v26 = vsel %vm447_vm0, %v1766_v13, %v1767_v14  ;;  %v2009_v9 = vsel %vm686_vm1, %v2007_v62, %v2008_v63  ;;  %v3189_v14 = vld [vmem:[%s3653_s1 + $0x218] sm:$0xff]  }
  0x70   : > { %3022 = vmatprep.subr.bf16.mxu1 %v3168_v27  ;;  %2968 = vmatprep.mubr.bf16.mxu0 %v1145_v28  ;;  %v1763_v11 = vrot.slane %v1729_v0, 1  ;;  %v2663_v28 = vld [vmem:[%s3294_s18 + $0x14] sm:$0x1] }
  0x71   : > { %2992 = vmatprep.mubr.bf16.mxu1 %v1383_v29  ;;  %v2664_v29 = vld [vmem:[%s3294_s18 + $0x18] sm:$0xe]  ;;  %v1964_v44 = vunpack.c.l.bf16 %v2663_v28  ;;  %v3191_v28 = vld [vmem:[%s3653_s1 + $0x208] sm:$0xff]  }
  0x72   : > { %2999 = vmatpush3.bf16.msra.mxu0 %v3167_v16  ;;  %v3180_v16 = vld [vmem:[%s3653_s1 + $0x1c0] sm:$0xff]   ;;  %v1765_v25 = vsel %vm447_vm0, %v1763_v11, %v1764_v12  ;;  %v1965_v45 = vunpack.c.l.bf16 %v2664_v29 }
  0x73   : > { %3023 = vmatpush3.bf16.msra.mxu1 %v3168_v27  ;;  %3000 = vmatprep.subr.bf16.mxu0 %v3169_v32  ;;  %v2662_v27 = vld [vmem:[%s3294_s18 + $0x10] sm:$0xe]  ;;  %v1798_v39 = vpack.c.bf16 %v1768_v26, %v1765_v25  ;;  %v3188_v11 = vld [vmem:[%s3653_s1 + $0x220] sm:$0xff]   ;;  %v1969_v26 = vunpack.c.l.bf16 %v2668_v18 }
  0x74   : > { %3024 = vmatprep.subr.bf16.mxu1 %v3170_v40  ;;  %v1998_v60 = vrot.slane %v1965_v45, 2 }
  0x75   : > { %2969 = vmatmul.mubr.bf16.gmra.mxu0 %v1146_v43  ;;  %v1963_v43 = vunpack.c.l.bf16 %v2662_v27 }
  0x76   : > { %3001 = vmatpush3.bf16.msra.mxu0 %v3169_v32  ;;  %2993 = vmatmul.mubr.bf16.gmra.mxu1 %v1384_v46  ;;  %v1737_v32 = vunpack.c.l.bf16 %v2634_v17  ;;  %v1966_v46 = vunpack.c.l.bf16 %v2665_v30  ;;  %v2667_v17 = vld [vmem:[%s3294_s18 + $0x24] sm:$0x1]  ;;  %v1976_v30 = vunpack.c.l.bf16 %v2675_v21 }
  0x77   : > { %3025 = vmatpush3.bf16.msra.mxu1 %v3170_v40  ;;  %3002 = vmatprep.subr.bf16.mxu0 %v3171_v49  ;;  %v1771_v40 = vsel %vm447_vm0, %v1769_v19, %v1770_v20  ;;  %v1995_v58 = vrot.slane %v1963_v43, 2  ;;  %v2669_v19 = vld [vmem:[%s3294_s18 + $0x2c] sm:$0x1]  ;;  %v2674_v20 = vld [vmem:[%s3294_s18 + $0x40] sm:$0xe]  ;;  %v1968_v25 = vunpack.c.l.bf16 %v2667_v17 }
  0x78   : > { %3026 = vmatprep.subr.bf16.mxu1 %v3172_v50  ;;  %3012 = vmatprep.mubr.bf16.mxu0 %v3181_v51  ;;  %v3184_v51 = vld [vmem:[%s3653_s1 + $0x230] sm:$0xff]   ;;  %v1775_v52 = vrot.slane %v1737_v32, 1  ;;  %v1999_v61 = vrot.slane %v1966_v46, 2  ;;  %v1970_v27 = vunpack.c.l.bf16 %v2669_v19  ;;  %v1975_v29 = vunpack.c.l.bf16 %v2674_v20 }
  0x79   : > { %3036 = vmatprep.mubr.bf16.mxu1 %v1797_v54  ;;  %v1778_v54 = vrot.slane %v1739_v34, 1  ;;  %v1978_v32 = vunpack.c.l.bf16 %v2677_v23  ;;  %v2002_v34 = vrot.slane %v1968_v25, 2 }
  0x7a   : > { %3003 = vmatpush3.bf16.msra.mxu0 %v3171_v49  ;;  %v1973_v49 = vunpack.c.l.bf16 %v2672_v37  ;;  %v1777_v3 = vsel %vm447_vm0, %v1775_v52, %v1776_v53  ;;  %v2000_v7 = vsel %vm686_vm1, %v1998_v60, %v1999_v61  ;;  %v2005_v36 = vrot.slane %v1970_v27, 2  ;;  %v3192_v37 = vld [vmem:[%s3653_s1 + $0x200] sm:$0xff]  }
  0x7b   : > { %3027 = vmatpush3.bf16.msra.mxu1 %v3172_v50  ;;  %3004 = vmatprep.subr.bf16.mxu0 %v3173_v55  ;;  %v1974_v50 = vunpack.c.l.bf16 %v2673_v38  ;;  %v2013_v38 = vrot.slane %v1975_v29, 2 }
  0x7c   : > { %3028 = vmatprep.subr.bf16.mxu1 %v3174_v56  ;;  %v2010_v0 = vrot.slane %v1973_v49, 2 }
  0x7d   : > { %v2011_v1 = vrot.slane %v1974_v50, 2 }
  0x7e   : > { %3005 = vmatpush3.bf16.msra.mxu0 %v3173_v55  ;;  %v1779_v55 = vrot.slane %v1740_v35, 1  ;;  %v2004_v35 = vrot.slane %v1969_v26, 2 }
  0x7f   : > { %3029 = vmatpush3.bf16.msra.mxu1 %v3174_v56  ;;  %3006 = vmatprep.subr.bf16.mxu0 %v3175_v57  ;;  %v3185_v56 = vld [vmem:[%s3294_s18 + $0x30] ss:$8 sps:$4 sm:$0xff]   ;;  %v2012_v10 = vsel %vm686_vm1, %v2010_v0, %v2011_v1 }
  0x80   : > { %3030 = vmatprep.subr.bf16.mxu1 %v3176_v59  ;;  %v1780_v4 = vsel %vm447_vm0, %v1778_v54, %v1779_v55  ;;  %v2037_v13 = vpack.c.bf16 %v2012_v10, %v2009_v9  ;;  %v2006_v43 = vsel %vm686_vm1, %v2004_v35, %v2005_v36 }
  0x81   : > { %v1800_v8 = vpack.c.bf16 %v1780_v4, %v1777_v3 }
  0x82   : > { %3007 = vmatpush3.bf16.msra.mxu0 %v3175_v57  ;;  %v1799_v57 = vpack.c.bf16 %v1774_v41, %v1771_v40  ;;  %v2016_v40 = vrot.slane %v1977_v31, 2  ;;  %v2017_v41 = vrot.slane %v1978_v32, 2 }
  0x83   : > { %3031 = vmatpush3.bf16.msra.mxu1 %v3176_v59  ;;  %3008 = vmatprep.subr.bf16.mxu0 %v3177_v5  ;;  %v1996_v59 = vrot.slane %v1964_v44, 2 }
  0x84   : > { %3032 = vmatprep.subr.bf16.mxu1 %v3178_v6  ;;  %v2018_v45 = vsel %vm686_vm1, %v2016_v40, %v2017_v41 }
  0x86   : > { %3009 = vmatpush3.bf16.msra.mxu0 %v3177_v5  ;;  %v3186_v5 = vld [vmem:[%s3294_s18 + $0x40] ss:$8 sps:$4 sm:$0xff]  }
  0x87   : > { %3033 = vmatpush3.bf16.msra.mxu1 %v3178_v6  ;;  %3010 = vmatprep.subr.bf16.mxu0 %v3179_v15  ;;  %v1997_v6 = vsel %vm686_vm1, %v1995_v58, %v1996_v59 }
  0x88   : > { %3034 = vmatprep.subr.bf16.mxu1 %v3180_v16  ;;  %v2035_v12 = vpack.c.bf16 %v2000_v7, %v1997_v6 }
  0x8a   : > { %3011 = vmatpush3.bf16.msra.mxu0 %v3179_v15  ;;  %v3190_v15 = vld [vmem:[%s3653_s1 + $0x210] sm:$0xff]  }
  0x8b   : > { %3035 = vmatpush3.bf16.msra.mxu1 %v3180_v16  ;;  %3044 = vmatprep.subr.bf16.mxu0 %v3183_v24  ;;  %v2666_v16 = vld [vmem:[%s3294_s18 + $0x20] sm:$0xe] }
  0x8c   : > { %3068 = vmatprep.subr.bf16.mxu1 %v3183_v24 }
  0x8d   : > { %3013 = vmatmul.mubr.bf16.vlgmr.msra.gmra.mxu0 %v3182_v42 }
  0x8e   : > { %3037 = vmatmul.mubr.bf16.vlgmr.msra.gmra.mxu1 %v1798_v39  ;;  %3045 = vmatpush3.bf16.msra.mxu0 %v3183_v24  ;;  %v2014_v39 = vrot.slane %v1976_v30, 2 }
  0x8f   : > { %3076 = vmatpush3.bf16.msra.mxu1 %v3183_v24  ;;  %3046 = vmatprep.subr.bf16.mxu0 %v3184_v51  ;;  %v1967_v24 = vunpack.c.l.bf16 %v2666_v16 }
  0x90   : > { %3069 = vmatprep.subr.bf16.mxu1 %v3184_v51  ;;  %3016 = vmatprep.mubr.bf16.mxu0 %v3185_v56  ;;  %v2015_v44 = vsel %vm686_vm1, %v2013_v38, %v2014_v39 }
  0x91   : > { %3040 = vmatprep.mubr.bf16.mxu1 %v1799_v57  ;;  %v2001_v33 = vrot.slane %v1967_v24, 2  ;;  %v2038_v47 = vpack.c.bf16 %v2018_v45, %v2015_v44 }
  0x92   : > { %3047 = vmatpush3.bf16.msra.mxu0 %v3184_v51 }
  0x93   : > { %3077 = vmatpush3.bf16.msra.mxu1 %v3184_v51  ;;  %3048 = vmatprep.subr.bf16.mxu0 %v3187_v2  ;;  %v2003_v42 = vsel %vm686_vm1, %v2001_v33, %v2002_v34 }
  0x94   : > { %3070 = vmatprep.subr.bf16.mxu1 %v3187_v2  ;;  %v2036_v46 = vpack.c.bf16 %v2006_v43, %v2003_v42 }
  0x95   : > { %3017 = vmatmul.mubr.bf16.gmra.mxu0 %v3186_v5 }
  0x96   : > { %3049 = vmatpush3.bf16.msra.mxu0 %v3187_v2  ;;  %3041 = vmatmul.mubr.bf16.gmra.mxu1 %v1800_v8 }
  0x97   : > { %3078 = vmatpush3.bf16.msra.mxu1 %v3187_v2  ;;  %3050 = vmatprep.subr.bf16.mxu0 %v3188_v11 }
  0x98   : > { %3071 = vmatprep.subr.bf16.mxu1 %v3188_v11  ;;  %3060 = vmatprep.mubr.bf16.mxu0 %v2035_v12 }
  0x99   : > { %3064 = vmatprep.mubr.bf16.mxu1 %v2037_v13 }
  0x9a   : > { %3051 = vmatpush3.bf16.msra.mxu0 %v3188_v11 }
  0x9b   : > { %3079 = vmatpush3.bf16.msra.mxu1 %v3188_v11  ;;  %3052 = vmatprep.subr.bf16.mxu0 %v3189_v14 }
  0x9c   : > { %3072 = vmatprep.subr.bf16.mxu1 %v3189_v14 }
  0x9e   : > { %3053 = vmatpush3.bf16.msra.mxu0 %v3189_v14 }
  0x9f   : > { %3080 = vmatpush3.bf16.msra.mxu1 %v3189_v14  ;;  %3054 = vmatprep.subr.bf16.mxu0 %v3190_v15 }
  0xa0   : > { %3073 = vmatprep.subr.bf16.mxu1 %v3190_v15 }
  0xa2   : > { %3055 = vmatpush3.bf16.msra.mxu0 %v3190_v15 }
  0xa3   : > { %3081 = vmatpush3.bf16.msra.mxu1 %v3190_v15  ;;  %3056 = vmatprep.subr.bf16.mxu0 %v3191_v28 }
  0xa4   : > { %3074 = vmatprep.subr.bf16.mxu1 %v3191_v28 }
  0xa6   : > { %3057 = vmatpush3.bf16.msra.mxu0 %v3191_v28 }
  0xa7   : > { %3082 = vmatpush3.bf16.msra.mxu1 %v3191_v28  ;;  %3058 = vmatprep.subr.bf16.mxu0 %v3192_v37 }
  0xa8   : > { %3075 = vmatprep.subr.bf16.mxu1 %v3192_v37 }
  0xaa   : > { %3059 = vmatpush3.bf16.msra.mxu0 %v3192_v37 }
  0xab   : > { %3083 = vmatpush3.bf16.msra.mxu1 %v3192_v37 }
  0xad   : > { %3061 = vmatmul.mubr.bf16.vlgmr.msra.gmra.mxu0 %v2036_v46 }
  0xae   : > { %3065 = vmatmul.mubr.bf16.vlgmr.msra.gmra.mxu1 %v2038_v47 }
  0xed   : > { %v2870_v48 = vpop.f32.mrf.mxu0 }
  0xee   : > { %v2894_v49 = vpop.f32.mrf.mxu1 }
  0xef   : > { %v352_v50 = vpop.f32.mrf.mxu0  ;;  %v624_v40 = vadd.f32 %v2894_v49, %v2870_v48 }
  0xf0   : > { %v591_v51 = vpop.f32.mrf.mxu1 }
  0xf1   : > { %v2871_v52 = vpop.f32.mrf.mxu0  ;;  %v622_v41 = vadd.f32 %v591_v51, %v352_v50 }
  0xf2   : > { %v2895_v53 = vpop.f32.mrf.mxu1 }
  0xf3   : > { %v355_v54 = vpop.f32.mrf.mxu0  ;;  %v625_v42 = vadd.f32 %v2895_v53, %v2871_v52 }
  0xf4   : > { %v594_v55 = vpop.f32.mrf.mxu1 }
  0xf5   : > { %v2874_v56 = vpop.f32.mrf.mxu0  ;;  %v623_v46 = vadd.f32 %v594_v55, %v355_v54 }
  0xf6   : > { %v2898_v57 = vpop.f32.mrf.mxu1 }
  0xf7   : > { %v368_v58 = vpop.f32.mrf.mxu0  ;;  %v628_v43 = vadd.f32 %v2898_v57, %v2874_v56 }
  0xf8   : > { %v607_v59 = vpop.f32.mrf.mxu1 }
  0xf9   : > { %v2875_v60 = vpop.f32.mrf.mxu0 }
  0xfa   : > { %v2899_v61 = vpop.f32.mrf.mxu1 }
  0xfb   : > { %v371_v62 = vpop.f32.mrf.mxu0  ;;  %v629_v44 = vadd.f32 %v2899_v61, %v2875_v60 }
  0xfc   : > { %v610_v63 = vpop.f32.mrf.mxu1 }
  0xfd   : > { %v627_v48 = vadd.f32 %v610_v63, %v371_v62 }
 0x10d   : > { %v2918_v0 = vpop.f32.mrf.mxu0 }
 0x10e   : > { %v2942_v1 = vpop.f32.mrf.mxu1  ;;  %v863_v47 = vadd.f32 %v2918_v0, %v624_v40 }
 0x10f   : > { %v830_v2 = vpop.f32.mrf.mxu0 }
 0x110   : > { %v1008_v3 = vpop.f32.mrf.mxu1  ;;  %v1041_v57 = vadd.f32 %v2942_v1, %v863_v47 }
 0x111   : > { %v2919_v4 = vpop.f32.mrf.mxu0 }
 0x112   : > { %v2943_v5 = vpop.f32.mrf.mxu1 }
 0x113   : > { %v833_v6 = vpop.f32.mrf.mxu0 }
 0x114   : > { %v1011_v7 = vpop.f32.mrf.mxu1  ;;  %v862_v51 = vadd.f32 %v833_v6, %v623_v46 }
 0x115   : > { %v2922_v8 = vpop.f32.mrf.mxu0 }
 0x116   : > { %v2946_v9 = vpop.f32.mrf.mxu1  ;;  %v867_v49 = vadd.f32 %v2922_v8, %v628_v43  ;;  %v1040_v40 = vadd.f32 %v1011_v7, %v862_v51 }
 0x117   : > { %v846_v10 = vpop.f32.mrf.mxu0 }
 0x118   : > { %v1024_v11 = vpop.f32.mrf.mxu1  ;;  %v1045_v55 = vadd.f32 %v2946_v9, %v867_v49 }
 0x119   : > { %v2923_v12 = vpop.f32.mrf.mxu0 }
 0x11a   : > { %v2947_v13 = vpop.f32.mrf.mxu1  ;;  %v868_v50 = vadd.f32 %v2923_v12, %v629_v44 }
 0x11b   : > { %v849_v14 = vpop.f32.mrf.mxu0 }
 0x11c   : > { %v1027_v15 = vpop.f32.mrf.mxu1  ;;  %v866_v53 = vadd.f32 %v849_v14, %v627_v48  ;;  %v1046_v0 = vadd.f32 %v2947_v13, %v868_v50 }
 0x12d   : > { %v2966_v16 = vpop.f32.mrf.mxu0 }
 0x12e   : > { %v2990_v17 = vpop.f32.mrf.mxu1 }
 0x12f   : > { %v1246_v18 = vpop.f32.mrf.mxu0 }
 0x130   : > { %v1484_v19 = vpop.f32.mrf.mxu1 }
 0x131   : > { %v2967_v20 = vpop.f32.mrf.mxu0 }
 0x132   : > { %v2991_v21 = vpop.f32.mrf.mxu1 }
 0x133   : > { %v1249_v22 = vpop.f32.mrf.mxu0 }
 0x134   : > { %v1487_v23 = vpop.f32.mrf.mxu1  ;;  %v1278_v8 = vadd.f32 %v1249_v22, %v1040_v40 }
 0x135   : > { %v2970_v24 = vpop.f32.mrf.mxu0 }
 0x136   : > { %v2994_v25 = vpop.f32.mrf.mxu1  ;;  %v1516_v13 = vadd.f32 %v1487_v23, %v1278_v8 }
 0x137   : > { %v1262_v26 = vpop.f32.mrf.mxu0 }
 0x138   : > { %v1500_v27 = vpop.f32.mrf.mxu1 }
 0x139   : > { %v2971_v28 = vpop.f32.mrf.mxu0 }
 0x13a   : > { %v2995_v29 = vpop.f32.mrf.mxu1  ;;  %v1284_v62 = vadd.f32 %v2971_v28, %v1046_v0 }
 0x13b   : > { %v1265_v30 = vpop.f32.mrf.mxu0 }
 0x13c   : > { %v1503_v31 = vpop.f32.mrf.mxu1 }
 0x14d   : > { %v3014_v32 = vpop.f32.mrf.mxu0 }
 0x14e   : > { %v3623_v33 = vpop.f32.mrf.mxu1 }
 0x14f   : > { %3656 = vst [vmem:[#allocation3_spill] sm:$0xff] %v3623_v33  ;;  %v1662_v34 = vpop.f32.mrf.mxu0  ;;  %v861_v33 = vadd.f32 %v830_v2, %v622_v41  ;;  %v1279_v2 = vadd.f32 %v2966_v16, %v1041_v57 }
 0x150   : > { %v3625_v35 = vpop.f32.mrf.mxu1 }
 0x151   : > { %3657 = vst [vmem:[#allocation4_spill] sm:$0xff] %v3625_v35  ;;  %v3015_v36 = vpop.f32.mrf.mxu0  ;;  %v864_v35 = vadd.f32 %v2919_v4, %v625_v42  ;;  %v1039_v60 = vadd.f32 %v1008_v3, %v861_v33  ;;  %v1517_v14 = vadd.f32 %v2990_v17, %v1279_v2  ;;  %v1522_v33 = vadd.f32 %v2995_v29, %v1284_v62 }
 0x152   : > { %v3627_v37 = vpop.f32.mrf.mxu1 }
 0x153   : > { %3658 = vst [vmem:[#allocation5_spill] sm:$0xff] %v3627_v37  ;;  %v1665_v38 = vpop.f32.mrf.mxu0  ;;  %v1042_v61 = vadd.f32 %v2943_v5, %v864_v35  ;;  %v1277_v41 = vadd.f32 %v1246_v18, %v1039_v60  ;;  %v1695_v7 = vadd.f32 %v3014_v32, %v1517_v14 }
 0x154   : > { %v3629_v39 = vpop.f32.mrf.mxu1  ;;  %v1694_v35 = vadd.f32 %v1665_v38, %v1516_v13 }
 0x155   : > { %3659 = vst [vmem:[#allocation6_spill] sm:$0xff] %v3629_v39  ;;  %v3018_v45 = vpop.f32.mrf.mxu0  ;;  %v626_v39 = vadd.f32 %v607_v59, %v368_v58  ;;  %v1280_v4 = vadd.f32 %v2967_v20, %v1042_v61  ;;  %v1044_v58 = vadd.f32 %v1027_v15, %v866_v53  ;;  %v1283_v59 = vadd.f32 %v2970_v24, %v1045_v55 }
 0x156   : > { %v3042_v37 = vpop.f32.mrf.mxu1  ;;  %v1515_v1 = vadd.f32 %v1484_v19, %v1277_v41 }
 0x157   : > { %v865_v52 = vadd.f32 %v846_v10, %v626_v39  ;;  %v1678_v56 = vpop.f32.mrf.mxu0  ;;  %v1282_v12 = vadd.f32 %v1265_v30, %v1044_v58  ;;  %v1518_v3 = vadd.f32 %v2991_v21, %v1280_v4  ;;  %v1521_v5 = vadd.f32 %v2994_v25, %v1283_v59  ;;  %v3660_v21 = vld [vmem:[#allocation3_spill] sm:$0xff] }
 0x158   : > { %v1916_v54 = vpop.f32.mrf.mxu1  ;;  %v1693_v16 = vadd.f32 %v1662_v34, %v1515_v1  ;;  %v1933_v25 = vadd.f32 %v3660_v21, %v1695_v7  ;;  %v3661_v29 = vld [vmem:[#allocation4_spill] sm:$0xff] }
 0x159   : > { %v1043_v42 = vadd.f32 %v1024_v11, %v865_v52  ;;  %v3019_v63 = vpop.f32.mrf.mxu0  ;;  %v1696_v18 = vadd.f32 %v3015_v36, %v1518_v3  ;;  %v1520_v20 = vadd.f32 %v1503_v31, %v1282_v12  ;;  %v1699_v24 = vadd.f32 %v3018_v45, %v1521_v5 }
 0x15a   : > { %v3043_v6 = vpop.f32.mrf.mxu1  ;;  %v1700_v28 = vadd.f32 %v3019_v63, %v1522_v33  ;;  %v1931_v39 = vadd.f32 %v3661_v29, %v1693_v16  ;;  %v3662_v23 = vld [vmem:[#allocation5_spill] sm:$0xff] }
 0x15b   : > { %v1281_v10 = vadd.f32 %v1262_v26, %v1043_v42  ;;  %v1681_v9 = vpop.f32.mrf.mxu0  ;;  %v1934_v32 = vadd.f32 %v3662_v23, %v1696_v18  ;;  %v1937_v36 = vadd.f32 %v3042_v37, %v1699_v24 }
 0x15c   : > { %v1919_v11 = vpop.f32.mrf.mxu1  ;;  %v1698_v17 = vadd.f32 %v1681_v9, %v1520_v20  ;;  %v1938_v43 = vadd.f32 %v3043_v6, %v1700_v28  ;;  %v3663_v31 = vld [vmem:[#allocation6_spill] sm:$0xff] }
 0x15d   : > { %v1519_v15 = vadd.f32 %v1500_v27, %v1281_v10  ;;  %v1932_v44 = vadd.f32 %v3663_v31, %v1694_v35 }
 0x15e   : > { %v1936_v49 = vadd.f32 %v1919_v11, %v1698_v17 }
 0x15f   : > { %v1697_v30 = vadd.f32 %v1678_v56, %v1519_v15 }
 0x161   : > { %v1935_v48 = vadd.f32 %v1916_v54, %v1697_v30 }
 0x16d   : > { %v3062_v22 = vpop.f32.mrf.mxu0 }
 0x16e   : > { %v3066_v26 = vpop.f32.mrf.mxu1  ;;  %v2171_v45 = vadd.f32 %v3062_v22, %v1933_v25 }
 0x16f   : > { %v2138_v19 = vpop.f32.mrf.mxu0  ;;  %v2175_v50 = vadd.f32 %v3066_v26, %v1937_v36 }
 0x170   : > { %v2154_v34 = vpop.f32.mrf.mxu1  ;;  %v2169_v46 = vadd.f32 %v2138_v19, %v1931_v39  ;;  %v2209_v41 = vmul.f32 %v2171_v45, %v2171_v45 }
 0x171   : > { %v3063_v27 = vpop.f32.mrf.mxu0  ;;  %v2173_v57 = vadd.f32 %v2154_v34, %v1935_v48  ;;  %v2213_v1 = vmul.f32 %v2175_v50, %v2175_v50 }
 0x172   : > { %v2172_v38 = vadd.f32 %v3063_v27, %v1934_v32  ;;  %v3067_v47 = vpop.f32.mrf.mxu1  ;;  %v2207_v55 = vmul.f32 %v2169_v46, %v2169_v46 }
 0x173   : > { %v2176_v51 = vadd.f32 %v3067_v47, %v1938_v43  ;;  %v2141_v52 = vpop.f32.mrf.mxu0  ;;  %v2211_v63 = vmul.f32 %v2173_v57, %v2173_v57 }
 0x174   : > { %v2729_v53 = vpack.c.bf16 %v2172_v38, %v2171_v45  ;;  %v2170_v56 = vadd.f32 %v2141_v52, %v1932_v44  ;;  %v2157_v37 = vpop.f32.mrf.mxu1  ;;  %v2210_v58 = vmul.f32 %v2172_v38, %v2172_v38 }
 0x175   : > { %v2739_v60 = vpack.c.bf16 %v2176_v51, %v2175_v50  ;;  %v2174_v61 = vadd.f32 %v2157_v37, %v1936_v49  ;;  %v2214_v33 = vmul.f32 %v2176_v51, %v2176_v51 }
 0x176   : > { %2741 = vst [vmem:[%s204_s6 + $0x8] sm:$0xff] %v2729_v53   ;;  %v2193_v0 = vadd.f32 %v2170_v56, %v2169_v46  ;;  %v2208_v40 = vmul.f32 %v2170_v56, %v2170_v56  ;;  %v2724_v2 = vpack.c.bf16 %v2170_v56, %v2169_v46 }
 0x177   : > { %2743 = vst [vmem:[%s204_s6 + $0x18] sm:$0xff] %v2739_v60   ;;  %v2734_v54 = vpack.c.bf16 %v2174_v61, %v2173_v57  ;;  %v2212_v12 = vmul.f32 %v2174_v61, %v2174_v61 }
 0x178   : > { %v2194_v4 = vadd.f32 %v2193_v0, %v2171_v45  ;;  %v2215_v42 = vadd.f32 %v2208_v40, %v2207_v55  ;;  %2725 = vst [vmem:[%s204_s6] sm:$0xff] %v2724_v2  }
 0x179   : > { %2742 = vst [vmem:[%s204_s6 + $0x10] sm:$0xff] %v2734_v54  }
 0x17a   : > { %v2216_v59 = vadd.f32 %v2215_v42, %v2209_v41  ;;  %v2195_v62 = vadd.f32 %v2194_v4, %v2172_v38 }
 0x17c   : > { %v2196_v8 = vadd.f32 %v2195_v62, %v2173_v57  ;;  %v2217_v6 = vadd.f32 %v2216_v59, %v2210_v58 }
 0x17e   : > { %v2197_v10 = vadd.f32 %v2196_v8, %v2174_v61  ;;  %v2218_v14 = vadd.f32 %v2217_v6, %v2211_v63 }
 0x180   : > { %v2198_v3 = vadd.f32 %v2197_v10, %v2175_v50  ;;  %v2219_v5 = vadd.f32 %v2218_v14, %v2212_v12 }
 0x182   : > { %v2199_v9 = vadd.f32 %v2198_v3, %v2176_v51  ;;  %v2220_v13 = vadd.f32 %v2219_v5, %v2213_v1 }
 0x184   : > { %v2200_v7 = vrot.slane %v2199_v9, 4  ;;  %v2221_v16 = vadd.f32 %v2220_v13, %v2214_v33 }
 0x186   : > { %v2201_v18 = vadd.f32 %v2200_v7, %v2199_v9  ;;  %v2222_v11 = vrot.slane %v2221_v16, 4 }
 0x188   : > { %v2202_v15 = vrot.slane %v2201_v18, 2  ;;  %v2223_v20 = vadd.f32 %v2222_v11, %v2221_v16 }
 0x18a   : > { %v2203_v24 = vadd.f32 %v2202_v15, %v2201_v18  ;;  %v2224_v28 = vrot.slane %v2223_v20, 2 }
 0x18c   : > { %v2204_v22 = vrot.slane %v2203_v24, 1  ;;  %v2225_v35 = vadd.f32 %v2224_v28, %v2223_v20 }
 0x18e   : > { %v2205_v26 = vadd.f32 %v2204_v22, %v2203_v24  ;;  %v2226_v30 = vrot.slane %v2225_v35, 1 }
 0x190   : > { %2206 = vst [vmem:[%s212_s10] sm:$0x1] %v2205_v26  ;;  %v2227_v17 = vadd.f32 %v2226_v30, %v2225_v35 }
 0x192   : > { %2228 = vst [vmem:[%s212_s10 + $0x1] sm:$0x1] %v2227_v17 }
 0x193 PF: > { %s14_s14 = sadd.s32 1, %s3215_s14   ;;  %s3664_s12 = smov %s3211_s13 }
 0x194   : > { %p11_p5 = scmp.ge.s32.totalorder %s14_s14, 4   ;;  %s3665_s13 = smov %s3667_s15 }
 0x196   :  { %13 = sbr.rel (!%p11_p5) target bundleno = 2 (0x2), region = 81 }

</bundles_post_ra>
